<compile_context>
chip_gen: v5e
topology: v5e:2x2
jax: 0.10.0
libtpu: 0.0.40
codegen_flags: <defaults>
</compile_context>

<pallas_src>
import functools

import jax
import jax.numpy as jnp
from jax.experimental import pallas as pl
from jax.experimental.pallas import tpu as pltpu

# ------------------------------ synthetic cfg --------------------------------
DF_DIM = 16          # cfg.GAN.DF_DIM (small)
EF_DIM = 16          # cfg.TEXT.Theta1_DIMENSION
B_CONDITION = False  # cfg.GAN.B_CONDITION
BN_EPS = 1e-5
LEAK = 0.2
_TM_CAP = 4096       # max lane (spatial) tile width per grid step


# ------------------------------ Pallas kernel --------------------------------
def _mm_bn_act_kernel(w_ref, x_ref, s_ref, b_ref, o_ref, *, act):
    """Fused (Cout,K) @ (K,M) -> per-channel affine -> activation (lane-dense)."""
    y = jnp.dot(w_ref[...], x_ref[...], preferred_element_type=jnp.float32)
    y = y * s_ref[...] + b_ref[...]          # (Cout, 1) broadcasts along lanes
    if act == "lrelu":
        y = jnp.where(y > 0, y, LEAK * y)
    elif act == "sigmoid":
        y = jax.nn.sigmoid(y)
    o_ref[...] = y.astype(o_ref.dtype)


def _pick_m_tile(m, cap=_TM_CAP):
    """Largest multiple-of-128 divisor of m (<= cap, leaving >=2 grid steps)."""
    if m <= 256 or m % 256 != 0:
        return m
    best = m
    tm = 128
    limit = min(cap, m // 2)
    while tm <= limit:
        if m % tm == 0:
            best = tm
        tm += 128
    return best


def _pick_co_tile(cout, grid_m):
    """Split channels in two when M has a single grid step so both v7x
    TensorCores get work (no-op perf-wise on 1-TC v5e/v6e)."""
    if grid_m >= 2:
        return cout
    half = cout // 2
    if cout % 2 == 0 and half >= 8 and half % 8 == 0:
        return half
    return cout


def mm_bn_act(w, x, scale, bias, act="lrelu", out_dtype=jnp.bfloat16):
    """w: (Cout, K), x: (K, M), scale/bias: (Cout,).  Returns (Cout, M)."""
    w = w.astype(jnp.bfloat16)
    x = x.astype(jnp.bfloat16)
    cout, k = w.shape
    k2, m = x.shape
    assert k == k2, (k, k2)

    tm = _pick_m_tile(m)
    grid_m = m // tm
    tco = _pick_co_tile(cout, grid_m)
    grid_co = cout // tco

    s2 = scale.reshape(cout, 1).astype(jnp.float32)
    b2 = bias.reshape(cout, 1).astype(jnp.float32)

    kern = functools.partial(_mm_bn_act_kernel, act=act)
    return pl.pallas_call(
        kern,
        out_shape=jax.ShapeDtypeStruct((cout, m), out_dtype),
        grid_spec=pltpu.PrefetchScalarGridSpec(
            num_scalar_prefetch=0,
            grid=(grid_co, grid_m),
            in_specs=[
                pl.BlockSpec((tco, k), lambda i, j: (i, 0)),
                pl.BlockSpec((k, tm), lambda i, j: (0, j)),
                pl.BlockSpec((tco, 1), lambda i, j: (i, 0)),
                pl.BlockSpec((tco, 1), lambda i, j: (i, 0)),
            ],
            out_specs=pl.BlockSpec((tco, tm), lambda i, j: (i, j)),
        ),
        compiler_params=pltpu.CompilerParams(
            dimension_semantics=("parallel", "parallel"),
        ),
    )(w, x, s2, b2)


# ------------------------------ XLA glue --------------------------------------
def im2col(x, kh, kw, stride, pad):
    """x: (C, B, H, W) -> patches (C*kh*kw, B*Ho*Wo), channel-major K order."""
    c, b, h, w = x.shape
    xp = jnp.pad(x, ((0, 0), (0, 0), (pad, pad), (pad, pad)))
    ho = (h + 2 * pad - kh) // stride + 1
    wo = (w + 2 * pad - kw) // stride + 1
    taps = [
        xp[:, :, dy:dy + stride * (ho - 1) + 1:stride,
              dx:dx + stride * (wo - 1) + 1:stride]
        for dy in range(kh) for dx in range(kw)
    ]
    cols = jnp.stack(taps, axis=1)                       # (C, kh*kw, B, Ho, Wo)
    return cols.reshape(c * kh * kw, b * ho * wo), ho, wo


def conv_bn_act(x, w_mat, scale, bias, *, k, stride, pad, act="lrelu"):
    """x: (Cin, B, H, W); w_mat: (Cout, Cin*k*k) -> (Cout, B, Ho, Wo) bf16."""
    b = x.shape[1]
    cols, ho, wo = im2col(x, k, k, stride, pad)
    out = mm_bn_act(w_mat, cols, scale, bias, act=act)
    return out.reshape(-1, b, ho, wo)


def conv_logits(x, w_mat, bias_vec):
    """Conv2d(C, 1, kernel_size=4, stride=4, bias=True) -> Sigmoid -> view(-1)."""
    cols, _, _ = im2col(x, 4, 4, stride=4, pad=0)
    out = mm_bn_act(w_mat, cols, jnp.ones((1,), jnp.float32), bias_vec,
                    act="sigmoid", out_dtype=jnp.float32)      # (1, B*Ho*Wo)
    return out.reshape(-1)


# ------------------------------ parameters ------------------------------------
def _conv_w(key, cin, cout, k, std=0.05):
    # PyTorch conv weight (Cout, Cin, k, k) -> (Cout, Cin*k*k) matmul matrix
    w = std * jax.random.normal(key, (cout, cin, k, k), jnp.float32)
    return w.reshape(cout, cin * k * k)


def _bn_params(key, c):
    k1, k2, k3, k4 = jax.random.split(key, 4)
    gamma = 1.0 + 0.1 * jax.random.normal(k1, (c,), jnp.float32)
    beta = 0.1 * jax.random.normal(k2, (c,), jnp.float32)
    mean = 0.1 * jax.random.normal(k3, (c,), jnp.float32)
    var = 1.0 + 0.1 * jax.random.uniform(k4, (c,), jnp.float32)
    scale = gamma / jnp.sqrt(var + BN_EPS)
    bias = beta - mean * scale
    return scale, bias


def _identity_affine(c):
    return jnp.ones((c,), jnp.float32), jnp.zeros((c,), jnp.float32)


def init_params(key):
    keys = iter(jax.random.split(key, 32))
    ndf = DF_DIM
    p = {}
    # encode_image_by_16times(ndf): 128 -> 64 -> 32 -> 16 -> 8
    p["c1_w"] = _conv_w(next(keys), 3, ndf, 4)                   # conv, no BN
    p["c2_w"] = _conv_w(next(keys), ndf, ndf * 2, 4)
    p["c2_bn"] = _bn_params(next(keys), ndf * 2)
    p["c3_w"] = _conv_w(next(keys), ndf * 2, ndf * 4, 4)
    p["c3_bn"] = _bn_params(next(keys), ndf * 4)
    p["c4_w"] = _conv_w(next(keys), ndf * 4, ndf * 8, 4)
    p["c4_bn"] = _bn_params(next(keys), ndf * 8)
    # img_code_s32: downBlock(ndf*8, ndf*16): 8 -> 4
    p["s32_w"] = _conv_w(next(keys), ndf * 8, ndf * 16, 4)
    p["s32_bn"] = _bn_params(next(keys), ndf * 16)
    # img_code_s32_1: Block3x3_leakRelu(ndf*16, ndf*8)
    p["s32_1_w"] = _conv_w(next(keys), ndf * 16, ndf * 8, 3)
    p["s32_1_bn"] = _bn_params(next(keys), ndf * 8)
    # logits: Conv2d(ndf*8, 1, kernel=4, stride=4, bias=True) + Sigmoid
    p["logit_w"] = _conv_w(next(keys), ndf * 8, 1, 4)
    p["logit_b"] = 0.01 * jax.random.normal(next(keys), (1,), jnp.float32)
    if B_CONDITION:
        p["joint_w"] = _conv_w(next(keys), ndf * 8 + EF_DIM, ndf * 8, 3)
        p["joint_bn"] = _bn_params(next(keys), ndf * 8)
        p["ulogit_w"] = _conv_w(next(keys), ndf * 8, 1, 4)
        p["ulogit_b"] = 0.01 * jax.random.normal(next(keys), (1,), jnp.float32)
    return p


# ------------------------------ forward ----------------------------------------
def d_net128_forward(p, x_var, c_code=None):
    """x_var: (B, 3, 128, 128) NCHW, like the PyTorch reference."""
    ndf = DF_DIM
    # channel-major (C, B, H, W) bf16 working layout
    x = jnp.transpose(x_var, (1, 0, 2, 3)).astype(jnp.bfloat16)

    # img_code_s16 = encode_image_by_16times(ndf)
    x = conv_bn_act(x, p["c1_w"], *_identity_affine(ndf), k=4, stride=2, pad=1)
    x = conv_bn_act(x, p["c2_w"], *p["c2_bn"], k=4, stride=2, pad=1)
    x = conv_bn_act(x, p["c3_w"], *p["c3_bn"], k=4, stride=2, pad=1)
    x = conv_bn_act(x, p["c4_w"], *p["c4_bn"], k=4, stride=2, pad=1)
    # img_code_s32 / img_code_s32_1
    x = conv_bn_act(x, p["s32_w"], *p["s32_bn"], k=4, stride=2, pad=1)
    x_code = conv_bn_act(x, p["s32_1_w"], *p["s32_1_bn"], k=3, stride=1, pad=1)

    if B_CONDITION and c_code is not None:
        _, b, h, w = x_code.shape
        c = jnp.broadcast_to(c_code.T[:, :, None, None],
                             (EF_DIM, b, h, w)).astype(x_code.dtype)
        h_c_code = jnp.concatenate([c, x_code], axis=0)     # cat along channels
        h_c_code = conv_bn_act(h_c_code, p["joint_w"], *p["joint_bn"],
                               k=3, stride=1, pad=1)
    else:
        h_c_code = x_code

    output = conv_logits(h_c_code, p["logit_w"], p["logit_b"])
    if B_CONDITION:
        out_uncond = conv_logits(x_code, p["ulogit_w"], p["ulogit_b"])
        return [output, out_uncond]
    return [output]


# ------------------------------ main -------------------------------------------
if __name__ == "__main__":
    key = jax.random.PRNGKey(0)
    k_params, k_in = jax.random.split(key)
    params = init_params(k_params)

    batch = 2
    # D_NET128 architecturally requires 128x128 inputs (16x encode -> 8 -> 4 -> 4x4 logits conv)
    x_var = jax.random.normal(k_in, (batch, 3, 128, 128), jnp.float32)

    fwd = jax.jit(functools.partial(d_net128_forward, params))
    outs = fwd(x_var)
    for o in outs:
        jax.block_until_ready(o)

    assert len(outs) == (2 if B_CONDITION else 1)
    for o in outs:
        assert o.shape == (batch,), o.shape
        assert bool(jnp.all(jnp.isfinite(o)))
        assert bool(jnp.all((o >= 0.0) & (o <= 1.0)))   # post-sigmoid range
    print("KERNEL_OK")
</pallas_src>

<mosaic_0001>
module attributes {stable_mosaic.version = 11 : i64} {
  func.func @_mm_bn_act_kernel(%arg0: i32, %arg1: i32, %arg2: memref<16x48xbf16, #tpu.memory_space<vmem>>, %arg3: memref<48x4096xbf16, #tpu.memory_space<vmem>>, %arg4: memref<16x1xf32, #tpu.memory_space<vmem>>, %arg5: memref<16x1xf32, #tpu.memory_space<vmem>>, %arg6: memref<16x4096xbf16, #tpu.memory_space<vmem>>) attributes {dimension_semantics = [#tpu.dimension_semantics<parallel>, #tpu.dimension_semantics<parallel>], iteration_bounds = array<i64: 1, 2>, scalar_prefetch = 0 : i64, scratch_operands = 0 : i64, tpu.core_type = #tpu.core_type<tc>, window_params = [{transform_indices = @transform_0, window_bounds = array<i64: 16, 48>}, {transform_indices = @transform_1, window_bounds = array<i64: 48, 4096>}, {transform_indices = @transform_2, window_bounds = array<i64: 16, 1>}, {transform_indices = @transform_3, window_bounds = array<i64: 16, 1>}, {transform_indices = @transform_4, window_bounds = array<i64: 16, 4096>}]} {
    %c0 = arith.constant 0 : index
    %c0_0 = arith.constant 0 : index
    %0 = vector.load %arg2[%c0, %c0_0] : memref<16x48xbf16, #tpu.memory_space<vmem>>, vector<16x48xbf16>
    %c0_1 = arith.constant 0 : index
    %c0_2 = arith.constant 0 : index
    %1 = vector.load %arg3[%c0_1, %c0_2] : memref<48x4096xbf16, #tpu.memory_space<vmem>>, vector<48x4096xbf16>
    %cst = arith.constant dense<0.000000e+00> : vector<16x4096xf32>
    %2 = tpu.matmul %0, %1, %cst {dimension_numbers = #tpu.dot_dimension_numbers<[1], [0], [0], [1], [0, 0, 1, 1], [], []>} : vector<16x48xbf16>, vector<48x4096xbf16>, vector<16x4096xf32> -> vector<16x4096xf32>
    %c0_3 = arith.constant 0 : index
    %c0_4 = arith.constant 0 : index
    %3 = vector.load %arg4[%c0_3, %c0_4] : memref<16x1xf32, #tpu.memory_space<vmem>>, vector<16x1xf32>
    %4 = vector.broadcast %3 : vector<16x1xf32> to vector<16x4096xf32>
    %5 = arith.mulf %2, %4 : vector<16x4096xf32>
    %c0_5 = arith.constant 0 : index
    %c0_6 = arith.constant 0 : index
    %6 = vector.load %arg5[%c0_5, %c0_6] : memref<16x1xf32, #tpu.memory_space<vmem>>, vector<16x1xf32>
    %7 = vector.broadcast %6 : vector<16x1xf32> to vector<16x4096xf32>
    %8 = arith.addf %5, %7 : vector<16x4096xf32>
    %cst_7 = arith.constant 0.000000e+00 : f32
    %9 = vector.broadcast %cst_7 : f32 to vector<16x4096xf32>
    %10 = arith.cmpf ogt, %8, %9 : vector<16x4096xf32>
    %cst_8 = arith.constant 2.000000e-01 : f32
    %11 = vector.broadcast %cst_8 : f32 to vector<16x4096xf32>
    %12 = arith.mulf %11, %8 : vector<16x4096xf32>
    %13 = arith.select %10, %8, %12 : vector<16x4096xi1>, vector<16x4096xf32>
    %14 = arith.truncf %13 : vector<16x4096xf32> to vector<16x4096xbf16>
    %c0_9 = arith.constant 0 : index
    %c0_10 = arith.constant 0 : index
    %15 = vector.load %arg6[%c0_9, %c0_10] : memref<16x4096xbf16, #tpu.memory_space<vmem>>, vector<16x4096xbf16>
    tpu.vector_store %arg6[%c0_9, %c0_10], %14 {strides = array<i32>} : memref<16x4096xbf16, #tpu.memory_space<vmem>>, vector<16x4096xbf16>,
    return
  }
  func.func @transform_0(%arg0: i32, %arg1: i32) -> (i32, i32) {
    %c0_i32 = arith.constant 0 : i32
    %c0_i32_0 = arith.constant 0 : i32
    return %arg0, %c0_i32 : i32, i32
  }
  func.func @transform_1(%arg0: i32, %arg1: i32) -> (i32, i32) {
    %c0_i32 = arith.constant 0 : i32
    %c0_i32_0 = arith.constant 0 : i32
    return %c0_i32, %arg1 : i32, i32
  }
  func.func @transform_2(%arg0: i32, %arg1: i32) -> (i32, i32) {
    %c0_i32 = arith.constant 0 : i32
    %c0_i32_0 = arith.constant 0 : i32
    return %arg0, %c0_i32 : i32, i32
  }
  func.func @transform_3(%arg0: i32, %arg1: i32) -> (i32, i32) {
    %c0_i32 = arith.constant 0 : i32
    %c0_i32_0 = arith.constant 0 : i32
    return %arg0, %c0_i32 : i32, i32
  }
  func.func @transform_4(%arg0: i32, %arg1: i32) -> (i32, i32) {
    %c0_i32 = arith.constant 0 : i32
    return %arg0, %arg1 : i32, i32
  }
}

module attributes {stable_mosaic.version = 11 : i64} {
  func.func @_mm_bn_act_kernel(%arg0: i32, %arg1: i32, %arg2: memref<32x256xbf16, #tpu.memory_space<vmem>>, %arg3: memref<256x1024xbf16, #tpu.memory_space<vmem>>, %arg4: memref<32x1xf32, #tpu.memory_space<vmem>>, %arg5: memref<32x1xf32, #tpu.memory_space<vmem>>, %arg6: memref<32x1024xbf16, #tpu.memory_space<vmem>>) attributes {dimension_semantics = [#tpu.dimension_semantics<parallel>, #tpu.dimension_semantics<parallel>], iteration_bounds = array<i64: 1, 2>, scalar_prefetch = 0 : i64, scratch_operands = 0 : i64, tpu.core_type = #tpu.core_type<tc>, window_params = [{transform_indices = @transform_0, window_bounds = array<i64: 32, 256>}, {transform_indices = @transform_1, window_bounds = array<i64: 256, 1024>}, {transform_indices = @transform_2, window_bounds = array<i64: 32, 1>}, {transform_indices = @transform_3, window_bounds = array<i64: 32, 1>}, {transform_indices = @transform_4, window_bounds = array<i64: 32, 1024>}]} {
    %c0 = arith.constant 0 : index
    %c0_0 = arith.constant 0 : index
    %0 = vector.load %arg2[%c0, %c0_0] : memref<32x256xbf16, #tpu.memory_space<vmem>>, vector<32x256xbf16>
    %c0_1 = arith.constant 0 : index
    %c0_2 = arith.constant 0 : index
    %1 = vector.load %arg3[%c0_1, %c0_2] : memref<256x1024xbf16, #tpu.memory_space<vmem>>, vector<256x1024xbf16>
    %cst = arith.constant dense<0.000000e+00> : vector<32x1024xf32>
    %2 = tpu.matmul %0, %1, %cst {dimension_numbers = #tpu.dot_dimension_numbers<[1], [0], [0], [1], [0, 0, 1, 1], [], []>} : vector<32x256xbf16>, vector<256x1024xbf16>, vector<32x1024xf32> -> vector<32x1024xf32>
    %c0_3 = arith.constant 0 : index
    %c0_4 = arith.constant 0 : index
    %3 = vector.load %arg4[%c0_3, %c0_4] : memref<32x1xf32, #tpu.memory_space<vmem>>, vector<32x1xf32>
    %4 = vector.broadcast %3 : vector<32x1xf32> to vector<32x1024xf32>
    %5 = arith.mulf %2, %4 : vector<32x1024xf32>
    %c0_5 = arith.constant 0 : index
    %c0_6 = arith.constant 0 : index
    %6 = vector.load %arg5[%c0_5, %c0_6] : memref<32x1xf32, #tpu.memory_space<vmem>>, vector<32x1xf32>
    %7 = vector.broadcast %6 : vector<32x1xf32> to vector<32x1024xf32>
    %8 = arith.addf %5, %7 : vector<32x1024xf32>
    %cst_7 = arith.constant 0.000000e+00 : f32
    %9 = vector.broadcast %cst_7 : f32 to vector<32x1024xf32>
    %10 = arith.cmpf ogt, %8, %9 : vector<32x1024xf32>
    %cst_8 = arith.constant 2.000000e-01 : f32
    %11 = vector.broadcast %cst_8 : f32 to vector<32x1024xf32>
    %12 = arith.mulf %11, %8 : vector<32x1024xf32>
    %13 = arith.select %10, %8, %12 : vector<32x1024xi1>, vector<32x1024xf32>
    %14 = arith.truncf %13 : vector<32x1024xf32> to vector<32x1024xbf16>
    %c0_9 = arith.constant 0 : index
    %c0_10 = arith.constant 0 : index
    %15 = vector.load %arg6[%c0_9, %c0_10] : memref<32x1024xbf16, #tpu.memory_space<vmem>>, vector<32x1024xbf16>
    tpu.vector_store %arg6[%c0_9, %c0_10], %14 {strides = array<i32>} : memref<32x1024xbf16, #tpu.memory_space<vmem>>, vector<32x1024xbf16>,
    return
  }
  func.func @transform_0(%arg0: i32, %arg1: i32) -> (i32, i32) {
    %c0_i32 = arith.constant 0 : i32
    %c0_i32_0 = arith.constant 0 : i32
    return %arg0, %c0_i32 : i32, i32
  }
  func.func @transform_1(%arg0: i32, %arg1: i32) -> (i32, i32) {
    %c0_i32 = arith.constant 0 : i32
    %c0_i32_0 = arith.constant 0 : i32
    return %c0_i32, %arg1 : i32, i32
  }
  func.func @transform_2(%arg0: i32, %arg1: i32) -> (i32, i32) {
    %c0_i32 = arith.constant 0 : i32
    %c0_i32_0 = arith.constant 0 : i32
    return %arg0, %c0_i32 : i32, i32
  }
  func.func @transform_3(%arg0: i32, %arg1: i32) -> (i32, i32) {
    %c0_i32 = arith.constant 0 : i32
    %c0_i32_0 = arith.constant 0 : i32
    return %arg0, %c0_i32 : i32, i32
  }
  func.func @transform_4(%arg0: i32, %arg1: i32) -> (i32, i32) {
    %c0_i32 = arith.constant 0 : i32
    return %arg0, %arg1 : i32, i32
  }
}

module attributes {stable_mosaic.version = 11 : i64} {
  func.func @_mm_bn_act_kernel(%arg0: i32, %arg1: i32, %arg2: memref<64x512xbf16, #tpu.memory_space<vmem>>, %arg3: memref<512x256xbf16, #tpu.memory_space<vmem>>, %arg4: memref<64x1xf32, #tpu.memory_space<vmem>>, %arg5: memref<64x1xf32, #tpu.memory_space<vmem>>, %arg6: memref<64x256xbf16, #tpu.memory_space<vmem>>) attributes {dimension_semantics = [#tpu.dimension_semantics<parallel>, #tpu.dimension_semantics<parallel>], iteration_bounds = array<i64: 1, 2>, scalar_prefetch = 0 : i64, scratch_operands = 0 : i64, tpu.core_type = #tpu.core_type<tc>, window_params = [{transform_indices = @transform_0, window_bounds = array<i64: 64, 512>}, {transform_indices = @transform_1, window_bounds = array<i64: 512, 256>}, {transform_indices = @transform_2, window_bounds = array<i64: 64, 1>}, {transform_indices = @transform_3, window_bounds = array<i64: 64, 1>}, {transform_indices = @transform_4, window_bounds = array<i64: 64, 256>}]} {
    %c0 = arith.constant 0 : index
    %c0_0 = arith.constant 0 : index
    %0 = vector.load %arg2[%c0, %c0_0] : memref<64x512xbf16, #tpu.memory_space<vmem>>, vector<64x512xbf16>
    %c0_1 = arith.constant 0 : index
    %c0_2 = arith.constant 0 : index
    %1 = vector.load %arg3[%c0_1, %c0_2] : memref<512x256xbf16, #tpu.memory_space<vmem>>, vector<512x256xbf16>
    %cst = arith.constant dense<0.000000e+00> : vector<64x256xf32>
    %2 = tpu.matmul %0, %1, %cst {dimension_numbers = #tpu.dot_dimension_numbers<[1], [0], [0], [1], [0, 0, 1, 1], [], []>} : vector<64x512xbf16>, vector<512x256xbf16>, vector<64x256xf32> -> vector<64x256xf32>
    %c0_3 = arith.constant 0 : index
    %c0_4 = arith.constant 0 : index
    %3 = vector.load %arg4[%c0_3, %c0_4] : memref<64x1xf32, #tpu.memory_space<vmem>>, vector<64x1xf32>
    %4 = vector.broadcast %3 : vector<64x1xf32> to vector<64x256xf32>
    %5 = arith.mulf %2, %4 : vector<64x256xf32>
    %c0_5 = arith.constant 0 : index
    %c0_6 = arith.constant 0 : index
    %6 = vector.load %arg5[%c0_5, %c0_6] : memref<64x1xf32, #tpu.memory_space<vmem>>, vector<64x1xf32>
    %7 = vector.broadcast %6 : vector<64x1xf32> to vector<64x256xf32>
    %8 = arith.addf %5, %7 : vector<64x256xf32>
    %cst_7 = arith.constant 0.000000e+00 : f32
    %9 = vector.broadcast %cst_7 : f32 to vector<64x256xf32>
    %10 = arith.cmpf ogt, %8, %9 : vector<64x256xf32>
    %cst_8 = arith.constant 2.000000e-01 : f32
    %11 = vector.broadcast %cst_8 : f32 to vector<64x256xf32>
    %12 = arith.mulf %11, %8 : vector<64x256xf32>
    %13 = arith.select %10, %8, %12 : vector<64x256xi1>, vector<64x256xf32>
    %14 = arith.truncf %13 : vector<64x256xf32> to vector<64x256xbf16>
    %c0_9 = arith.constant 0 : index
    %c0_10 = arith.constant 0 : index
    %15 = vector.load %arg6[%c0_9, %c0_10] : memref<64x256xbf16, #tpu.memory_space<vmem>>, vector<64x256xbf16>
    tpu.vector_store %arg6[%c0_9, %c0_10], %14 {strides = array<i32>} : memref<64x256xbf16, #tpu.memory_space<vmem>>, vector<64x256xbf16>,
    return
  }
  func.func @transform_0(%arg0: i32, %arg1: i32) -> (i32, i32) {
    %c0_i32 = arith.constant 0 : i32
    %c0_i32_0 = arith.constant 0 : i32
    return %arg0, %c0_i32 : i32, i32
  }
  func.func @transform_1(%arg0: i32, %arg1: i32) -> (i32, i32) {
    %c0_i32 = arith.constant 0 : i32
    %c0_i32_0 = arith.constant 0 : i32
    return %c0_i32, %arg1 : i32, i32
  }
  func.func @transform_2(%arg0: i32, %arg1: i32) -> (i32, i32) {
    %c0_i32 = arith.constant 0 : i32
    %c0_i32_0 = arith.constant 0 : i32
    return %arg0, %c0_i32 : i32, i32
  }
  func.func @transform_3(%arg0: i32, %arg1: i32) -> (i32, i32) {
    %c0_i32 = arith.constant 0 : i32
    %c0_i32_0 = arith.constant 0 : i32
    return %arg0, %c0_i32 : i32, i32
  }
  func.func @transform_4(%arg0: i32, %arg1: i32) -> (i32, i32) {
    %c0_i32 = arith.constant 0 : i32
    return %arg0, %arg1 : i32, i32
  }
}

module attributes {stable_mosaic.version = 11 : i64} {
  func.func @_mm_bn_act_kernel(%arg0: i32, %arg1: i32, %arg2: memref<64x1024xbf16, #tpu.memory_space<vmem>>, %arg3: memref<1024x128xbf16, #tpu.memory_space<vmem>>, %arg4: memref<64x1xf32, #tpu.memory_space<vmem>>, %arg5: memref<64x1xf32, #tpu.memory_space<vmem>>, %arg6: memref<64x128xbf16, #tpu.memory_space<vmem>>) attributes {dimension_semantics = [#tpu.dimension_semantics<parallel>, #tpu.dimension_semantics<parallel>], iteration_bounds = array<i64: 2, 1>, scalar_prefetch = 0 : i64, scratch_operands = 0 : i64, tpu.core_type = #tpu.core_type<tc>, window_params = [{transform_indices = @transform_0, window_bounds = array<i64: 64, 1024>}, {transform_indices = @transform_1, window_bounds = array<i64: 1024, 128>}, {transform_indices = @transform_2, window_bounds = array<i64: 64, 1>}, {transform_indices = @transform_3, window_bounds = array<i64: 64, 1>}, {transform_indices = @transform_4, window_bounds = array<i64: 64, 128>}]} {
    %c0 = arith.constant 0 : index
    %c0_0 = arith.constant 0 : index
    %0 = vector.load %arg2[%c0, %c0_0] : memref<64x1024xbf16, #tpu.memory_space<vmem>>, vector<64x1024xbf16>
    %c0_1 = arith.constant 0 : index
    %c0_2 = arith.constant 0 : index
    %1 = vector.load %arg3[%c0_1, %c0_2] : memref<1024x128xbf16, #tpu.memory_space<vmem>>, vector<1024x128xbf16>
    %cst = arith.constant dense<0.000000e+00> : vector<64x128xf32>
    %2 = tpu.matmul %0, %1, %cst {dimension_numbers = #tpu.dot_dimension_numbers<[1], [0], [0], [1], [0, 0, 1, 1], [], []>} : vector<64x1024xbf16>, vector<1024x128xbf16>, vector<64x128xf32> -> vector<64x128xf32>
    %c0_3 = arith.constant 0 : index
    %c0_4 = arith.constant 0 : index
    %3 = vector.load %arg4[%c0_3, %c0_4] : memref<64x1xf32, #tpu.memory_space<vmem>>, vector<64x1xf32>
    %4 = vector.broadcast %3 : vector<64x1xf32> to vector<64x128xf32>
    %5 = arith.mulf %2, %4 : vector<64x128xf32>
    %c0_5 = arith.constant 0 : index
    %c0_6 = arith.constant 0 : index
    %6 = vector.load %arg5[%c0_5, %c0_6] : memref<64x1xf32, #tpu.memory_space<vmem>>, vector<64x1xf32>
    %7 = vector.broadcast %6 : vector<64x1xf32> to vector<64x128xf32>
    %8 = arith.addf %5, %7 : vector<64x128xf32>
    %cst_7 = arith.constant 0.000000e+00 : f32
    %9 = vector.broadcast %cst_7 : f32 to vector<64x128xf32>
    %10 = arith.cmpf ogt, %8, %9 : vector<64x128xf32>
    %cst_8 = arith.constant 2.000000e-01 : f32
    %11 = vector.broadcast %cst_8 : f32 to vector<64x128xf32>
    %12 = arith.mulf %11, %8 : vector<64x128xf32>
    %13 = arith.select %10, %8, %12 : vector<64x128xi1>, vector<64x128xf32>
    %14 = arith.truncf %13 : vector<64x128xf32> to vector<64x128xbf16>
    %c0_9 = arith.constant 0 : index
    %c0_10 = arith.constant 0 : index
    %15 = vector.load %arg6[%c0_9, %c0_10] : memref<64x128xbf16, #tpu.memory_space<vmem>>, vector<64x128xbf16>
    tpu.vector_store %arg6[%c0_9, %c0_10], %14 {strides = array<i32>} : memref<64x128xbf16, #tpu.memory_space<vmem>>, vector<64x128xbf16>,
    return
  }
  func.func @transform_0(%arg0: i32, %arg1: i32) -> (i32, i32) {
    %c0_i32 = arith.constant 0 : i32
    %c0_i32_0 = arith.constant 0 : i32
    return %arg0, %c0_i32 : i32, i32
  }
  func.func @transform_1(%arg0: i32, %arg1: i32) -> (i32, i32) {
    %c0_i32 = arith.constant 0 : i32
    %c0_i32_0 = arith.constant 0 : i32
    return %c0_i32, %arg1 : i32, i32
  }
  func.func @transform_2(%arg0: i32, %arg1: i32) -> (i32, i32) {
    %c0_i32 = arith.constant 0 : i32
    %c0_i32_0 = arith.constant 0 : i32
    return %arg0, %c0_i32 : i32, i32
  }
  func.func @transform_3(%arg0: i32, %arg1: i32) -> (i32, i32) {
    %c0_i32 = arith.constant 0 : i32
    %c0_i32_0 = arith.constant 0 : i32
    return %arg0, %c0_i32 : i32, i32
  }
  func.func @transform_4(%arg0: i32, %arg1: i32) -> (i32, i32) {
    %c0_i32 = arith.constant 0 : i32
    return %arg0, %arg1 : i32, i32
  }
}

module attributes {stable_mosaic.version = 11 : i64} {
  func.func @_mm_bn_act_kernel(%arg0: i32, %arg1: i32, %arg2: memref<128x2048xbf16, #tpu.memory_space<vmem>>, %arg3: memref<2048x32xbf16, #tpu.memory_space<vmem>>, %arg4: memref<128x1xf32, #tpu.memory_space<vmem>>, %arg5: memref<128x1xf32, #tpu.memory_space<vmem>>, %arg6: memref<128x32xbf16, #tpu.memory_space<vmem>>) attributes {dimension_semantics = [#tpu.dimension_semantics<parallel>, #tpu.dimension_semantics<parallel>], iteration_bounds = array<i64: 2, 1>, scalar_prefetch = 0 : i64, scratch_operands = 0 : i64, tpu.core_type = #tpu.core_type<tc>, window_params = [{transform_indices = @transform_0, window_bounds = array<i64: 128, 2048>}, {transform_indices = @transform_1, window_bounds = array<i64: 2048, 32>}, {transform_indices = @transform_2, window_bounds = array<i64: 128, 1>}, {transform_indices = @transform_3, window_bounds = array<i64: 128, 1>}, {transform_indices = @transform_4, window_bounds = array<i64: 128, 32>}]} {
    %c0 = arith.constant 0 : index
    %c0_0 = arith.constant 0 : index
    %0 = vector.load %arg2[%c0, %c0_0] : memref<128x2048xbf16, #tpu.memory_space<vmem>>, vector<128x2048xbf16>
    %c0_1 = arith.constant 0 : index
    %c0_2 = arith.constant 0 : index
    %1 = vector.load %arg3[%c0_1, %c0_2] : memref<2048x32xbf16, #tpu.memory_space<vmem>>, vector<2048x32xbf16>
    %cst = arith.constant dense<0.000000e+00> : vector<128x32xf32>
    %2 = tpu.matmul %0, %1, %cst {dimension_numbers = #tpu.dot_dimension_numbers<[1], [0], [0], [1], [0, 0, 1, 1], [], []>} : vector<128x2048xbf16>, vector<2048x32xbf16>, vector<128x32xf32> -> vector<128x32xf32>
    %c0_3 = arith.constant 0 : index
    %c0_4 = arith.constant 0 : index
    %3 = vector.load %arg4[%c0_3, %c0_4] : memref<128x1xf32, #tpu.memory_space<vmem>>, vector<128x1xf32>
    %4 = vector.broadcast %3 : vector<128x1xf32> to vector<128x32xf32>
    %5 = arith.mulf %2, %4 : vector<128x32xf32>
    %c0_5 = arith.constant 0 : index
    %c0_6 = arith.constant 0 : index
    %6 = vector.load %arg5[%c0_5, %c0_6] : memref<128x1xf32, #tpu.memory_space<vmem>>, vector<128x1xf32>
    %7 = vector.broadcast %6 : vector<128x1xf32> to vector<128x32xf32>
    %8 = arith.addf %5, %7 : vector<128x32xf32>
    %cst_7 = arith.constant 0.000000e+00 : f32
    %9 = vector.broadcast %cst_7 : f32 to vector<128x32xf32>
    %10 = arith.cmpf ogt, %8, %9 : vector<128x32xf32>
    %cst_8 = arith.constant 2.000000e-01 : f32
    %11 = vector.broadcast %cst_8 : f32 to vector<128x32xf32>
    %12 = arith.mulf %11, %8 : vector<128x32xf32>
    %13 = arith.select %10, %8, %12 : vector<128x32xi1>, vector<128x32xf32>
    %14 = arith.truncf %13 : vector<128x32xf32> to vector<128x32xbf16>
    %c0_9 = arith.constant 0 : index
    %c0_10 = arith.constant 0 : index
    %15 = vector.load %arg6[%c0_9, %c0_10] : memref<128x32xbf16, #tpu.memory_space<vmem>>, vector<128x32xbf16>
    tpu.vector_store %arg6[%c0_9, %c0_10], %14 {strides = array<i32>} : memref<128x32xbf16, #tpu.memory_space<vmem>>, vector<128x32xbf16>,
    return
  }
  func.func @transform_0(%arg0: i32, %arg1: i32) -> (i32, i32) {
    %c0_i32 = arith.constant 0 : i32
    %c0_i32_0 = arith.constant 0 : i32
    return %arg0, %c0_i32 : i32, i32
  }
  func.func @transform_1(%arg0: i32, %arg1: i32) -> (i32, i32) {
    %c0_i32 = arith.constant 0 : i32
    %c0_i32_0 = arith.constant 0 : i32
    return %c0_i32, %arg1 : i32, i32
  }
  func.func @transform_2(%arg0: i32, %arg1: i32) -> (i32, i32) {
    %c0_i32 = arith.constant 0 : i32
    %c0_i32_0 = arith.constant 0 : i32
    return %arg0, %c0_i32 : i32, i32
  }
  func.func @transform_3(%arg0: i32, %arg1: i32) -> (i32, i32) {
    %c0_i32 = arith.constant 0 : i32
    %c0_i32_0 = arith.constant 0 : i32
    return %arg0, %c0_i32 : i32, i32
  }
  func.func @transform_4(%arg0: i32, %arg1: i32) -> (i32, i32) {
    %c0_i32 = arith.constant 0 : i32
    return %arg0, %arg1 : i32, i32
  }
}

module attributes {stable_mosaic.version = 11 : i64} {
  func.func @_mm_bn_act_kernel(%arg0: i32, %arg1: i32, %arg2: memref<64x2304xbf16, #tpu.memory_space<vmem>>, %arg3: memref<2304x32xbf16, #tpu.memory_space<vmem>>, %arg4: memref<64x1xf32, #tpu.memory_space<vmem>>, %arg5: memref<64x1xf32, #tpu.memory_space<vmem>>, %arg6: memref<64x32xbf16, #tpu.memory_space<vmem>>) attributes {dimension_semantics = [#tpu.dimension_semantics<parallel>, #tpu.dimension_semantics<parallel>], iteration_bounds = array<i64: 2, 1>, scalar_prefetch = 0 : i64, scratch_operands = 0 : i64, tpu.core_type = #tpu.core_type<tc>, window_params = [{transform_indices = @transform_0, window_bounds = array<i64: 64, 2304>}, {transform_indices = @transform_1, window_bounds = array<i64: 2304, 32>}, {transform_indices = @transform_2, window_bounds = array<i64: 64, 1>}, {transform_indices = @transform_3, window_bounds = array<i64: 64, 1>}, {transform_indices = @transform_4, window_bounds = array<i64: 64, 32>}]} {
    %c0 = arith.constant 0 : index
    %c0_0 = arith.constant 0 : index
    %0 = vector.load %arg2[%c0, %c0_0] : memref<64x2304xbf16, #tpu.memory_space<vmem>>, vector<64x2304xbf16>
    %c0_1 = arith.constant 0 : index
    %c0_2 = arith.constant 0 : index
    %1 = vector.load %arg3[%c0_1, %c0_2] : memref<2304x32xbf16, #tpu.memory_space<vmem>>, vector<2304x32xbf16>
    %cst = arith.constant dense<0.000000e+00> : vector<64x32xf32>
    %2 = tpu.matmul %0, %1, %cst {dimension_numbers = #tpu.dot_dimension_numbers<[1], [0], [0], [1], [0, 0, 1, 1], [], []>} : vector<64x2304xbf16>, vector<2304x32xbf16>, vector<64x32xf32> -> vector<64x32xf32>
    %c0_3 = arith.constant 0 : index
    %c0_4 = arith.constant 0 : index
    %3 = vector.load %arg4[%c0_3, %c0_4] : memref<64x1xf32, #tpu.memory_space<vmem>>, vector<64x1xf32>
    %4 = vector.broadcast %3 : vector<64x1xf32> to vector<64x32xf32>
    %5 = arith.mulf %2, %4 : vector<64x32xf32>
    %c0_5 = arith.constant 0 : index
    %c0_6 = arith.constant 0 : index
    %6 = vector.load %arg5[%c0_5, %c0_6] : memref<64x1xf32, #tpu.memory_space<vmem>>, vector<64x1xf32>
    %7 = vector.broadcast %6 : vector<64x1xf32> to vector<64x32xf32>
    %8 = arith.addf %5, %7 : vector<64x32xf32>
    %cst_7 = arith.constant 0.000000e+00 : f32
    %9 = vector.broadcast %cst_7 : f32 to vector<64x32xf32>
    %10 = arith.cmpf ogt, %8, %9 : vector<64x32xf32>
    %cst_8 = arith.constant 2.000000e-01 : f32
    %11 = vector.broadcast %cst_8 : f32 to vector<64x32xf32>
    %12 = arith.mulf %11, %8 : vector<64x32xf32>
    %13 = arith.select %10, %8, %12 : vector<64x32xi1>, vector<64x32xf32>
    %14 = arith.truncf %13 : vector<64x32xf32> to vector<64x32xbf16>
    %c0_9 = arith.constant 0 : index
    %c0_10 = arith.constant 0 : index
    %15 = vector.load %arg6[%c0_9, %c0_10] : memref<64x32xbf16, #tpu.memory_space<vmem>>, vector<64x32xbf16>
    tpu.vector_store %arg6[%c0_9, %c0_10], %14 {strides = array<i32>} : memref<64x32xbf16, #tpu.memory_space<vmem>>, vector<64x32xbf16>,
    return
  }
  func.func @transform_0(%arg0: i32, %arg1: i32) -> (i32, i32) {
    %c0_i32 = arith.constant 0 : i32
    %c0_i32_0 = arith.constant 0 : i32
    return %arg0, %c0_i32 : i32, i32
  }
  func.func @transform_1(%arg0: i32, %arg1: i32) -> (i32, i32) {
    %c0_i32 = arith.constant 0 : i32
    %c0_i32_0 = arith.constant 0 : i32
    return %c0_i32, %arg1 : i32, i32
  }
  func.func @transform_2(%arg0: i32, %arg1: i32) -> (i32, i32) {
    %c0_i32 = arith.constant 0 : i32
    %c0_i32_0 = arith.constant 0 : i32
    return %arg0, %c0_i32 : i32, i32
  }
  func.func @transform_3(%arg0: i32, %arg1: i32) -> (i32, i32) {
    %c0_i32 = arith.constant 0 : i32
    %c0_i32_0 = arith.constant 0 : i32
    return %arg0, %c0_i32 : i32, i32
  }
  func.func @transform_4(%arg0: i32, %arg1: i32) -> (i32, i32) {
    %c0_i32 = arith.constant 0 : i32
    return %arg0, %arg1 : i32, i32
  }
}

module attributes {stable_mosaic.version = 11 : i64} {
  func.func @_mm_bn_act_kernel(%arg0: i32, %arg1: i32, %arg2: memref<1x2048xbf16, #tpu.memory_space<vmem>>, %arg3: memref<2048x2xbf16, #tpu.memory_space<vmem>>, %arg4: memref<1x1xf32, #tpu.memory_space<vmem>>, %arg5: memref<1x1xf32, #tpu.memory_space<vmem>>, %arg6: memref<1x2xf32, #tpu.memory_space<vmem>>) attributes {dimension_semantics = [#tpu.dimension_semantics<parallel>, #tpu.dimension_semantics<parallel>], iteration_bounds = array<i64: 1, 1>, scalar_prefetch = 0 : i64, scratch_operands = 0 : i64, tpu.core_type = #tpu.core_type<tc>, window_params = [{transform_indices = @transform_0, window_bounds = array<i64: 1, 2048>}, {transform_indices = @transform_1, window_bounds = array<i64: 2048, 2>}, {transform_indices = @transform_2, window_bounds = array<i64: 1, 1>}, {transform_indices = @transform_3, window_bounds = array<i64: 1, 1>}, {transform_indices = @transform_4, window_bounds = array<i64: 1, 2>}]} {
    %c0 = arith.constant 0 : index
    %c0_0 = arith.constant 0 : index
    %0 = vector.load %arg2[%c0, %c0_0] : memref<1x2048xbf16, #tpu.memory_space<vmem>>, vector<1x2048xbf16>
    %c0_1 = arith.constant 0 : index
    %c0_2 = arith.constant 0 : index
    %1 = vector.load %arg3[%c0_1, %c0_2] : memref<2048x2xbf16, #tpu.memory_space<vmem>>, vector<2048x2xbf16>
    %cst = arith.constant dense<0.000000e+00> : vector<1x2xf32>
    %2 = tpu.matmul %0, %1, %cst {dimension_numbers = #tpu.dot_dimension_numbers<[1], [0], [0], [1], [0, 0, 1, 1], [], []>} : vector<1x2048xbf16>, vector<2048x2xbf16>, vector<1x2xf32> -> vector<1x2xf32>
    %c0_3 = arith.constant 0 : index
    %c0_4 = arith.constant 0 : index
    %3 = vector.load %arg4[%c0_3, %c0_4] : memref<1x1xf32, #tpu.memory_space<vmem>>, vector<1x1xf32>
    %4 = vector.broadcast %3 : vector<1x1xf32> to vector<1x2xf32>
    %5 = arith.mulf %2, %4 : vector<1x2xf32>
    %c0_5 = arith.constant 0 : index
    %c0_6 = arith.constant 0 : index
    %6 = vector.load %arg5[%c0_5, %c0_6] : memref<1x1xf32, #tpu.memory_space<vmem>>, vector<1x1xf32>
    %7 = vector.broadcast %6 : vector<1x1xf32> to vector<1x2xf32>
    %8 = arith.addf %5, %7 : vector<1x2xf32>
    %9 = arith.negf %8 : vector<1x2xf32>
    %10 = math.exp %9 : vector<1x2xf32>
    %cst_7 = arith.constant 1.000000e+00 : f32
    %11 = vector.broadcast %cst_7 : f32 to vector<1x2xf32>
    %12 = arith.addf %11, %10 : vector<1x2xf32>
    %13 = arith.divf %11, %12 : vector<1x2xf32>
    %c0_8 = arith.constant 0 : index
    %c0_9 = arith.constant 0 : index
    %14 = vector.load %arg6[%c0_8, %c0_9] : memref<1x2xf32, #tpu.memory_space<vmem>>, vector<1x2xf32>
    tpu.vector_store %arg6[%c0_8, %c0_9], %13 {strides = array<i32>} : memref<1x2xf32, #tpu.memory_space<vmem>>, vector<1x2xf32>,
    return
  }
  func.func @transform_0(%arg0: i32, %arg1: i32) -> (i32, i32) {
    %c0_i32 = arith.constant 0 : i32
    %c0_i32_0 = arith.constant 0 : i32
    return %arg0, %c0_i32 : i32, i32
  }
  func.func @transform_1(%arg0: i32, %arg1: i32) -> (i32, i32) {
    %c0_i32 = arith.constant 0 : i32
    %c0_i32_0 = arith.constant 0 : i32
    return %c0_i32, %arg1 : i32, i32
  }
  func.func @transform_2(%arg0: i32, %arg1: i32) -> (i32, i32) {
    %c0_i32 = arith.constant 0 : i32
    %c0_i32_0 = arith.constant 0 : i32
    return %arg0, %c0_i32 : i32, i32
  }
  func.func @transform_3(%arg0: i32, %arg1: i32) -> (i32, i32) {
    %c0_i32 = arith.constant 0 : i32
    %c0_i32_0 = arith.constant 0 : i32
    return %arg0, %c0_i32 : i32, i32
  }
  func.func @transform_4(%arg0: i32, %arg1: i32) -> (i32, i32) {
    %c0_i32 = arith.constant 0 : i32
    return %arg0, %arg1 : i32, i32
  }
}

</mosaic_0001>

<bundles_post_ra>
// kernel: d_net128_forward.7
= control target key start
LH: loop header
LB: loop body
LE: loop exit
PB: predicated region body
PF: predicated region fallthrough
CT: control target
= control target key end

     0   :  { %s2780_s15 = smov 0   ;;  %s2782_s16 = smov 0   ;;  %s3563_s0 = inlined_call_operand.vmem [shape: bf16[16,48], index: 0, kind: input, shape index: {}]   ;;  %s3564_s1 = inlined_call_operand.vmem [shape: bf16[48,8192], index: 1, kind: input, shape index: {}]   ;;  %s3565_s2 = inlined_call_operand.vmem [shape: f32[16,1], index: 2, kind: input, shape index: {}]   ;;  %s3566_s3 = inlined_call_operand.vmem [shape: f32[16,1], index: 3, kind: input, shape index: {}]   ;;  %s3567_s4 = inlined_call_operand.vmem [shape: bf16[16,8192], index: 4, kind: output, shape index: {}]  }
   0x1   :  { %s2784_s17 = smov 0   ;;  %s2786_s18 = smov 0  }
   0x2   :  { %s2788_s19 = smov 0  }
   0x3 LB: > { %s23_s20 = sadd.s32 1, %s2748_s18  ;;  %s2134_s21 = sadd.s32 4294967295, %s2752_s19   ;;  %s2752_s19 = sphi %s2788_s19, %s14_s19   ;;  %s2748_s18 = sphi %s2786_s18, %s3572_s18   ;;  %s2744_s17 = sphi %s2784_s17, %s3571_s17   ;;  %s2740_s16 = sphi %s2782_s16, %s3570_s16   ;;  %s2736_s15 = sphi %s2780_s15, %s3569_s15  }
   0x4   : > { %p24_p0 = scmp.ge.s32.totalorder %s23_s20, 2  ;;  %p66_p1 = scmp.ne.s32.totalorder %s2740_s16, %s2736_s15 }
   0x5   : > { %p67_p2 = scmp.eq.s32.totalorder %s2752_s19, 0  ;;  %p150_p4 = scmp.eq.s32.totalorder %s2134_s21, 1 }
   0x6   : > { %s3574_s20 = smov (%p24_p0, %s23_s20), 0  ;;  %s59_s23 = sadd.s32 1, %s2740_s16 }
   0x7   : > { %p68_p3 = por %p67_p2, %p66_p1  ;;  %s56_s22 = ssub.s32 %s2748_s18, %s3574_s20 }
   0x8   : > { %p57_p5 = scmp.eq.s32.totalorder %s56_s22, 0  ;;  %p2815_p6 = por %p150_p4, %p66_p1 }
   0x9   : > { %p2140_p7 = scmp.ge.s32.totalorder %s2752_s19, 2 }
   0xa   : > { %s2820_s25 = scalar_select %p57_p5, %s2740_s16, %s59_s23  }
   0xb   : > { %199 = sbr.rel (%p2140_p7) target bundleno = 116 (0x74), region = 28 }
  0x10   : > { %202 = sbr.rel (!%p68_p3) target bundleno = 116 (0x74), region = 32  ;;  %s204_s26 = sand.u32 (%p68_p3), 1, %s2740_s16  }
  0x11   : > { %s2570_s27 = sshll.u32 (%p68_p3), %s2748_s18, 7  ;;  %s2669_s28 = smul.u32 (%p68_p3), 768, %s204_s26 }
  0x12   : > { %s2828_s5 = scalar_lea.vmem (%p68_p3), %s3564_s1, %s2570_s27 }
  0x13   : > { %v222_v0 = vld [vmem:[%s2828_s5] sm:$0xff] (%p68_p3)  ;;  %v224_v1 = vld [vmem:[%s2828_s5 + $0x8] sm:$0xff] (%p68_p3)  ;;  %v226_v2 = vld [vmem:[%s2828_s5 + $0x10] sm:$0xff] (%p68_p3)  ;;  %s2833_s6 = scalar_lea.vmem (%p68_p3), [#allocation2], %s2669_s28 }
  0x14   : > { %223 = vst [vmem:[%s2833_s6] sm:$0xff] (%p68_p3), %v222_v0  ;;  %v228_v3 = vld [vmem:[%s2828_s5 + $0x18] sm:$0xff] (%p68_p3)  ;;  %v230_v4 = vld [vmem:[%s2828_s5 + $0x20] sm:$0xff] (%p68_p3)  ;;  %v232_v5 = vld [vmem:[%s2828_s5 + $0x28] sm:$0xff] (%p68_p3) }
  0x15   : > { %225 = vst [vmem:[%s2833_s6 + $0x8] sm:$0xff] %v224_v1  ;;  %v234_v6 = vld [vmem:[%s2828_s5 + $0x30] sm:$0xff]  ;;  %v236_v7 = vld [vmem:[%s2828_s5 + $0x38] sm:$0xff]  ;;  %v238_v8 = vld [vmem:[%s2828_s5 + $0x40] sm:$0xff] }
  0x16   : > { %227 = vst [vmem:[%s2833_s6 + $0x10] sm:$0xff] %v226_v2  ;;  %v240_v9 = vld [vmem:[%s2828_s5 + $0x48] sm:$0xff]  ;;  %v242_v10 = vld [vmem:[%s2828_s5 + $0x50] sm:$0xff]  ;;  %v244_v11 = vld [vmem:[%s2828_s5 + $0x58] sm:$0xff] }
  0x17   : > { %229 = vst [vmem:[%s2833_s6 + $0x18] sm:$0xff] %v228_v3  ;;  %v246_v12 = vld [vmem:[%s2828_s5 + $0x60] sm:$0xff]  ;;  %v248_v13 = vld [vmem:[%s2828_s5 + $0x68] sm:$0xff]  ;;  %v250_v14 = vld [vmem:[%s2828_s5 + $0x70] sm:$0xff] }
  0x18   : > { %231 = vst [vmem:[%s2833_s6 + $0x20] sm:$0xff] %v230_v4  ;;  %v252_v15 = vld [vmem:[%s2828_s5 + $0x78] sm:$0xff]  ;;  %v254_v16 = vld [vmem:[%s2828_s5 + $0x100] sm:$0xff]  ;;  %v256_v17 = vld [vmem:[%s2828_s5 + $0x108] sm:$0xff] }
  0x19   : > { %233 = vst [vmem:[%s2833_s6 + $0x28] sm:$0xff] %v232_v5  ;;  %v258_v18 = vld [vmem:[%s2828_s5 + $0x110] sm:$0xff]  ;;  %v260_v19 = vld [vmem:[%s2828_s5 + $0x118] sm:$0xff]  ;;  %v262_v20 = vld [vmem:[%s2828_s5 + $0x120] sm:$0xff] }
  0x1a   : > { %235 = vst [vmem:[%s2833_s6 + $0x30] sm:$0xff] %v234_v6  ;;  %v264_v21 = vld [vmem:[%s2828_s5 + $0x128] sm:$0xff]  ;;  %v266_v22 = vld [vmem:[%s2828_s5 + $0x130] sm:$0xff]  ;;  %v268_v23 = vld [vmem:[%s2828_s5 + $0x138] sm:$0xff] }
  0x1b   : > { %237 = vst [vmem:[%s2833_s6 + $0x38] sm:$0xff] %v236_v7  ;;  %v270_v24 = vld [vmem:[%s2828_s5 + $0x140] sm:$0xff]  ;;  %v272_v25 = vld [vmem:[%s2828_s5 + $0x148] sm:$0xff]  ;;  %v274_v26 = vld [vmem:[%s2828_s5 + $0x150] sm:$0xff] }
  0x1c   : > { %239 = vst [vmem:[%s2833_s6 + $0x40] sm:$0xff] %v238_v8  ;;  %v276_v27 = vld [vmem:[%s2828_s5 + $0x158] sm:$0xff]  ;;  %v278_v28 = vld [vmem:[%s2828_s5 + $0x160] sm:$0xff]  ;;  %v280_v29 = vld [vmem:[%s2828_s5 + $0x168] sm:$0xff] }
  0x1d   : > { %241 = vst [vmem:[%s2833_s6 + $0x48] sm:$0xff] %v240_v9  ;;  %v282_v30 = vld [vmem:[%s2828_s5 + $0x170] sm:$0xff]  ;;  %v284_v31 = vld [vmem:[%s2828_s5 + $0x178] sm:$0xff]  ;;  %v286_v32 = vld [vmem:[%s2828_s5 + $0x200] sm:$0xff] }
  0x1e   : > { %243 = vst [vmem:[%s2833_s6 + $0x50] sm:$0xff] %v242_v10  ;;  %v288_v33 = vld [vmem:[%s2828_s5 + $0x208] sm:$0xff]  ;;  %v290_v34 = vld [vmem:[%s2828_s5 + $0x210] sm:$0xff]  ;;  %v292_v35 = vld [vmem:[%s2828_s5 + $0x218] sm:$0xff] }
  0x1f   : > { %245 = vst [vmem:[%s2833_s6 + $0x58] sm:$0xff] %v244_v11  ;;  %v294_v36 = vld [vmem:[%s2828_s5 + $0x220] sm:$0xff]  ;;  %v296_v37 = vld [vmem:[%s2828_s5 + $0x228] sm:$0xff]  ;;  %v298_v38 = vld [vmem:[%s2828_s5 + $0x230] sm:$0xff] }
  0x20   : > { %247 = vst [vmem:[%s2833_s6 + $0x60] sm:$0xff] %v246_v12  ;;  %v300_v39 = vld [vmem:[%s2828_s5 + $0x238] sm:$0xff]  ;;  %v302_v40 = vld [vmem:[%s2828_s5 + $0x240] sm:$0xff]  ;;  %v304_v41 = vld [vmem:[%s2828_s5 + $0x248] sm:$0xff] }
  0x21   : > { %249 = vst [vmem:[%s2833_s6 + $0x68] sm:$0xff] %v248_v13  ;;  %v306_v42 = vld [vmem:[%s2828_s5 + $0x250] sm:$0xff]  ;;  %v308_v43 = vld [vmem:[%s2828_s5 + $0x258] sm:$0xff]  ;;  %v310_v44 = vld [vmem:[%s2828_s5 + $0x260] sm:$0xff] }
  0x22   : > { %251 = vst [vmem:[%s2833_s6 + $0x70] sm:$0xff] %v250_v14  ;;  %v312_v45 = vld [vmem:[%s2828_s5 + $0x268] sm:$0xff]  ;;  %v314_v46 = vld [vmem:[%s2828_s5 + $0x270] sm:$0xff]  ;;  %v316_v47 = vld [vmem:[%s2828_s5 + $0x278] sm:$0xff] }
  0x23   : > { %253 = vst [vmem:[%s2833_s6 + $0x78] sm:$0xff] %v252_v15  ;;  %v318_v48 = vld [vmem:[%s2828_s5 + $0x300] sm:$0xff]  ;;  %v320_v49 = vld [vmem:[%s2828_s5 + $0x308] sm:$0xff]  ;;  %v322_v50 = vld [vmem:[%s2828_s5 + $0x310] sm:$0xff] }
  0x24   : > { %255 = vst [vmem:[%s2833_s6 + $0x80] sm:$0xff] %v254_v16  ;;  %v324_v51 = vld [vmem:[%s2828_s5 + $0x318] sm:$0xff]  ;;  %v326_v52 = vld [vmem:[%s2828_s5 + $0x320] sm:$0xff]  ;;  %v328_v53 = vld [vmem:[%s2828_s5 + $0x328] sm:$0xff] }
  0x25   : > { %257 = vst [vmem:[%s2833_s6 + $0x88] sm:$0xff] %v256_v17  ;;  %v330_v54 = vld [vmem:[%s2828_s5 + $0x330] sm:$0xff]  ;;  %v332_v55 = vld [vmem:[%s2828_s5 + $0x338] sm:$0xff]  ;;  %v334_v56 = vld [vmem:[%s2828_s5 + $0x340] sm:$0xff] }
  0x26   : > { %259 = vst [vmem:[%s2833_s6 + $0x90] sm:$0xff] %v258_v18  ;;  %v336_v57 = vld [vmem:[%s2828_s5 + $0x348] sm:$0xff]  ;;  %v338_v58 = vld [vmem:[%s2828_s5 + $0x350] sm:$0xff]  ;;  %v340_v59 = vld [vmem:[%s2828_s5 + $0x358] sm:$0xff] }
  0x27   : > { %261 = vst [vmem:[%s2833_s6 + $0x98] sm:$0xff] %v260_v19  ;;  %v342_v60 = vld [vmem:[%s2828_s5 + $0x360] sm:$0xff]  ;;  %v344_v61 = vld [vmem:[%s2828_s5 + $0x368] sm:$0xff]  ;;  %v346_v62 = vld [vmem:[%s2828_s5 + $0x370] sm:$0xff] }
  0x28   : > { %263 = vst [vmem:[%s2833_s6 + $0xa0] sm:$0xff] %v262_v20  ;;  %v348_v63 = vld [vmem:[%s2828_s5 + $0x378] sm:$0xff]  ;;  %v350_v0 = vld [vmem:[%s2828_s5 + $0x400] sm:$0xff]  ;;  %v352_v1 = vld [vmem:[%s2828_s5 + $0x408] sm:$0xff] }
  0x29   : > { %265 = vst [vmem:[%s2833_s6 + $0xa8] sm:$0xff] %v264_v21  ;;  %v354_v2 = vld [vmem:[%s2828_s5 + $0x410] sm:$0xff]  ;;  %v356_v3 = vld [vmem:[%s2828_s5 + $0x418] sm:$0xff]  ;;  %v358_v4 = vld [vmem:[%s2828_s5 + $0x420] sm:$0xff] }
  0x2a   : > { %267 = vst [vmem:[%s2833_s6 + $0xb0] sm:$0xff] %v266_v22  ;;  %v360_v5 = vld [vmem:[%s2828_s5 + $0x428] sm:$0xff]  ;;  %v362_v6 = vld [vmem:[%s2828_s5 + $0x430] sm:$0xff]  ;;  %v364_v7 = vld [vmem:[%s2828_s5 + $0x438] sm:$0xff] }
  0x2b   : > { %269 = vst [vmem:[%s2833_s6 + $0xb8] sm:$0xff] %v268_v23  ;;  %v366_v8 = vld [vmem:[%s2828_s5 + $0x440] sm:$0xff]  ;;  %v368_v9 = vld [vmem:[%s2828_s5 + $0x448] sm:$0xff]  ;;  %v370_v10 = vld [vmem:[%s2828_s5 + $0x450] sm:$0xff] }
  0x2c   : > { %271 = vst [vmem:[%s2833_s6 + $0xc0] sm:$0xff] %v270_v24  ;;  %v372_v11 = vld [vmem:[%s2828_s5 + $0x458] sm:$0xff]  ;;  %v374_v12 = vld [vmem:[%s2828_s5 + $0x460] sm:$0xff]  ;;  %v376_v13 = vld [vmem:[%s2828_s5 + $0x468] sm:$0xff] }
  0x2d   : > { %273 = vst [vmem:[%s2833_s6 + $0xc8] sm:$0xff] %v272_v25  ;;  %v378_v14 = vld [vmem:[%s2828_s5 + $0x470] sm:$0xff]  ;;  %v380_v15 = vld [vmem:[%s2828_s5 + $0x478] sm:$0xff]  ;;  %v382_v16 = vld [vmem:[%s2828_s5 + $0x500] sm:$0xff] }
  0x2e   : > { %275 = vst [vmem:[%s2833_s6 + $0xd0] sm:$0xff] %v274_v26  ;;  %v384_v17 = vld [vmem:[%s2828_s5 + $0x508] sm:$0xff]  ;;  %v386_v18 = vld [vmem:[%s2828_s5 + $0x510] sm:$0xff]  ;;  %v388_v19 = vld [vmem:[%s2828_s5 + $0x518] sm:$0xff] }
  0x2f   : > { %277 = vst [vmem:[%s2833_s6 + $0xd8] sm:$0xff] %v276_v27  ;;  %v390_v20 = vld [vmem:[%s2828_s5 + $0x520] sm:$0xff]  ;;  %v392_v21 = vld [vmem:[%s2828_s5 + $0x528] sm:$0xff]  ;;  %v394_v22 = vld [vmem:[%s2828_s5 + $0x530] sm:$0xff] }
  0x30   : > { %279 = vst [vmem:[%s2833_s6 + $0xe0] sm:$0xff] %v278_v28  ;;  %v396_v23 = vld [vmem:[%s2828_s5 + $0x538] sm:$0xff]  ;;  %v398_v24 = vld [vmem:[%s2828_s5 + $0x540] sm:$0xff]  ;;  %v400_v25 = vld [vmem:[%s2828_s5 + $0x548] sm:$0xff] }
  0x31   : > { %281 = vst [vmem:[%s2833_s6 + $0xe8] sm:$0xff] %v280_v29  ;;  %v402_v26 = vld [vmem:[%s2828_s5 + $0x550] sm:$0xff]  ;;  %v404_v27 = vld [vmem:[%s2828_s5 + $0x558] sm:$0xff]  ;;  %v406_v28 = vld [vmem:[%s2828_s5 + $0x560] sm:$0xff] }
  0x32   : > { %283 = vst [vmem:[%s2833_s6 + $0xf0] sm:$0xff] %v282_v30  ;;  %v408_v29 = vld [vmem:[%s2828_s5 + $0x568] sm:$0xff]  ;;  %v410_v30 = vld [vmem:[%s2828_s5 + $0x570] sm:$0xff] }
  0x33   : > { %285 = vst [vmem:[%s2833_s6 + $0xf8] sm:$0xff] %v284_v31  ;;  %v412_v31 = vld [vmem:[%s2828_s5 + $0x578] sm:$0xff] }
  0x34   : > { %287 = vst [vmem:[%s2833_s6 + $0x100] sm:$0xff] %v286_v32 }
  0x35   : > { %289 = vst [vmem:[%s2833_s6 + $0x108] sm:$0xff] %v288_v33 }
  0x36   : > { %291 = vst [vmem:[%s2833_s6 + $0x110] sm:$0xff] %v290_v34 }
  0x37   : > { %293 = vst [vmem:[%s2833_s6 + $0x118] sm:$0xff] %v292_v35 }
  0x38   : > { %295 = vst [vmem:[%s2833_s6 + $0x120] sm:$0xff] %v294_v36 }
  0x39   : > { %297 = vst [vmem:[%s2833_s6 + $0x128] sm:$0xff] %v296_v37 }
  0x3a   : > { %299 = vst [vmem:[%s2833_s6 + $0x130] sm:$0xff] %v298_v38 }
  0x3b   : > { %301 = vst [vmem:[%s2833_s6 + $0x138] sm:$0xff] %v300_v39 }
  0x3c   : > { %303 = vst [vmem:[%s2833_s6 + $0x140] sm:$0xff] %v302_v40 }
  0x3d   : > { %305 = vst [vmem:[%s2833_s6 + $0x148] sm:$0xff] %v304_v41 }
  0x3e   : > { %307 = vst [vmem:[%s2833_s6 + $0x150] sm:$0xff] %v306_v42 }
  0x3f   : > { %309 = vst [vmem:[%s2833_s6 + $0x158] sm:$0xff] %v308_v43 }
  0x40   : > { %311 = vst [vmem:[%s2833_s6 + $0x160] sm:$0xff] %v310_v44 }
  0x41   : > { %313 = vst [vmem:[%s2833_s6 + $0x168] sm:$0xff] %v312_v45 }
  0x42   : > { %315 = vst [vmem:[%s2833_s6 + $0x170] sm:$0xff] %v314_v46 }
  0x43   : > { %317 = vst [vmem:[%s2833_s6 + $0x178] sm:$0xff] %v316_v47 }
  0x44   : > { %319 = vst [vmem:[%s2833_s6 + $0x180] sm:$0xff] %v318_v48 }
  0x45   : > { %321 = vst [vmem:[%s2833_s6 + $0x188] sm:$0xff] %v320_v49 }
  0x46   : > { %323 = vst [vmem:[%s2833_s6 + $0x190] sm:$0xff] %v322_v50 }
  0x47   : > { %325 = vst [vmem:[%s2833_s6 + $0x198] sm:$0xff] %v324_v51 }
  0x48   : > { %327 = vst [vmem:[%s2833_s6 + $0x1a0] sm:$0xff] %v326_v52 }
  0x49   : > { %329 = vst [vmem:[%s2833_s6 + $0x1a8] sm:$0xff] %v328_v53 }
  0x4a   : > { %331 = vst [vmem:[%s2833_s6 + $0x1b0] sm:$0xff] %v330_v54 }
  0x4b   : > { %333 = vst [vmem:[%s2833_s6 + $0x1b8] sm:$0xff] %v332_v55 }
  0x4c   : > { %335 = vst [vmem:[%s2833_s6 + $0x1c0] sm:$0xff] %v334_v56 }
  0x4d   : > { %337 = vst [vmem:[%s2833_s6 + $0x1c8] sm:$0xff] %v336_v57 }
  0x4e   : > { %339 = vst [vmem:[%s2833_s6 + $0x1d0] sm:$0xff] %v338_v58 }
  0x4f   : > { %341 = vst [vmem:[%s2833_s6 + $0x1d8] sm:$0xff] %v340_v59 }
  0x50   : > { %343 = vst [vmem:[%s2833_s6 + $0x1e0] sm:$0xff] %v342_v60 }
  0x51   : > { %345 = vst [vmem:[%s2833_s6 + $0x1e8] sm:$0xff] %v344_v61 }
  0x52   : > { %347 = vst [vmem:[%s2833_s6 + $0x1f0] sm:$0xff] %v346_v62 }
  0x53   : > { %349 = vst [vmem:[%s2833_s6 + $0x1f8] sm:$0xff] %v348_v63 }
  0x54   : > { %351 = vst [vmem:[%s2833_s6 + $0x200] sm:$0xff] %v350_v0 }
  0x55   : > { %353 = vst [vmem:[%s2833_s6 + $0x208] sm:$0xff] %v352_v1 }
  0x56   : > { %355 = vst [vmem:[%s2833_s6 + $0x210] sm:$0xff] %v354_v2 }
  0x57   : > { %357 = vst [vmem:[%s2833_s6 + $0x218] sm:$0xff] %v356_v3 }
  0x58   : > { %359 = vst [vmem:[%s2833_s6 + $0x220] sm:$0xff] %v358_v4 }
  0x59   : > { %361 = vst [vmem:[%s2833_s6 + $0x228] sm:$0xff] %v360_v5 }
  0x5a   : > { %363 = vst [vmem:[%s2833_s6 + $0x230] sm:$0xff] %v362_v6 }
  0x5b   : > { %365 = vst [vmem:[%s2833_s6 + $0x238] sm:$0xff] %v364_v7 }
  0x5c   : > { %367 = vst [vmem:[%s2833_s6 + $0x240] sm:$0xff] %v366_v8 }
  0x5d   : > { %369 = vst [vmem:[%s2833_s6 + $0x248] sm:$0xff] %v368_v9 }
  0x5e   : > { %371 = vst [vmem:[%s2833_s6 + $0x250] sm:$0xff] %v370_v10 }
  0x5f   : > { %373 = vst [vmem:[%s2833_s6 + $0x258] sm:$0xff] %v372_v11 }
  0x60   : > { %375 = vst [vmem:[%s2833_s6 + $0x260] sm:$0xff] %v374_v12 }
  0x61   : > { %377 = vst [vmem:[%s2833_s6 + $0x268] sm:$0xff] %v376_v13 }
  0x62   : > { %379 = vst [vmem:[%s2833_s6 + $0x270] sm:$0xff] %v378_v14 }
  0x63   : > { %381 = vst [vmem:[%s2833_s6 + $0x278] sm:$0xff] %v380_v15 }
  0x64   : > { %383 = vst [vmem:[%s2833_s6 + $0x280] sm:$0xff] %v382_v16 }
  0x65   : > { %385 = vst [vmem:[%s2833_s6 + $0x288] sm:$0xff] %v384_v17 }
  0x66   : > { %387 = vst [vmem:[%s2833_s6 + $0x290] sm:$0xff] %v386_v18 }
  0x67   : > { %389 = vst [vmem:[%s2833_s6 + $0x298] sm:$0xff] %v388_v19 }
  0x68   : > { %391 = vst [vmem:[%s2833_s6 + $0x2a0] sm:$0xff] %v390_v20 }
  0x69   : > { %393 = vst [vmem:[%s2833_s6 + $0x2a8] sm:$0xff] %v392_v21 }
  0x6a   : > { %395 = vst [vmem:[%s2833_s6 + $0x2b0] sm:$0xff] %v394_v22 }
  0x6b   : > { %397 = vst [vmem:[%s2833_s6 + $0x2b8] sm:$0xff] %v396_v23 }
  0x6c   : > { %399 = vst [vmem:[%s2833_s6 + $0x2c0] sm:$0xff] %v398_v24 }
  0x6d   : > { %401 = vst [vmem:[%s2833_s6 + $0x2c8] sm:$0xff] %v400_v25 }
  0x6e   : > { %403 = vst [vmem:[%s2833_s6 + $0x2d0] sm:$0xff] %v402_v26 }
  0x6f   : > { %405 = vst [vmem:[%s2833_s6 + $0x2d8] sm:$0xff] %v404_v27 }
  0x70   : > { %407 = vst [vmem:[%s2833_s6 + $0x2e0] sm:$0xff] %v406_v28 }
  0x71   : > { %409 = vst [vmem:[%s2833_s6 + $0x2e8] sm:$0xff] %v408_v29 }
  0x72   : > { %411 = vst [vmem:[%s2833_s6 + $0x2f0] sm:$0xff] %v410_v30 }
  0x73   : > { %413 = vst [vmem:[%s2833_s6 + $0x2f8] sm:$0xff] %v412_v31 }
  0x74 PF: > { %p2143_p8 = scmp.ge.s32.totalorder %s2752_s19, 1  ;;  %p418_p9 = scmp.lt.s32.totalorder %s2752_s19, 3 }
  0x76   : > { %p419_p10 = pnand %p2143_p8, %p418_p9 }
  0x77   : > { %s425_s7 = sand.u32 (!%p419_p10), 1, %s2736_s15  }
  0x78   : > { %422 = sbr.rel (%p419_p10) target bundleno = 419 (0x1a3), region = 55  ;;  %s2144_s28 = sshll.u32 (!%p419_p10), %s425_s7, 8 }
  0x79   : > { %s2670_s12 = smul.u32 (!%p419_p10), 768, %s425_s7  ;;  %s3323_s15 = scalar_lea.vmem (!%p419_p10), [#allocation3], %s2144_s28 }
  0x7b   : > { %s3035_s13 = scalar_lea.vmem (!%p419_p10), [#allocation2], %s2670_s12 }
  0x7d   : > { %v1521_v32 = vld [vmem:[%s3565_s2] sm:$0xff]  ;;  %v2754_v34 = vmov 0   ;;  %v2415_v40 = vld [vmem:[%s3035_s13 + $0x208] sm:$0xf]  ;;  %v2637_v44 = vld [vmem:[%s3035_s13 + $0x20c] sm:$0xf] }
  0x7e   : > { %v1597_v33 = vld [vmem:[%s3566_s3] sm:$0xff]  ;;  %2712 = vset.pattern.permute.xlu0 %v2754_v34  ;;  %2713 = vset.pattern.permute.xlu1 %v2754_v34  ;;  %v2653_v41 = vld [vmem:[%s3035_s13 + $0x284] sm:$0xf0]  ;;  %v2417_v45 = vld [vmem:[%s3035_s13 + $0x288] sm:$0xf0]  ;;  %vm1069_vm0 = vcmask 392192  }
  0x7f   : > { %1525 = vperm.xlu0 %2712, %v1521_v32   ;;  %1601 = vperm.xlu1 %2713, %v1597_v33   ;;  %v2407_v35 = vld [vmem:[%s3035_s13 + $0x200] sm:$0xf]  ;;  %v2636_v37 = vld [vmem:[%s3035_s13 + $0x204] sm:$0xf]  ;;  %v2416_v43 = vor.u32 %v2653_v41, %v2415_v40  ;;  %v2420_v47 = vor.u32 %v2637_v44, %v2417_v45  ;;  %v2287_v53 = vld [vmem:[%s3035_s13 + $0x108] sm:$0xf] }
  0x80   : > { %v2652_v36 = vld [vmem:[%s3035_s13 + $0x27c] sm:$0xf0]  ;;  %v2409_v39 = vld [vmem:[%s3035_s13 + $0x280] sm:$0xf0]  ;;  %v2621_v54 = vld [vmem:[%s3035_s13 + $0x184] sm:$0xf0] }
  0x81   : > { %v2408_v38 = vor.u32 %v2652_v36, %v2407_v35  ;;  %v2412_v42 = vor.u32 %v2636_v37, %v2409_v39  ;;  %v2279_v46 = vld [vmem:[%s3035_s13 + $0x100] sm:$0xf]  ;;  %v2604_v49 = vld [vmem:[%s3035_s13 + $0x104] sm:$0xf]  ;;  %1106 = vmatpush.bf16.msra.mxu2 %v2416_v43  ;;  %v2605_v55 = vld [vmem:[%s3035_s13 + $0x10c] sm:$0xf]  ;;  %1120 = vmatpush.bf16.msra.mxu3 %v2420_v47  ;;  %v2288_v56 = vor.u32 %v2621_v54, %v2287_v53 }
  0x82   : > { %v2620_v48 = vld [vmem:[%s3035_s13 + $0x17c] sm:$0xf0]  ;;  %v2281_v50 = vld [vmem:[%s3035_s13 + $0x180] sm:$0xf0]  ;;  %v2289_v57 = vld [vmem:[%s3035_s13 + $0x188] sm:$0xf0] }
  0x83   : > { %1078 = vmatpush.bf16.msra.mxu0 %v2408_v38  ;;  %1092 = vmatpush.bf16.msra.mxu1 %v2412_v42  ;;  %v2280_v51 = vor.u32 %v2620_v48, %v2279_v46  ;;  %v2284_v52 = vor.u32 %v2604_v49, %v2281_v50  ;;  %v2151_v58 = vld [vmem:[%s3035_s13] sm:$0xf]  ;;  %v2292_v60 = vor.u32 %v2605_v55, %v2289_v57  ;;  %v2572_v61 = vld [vmem:[%s3035_s13 + $0x4] sm:$0xf]  ;;  %v2159_v63 = vld [vmem:[%s3035_s13 + $0x8] sm:$0xf] }
  0x84   : > { %v2588_v59 = vld [vmem:[%s3035_s13 + $0x7c] sm:$0xf0]  ;;  %v2153_v62 = vld [vmem:[%s3035_s13 + $0x80] sm:$0xf0]  ;;  %v2589_v1 = vld [vmem:[%s3035_s13 + $0x84] sm:$0xf0] }
  0x85   : > { %v2152_v0 = vor.u32 %v2588_v59, %v2151_v58  ;;  %v2573_v2 = vld [vmem:[%s3035_s13 + $0xc] sm:$0xf]  ;;  %1107 = vmatpush.bf16.msra.mxu2 %v2288_v56  ;;  %v2156_v4 = vor.u32 %v2572_v61, %v2153_v62  ;;  %v2160_v5 = vor.u32 %v2589_v1, %v2159_v63  ;;  %v3064_v6 = vld [vmem:[%s3563_s0] sm:$0xff]  ;;  %v2431_v7 = vld [vmem:[%s3035_s13 + $0x218] sm:$0xf]  ;;  %1121 = vmatpush.bf16.msra.mxu3 %v2292_v60  ;;  %s2668_s29 = sshll.u32 (%p2815_p6), %s2744_s17, 7 }
  0x86   : > { %v2161_v3 = vld [vmem:[%s3035_s13 + $0x88] sm:$0xf0]  ;;  %v2655_v8 = vld [vmem:[%s3035_s13 + $0x294] sm:$0xf0]  ;;  %v2639_v9 = vld [vmem:[%s3035_s13 + $0x21c] sm:$0xf]  ;;  %s3484_s6 = scalar_lea.vmem (%p2815_p6), %s3567_s4, %s2668_s29 }
  0x87   : > { %1079 = vmatpush.bf16.msra.mxu0 %v2280_v51  ;;  %1093 = vmatpush.bf16.msra.mxu1 %v2284_v52  ;;  %v2164_v10 = vor.u32 %v2573_v2, %v2161_v3  ;;  %v2432_v11 = vor.u32 %v2655_v8, %v2431_v7  ;;  %v2433_v12 = vld [vmem:[%s3035_s13 + $0x298] sm:$0xf0]  ;;  %v2423_v13 = vld [vmem:[%s3035_s13 + $0x210] sm:$0xf]  ;;  %v2638_v16 = vld [vmem:[%s3035_s13 + $0x214] sm:$0xf] }
  0x88   : > { %v2654_v14 = vld [vmem:[%s3035_s13 + $0x28c] sm:$0xf0]  ;;  %v2436_v15 = vor.u32 %v2639_v9, %v2433_v12  ;;  %v2425_v17 = vld [vmem:[%s3035_s13 + $0x290] sm:$0xf0]  ;;  %v2303_v18 = vld [vmem:[%s3035_s13 + $0x118] sm:$0xf] }
  0x89   : > { %v2623_v19 = vld [vmem:[%s3035_s13 + $0x194] sm:$0xf0]  ;;  %v2607_v20 = vld [vmem:[%s3035_s13 + $0x11c] sm:$0xf]  ;;  %1108 = vmatpush.bf16.msra.mxu2 %v2160_v5  ;;  %v2424_v22 = vor.u32 %v2654_v14, %v2423_v13  ;;  %v2295_v23 = vld [vmem:[%s3035_s13 + $0x110] sm:$0xf]  ;;  %1122 = vmatpush.bf16.msra.mxu3 %v2164_v10  ;;  %v2428_v24 = vor.u32 %v2638_v16, %v2425_v17 }
  0x8a   : > { %v2305_v21 = vld [vmem:[%s3035_s13 + $0x198] sm:$0xf0]  ;;  %v2304_v25 = vor.u32 %v2623_v19, %v2303_v18  ;;  %v2622_v26 = vld [vmem:[%s3035_s13 + $0x18c] sm:$0xf0]  ;;  %v2606_v27 = vld [vmem:[%s3035_s13 + $0x114] sm:$0xf] }
  0x8b   : > { %1080 = vmatpush.bf16.msra.mxu0 %v2152_v0  ;;  %1094 = vmatpush.bf16.msra.mxu1 %v2156_v4  ;;  %v2297_v28 = vld [vmem:[%s3035_s13 + $0x190] sm:$0xf0]  ;;  %v2308_v29 = vor.u32 %v2607_v20, %v2305_v21  ;;  %v2175_v30 = vld [vmem:[%s3035_s13 + $0x18] sm:$0xf]  ;;  %v2575_v32 = vld [vmem:[%s3035_s13 + $0x1c] sm:$0xf]  ;;  %v2296_v36 = vor.u32 %v2622_v26, %v2295_v23 }
  0x8c   : > { %v2591_v31 = vld [vmem:[%s3035_s13 + $0x94] sm:$0xf0]  ;;  %2535 = vmatmul.msk.bf16.vlgmr.msra.gmra.mxu2 %vm1069_vm0, %v3064_v6  ;;  %v2177_v33 = vld [vmem:[%s3035_s13 + $0x98] sm:$0xf0]  ;;  %v2167_v34 = vld [vmem:[%s3035_s13 + $0x10] sm:$0xf]  ;;  %2536 = vmatmul.msk.bf16.vlgmr.msra.gmra.mxu3 %vm1069_vm0, %v3064_v6  ;;  %v2300_v42 = vor.u32 %v2606_v27, %v2297_v28 }
  0x8d   : > { %1162 = vmatpush.bf16.msrb.mxu2 %v2432_v11  ;;  %1176 = vmatpush.bf16.msrb.mxu3 %v2436_v15  ;;  %v2590_v35 = vld [vmem:[%s3035_s13 + $0x8c] sm:$0xf0]  ;;  %v2574_v37 = vld [vmem:[%s3035_s13 + $0x14] sm:$0xf]  ;;  %v2447_v39 = vld [vmem:[%s3035_s13 + $0x228] sm:$0xf]  ;;  %v2176_v43 = vor.u32 %v2591_v31, %v2175_v30  ;;  %v2180_v47 = vor.u32 %v2575_v32, %v2177_v33 }
  0x8e   : > { %2533 = vmatmul.msk.bf16.vlgmr.msra.gmra.mxu0 %vm1069_vm0, %v3064_v6  ;;  %2534 = vmatmul.msk.bf16.vlgmr.msra.gmra.mxu1 %vm1069_vm0, %v3064_v6  ;;  %v2169_v38 = vld [vmem:[%s3035_s13 + $0x90] sm:$0xf0]  ;;  %v2657_v40 = vld [vmem:[%s3035_s13 + $0x2a4] sm:$0xf0]  ;;  %v2641_v41 = vld [vmem:[%s3035_s13 + $0x22c] sm:$0xf]  ;;  %v2168_v56 = vor.u32 %v2590_v35, %v2167_v34 }
  0x8f   : > { %1134 = vmatpush.bf16.msrb.mxu0 %v2424_v22  ;;  %1148 = vmatpush.bf16.msrb.mxu1 %v2428_v24  ;;  %v2449_v44 = vld [vmem:[%s3035_s13 + $0x2a8] sm:$0xf0]  ;;  %v2448_v48 = vor.u32 %v2657_v40, %v2447_v39  ;;  %v2439_v49 = vld [vmem:[%s3035_s13 + $0x220] sm:$0xf]  ;;  %v2640_v51 = vld [vmem:[%s3035_s13 + $0x224] sm:$0xf]  ;;  %v2172_v59 = vor.u32 %v2574_v37, %v2169_v38 }
  0x90   : > { %v1522_v45 = vld [vmem:[%s3565_s2 + $0x8] sm:$0xff]  ;;  %v2656_v50 = vld [vmem:[%s3035_s13 + $0x29c] sm:$0xf0]  ;;  %v2452_v52 = vor.u32 %v2641_v41, %v2449_v44  ;;  %v2441_v53 = vld [vmem:[%s3035_s13 + $0x2a0] sm:$0xf0] }
  0x91   : > { %1163 = vmatpush.bf16.msrb.mxu2 %v2304_v25  ;;  %v1598_v46 = vld [vmem:[%s3566_s3 + $0x8] sm:$0xff]  ;;  %1177 = vmatpush.bf16.msrb.mxu3 %v2308_v29  ;;  %v2440_v60 = vor.u32 %v2656_v50, %v2439_v49  ;;  %v2444_v61 = vor.u32 %v2640_v51, %v2441_v53  ;;  %v2311_v63 = vld [vmem:[%s3035_s13 + $0x120] sm:$0xf]  ;;  %v2608_v2 = vld [vmem:[%s3035_s13 + $0x124] sm:$0xf] }
  0x92   : > { %1530 = vperm.xlu0 %2712, %v1522_v45   ;;  %1606 = vperm.xlu1 %2713, %v1598_v46   ;;  %v2319_v54 = vld [vmem:[%s3035_s13 + $0x128] sm:$0xf]  ;;  %v2609_v57 = vld [vmem:[%s3035_s13 + $0x12c] sm:$0xf]  ;;  %v2624_v0 = vld [vmem:[%s3035_s13 + $0x19c] sm:$0xf0] }
  0x93   : > { %v2625_v55 = vld [vmem:[%s3035_s13 + $0x1a4] sm:$0xf0]  ;;  %1135 = vmatpush.bf16.msrb.mxu0 %v2296_v36  ;;  %v2321_v58 = vld [vmem:[%s3035_s13 + $0x1a8] sm:$0xf0]  ;;  %1149 = vmatpush.bf16.msrb.mxu1 %v2300_v42  ;;  %v2313_v3 = vld [vmem:[%s3035_s13 + $0x1a0] sm:$0xf0]  ;;  %v2312_v7 = vor.u32 %v2624_v0, %v2311_v63 }
  0x94   : > { %v2320_v62 = vor.u32 %v2625_v55, %v2319_v54  ;;  %v2324_v1 = vor.u32 %v2609_v57, %v2321_v58  ;;  %v2191_v4 = vld [vmem:[%s3035_s13 + $0x28] sm:$0xf]  ;;  %v2577_v8 = vld [vmem:[%s3035_s13 + $0x2c] sm:$0xf]  ;;  %v2183_v10 = vld [vmem:[%s3035_s13 + $0x20] sm:$0xf]  ;;  %v2316_v11 = vor.u32 %v2608_v2, %v2313_v3 }
  0x95   : > { %1164 = vmatpush.bf16.msrb.mxu2 %v2176_v43  ;;  %1178 = vmatpush.bf16.msrb.mxu3 %v2180_v47  ;;  %v2593_v5 = vld [vmem:[%s3035_s13 + $0xa4] sm:$0xf0]  ;;  %v2193_v9 = vld [vmem:[%s3035_s13 + $0xa8] sm:$0xf0]  ;;  %v2592_v12 = vld [vmem:[%s3035_s13 + $0x9c] sm:$0xf0] }
  0x96   : > { %v2576_v13 = vld [vmem:[%s3035_s13 + $0x24] sm:$0xf]  ;;  %v2463_v15 = vld [vmem:[%s3035_s13 + $0x238] sm:$0xf]  ;;  %v2643_v17 = vld [vmem:[%s3035_s13 + $0x23c] sm:$0xf]  ;;  %v2192_v18 = vor.u32 %v2593_v5, %v2191_v4  ;;  %v2196_v22 = vor.u32 %v2577_v8, %v2193_v9  ;;  %v2184_v23 = vor.u32 %v2592_v12, %v2183_v10 }
  0x97   : > { %1136 = vmatpush.bf16.msrb.mxu0 %v2168_v56  ;;  %1150 = vmatpush.bf16.msrb.mxu1 %v2172_v59  ;;  %v2185_v14 = vld [vmem:[%s3035_s13 + $0xa0] sm:$0xf0]  ;;  %v2659_v16 = vld [vmem:[%s3035_s13 + $0x2b4] sm:$0xf0]  ;;  %v2465_v19 = vld [vmem:[%s3035_s13 + $0x2b8] sm:$0xf0] }
  0x98   : > { %v2455_v20 = vld [vmem:[%s3035_s13 + $0x230] sm:$0xf]  ;;  %v2642_v24 = vld [vmem:[%s3035_s13 + $0x234] sm:$0xf]  ;;  %v2188_v26 = vor.u32 %v2576_v13, %v2185_v14  ;;  %v2464_v27 = vor.u32 %v2659_v16, %v2463_v15  ;;  %v2468_v28 = vor.u32 %v2643_v17, %v2465_v19  ;;  %v2335_v30 = vld [vmem:[%s3035_s13 + $0x138] sm:$0xf] }
  0x99   : > { %1218 = vmatpush.bf16.msra.mxu2 %v2448_v48  ;;  %1232 = vmatpush.bf16.msra.mxu3 %v2452_v52  ;;  %v2658_v21 = vld [vmem:[%s3035_s13 + $0x2ac] sm:$0xf0]  ;;  %v2457_v25 = vld [vmem:[%s3035_s13 + $0x2b0] sm:$0xf0]  ;;  %v2627_v31 = vld [vmem:[%s3035_s13 + $0x1b4] sm:$0xf0] }
  0x9a   : > { %v2456_v29 = vor.u32 %v2658_v21, %v2455_v20  ;;  %v2611_v32 = vld [vmem:[%s3035_s13 + $0x13c] sm:$0xf]  ;;  %v2460_v33 = vor.u32 %v2642_v24, %v2457_v25  ;;  %v2327_v35 = vld [vmem:[%s3035_s13 + $0x130] sm:$0xf]  ;;  %v2610_v37 = vld [vmem:[%s3035_s13 + $0x134] sm:$0xf]  ;;  %v2336_v39 = vor.u32 %v2627_v31, %v2335_v30 }
  0x9b   : > { %1190 = vmatpush.bf16.msra.mxu0 %v2440_v60  ;;  %1204 = vmatpush.bf16.msra.mxu1 %v2444_v61  ;;  %v2337_v34 = vld [vmem:[%s3035_s13 + $0x1b8] sm:$0xf0]  ;;  %v2626_v36 = vld [vmem:[%s3035_s13 + $0x1ac] sm:$0xf0]  ;;  %v2329_v38 = vld [vmem:[%s3035_s13 + $0x1b0] sm:$0xf0] }
  0x9c   : > { %2539 = vmatmul.msk.bf16.vlgmr.msrb.gmra.mxu2 %vm1069_vm0, %v3064_v6  ;;  %2540 = vmatmul.msk.bf16.vlgmr.msrb.gmra.mxu3 %vm1069_vm0, %v3064_v6  ;;  %v2340_v40 = vor.u32 %v2611_v32, %v2337_v34  ;;  %v2328_v41 = vor.u32 %v2626_v36, %v2327_v35  ;;  %v2207_v42 = vld [vmem:[%s3035_s13 + $0x38] sm:$0xf]  ;;  %v2579_v44 = vld [vmem:[%s3035_s13 + $0x3c] sm:$0xf]  ;;  %v2332_v45 = vor.u32 %v2610_v37, %v2329_v38  ;;  %v2199_v47 = vld [vmem:[%s3035_s13 + $0x30] sm:$0xf] }
  0x9d   : > { %1219 = vmatpush.bf16.msra.mxu2 %v2320_v62  ;;  %1233 = vmatpush.bf16.msra.mxu3 %v2324_v1  ;;  %v2595_v43 = vld [vmem:[%s3035_s13 + $0xb4] sm:$0xf0]  ;;  %v2209_v46 = vld [vmem:[%s3035_s13 + $0xb8] sm:$0xf0]  ;;  %v2594_v48 = vld [vmem:[%s3035_s13 + $0xac] sm:$0xf0] }
  0x9e   : > { %2537 = vmatmul.msk.bf16.vlgmr.msrb.gmra.mxu0 %vm1069_vm0, %v3064_v6  ;;  %2538 = vmatmul.msk.bf16.vlgmr.msrb.gmra.mxu1 %vm1069_vm0, %v3064_v6  ;;  %v2578_v49 = vld [vmem:[%s3035_s13 + $0x34] sm:$0xf]  ;;  %v2208_v51 = vor.u32 %v2595_v43, %v2207_v42  ;;  %v2212_v52 = vor.u32 %v2579_v44, %v2209_v46  ;;  %v2200_v53 = vor.u32 %v2594_v48, %v2199_v47  ;;  %v2479_v55 = vld [vmem:[%s3035_s13 + $0x248] sm:$0xf]  ;;  %v2645_v57 = vld [vmem:[%s3035_s13 + $0x24c] sm:$0xf] }
  0x9f   : > { %1191 = vmatpush.bf16.msra.mxu0 %v2312_v7  ;;  %1205 = vmatpush.bf16.msra.mxu1 %v2316_v11  ;;  %v2201_v50 = vld [vmem:[%s3035_s13 + $0xb0] sm:$0xf0]  ;;  %v2661_v56 = vld [vmem:[%s3035_s13 + $0x2c4] sm:$0xf0]  ;;  %v2481_v58 = vld [vmem:[%s3035_s13 + $0x2c8] sm:$0xf0] }
  0xa0   : > { %v2204_v54 = vor.u32 %v2578_v49, %v2201_v50  ;;  %v2471_v59 = vld [vmem:[%s3035_s13 + $0x240] sm:$0xf]  ;;  %v2644_v61 = vld [vmem:[%s3035_s13 + $0x244] sm:$0xf]  ;;  %v2480_v63 = vor.u32 %v2661_v56, %v2479_v55  ;;  %v2484_v0 = vor.u32 %v2645_v57, %v2481_v58  ;;  %v2351_v2 = vld [vmem:[%s3035_s13 + $0x148] sm:$0xf] }
  0xa1   : > { %1220 = vmatpush.bf16.msra.mxu2 %v2192_v18  ;;  %1234 = vmatpush.bf16.msra.mxu3 %v2196_v22  ;;  %v2660_v60 = vld [vmem:[%s3035_s13 + $0x2bc] sm:$0xf0]  ;;  %v2473_v62 = vld [vmem:[%s3035_s13 + $0x2c0] sm:$0xf0]  ;;  %v2629_v3 = vld [vmem:[%s3035_s13 + $0x1c4] sm:$0xf0] }
  0xa2   : > { %v2472_v1 = vor.u32 %v2660_v60, %v2471_v59  ;;  %v2613_v4 = vld [vmem:[%s3035_s13 + $0x14c] sm:$0xf]  ;;  %v2476_v5 = vor.u32 %v2644_v61, %v2473_v62  ;;  %v2343_v8 = vld [vmem:[%s3035_s13 + $0x140] sm:$0xf]  ;;  %v2612_v10 = vld [vmem:[%s3035_s13 + $0x144] sm:$0xf]  ;;  %v2352_v12 = vor.u32 %v2629_v3, %v2351_v2 }
  0xa3   : > { %1192 = vmatpush.bf16.msra.mxu0 %v2184_v23  ;;  %1206 = vmatpush.bf16.msra.mxu1 %v2188_v26  ;;  %v2353_v7 = vld [vmem:[%s3035_s13 + $0x1c8] sm:$0xf0]  ;;  %v2628_v9 = vld [vmem:[%s3035_s13 + $0x1bc] sm:$0xf0]  ;;  %v2345_v11 = vld [vmem:[%s3035_s13 + $0x1c0] sm:$0xf0] }
  0xa4   : > { %v2356_v13 = vor.u32 %v2613_v4, %v2353_v7  ;;  %v2344_v14 = vor.u32 %v2628_v9, %v2343_v8  ;;  %v2223_v15 = vld [vmem:[%s3035_s13 + $0x48] sm:$0xf]  ;;  %v2581_v17 = vld [vmem:[%s3035_s13 + $0x4c] sm:$0xf]  ;;  %v2348_v18 = vor.u32 %v2612_v10, %v2345_v11  ;;  %v2215_v20 = vld [vmem:[%s3035_s13 + $0x40] sm:$0xf] }
  0xa5   : > { %1274 = vmatpush.bf16.msrb.mxu2 %v2464_v27  ;;  %1288 = vmatpush.bf16.msrb.mxu3 %v2468_v28  ;;  %v2597_v16 = vld [vmem:[%s3035_s13 + $0xc4] sm:$0xf0]  ;;  %v2225_v19 = vld [vmem:[%s3035_s13 + $0xc8] sm:$0xf0]  ;;  %v2596_v21 = vld [vmem:[%s3035_s13 + $0xbc] sm:$0xf0] }
  0xa6   : > { %v2580_v22 = vld [vmem:[%s3035_s13 + $0x44] sm:$0xf]  ;;  %v2224_v24 = vor.u32 %v2597_v16, %v2223_v15  ;;  %v2228_v25 = vor.u32 %v2581_v17, %v2225_v19  ;;  %v2216_v26 = vor.u32 %v2596_v21, %v2215_v20  ;;  %v2495_v28 = vld [vmem:[%s3035_s13 + $0x258] sm:$0xf]  ;;  %v2647_v30 = vld [vmem:[%s3035_s13 + $0x25c] sm:$0xf] }
  0xa7   : > { %1246 = vmatpush.bf16.msrb.mxu0 %v2456_v29  ;;  %1260 = vmatpush.bf16.msrb.mxu1 %v2460_v33  ;;  %v2217_v23 = vld [vmem:[%s3035_s13 + $0xc0] sm:$0xf0]  ;;  %v2663_v29 = vld [vmem:[%s3035_s13 + $0x2d4] sm:$0xf0]  ;;  %v2497_v31 = vld [vmem:[%s3035_s13 + $0x2d8] sm:$0xf0] }
  0xa8   : > { %v2220_v27 = vor.u32 %v2580_v22, %v2217_v23  ;;  %v2487_v32 = vld [vmem:[%s3035_s13 + $0x250] sm:$0xf]  ;;  %v2646_v34 = vld [vmem:[%s3035_s13 + $0x254] sm:$0xf]  ;;  %v2496_v36 = vor.u32 %v2663_v29, %v2495_v28  ;;  %v2500_v37 = vor.u32 %v2647_v30, %v2497_v31  ;;  %v2369_v43 = vld [vmem:[%s3035_s13 + $0x1d8] sm:$0xf0] }
  0xa9   : > { %1275 = vmatpush.bf16.msrb.mxu2 %v2336_v39  ;;  %1289 = vmatpush.bf16.msrb.mxu3 %v2340_v40  ;;  %v2662_v33 = vld [vmem:[%s3035_s13 + $0x2cc] sm:$0xf0]  ;;  %v2489_v35 = vld [vmem:[%s3035_s13 + $0x2d0] sm:$0xf0]  ;;  %v2367_v39 = vld [vmem:[%s3035_s13 + $0x158] sm:$0xf] }
  0xaa   : > { %v2488_v38 = vor.u32 %v2662_v33, %v2487_v32  ;;  %v2631_v40 = vld [vmem:[%s3035_s13 + $0x1d4] sm:$0xf0]  ;;  %v2492_v42 = vor.u32 %v2646_v34, %v2489_v35  ;;  %v2359_v44 = vld [vmem:[%s3035_s13 + $0x150] sm:$0xf]  ;;  %v2614_v46 = vld [vmem:[%s3035_s13 + $0x154] sm:$0xf] }
  0xab   : > { %1247 = vmatpush.bf16.msrb.mxu0 %v2328_v41  ;;  %1261 = vmatpush.bf16.msrb.mxu1 %v2332_v45  ;;  %v2615_v41 = vld [vmem:[%s3035_s13 + $0x15c] sm:$0xf]  ;;  %v2630_v45 = vld [vmem:[%s3035_s13 + $0x1cc] sm:$0xf0]  ;;  %v2361_v47 = vld [vmem:[%s3035_s13 + $0x1d0] sm:$0xf0]  ;;  %v2368_v48 = vor.u32 %v2631_v40, %v2367_v39 }
  0xac   : > { %2543 = vmatmul.msk.bf16.vlgmr.msra.gmra.mxu2 %vm1069_vm0, %v3064_v6  ;;  %2544 = vmatmul.msk.bf16.vlgmr.msra.gmra.mxu3 %vm1069_vm0, %v3064_v6  ;;  %v2372_v49 = vor.u32 %v2615_v41, %v2369_v43  ;;  %v2360_v50 = vor.u32 %v2630_v45, %v2359_v44  ;;  %v2241_v55 = vld [vmem:[%s3035_s13 + $0xd8] sm:$0xf0]  ;;  %v2231_v56 = vld [vmem:[%s3035_s13 + $0x50] sm:$0xf]  ;;  %v2582_v58 = vld [vmem:[%s3035_s13 + $0x54] sm:$0xf] }
  0xad   : > { %1276 = vmatpush.bf16.msrb.mxu2 %v2208_v51  ;;  %1290 = vmatpush.bf16.msrb.mxu3 %v2212_v52  ;;  %v2239_v51 = vld [vmem:[%s3035_s13 + $0x58] sm:$0xf]  ;;  %v2598_v57 = vld [vmem:[%s3035_s13 + $0xcc] sm:$0xf0]  ;;  %v2233_v59 = vld [vmem:[%s3035_s13 + $0xd0] sm:$0xf0] }
  0xae   : > { %2541 = vmatmul.msk.bf16.vlgmr.msra.gmra.mxu0 %vm1069_vm0, %v3064_v6  ;;  %2542 = vmatmul.msk.bf16.vlgmr.msra.gmra.mxu1 %vm1069_vm0, %v3064_v6  ;;  %v2599_v52 = vld [vmem:[%s3035_s13 + $0xd4] sm:$0xf0]  ;;  %v2232_v62 = vor.u32 %v2598_v57, %v2231_v56  ;;  %v2649_v2 = vld [vmem:[%s3035_s13 + $0x26c] sm:$0xf]  ;;  %v2503_v4 = vld [vmem:[%s3035_s13 + $0x260] sm:$0xf] }
  0xaf   : > { %1248 = vmatpush.bf16.msrb.mxu0 %v2200_v53  ;;  %1262 = vmatpush.bf16.msrb.mxu1 %v2204_v54  ;;  %v2583_v53 = vld [vmem:[%s3035_s13 + $0x5c] sm:$0xf]  ;;  %v2364_v54 = vor.u32 %v2614_v46, %v2361_v47  ;;  %v2240_v60 = vor.u32 %v2599_v52, %v2239_v51  ;;  %v2513_v3 = vld [vmem:[%s3035_s13 + $0x2e8] sm:$0xf0]  ;;  %v2648_v7 = vld [vmem:[%s3035_s13 + $0x264] sm:$0xf] }
  0xb0   : > { %v2244_v61 = vor.u32 %v2583_v53, %v2241_v55  ;;  %v2505_v8 = vld [vmem:[%s3035_s13 + $0x2e0] sm:$0xf0]  ;;  %v2516_v10 = vor.u32 %v2649_v2, %v2513_v3  ;;  %v2385_v16 = vld [vmem:[%s3035_s13 + $0x1e8] sm:$0xf0]  ;;  %v2375_v17 = vld [vmem:[%s3035_s13 + $0x160] sm:$0xf] }
  0xb1   : > { %1330 = vmatpush.bf16.msra.mxu2 %v2480_v63  ;;  %1344 = vmatpush.bf16.msra.mxu3 %v2484_v0  ;;  %v2236_v63 = vor.u32 %v2582_v58, %v2233_v59  ;;  %v2511_v0 = vld [vmem:[%s3035_s13 + $0x268] sm:$0xf]  ;;  %v2508_v15 = vor.u32 %v2648_v7, %v2505_v8  ;;  %v2616_v19 = vld [vmem:[%s3035_s13 + $0x164] sm:$0xf]  ;;  %v2257_v28 = vld [vmem:[%s3035_s13 + $0xe8] sm:$0xf0] }
  0xb2   : > { %v2377_v20 = vld [vmem:[%s3035_s13 + $0x1e0] sm:$0xf0]  ;;  %v2247_v29 = vld [vmem:[%s3035_s13 + $0x60] sm:$0xf]  ;;  %v2651_v39 = vld [vmem:[%s3035_s13 + $0x27c] sm:$0xf] }
  0xb3   : > { %1302 = vmatpush.bf16.msra.mxu0 %v2472_v1  ;;  %1316 = vmatpush.bf16.msra.mxu1 %v2476_v5  ;;  %v2665_v1 = vld [vmem:[%s3035_s13 + $0x2e4] sm:$0xf0]  ;;  %v2664_v5 = vld [vmem:[%s3035_s13 + $0x2dc] sm:$0xf0]  ;;  %v2584_v31 = vld [vmem:[%s3035_s13 + $0x64] sm:$0xf] }
  0xb4   : > { %v2512_v9 = vor.u32 %v2665_v1, %v2511_v0  ;;  %v2504_v11 = vor.u32 %v2664_v5, %v2503_v4  ;;  %v2600_v30 = vld [vmem:[%s3035_s13 + $0xdc] sm:$0xf0]  ;;  %v2249_v32 = vld [vmem:[%s3035_s13 + $0xe0] sm:$0xf0]  ;;  %v2529_v40 = vld [vmem:[%s3035_s13 + $0x2f8] sm:$0xf0] }
  0xb5   : > { %1331 = vmatpush.bf16.msra.mxu2 %v2352_v12  ;;  %1345 = vmatpush.bf16.msra.mxu3 %v2356_v13  ;;  %v2383_v12 = vld [vmem:[%s3035_s13 + $0x168] sm:$0xf]  ;;  %v2248_v35 = vor.u32 %v2600_v30, %v2247_v29  ;;  %v2519_v41 = vld [vmem:[%s3035_s13 + $0x270] sm:$0xf]  ;;  %v2650_v43 = vld [vmem:[%s3035_s13 + $0x274] sm:$0xf]  ;;  %v2532_v46 = vor.u32 %v2651_v39, %v2529_v40 }
  0xb6   : > { %v2633_v13 = vld [vmem:[%s3035_s13 + $0x1e4] sm:$0xf0]  ;;  %v2521_v44 = vld [vmem:[%s3035_s13 + $0x2f0] sm:$0xf0]  ;;  %v2401_v52 = vld [vmem:[%s3035_s13 + $0x1f8] sm:$0xf0] }
  0xb7   : > { %1303 = vmatpush.bf16.msra.mxu0 %v2344_v14  ;;  %1317 = vmatpush.bf16.msra.mxu1 %v2348_v18  ;;  %v2617_v14 = vld [vmem:[%s3035_s13 + $0x16c] sm:$0xf]  ;;  %v2632_v18 = vld [vmem:[%s3035_s13 + $0x1dc] sm:$0xf0]  ;;  %v2384_v21 = vor.u32 %v2633_v13, %v2383_v12  ;;  %v2524_v51 = vor.u32 %v2650_v43, %v2521_v44  ;;  %v2391_v53 = vld [vmem:[%s3035_s13 + $0x170] sm:$0xf] }
  0xb8   : > { %v2388_v22 = vor.u32 %v2617_v14, %v2385_v16  ;;  %v2376_v23 = vor.u32 %v2632_v18, %v2375_v17  ;;  %v2618_v55 = vld [vmem:[%s3035_s13 + $0x174] sm:$0xf]  ;;  %v2273_v0 = vld [vmem:[%s3035_s13 + $0xf8] sm:$0xf0]  ;;  %v2263_v1 = vld [vmem:[%s3035_s13 + $0x70] sm:$0xf] }
  0xb9   : > { %1332 = vmatpush.bf16.msra.mxu2 %v2224_v24  ;;  %1346 = vmatpush.bf16.msra.mxu3 %v2228_v25  ;;  %v2255_v24 = vld [vmem:[%s3035_s13 + $0x68] sm:$0xf]  ;;  %v2393_v56 = vld [vmem:[%s3035_s13 + $0x1f0] sm:$0xf0]  ;;  %v2602_v2 = vld [vmem:[%s3035_s13 + $0xec] sm:$0xf0] }
  0xba   : > { %v2601_v25 = vld [vmem:[%s3035_s13 + $0xe4] sm:$0xf0]  ;;  %v2586_v3 = vld [vmem:[%s3035_s13 + $0x74] sm:$0xf]  ;;  %v2264_v8 = vor.u32 %v2602_v2, %v2263_v1 }
  0xbb   : > { %1304 = vmatpush.bf16.msra.mxu0 %v2216_v26  ;;  %1318 = vmatpush.bf16.msra.mxu1 %v2220_v27  ;;  %v2585_v26 = vld [vmem:[%s3035_s13 + $0x6c] sm:$0xf]  ;;  %v2380_v27 = vor.u32 %v2616_v19, %v2377_v20  ;;  %v2256_v33 = vor.u32 %v2601_v25, %v2255_v24  ;;  %v2265_v4 = vld [vmem:[%s3035_s13 + $0xf0] sm:$0xf0] }
  0xbc   : > { %2547 = vmatmul.msk.bf16.vlgmr.msrb.gmra.mxu2 %vm1069_vm0, %v3064_v6  ;;  %2548 = vmatmul.msk.bf16.vlgmr.msrb.gmra.mxu3 %vm1069_vm0, %v3064_v6  ;;  %v2260_v34 = vor.u32 %v2585_v26, %v2257_v28 }
  0xbd   : > { %1386 = vmatpush.bf16.msrb.mxu2 %v2496_v36  ;;  %1400 = vmatpush.bf16.msrb.mxu3 %v2500_v37  ;;  %v2252_v36 = vor.u32 %v2584_v31, %v2249_v32  ;;  %v2527_v37 = vld [vmem:[%s3035_s13 + $0x278] sm:$0xf] }
  0xbe   : > { %2545 = vmatmul.msk.bf16.vlgmr.msrb.gmra.mxu0 %vm1069_vm0, %v3064_v6  ;;  %2546 = vmatmul.msk.bf16.vlgmr.msrb.gmra.mxu1 %vm1069_vm0, %v3064_v6 }
  0xbf   : > { %1358 = vmatpush.bf16.msrb.mxu0 %v2488_v38  ;;  %1372 = vmatpush.bf16.msrb.mxu1 %v2492_v42  ;;  %v2667_v38 = vld [vmem:[%s3035_s13 + $0x2f4] sm:$0xf0]  ;;  %v2666_v42 = vld [vmem:[%s3035_s13 + $0x2ec] sm:$0xf0] }
  0xc0   : > { %v2528_v45 = vor.u32 %v2667_v38, %v2527_v37  ;;  %v2520_v47 = vor.u32 %v2666_v42, %v2519_v41 }
  0xc1   : > { %1387 = vmatpush.bf16.msrb.mxu2 %v2368_v48  ;;  %1401 = vmatpush.bf16.msrb.mxu3 %v2372_v49  ;;  %v2399_v48 = vld [vmem:[%s3035_s13 + $0x178] sm:$0xf] }
  0xc2   : > { %v2635_v49 = vld [vmem:[%s3035_s13 + $0x1f4] sm:$0xf0] }
  0xc3   : > { %1359 = vmatpush.bf16.msrb.mxu0 %v2360_v50  ;;  %1373 = vmatpush.bf16.msrb.mxu1 %v2364_v54  ;;  %v2619_v50 = vld [vmem:[%s3035_s13 + $0x17c] sm:$0xf]  ;;  %v2634_v54 = vld [vmem:[%s3035_s13 + $0x1ec] sm:$0xf0]  ;;  %v2400_v57 = vor.u32 %v2635_v49, %v2399_v48 }
  0xc4   : > { %v2404_v58 = vor.u32 %v2619_v50, %v2401_v52  ;;  %v2392_v59 = vor.u32 %v2634_v54, %v2391_v53 }
  0xc5   : > { %1388 = vmatpush.bf16.msrb.mxu2 %v2240_v60  ;;  %1402 = vmatpush.bf16.msrb.mxu3 %v2244_v61  ;;  %v2271_v60 = vld [vmem:[%s3035_s13 + $0x78] sm:$0xf] }
  0xc6   : > { %v2603_v61 = vld [vmem:[%s3035_s13 + $0xf4] sm:$0xf0] }
  0xc7   : > { %1360 = vmatpush.bf16.msrb.mxu0 %v2232_v62  ;;  %1374 = vmatpush.bf16.msrb.mxu1 %v2236_v63  ;;  %v2587_v62 = vld [vmem:[%s3035_s13 + $0x7c] sm:$0xf]  ;;  %v2396_v63 = vor.u32 %v2618_v55, %v2393_v56  ;;  %v2272_v5 = vor.u32 %v2603_v61, %v2271_v60 }
  0xc8   : > { %v2276_v7 = vor.u32 %v2587_v62, %v2273_v0 }
  0xcc   : > { %2551 = vmatmul.msk.bf16.vlgmr.msra.gmra.mxu2 %vm1069_vm0, %v3064_v6  ;;  %2552 = vmatmul.msk.bf16.vlgmr.msra.gmra.mxu3 %vm1069_vm0, %v3064_v6 }
  0xcd   : > { %1442 = vmatpush.bf16.msra.mxu2 %v2512_v9  ;;  %1456 = vmatpush.bf16.msra.mxu3 %v2516_v10  ;;  %v2268_v9 = vor.u32 %v2586_v3, %v2265_v4 }
  0xce   : > { %2549 = vmatmul.msk.bf16.vlgmr.msra.gmra.mxu0 %vm1069_vm0, %v3064_v6  ;;  %2550 = vmatmul.msk.bf16.vlgmr.msra.gmra.mxu1 %vm1069_vm0, %v3064_v6 }
  0xcf   : > { %1414 = vmatpush.bf16.msra.mxu0 %v2504_v11  ;;  %1428 = vmatpush.bf16.msra.mxu1 %v2508_v15 }
  0xd1   : > { %1443 = vmatpush.bf16.msra.mxu2 %v2384_v21  ;;  %1457 = vmatpush.bf16.msra.mxu3 %v2388_v22 }
  0xd3   : > { %1415 = vmatpush.bf16.msra.mxu0 %v2376_v23  ;;  %1429 = vmatpush.bf16.msra.mxu1 %v2380_v27 }
  0xd5   : > { %1444 = vmatpush.bf16.msra.mxu2 %v2256_v33  ;;  %1458 = vmatpush.bf16.msra.mxu3 %v2260_v34 }
  0xd7   : > { %1416 = vmatpush.bf16.msra.mxu0 %v2248_v35  ;;  %1430 = vmatpush.bf16.msra.mxu1 %v2252_v36 }
  0xdc   : > { %2555 = vmatmul.msk.bf16.vlgmr.msrb.gmra.mxu2 %vm1069_vm0, %v3064_v6  ;;  %2556 = vmatmul.msk.bf16.vlgmr.msrb.gmra.mxu3 %vm1069_vm0, %v3064_v6 }
  0xdd   : > { %1498 = vmatpush.bf16.msrb.mxu2 %v2528_v45  ;;  %1512 = vmatpush.bf16.msrb.mxu3 %v2532_v46 }
  0xde   : > { %2553 = vmatmul.msk.bf16.vlgmr.msrb.gmra.mxu0 %vm1069_vm0, %v3064_v6  ;;  %2554 = vmatmul.msk.bf16.vlgmr.msrb.gmra.mxu1 %vm1069_vm0, %v3064_v6 }
  0xdf   : > { %1470 = vmatpush.bf16.msrb.mxu0 %v2520_v47  ;;  %1484 = vmatpush.bf16.msrb.mxu1 %v2524_v51 }
  0xe1   : > { %1499 = vmatpush.bf16.msrb.mxu2 %v2400_v57  ;;  %1513 = vmatpush.bf16.msrb.mxu3 %v2404_v58 }
  0xe3   : > { %1471 = vmatpush.bf16.msrb.mxu0 %v2392_v59  ;;  %1485 = vmatpush.bf16.msrb.mxu1 %v2396_v63 }
  0xe5   : > { %1500 = vmatpush.bf16.msrb.mxu2 %v2272_v5  ;;  %1514 = vmatpush.bf16.msrb.mxu3 %v2276_v7 }
  0xe7   : > { %1472 = vmatpush.bf16.msrb.mxu0 %v2264_v8  ;;  %1486 = vmatpush.bf16.msrb.mxu1 %v2268_v9 }
  0xec   : > { %2559 = vmatmul.msk.bf16.vlgmr.msra.gmra.mxu2 %vm1069_vm0, %v3064_v6  ;;  %2560 = vmatmul.msk.bf16.vlgmr.msra.gmra.mxu3 %vm1069_vm0, %v3064_v6 }
  0xee   : > { %2557 = vmatmul.msk.bf16.vlgmr.msra.gmra.mxu0 %vm1069_vm0, %v3064_v6  ;;  %2558 = vmatmul.msk.bf16.vlgmr.msra.gmra.mxu1 %vm1069_vm0, %v3064_v6 }
  0xf1   : > { %v3304_v10 = vpop.permute.xlu0 %1525  ;;  %v3306_v11 = vpop.permute.xlu1 %1601 }
  0xfc   : > { %2563 = vmatmul.msk.bf16.vlgmr.msrb.gmra.mxu2 %vm1069_vm0, %v3064_v6  ;;  %2564 = vmatmul.msk.bf16.vlgmr.msrb.gmra.mxu3 %vm1069_vm0, %v3064_v6 }
  0xfe   : > { %2561 = vmatmul.msk.bf16.vlgmr.msrb.gmra.mxu0 %vm1069_vm0, %v3064_v6  ;;  %2562 = vmatmul.msk.bf16.vlgmr.msrb.gmra.mxu1 %vm1069_vm0, %v3064_v6 }
 0x104   : > { %v3314_v19 = vpop.permute.xlu0 %1530  ;;  %v3316_v22 = vpop.permute.xlu1 %1606 }
 0x10b   : > { %v1082_v12 = vpop.f32.mrf.mxu0  ;;  %v1096_v14 = vpop.f32.mrf.mxu1 }
 0x10c   : > { %v1533_v13 = vmul.f32 %v3304_v10, %v1082_v12  ;;  %v1534_v15 = vmul.f32 %v3304_v10, %v1096_v14 }
 0x10e   : > { %v1609_v16 = vadd.f32 %v3306_v11, %v1533_v13  ;;  %v1610_v17 = vadd.f32 %v3306_v11, %v1534_v15 }
 0x10f   : > { %v1110_v21 = vpop.f32.mrf.mxu2  ;;  %v1124_v25 = vpop.f32.mrf.mxu3 }
 0x110   : > { %vm1673_vm1 = vcmp.gt.f32.partialorder %v1609_v16, 0.0  ;;  %v1737_v18 = vmul.f32 0.2, %v1609_v16  ;;  %vm1674_vm2 = vcmp.gt.f32.partialorder %v1610_v17, 0.0  ;;  %v1738_v6 = vmul.f32 0.2, %v1610_v17 }
 0x111   : > { %v1535_v24 = vmul.f32 %v3304_v10, %v1110_v21  ;;  %v1536_v28 = vmul.f32 %v3304_v10, %v1124_v25 }
 0x112   : > { %v1801_v20 = vsel %vm1673_vm1, %v1609_v16, %v1737_v18  ;;  %v1802_v23 = vsel %vm1674_vm2, %v1610_v17, %v1738_v6 }
 0x113   : > { %v1084_v26 = vpop.f32.mrf.mxu0  ;;  %v1865_v27 = vpack.c.bf16 %v1802_v23, %v1801_v20  ;;  %v1098_v30 = vpop.f32.mrf.mxu1  ;;  %v1611_v31 = vadd.f32 %v3306_v11, %v1535_v24  ;;  %v1612_v33 = vadd.f32 %v3306_v11, %v1536_v28 }
 0x114   : > { %v1565_v29 = vmul.f32 %v3314_v19, %v1084_v26  ;;  %v1566_v32 = vmul.f32 %v3314_v19, %v1098_v30 }
 0x115   : > { %1897 = vst [vmem:[%s3323_s15] sm:$0xff] %v1865_v27  ;;  %vm1675_vm3 = vcmp.gt.f32.partialorder %v1611_v31, 0.0  ;;  %v1739_v35 = vmul.f32 0.2, %v1611_v31  ;;  %vm1676_vm4 = vcmp.gt.f32.partialorder %v1612_v33, 0.0  ;;  %v1740_v37 = vmul.f32 0.2, %v1612_v33 }
 0x116   : > { %v1641_v34 = vadd.f32 %v3316_v22, %v1565_v29  ;;  %v1642_v36 = vadd.f32 %v3316_v22, %v1566_v32 }
 0x117   : > { %v1803_v39 = vsel %vm1675_vm3, %v1611_v31, %v1739_v35  ;;  %v1804_v41 = vsel %vm1676_vm4, %v1612_v33, %v1740_v37  ;;  %v1112_v43 = vpop.f32.mrf.mxu2  ;;  %v1126_v47 = vpop.f32.mrf.mxu3 }
 0x118   : > { %vm1705_vm5 = vcmp.gt.f32.partialorder %v1641_v34, 0.0  ;;  %v1769_v38 = vmul.f32 0.2, %v1641_v34  ;;  %vm1706_vm6 = vcmp.gt.f32.partialorder %v1642_v36, 0.0  ;;  %v1770_v40 = vmul.f32 0.2, %v1642_v36 }
 0x119   : > { %v1866_v44 = vpack.c.bf16 %v1804_v41, %v1803_v39  ;;  %v1567_v46 = vmul.f32 %v3314_v19, %v1112_v43  ;;  %v1568_v50 = vmul.f32 %v3314_v19, %v1126_v47 }
 0x11a   : > { %v1833_v42 = vsel %vm1705_vm5, %v1641_v34, %v1769_v38  ;;  %v1834_v45 = vsel %vm1706_vm6, %v1642_v36, %v1770_v40 }
 0x11b   : > { %v1138_v48 = vpop.f32.mrf.mxu0  ;;  %v1881_v49 = vpack.c.bf16 %v1834_v45, %v1833_v42  ;;  %v1152_v52 = vpop.f32.mrf.mxu1  ;;  %1898 = vst [vmem:[%s3323_s15 + $0x8] sm:$0xff] %v1866_v44  ;;  %v1643_v53 = vadd.f32 %v3316_v22, %v1567_v46  ;;  %v1644_v55 = vadd.f32 %v3316_v22, %v1568_v50 }
 0x11c   : > { %v1537_v51 = vmul.f32 %v3304_v10, %v1138_v48  ;;  %v1538_v54 = vmul.f32 %v3304_v10, %v1152_v52 }
 0x11d   : > { %1913 = vst [vmem:[%s3323_s15 + $0x80] sm:$0xff] %v1881_v49  ;;  %vm1707_vm7 = vcmp.gt.f32.partialorder %v1643_v53, 0.0  ;;  %v1771_v57 = vmul.f32 0.2, %v1643_v53  ;;  %vm1708_vm8 = vcmp.gt.f32.partialorder %v1644_v55, 0.0 }
 0x11e   : > { %v1613_v56 = vadd.f32 %v3306_v11, %v1537_v51  ;;  %v1614_v58 = vadd.f32 %v3306_v11, %v1538_v54  ;;  %v1772_v59 = vmul.f32 0.2, %v1644_v55 }
 0x11f   : > { %v1835_v61 = vsel %vm1707_vm7, %v1643_v53, %v1771_v57  ;;  %v1166_v1 = vpop.f32.mrf.mxu2  ;;  %v1180_v5 = vpop.f32.mrf.mxu3 }
 0x120   : > { %vm1677_vm9 = vcmp.gt.f32.partialorder %v1613_v56, 0.0  ;;  %v1741_v60 = vmul.f32 0.2, %v1613_v56  ;;  %vm1678_vm10 = vcmp.gt.f32.partialorder %v1614_v58, 0.0  ;;  %v1742_v62 = vmul.f32 0.2, %v1614_v58 }
 0x121   : > { %v1836_v63 = vsel %vm1708_vm8, %v1644_v55, %v1772_v59  ;;  %v1539_v4 = vmul.f32 %v3304_v10, %v1166_v1  ;;  %v1540_v9 = vmul.f32 %v3304_v10, %v1180_v5 }
 0x122   : > { %v1805_v0 = vsel %vm1677_vm9, %v1613_v56, %v1741_v60  ;;  %v1882_v2 = vpack.c.bf16 %v1836_v63, %v1835_v61  ;;  %v1806_v3 = vsel %vm1678_vm10, %v1614_v58, %v1742_v62 }
 0x123   : > { %v1140_v7 = vpop.f32.mrf.mxu0  ;;  %v1867_v8 = vpack.c.bf16 %v1806_v3, %v1805_v0  ;;  %v1154_v13 = vpop.f32.mrf.mxu1  ;;  %v1615_v14 = vadd.f32 %v3306_v11, %v1539_v4  ;;  %v1616_v16 = vadd.f32 %v3306_v11, %v1540_v9 }
 0x124   : > { %v1569_v12 = vmul.f32 %v3314_v19, %v1140_v7  ;;  %1914 = vst [vmem:[%s3323_s15 + $0x88] sm:$0xff] %v1882_v2  ;;  %v1570_v15 = vmul.f32 %v3314_v19, %v1154_v13 }
 0x125   : > { %1899 = vst [vmem:[%s3323_s15 + $0x10] sm:$0xff] %v1867_v8  ;;  %vm1679_vm11 = vcmp.gt.f32.partialorder %v1615_v14, 0.0  ;;  %v1743_v18 = vmul.f32 0.2, %v1615_v14  ;;  %vm1680_vm12 = vcmp.gt.f32.partialorder %v1616_v16, 0.0 }
 0x126   : > { %v1645_v17 = vadd.f32 %v3316_v22, %v1569_v12  ;;  %v1646_v6 = vadd.f32 %v3316_v22, %v1570_v15  ;;  %v1744_v20 = vmul.f32 0.2, %v1616_v16 }
 0x127   : > { %v1807_v23 = vsel %vm1679_vm11, %v1615_v14, %v1743_v18  ;;  %v1168_v27 = vpop.f32.mrf.mxu2  ;;  %v1182_v31 = vpop.f32.mrf.mxu3 }
 0x128   : > { %vm1709_vm13 = vcmp.gt.f32.partialorder %v1645_v17, 0.0  ;;  %v1773_v21 = vmul.f32 0.2, %v1645_v17  ;;  %vm1710_vm14 = vcmp.gt.f32.partialorder %v1646_v6, 0.0  ;;  %v1774_v24 = vmul.f32 0.2, %v1646_v6 }
 0x129   : > { %v1808_v25 = vsel %vm1680_vm12, %v1616_v16, %v1744_v20  ;;  %v1571_v30 = vmul.f32 %v3314_v19, %v1168_v27  ;;  %v1572_v34 = vmul.f32 %v3314_v19, %v1182_v31 }
 0x12a   : > { %v1837_v26 = vsel %vm1709_vm13, %v1645_v17, %v1773_v21  ;;  %v1868_v28 = vpack.c.bf16 %v1808_v25, %v1807_v23  ;;  %v1838_v29 = vsel %vm1710_vm14, %v1646_v6, %v1774_v24 }
 0x12b   : > { %v1194_v32 = vpop.f32.mrf.mxu0  ;;  %v1883_v33 = vpack.c.bf16 %v1838_v29, %v1837_v26  ;;  %v1208_v36 = vpop.f32.mrf.mxu1  ;;  %v1647_v37 = vadd.f32 %v3316_v22, %v1571_v30  ;;  %v1648_v39 = vadd.f32 %v3316_v22, %v1572_v34 }
 0x12c   : > { %v1541_v35 = vmul.f32 %v3304_v10, %v1194_v32  ;;  %1900 = vst [vmem:[%s3323_s15 + $0x18] sm:$0xff] %v1868_v28  ;;  %v1542_v38 = vmul.f32 %v3304_v10, %v1208_v36 }
 0x12d   : > { %1915 = vst [vmem:[%s3323_s15 + $0x90] sm:$0xff] %v1883_v33  ;;  %vm1711_vm15 = vcmp.gt.f32.partialorder %v1647_v37, 0.0  ;;  %v1775_v41 = vmul.f32 0.2, %v1647_v37  ;;  %vm1712_vm0 = vcmp.gt.f32.partialorder %v1648_v39, 0.0 }
 0x12e   : > { %v1617_v40 = vadd.f32 %v3306_v11, %v1541_v35  ;;  %v1618_v42 = vadd.f32 %v3306_v11, %v1542_v38  ;;  %v1776_v43 = vmul.f32 0.2, %v1648_v39 }
 0x12f   : > { %v1839_v45 = vsel %vm1711_vm15, %v1647_v37, %v1775_v41  ;;  %v1222_v49 = vpop.f32.mrf.mxu2  ;;  %v1236_v53 = vpop.f32.mrf.mxu3 }
 0x130   : > { %vm1681_vm1 = vcmp.gt.f32.partialorder %v1617_v40, 0.0  ;;  %v1745_v44 = vmul.f32 0.2, %v1617_v40  ;;  %vm1682_vm2 = vcmp.gt.f32.partialorder %v1618_v42, 0.0  ;;  %v1746_v46 = vmul.f32 0.2, %v1618_v42 }
 0x131   : > { %v1840_v47 = vsel %vm1712_vm0, %v1648_v39, %v1776_v43  ;;  %v1543_v52 = vmul.f32 %v3304_v10, %v1222_v49  ;;  %v1544_v56 = vmul.f32 %v3304_v10, %v1236_v53 }
 0x132   : > { %v1809_v48 = vsel %vm1681_vm1, %v1617_v40, %v1745_v44  ;;  %v1884_v50 = vpack.c.bf16 %v1840_v47, %v1839_v45  ;;  %v1810_v51 = vsel %vm1682_vm2, %v1618_v42, %v1746_v46 }
 0x133   : > { %v1196_v54 = vpop.f32.mrf.mxu0  ;;  %v1869_v55 = vpack.c.bf16 %v1810_v51, %v1809_v48  ;;  %v1210_v58 = vpop.f32.mrf.mxu1  ;;  %v1619_v59 = vadd.f32 %v3306_v11, %v1543_v52  ;;  %v1620_v61 = vadd.f32 %v3306_v11, %v1544_v56 }
 0x134   : > { %v1573_v57 = vmul.f32 %v3314_v19, %v1196_v54  ;;  %1916 = vst [vmem:[%s3323_s15 + $0x98] sm:$0xff] %v1884_v50  ;;  %v1574_v60 = vmul.f32 %v3314_v19, %v1210_v58 }
 0x135   : > { %1901 = vst [vmem:[%s3323_s15 + $0x20] sm:$0xff] %v1869_v55  ;;  %vm1683_vm3 = vcmp.gt.f32.partialorder %v1619_v59, 0.0  ;;  %v1747_v63 = vmul.f32 0.2, %v1619_v59  ;;  %vm1684_vm4 = vcmp.gt.f32.partialorder %v1620_v61, 0.0 }
 0x136   : > { %v1649_v62 = vadd.f32 %v3316_v22, %v1573_v57  ;;  %v1650_v0 = vadd.f32 %v3316_v22, %v1574_v60  ;;  %v1748_v1 = vmul.f32 0.2, %v1620_v61 }
 0x137   : > { %v1811_v3 = vsel %vm1683_vm3, %v1619_v59, %v1747_v63  ;;  %v1224_v8 = vpop.f32.mrf.mxu2  ;;  %v1238_v14 = vpop.f32.mrf.mxu3 }
 0x138   : > { %vm1713_vm5 = vcmp.gt.f32.partialorder %v1649_v62, 0.0  ;;  %v1777_v2 = vmul.f32 0.2, %v1649_v62  ;;  %vm1714_vm6 = vcmp.gt.f32.partialorder %v1650_v0, 0.0  ;;  %v1778_v4 = vmul.f32 0.2, %v1650_v0 }
 0x139   : > { %v1812_v5 = vsel %vm1684_vm4, %v1620_v61, %v1748_v1  ;;  %v1575_v13 = vmul.f32 %v3314_v19, %v1224_v8  ;;  %v1576_v17 = vmul.f32 %v3314_v19, %v1238_v14 }
 0x13a   : > { %v1841_v7 = vsel %vm1713_vm5, %v1649_v62, %v1777_v2  ;;  %v1870_v9 = vpack.c.bf16 %v1812_v5, %v1811_v3  ;;  %v1842_v12 = vsel %vm1714_vm6, %v1650_v0, %v1778_v4 }
 0x13b   : > { %v1250_v15 = vpop.f32.mrf.mxu0  ;;  %v1885_v16 = vpack.c.bf16 %v1842_v12, %v1841_v7  ;;  %v1264_v6 = vpop.f32.mrf.mxu1  ;;  %v1651_v20 = vadd.f32 %v3316_v22, %v1575_v13  ;;  %v1652_v23 = vadd.f32 %v3316_v22, %v1576_v17 }
 0x13c   : > { %v1545_v18 = vmul.f32 %v3304_v10, %v1250_v15  ;;  %1902 = vst [vmem:[%s3323_s15 + $0x28] sm:$0xff] %v1870_v9  ;;  %v1546_v21 = vmul.f32 %v3304_v10, %v1264_v6 }
 0x13d   : > { %1917 = vst [vmem:[%s3323_s15 + $0xa0] sm:$0xff] %v1885_v16  ;;  %vm1715_vm7 = vcmp.gt.f32.partialorder %v1651_v20, 0.0  ;;  %v1779_v25 = vmul.f32 0.2, %v1651_v20  ;;  %vm1716_vm8 = vcmp.gt.f32.partialorder %v1652_v23, 0.0 }
 0x13e   : > { %v1621_v24 = vadd.f32 %v3306_v11, %v1545_v18  ;;  %v1622_v26 = vadd.f32 %v3306_v11, %v1546_v21  ;;  %v1780_v27 = vmul.f32 0.2, %v1652_v23 }
 0x13f   : > { %v1843_v29 = vsel %vm1715_vm7, %v1651_v20, %v1779_v25  ;;  %v1278_v33 = vpop.f32.mrf.mxu2  ;;  %v1292_v37 = vpop.f32.mrf.mxu3 }
 0x140   : > { %vm1685_vm9 = vcmp.gt.f32.partialorder %v1621_v24, 0.0  ;;  %v1749_v28 = vmul.f32 0.2, %v1621_v24  ;;  %vm1686_vm10 = vcmp.gt.f32.partialorder %v1622_v26, 0.0  ;;  %v1750_v30 = vmul.f32 0.2, %v1622_v26 }
 0x141   : > { %v1844_v31 = vsel %vm1716_vm8, %v1652_v23, %v1780_v27  ;;  %v1547_v36 = vmul.f32 %v3304_v10, %v1278_v33  ;;  %v1548_v40 = vmul.f32 %v3304_v10, %v1292_v37 }
 0x142   : > { %v1813_v32 = vsel %vm1685_vm9, %v1621_v24, %v1749_v28  ;;  %v1886_v34 = vpack.c.bf16 %v1844_v31, %v1843_v29  ;;  %v1814_v35 = vsel %vm1686_vm10, %v1622_v26, %v1750_v30 }
 0x143   : > { %v1252_v38 = vpop.f32.mrf.mxu0  ;;  %v1871_v39 = vpack.c.bf16 %v1814_v35, %v1813_v32  ;;  %v1266_v42 = vpop.f32.mrf.mxu1  ;;  %v1623_v43 = vadd.f32 %v3306_v11, %v1547_v36  ;;  %v1624_v45 = vadd.f32 %v3306_v11, %v1548_v40 }
 0x144   : > { %v1577_v41 = vmul.f32 %v3314_v19, %v1252_v38  ;;  %1918 = vst [vmem:[%s3323_s15 + $0xa8] sm:$0xff] %v1886_v34  ;;  %v1578_v44 = vmul.f32 %v3314_v19, %v1266_v42 }
 0x145   : > { %1903 = vst [vmem:[%s3323_s15 + $0x30] sm:$0xff] %v1871_v39  ;;  %vm1687_vm11 = vcmp.gt.f32.partialorder %v1623_v43, 0.0  ;;  %v1751_v47 = vmul.f32 0.2, %v1623_v43  ;;  %vm1688_vm12 = vcmp.gt.f32.partialorder %v1624_v45, 0.0 }
 0x146   : > { %v1653_v46 = vadd.f32 %v3316_v22, %v1577_v41  ;;  %v1654_v48 = vadd.f32 %v3316_v22, %v1578_v44  ;;  %v1752_v49 = vmul.f32 0.2, %v1624_v45 }
 0x147   : > { %v1815_v51 = vsel %vm1687_vm11, %v1623_v43, %v1751_v47  ;;  %v1280_v55 = vpop.f32.mrf.mxu2  ;;  %v1294_v59 = vpop.f32.mrf.mxu3 }
 0x148   : > { %vm1717_vm13 = vcmp.gt.f32.partialorder %v1653_v46, 0.0  ;;  %v1781_v50 = vmul.f32 0.2, %v1653_v46  ;;  %vm1718_vm14 = vcmp.gt.f32.partialorder %v1654_v48, 0.0  ;;  %v1782_v52 = vmul.f32 0.2, %v1654_v48 }
 0x149   : > { %v1816_v53 = vsel %vm1688_vm12, %v1624_v45, %v1752_v49  ;;  %v1579_v58 = vmul.f32 %v3314_v19, %v1280_v55  ;;  %v1580_v62 = vmul.f32 %v3314_v19, %v1294_v59 }
 0x14a   : > { %v1845_v54 = vsel %vm1717_vm13, %v1653_v46, %v1781_v50  ;;  %v1872_v56 = vpack.c.bf16 %v1816_v53, %v1815_v51  ;;  %v1846_v57 = vsel %vm1718_vm14, %v1654_v48, %v1782_v52 }
 0x14b   : > { %v1306_v60 = vpop.f32.mrf.mxu0  ;;  %v1887_v61 = vpack.c.bf16 %v1846_v57, %v1845_v54  ;;  %v1320_v0 = vpop.f32.mrf.mxu1  ;;  %v1655_v1 = vadd.f32 %v3316_v22, %v1579_v58  ;;  %v1656_v3 = vadd.f32 %v3316_v22, %v1580_v62 }
 0x14c   : > { %v1549_v63 = vmul.f32 %v3304_v10, %v1306_v60  ;;  %1904 = vst [vmem:[%s3323_s15 + $0x38] sm:$0xff] %v1872_v56  ;;  %v1550_v2 = vmul.f32 %v3304_v10, %v1320_v0 }
 0x14d   : > { %1919 = vst [vmem:[%s3323_s15 + $0xb0] sm:$0xff] %v1887_v61  ;;  %vm1719_vm15 = vcmp.gt.f32.partialorder %v1655_v1, 0.0  ;;  %v1783_v5 = vmul.f32 0.2, %v1655_v1  ;;  %vm1720_vm0 = vcmp.gt.f32.partialorder %v1656_v3, 0.0 }
 0x14e   : > { %v1625_v4 = vadd.f32 %v3306_v11, %v1549_v63  ;;  %v1626_v7 = vadd.f32 %v3306_v11, %v1550_v2  ;;  %v1784_v8 = vmul.f32 0.2, %v1656_v3 }
 0x14f   : > { %v1847_v12 = vsel %vm1719_vm15, %v1655_v1, %v1783_v5  ;;  %v1334_v16 = vpop.f32.mrf.mxu2  ;;  %v1348_v20 = vpop.f32.mrf.mxu3 }
 0x150   : > { %vm1689_vm1 = vcmp.gt.f32.partialorder %v1625_v4, 0.0  ;;  %v1753_v9 = vmul.f32 0.2, %v1625_v4  ;;  %vm1690_vm2 = vcmp.gt.f32.partialorder %v1626_v7, 0.0  ;;  %v1754_v13 = vmul.f32 0.2, %v1626_v7 }
 0x151   : > { %v1848_v14 = vsel %vm1720_vm0, %v1656_v3, %v1784_v8  ;;  %v1551_v6 = vmul.f32 %v3304_v10, %v1334_v16  ;;  %v1552_v24 = vmul.f32 %v3304_v10, %v1348_v20 }
 0x152   : > { %v1817_v15 = vsel %vm1689_vm1, %v1625_v4, %v1753_v9  ;;  %v1888_v17 = vpack.c.bf16 %v1848_v14, %v1847_v12  ;;  %v1818_v18 = vsel %vm1690_vm2, %v1626_v7, %v1754_v13 }
 0x153   : > { %v1308_v21 = vpop.f32.mrf.mxu0  ;;  %v1873_v23 = vpack.c.bf16 %v1818_v18, %v1817_v15  ;;  %v1322_v26 = vpop.f32.mrf.mxu1  ;;  %v1627_v27 = vadd.f32 %v3306_v11, %v1551_v6  ;;  %v1628_v29 = vadd.f32 %v3306_v11, %v1552_v24 }
 0x154   : > { %v1581_v25 = vmul.f32 %v3314_v19, %v1308_v21  ;;  %1920 = vst [vmem:[%s3323_s15 + $0xb8] sm:$0xff] %v1888_v17  ;;  %v1582_v28 = vmul.f32 %v3314_v19, %v1322_v26 }
 0x155   : > { %1905 = vst [vmem:[%s3323_s15 + $0x40] sm:$0xff] %v1873_v23  ;;  %vm1691_vm3 = vcmp.gt.f32.partialorder %v1627_v27, 0.0  ;;  %v1755_v31 = vmul.f32 0.2, %v1627_v27  ;;  %vm1692_vm4 = vcmp.gt.f32.partialorder %v1628_v29, 0.0 }
 0x156   : > { %v1657_v30 = vadd.f32 %v3316_v22, %v1581_v25  ;;  %v1658_v32 = vadd.f32 %v3316_v22, %v1582_v28  ;;  %v1756_v33 = vmul.f32 0.2, %v1628_v29 }
 0x157   : > { %v1819_v35 = vsel %vm1691_vm3, %v1627_v27, %v1755_v31  ;;  %v1336_v39 = vpop.f32.mrf.mxu2  ;;  %v1350_v43 = vpop.f32.mrf.mxu3 }
 0x158   : > { %vm1721_vm5 = vcmp.gt.f32.partialorder %v1657_v30, 0.0  ;;  %v1785_v34 = vmul.f32 0.2, %v1657_v30  ;;  %vm1722_vm6 = vcmp.gt.f32.partialorder %v1658_v32, 0.0  ;;  %v1786_v36 = vmul.f32 0.2, %v1658_v32 }
 0x159   : > { %v1820_v37 = vsel %vm1692_vm4, %v1628_v29, %v1756_v33  ;;  %v1583_v42 = vmul.f32 %v3314_v19, %v1336_v39  ;;  %v1584_v46 = vmul.f32 %v3314_v19, %v1350_v43 }
 0x15a   : > { %v1849_v38 = vsel %vm1721_vm5, %v1657_v30, %v1785_v34  ;;  %v1874_v40 = vpack.c.bf16 %v1820_v37, %v1819_v35  ;;  %v1850_v41 = vsel %vm1722_vm6, %v1658_v32, %v1786_v36 }
 0x15b   : > { %v1362_v44 = vpop.f32.mrf.mxu0  ;;  %v1889_v45 = vpack.c.bf16 %v1850_v41, %v1849_v38  ;;  %v1376_v48 = vpop.f32.mrf.mxu1  ;;  %v1659_v49 = vadd.f32 %v3316_v22, %v1583_v42  ;;  %v1660_v51 = vadd.f32 %v3316_v22, %v1584_v46 }
 0x15c   : > { %v1553_v47 = vmul.f32 %v3304_v10, %v1362_v44  ;;  %1906 = vst [vmem:[%s3323_s15 + $0x48] sm:$0xff] %v1874_v40  ;;  %v1554_v50 = vmul.f32 %v3304_v10, %v1376_v48 }
 0x15d   : > { %1921 = vst [vmem:[%s3323_s15 + $0xc0] sm:$0xff] %v1889_v45  ;;  %vm1723_vm7 = vcmp.gt.f32.partialorder %v1659_v49, 0.0  ;;  %v1787_v53 = vmul.f32 0.2, %v1659_v49  ;;  %vm1724_vm8 = vcmp.gt.f32.partialorder %v1660_v51, 0.0 }
 0x15e   : > { %v1629_v52 = vadd.f32 %v3306_v11, %v1553_v47  ;;  %v1630_v54 = vadd.f32 %v3306_v11, %v1554_v50  ;;  %v1788_v55 = vmul.f32 0.2, %v1660_v51 }
 0x15f   : > { %v1851_v57 = vsel %vm1723_vm7, %v1659_v49, %v1787_v53  ;;  %v1390_v61 = vpop.f32.mrf.mxu2  ;;  %v1404_v1 = vpop.f32.mrf.mxu3 }
 0x160   : > { %vm1693_vm9 = vcmp.gt.f32.partialorder %v1629_v52, 0.0  ;;  %v1757_v56 = vmul.f32 0.2, %v1629_v52  ;;  %vm1694_vm10 = vcmp.gt.f32.partialorder %v1630_v54, 0.0  ;;  %v1758_v58 = vmul.f32 0.2, %v1630_v54 }
 0x161   : > { %v1852_v59 = vsel %vm1724_vm8, %v1660_v51, %v1788_v55  ;;  %v1555_v0 = vmul.f32 %v3304_v10, %v1390_v61  ;;  %v1556_v4 = vmul.f32 %v3304_v10, %v1404_v1 }
 0x162   : > { %v1821_v60 = vsel %vm1693_vm9, %v1629_v52, %v1757_v56  ;;  %v1890_v62 = vpack.c.bf16 %v1852_v59, %v1851_v57  ;;  %v1822_v63 = vsel %vm1694_vm10, %v1630_v54, %v1758_v58 }
 0x163   : > { %v1364_v2 = vpop.f32.mrf.mxu0  ;;  %v1875_v3 = vpack.c.bf16 %v1822_v63, %v1821_v60  ;;  %v1378_v7 = vpop.f32.mrf.mxu1  ;;  %v1631_v8 = vadd.f32 %v3306_v11, %v1555_v0  ;;  %v1632_v12 = vadd.f32 %v3306_v11, %v1556_v4 }
 0x164   : > { %v1585_v5 = vmul.f32 %v3314_v19, %v1364_v2  ;;  %1922 = vst [vmem:[%s3323_s15 + $0xc8] sm:$0xff] %v1890_v62  ;;  %v1586_v9 = vmul.f32 %v3314_v19, %v1378_v7 }
 0x165   : > { %1907 = vst [vmem:[%s3323_s15 + $0x50] sm:$0xff] %v1875_v3  ;;  %vm1695_vm11 = vcmp.gt.f32.partialorder %v1631_v8, 0.0  ;;  %v1759_v14 = vmul.f32 0.2, %v1631_v8  ;;  %vm1696_vm12 = vcmp.gt.f32.partialorder %v1632_v12, 0.0 }
 0x166   : > { %v1661_v13 = vadd.f32 %v3316_v22, %v1585_v5  ;;  %v1662_v15 = vadd.f32 %v3316_v22, %v1586_v9  ;;  %v1760_v16 = vmul.f32 0.2, %v1632_v12 }
 0x167   : > { %v1823_v18 = vsel %vm1695_vm11, %v1631_v8, %v1759_v14  ;;  %v1392_v23 = vpop.f32.mrf.mxu2  ;;  %v1406_v27 = vpop.f32.mrf.mxu3 }
 0x168   : > { %vm1725_vm13 = vcmp.gt.f32.partialorder %v1661_v13, 0.0  ;;  %v1789_v17 = vmul.f32 0.2, %v1661_v13  ;;  %vm1726_vm14 = vcmp.gt.f32.partialorder %v1662_v15, 0.0  ;;  %v1790_v6 = vmul.f32 0.2, %v1662_v15 }
 0x169   : > { %v1824_v20 = vsel %vm1696_vm12, %v1632_v12, %v1760_v16  ;;  %v1587_v26 = vmul.f32 %v3314_v19, %v1392_v23  ;;  %v1588_v30 = vmul.f32 %v3314_v19, %v1406_v27 }
 0x16a   : > { %v1853_v21 = vsel %vm1725_vm13, %v1661_v13, %v1789_v17  ;;  %v1876_v24 = vpack.c.bf16 %v1824_v20, %v1823_v18  ;;  %v1854_v25 = vsel %vm1726_vm14, %v1662_v15, %v1790_v6 }
 0x16b   : > { %v1418_v28 = vpop.f32.mrf.mxu0  ;;  %v1891_v29 = vpack.c.bf16 %v1854_v25, %v1853_v21  ;;  %v1432_v32 = vpop.f32.mrf.mxu1  ;;  %v1663_v33 = vadd.f32 %v3316_v22, %v1587_v26  ;;  %v1664_v35 = vadd.f32 %v3316_v22, %v1588_v30 }
 0x16c   : > { %v1557_v31 = vmul.f32 %v3304_v10, %v1418_v28  ;;  %1908 = vst [vmem:[%s3323_s15 + $0x58] sm:$0xff] %v1876_v24  ;;  %v1558_v34 = vmul.f32 %v3304_v10, %v1432_v32 }
 0x16d   : > { %1923 = vst [vmem:[%s3323_s15 + $0xd0] sm:$0xff] %v1891_v29  ;;  %vm1727_vm15 = vcmp.gt.f32.partialorder %v1663_v33, 0.0  ;;  %v1791_v37 = vmul.f32 0.2, %v1663_v33  ;;  %vm1728_vm0 = vcmp.gt.f32.partialorder %v1664_v35, 0.0 }
 0x16e   : > { %v1633_v36 = vadd.f32 %v3306_v11, %v1557_v31  ;;  %v1634_v38 = vadd.f32 %v3306_v11, %v1558_v34  ;;  %v1792_v39 = vmul.f32 0.2, %v1664_v35 }
 0x16f   : > { %v1855_v41 = vsel %vm1727_vm15, %v1663_v33, %v1791_v37  ;;  %v1446_v45 = vpop.f32.mrf.mxu2  ;;  %v1460_v49 = vpop.f32.mrf.mxu3 }
 0x170   : > { %vm1697_vm1 = vcmp.gt.f32.partialorder %v1633_v36, 0.0  ;;  %v1761_v40 = vmul.f32 0.2, %v1633_v36  ;;  %vm1698_vm2 = vcmp.gt.f32.partialorder %v1634_v38, 0.0  ;;  %v1762_v42 = vmul.f32 0.2, %v1634_v38 }
 0x171   : > { %v1856_v43 = vsel %vm1728_vm0, %v1664_v35, %v1792_v39  ;;  %v1559_v48 = vmul.f32 %v3304_v10, %v1446_v45  ;;  %v1560_v52 = vmul.f32 %v3304_v10, %v1460_v49 }
 0x172   : > { %v1825_v44 = vsel %vm1697_vm1, %v1633_v36, %v1761_v40  ;;  %v1892_v46 = vpack.c.bf16 %v1856_v43, %v1855_v41  ;;  %v1826_v47 = vsel %vm1698_vm2, %v1634_v38, %v1762_v42 }
 0x173   : > { %v1420_v50 = vpop.f32.mrf.mxu0  ;;  %v1877_v51 = vpack.c.bf16 %v1826_v47, %v1825_v44  ;;  %v1434_v54 = vpop.f32.mrf.mxu1  ;;  %v1635_v55 = vadd.f32 %v3306_v11, %v1559_v48  ;;  %v1636_v57 = vadd.f32 %v3306_v11, %v1560_v52 }
 0x174   : > { %v1589_v53 = vmul.f32 %v3314_v19, %v1420_v50  ;;  %1924 = vst [vmem:[%s3323_s15 + $0xd8] sm:$0xff] %v1892_v46  ;;  %v1590_v56 = vmul.f32 %v3314_v19, %v1434_v54 }
 0x175   : > { %1909 = vst [vmem:[%s3323_s15 + $0x60] sm:$0xff] %v1877_v51  ;;  %vm1699_vm3 = vcmp.gt.f32.partialorder %v1635_v55, 0.0  ;;  %v1763_v59 = vmul.f32 0.2, %v1635_v55  ;;  %vm1700_vm4 = vcmp.gt.f32.partialorder %v1636_v57, 0.0 }
 0x176   : > { %v1665_v58 = vadd.f32 %v3316_v22, %v1589_v53  ;;  %v1666_v60 = vadd.f32 %v3316_v22, %v1590_v56  ;;  %v1764_v61 = vmul.f32 0.2, %v1636_v57 }
 0x177   : > { %v1827_v63 = vsel %vm1699_vm3, %v1635_v55, %v1763_v59  ;;  %v1448_v3 = vpop.f32.mrf.mxu2  ;;  %v1462_v8 = vpop.f32.mrf.mxu3 }
 0x178   : > { %vm1729_vm5 = vcmp.gt.f32.partialorder %v1665_v58, 0.0  ;;  %v1793_v62 = vmul.f32 0.2, %v1665_v58  ;;  %vm1730_vm6 = vcmp.gt.f32.partialorder %v1666_v60, 0.0  ;;  %v1794_v0 = vmul.f32 0.2, %v1666_v60 }
 0x179   : > { %v1828_v1 = vsel %vm1700_vm4, %v1636_v57, %v1764_v61  ;;  %v1591_v7 = vmul.f32 %v3314_v19, %v1448_v3  ;;  %v1592_v13 = vmul.f32 %v3314_v19, %v1462_v8  ;;  %v1966_v3 = vld [vmem:[%s3323_s15 + $0x30] sm:$0xff] (%p2815_p6) }
 0x17a   : > { %v1857_v2 = vsel %vm1729_vm5, %v1665_v58, %v1793_v62  ;;  %v1878_v4 = vpack.c.bf16 %v1828_v1, %v1827_v63  ;;  %v1858_v5 = vsel %vm1730_vm6, %v1666_v60, %v1794_v0  ;;  %v1958_v63 = vld [vmem:[%s3323_s15 + $0x10] sm:$0xff] (%p2815_p6)  ;;  %v1960_v0 = vld [vmem:[%s3323_s15 + $0x18] sm:$0xff] (%p2815_p6)  ;;  %v1962_v1 = vld [vmem:[%s3323_s15 + $0x20] sm:$0xff] (%p2815_p6)  ;;  %1967 = vst [vmem:[%s3484_s6 + $0x30] sm:$0xff] (%p2815_p6), %v1966_v3 }
 0x17b   : > { %v1474_v9 = vpop.f32.mrf.mxu0  ;;  %v1893_v12 = vpack.c.bf16 %v1858_v5, %v1857_v2  ;;  %v1488_v15 = vpop.f32.mrf.mxu1  ;;  %v1667_v16 = vadd.f32 %v3316_v22, %v1591_v7  ;;  %v1668_v18 = vadd.f32 %v3316_v22, %v1592_v13  ;;  %1959 = vst [vmem:[%s3484_s6 + $0x10] sm:$0xff] (%p2815_p6), %v1958_v63  ;;  %v1964_v2 = vld [vmem:[%s3323_s15 + $0x28] sm:$0xff] (%p2815_p6)  ;;  %v1970_v5 = vld [vmem:[%s3323_s15 + $0x40] sm:$0xff] (%p2815_p6)  ;;  %v1974_v8 = vld [vmem:[%s3323_s15 + $0x50] sm:$0xff] (%p2815_p6) }
 0x17c   : > { %v1561_v14 = vmul.f32 %v3304_v10, %v1474_v9  ;;  %1910 = vst [vmem:[%s3323_s15 + $0x68] sm:$0xff] %v1878_v4  ;;  %v1562_v17 = vmul.f32 %v3304_v10, %v1488_v15  ;;  %v1968_v4 = vld [vmem:[%s3323_s15 + $0x38] sm:$0xff] (%p2815_p6)  ;;  %v1972_v7 = vld [vmem:[%s3323_s15 + $0x48] sm:$0xff] (%p2815_p6) }
 0x17d   : > { %1925 = vst [vmem:[%s3323_s15 + $0xe0] sm:$0xff] %v1893_v12  ;;  %vm1731_vm7 = vcmp.gt.f32.partialorder %v1667_v16, 0.0  ;;  %v1795_v20 = vmul.f32 0.2, %v1667_v16  ;;  %vm1732_vm8 = vcmp.gt.f32.partialorder %v1668_v18, 0.0  ;;  %v1976_v9 = vld [vmem:[%s3323_s15 + $0x58] sm:$0xff] (%p2815_p6) }
 0x17e   : > { %v1637_v6 = vadd.f32 %v3306_v11, %v1561_v14  ;;  %v1638_v21 = vadd.f32 %v3306_v11, %v1562_v17  ;;  %v1796_v23 = vmul.f32 0.2, %v1668_v18  ;;  %1961 = vst [vmem:[%s3484_s6 + $0x18] sm:$0xff] (%p2815_p6), %v1960_v0  ;;  %v1978_v12 = vld [vmem:[%s3323_s15 + $0x60] sm:$0xff] (%p2815_p6)  ;;  %v1988_v17 = vld [vmem:[%s3323_s15 + $0x88] sm:$0xff] (%p2815_p6) }
 0x17f   : > { %v1859_v25 = vsel %vm1731_vm7, %v1667_v16, %v1795_v20  ;;  %v1502_v29 = vpop.f32.mrf.mxu2  ;;  %v1516_v33 = vpop.f32.mrf.mxu3  ;;  %1963 = vst [vmem:[%s3484_s6 + $0x20] sm:$0xff] (%p2815_p6), %v1962_v1  ;;  %v1986_v16 = vld [vmem:[%s3323_s15 + $0x80] sm:$0xff] (%p2815_p6) }
 0x180   : > { %vm1701_vm9 = vcmp.gt.f32.partialorder %v1637_v6, 0.0  ;;  %v1765_v24 = vmul.f32 0.2, %v1637_v6  ;;  %vm1702_vm10 = vcmp.gt.f32.partialorder %v1638_v21, 0.0  ;;  %v1766_v26 = vmul.f32 0.2, %v1638_v21 }
 0x181   : > { %v1860_v27 = vsel %vm1732_vm8, %v1668_v18, %v1796_v23  ;;  %v1563_v32 = vmul.f32 %v3304_v10, %v1502_v29  ;;  %v1564_v36 = vmul.f32 %v3304_v10, %v1516_v33  ;;  %1965 = vst [vmem:[%s3484_s6 + $0x28] sm:$0xff] (%p2815_p6), %v1964_v2  ;;  %v1990_v18 = vld [vmem:[%s3323_s15 + $0x90] sm:$0xff] (%p2815_p6)  ;;  %v1994_v20 = vld [vmem:[%s3323_s15 + $0xa0] sm:$0xff] (%p2815_p6) }
 0x182   : > { %v1829_v28 = vsel %vm1701_vm9, %v1637_v6, %v1765_v24  ;;  %v1894_v30 = vpack.c.bf16 %v1860_v27, %v1859_v25  ;;  %v1830_v31 = vsel %vm1702_vm10, %v1638_v21, %v1766_v26  ;;  %1969 = vst [vmem:[%s3484_s6 + $0x38] sm:$0xff] (%p2815_p6), %v1968_v4  ;;  %v1992_v6 = vld [vmem:[%s3323_s15 + $0x98] sm:$0xff] (%p2815_p6)  ;;  %v1996_v21 = vld [vmem:[%s3323_s15 + $0xa8] sm:$0xff] (%p2815_p6)  ;;  %v1998_v23 = vld [vmem:[%s3323_s15 + $0xb0] sm:$0xff] (%p2815_p6) }
 0x183   : > { %v1476_v34 = vpop.f32.mrf.mxu0  ;;  %v1879_v35 = vpack.c.bf16 %v1830_v31, %v1829_v28  ;;  %v1490_v38 = vpop.f32.mrf.mxu1  ;;  %v1639_v39 = vadd.f32 %v3306_v11, %v1563_v32  ;;  %v1640_v41 = vadd.f32 %v3306_v11, %v1564_v36  ;;  %1971 = vst [vmem:[%s3484_s6 + $0x40] sm:$0xff] (%p2815_p6), %v1970_v5  ;;  %v1980_v13 = vld [vmem:[%s3323_s15 + $0x68] sm:$0xff] (%p2815_p6)  ;;  %v2000_v24 = vld [vmem:[%s3323_s15 + $0xb8] sm:$0xff] (%p2815_p6)  ;;  %v2002_v25 = vld [vmem:[%s3323_s15 + $0xc0] sm:$0xff] (%p2815_p6) }
 0x184   : > { %v1593_v37 = vmul.f32 %v3314_v19, %v1476_v34  ;;  %1926 = vst [vmem:[%s3323_s15 + $0xe8] sm:$0xff] %v1894_v30  ;;  %v1594_v40 = vmul.f32 %v3314_v19, %v1490_v38  ;;  %v2004_v26 = vld [vmem:[%s3323_s15 + $0xc8] sm:$0xff] (%p2815_p6)  ;;  %v2006_v27 = vld [vmem:[%s3323_s15 + $0xd0] sm:$0xff] (%p2815_p6)  ;;  %v2008_v28 = vld [vmem:[%s3323_s15 + $0xd8] sm:$0xff] (%p2815_p6) }
 0x185   : > { %1911 = vst [vmem:[%s3323_s15 + $0x70] sm:$0xff] %v1879_v35  ;;  %vm1703_vm11 = vcmp.gt.f32.partialorder %v1639_v39, 0.0  ;;  %v1767_v43 = vmul.f32 0.2, %v1639_v39  ;;  %vm1704_vm12 = vcmp.gt.f32.partialorder %v1640_v41, 0.0  ;;  %v2010_v29 = vld [vmem:[%s3323_s15 + $0xe0] sm:$0xff] (%p2815_p6) }
 0x186   : > { %v1669_v42 = vadd.f32 %v3316_v22, %v1593_v37  ;;  %v1670_v44 = vadd.f32 %v3316_v22, %v1594_v40  ;;  %v1768_v10 = vmul.f32 0.2, %v1640_v41  ;;  %1973 = vst [vmem:[%s3484_s6 + $0x48] sm:$0xff] (%p2815_p6), %v1972_v7 }
 0x187   : > { %v1831_v46 = vsel %vm1703_vm11, %v1639_v39, %v1767_v43  ;;  %v1504_v50 = vpop.f32.mrf.mxu2  ;;  %v1518_v53 = vpop.f32.mrf.mxu3  ;;  %1975 = vst [vmem:[%s3484_s6 + $0x50] sm:$0xff] (%p2815_p6), %v1974_v8 }
 0x188   : > { %vm1733_vm13 = vcmp.gt.f32.partialorder %v1669_v42, 0.0  ;;  %v1797_v45 = vmul.f32 0.2, %v1669_v42  ;;  %vm1734_vm14 = vcmp.gt.f32.partialorder %v1670_v44, 0.0  ;;  %v1798_v47 = vmul.f32 0.2, %v1670_v44 }
 0x189   : > { %v1832_v48 = vsel %vm1704_vm12, %v1640_v41, %v1768_v10  ;;  %v1595_v52 = vmul.f32 %v3314_v19, %v1504_v50  ;;  %v1596_v55 = vmul.f32 %v3314_v19, %v1518_v53  ;;  %v1954_v19 = vld [vmem:[%s3323_s15] sm:$0xff] (%p2815_p6)  ;;  %1977 = vst [vmem:[%s3484_s6 + $0x58] sm:$0xff] (%p2815_p6), %v1976_v9 }
 0x18a   : > { %v1861_v49 = vsel %vm1733_vm13, %v1669_v42, %v1797_v45  ;;  %v1880_v51 = vpack.c.bf16 %v1832_v48, %v1831_v46  ;;  %v1862_v11 = vsel %vm1734_vm14, %v1670_v44, %v1798_v47  ;;  %1955 = vst [vmem:[%s3484_s6] sm:$0xff] (%p2815_p6), %v1954_v19 }
 0x18b   : > { %v1895_v54 = vpack.c.bf16 %v1862_v11, %v1861_v49  ;;  %v1671_v56 = vadd.f32 %v3316_v22, %v1595_v52  ;;  %v1672_v57 = vadd.f32 %v3316_v22, %v1596_v55  ;;  %v1956_v22 = vld [vmem:[%s3323_s15 + $0x8] sm:$0xff] (%p2815_p6)  ;;  %1979 = vst [vmem:[%s3484_s6 + $0x60] sm:$0xff] (%p2815_p6), %v1978_v12 }
 0x18c   : > { %1912 = vst [vmem:[%s3323_s15 + $0x78] sm:$0xff] %v1880_v51  ;;  %v1982_v14 = vld [vmem:[%s3323_s15 + $0x70] sm:$0xff] (%p2815_p6)  ;;  %v2012_v30 = vld [vmem:[%s3323_s15 + $0xe8] sm:$0xff] (%p2815_p6) }
 0x18d   : > { %1927 = vst [vmem:[%s3323_s15 + $0xf0] sm:$0xff] %v1895_v54  ;;  %vm1735_vm15 = vcmp.gt.f32.partialorder %v1671_v56, 0.0  ;;  %v1799_v58 = vmul.f32 0.2, %v1671_v56  ;;  %vm1736_vm0 = vcmp.gt.f32.partialorder %v1672_v57, 0.0 }
 0x18e   : > { %v1800_v59 = vmul.f32 0.2, %v1672_v57  ;;  %1957 = vst [vmem:[%s3484_s6 + $0x8] sm:$0xff] (%p2815_p6), %v1956_v22 }
 0x18f   : > { %v1863_v60 = vsel %vm1735_vm15, %v1671_v56, %v1799_v58  ;;  %1935 = sbr.rel (!%p2815_p6) target bundleno = 419 (0x1a3), region = 63  ;;  %1981 = vst [vmem:[%s3484_s6 + $0x68] sm:$0xff] (%p2815_p6), %v1980_v13 }
 0x190   : > { %v1864_v61 = vsel %vm1736_vm0, %v1672_v57, %v1800_v59  ;;  %1983 = vst [vmem:[%s3484_s6 + $0x70] sm:$0xff] (%p2815_p6), %v1982_v14 }
 0x191   : > { %v1896_v62 = vpack.c.bf16 %v1864_v61, %v1863_v60  ;;  %1987 = vst [vmem:[%s3484_s6 + $0x100] sm:$0xff] (%p2815_p6), %v1986_v16 }
 0x192   : > { %1989 = vst [vmem:[%s3484_s6 + $0x108] sm:$0xff] (%p2815_p6), %v1988_v17 }
 0x193   : > { %1928 = vst [vmem:[%s3323_s15 + $0xf8] sm:$0xff] %v1896_v62  ;;  %v1984_v15 = vld [vmem:[%s3323_s15 + $0x78] sm:$0xff] (%p2815_p6) }
 0x194   : > { %1985 = vst [vmem:[%s3484_s6 + $0x78] sm:$0xff] %v1984_v15  ;;  %v2014_v31 = vld [vmem:[%s3323_s15 + $0xf0] sm:$0xff] }
 0x195   : > { %1991 = vst [vmem:[%s3484_s6 + $0x110] sm:$0xff] %v1990_v18 }
 0x196   : > { %1993 = vst [vmem:[%s3484_s6 + $0x118] sm:$0xff] %v1992_v6 }
 0x197   : > { %1995 = vst [vmem:[%s3484_s6 + $0x120] sm:$0xff] %v1994_v20 }
 0x198   : > { %1997 = vst [vmem:[%s3484_s6 + $0x128] sm:$0xff] %v1996_v21 }
 0x199   : > { %1999 = vst [vmem:[%s3484_s6 + $0x130] sm:$0xff] %v1998_v23 }
 0x19a   : > { %2001 = vst [vmem:[%s3484_s6 + $0x138] sm:$0xff] %v2000_v24  ;;  %v2016_v32 = vld [vmem:[%s3323_s15 + $0xf8] sm:$0xff] }
 0x19b   : > { %2003 = vst [vmem:[%s3484_s6 + $0x140] sm:$0xff] %v2002_v25 }
 0x19c   : > { %2005 = vst [vmem:[%s3484_s6 + $0x148] sm:$0xff] %v2004_v26 }
 0x19d   : > { %2007 = vst [vmem:[%s3484_s6 + $0x150] sm:$0xff] %v2006_v27 }
 0x19e   : > { %2009 = vst [vmem:[%s3484_s6 + $0x158] sm:$0xff] %v2008_v28 }
 0x19f   : > { %2011 = vst [vmem:[%s3484_s6 + $0x160] sm:$0xff] %v2010_v29 }
 0x1a0   : > { %2013 = vst [vmem:[%s3484_s6 + $0x168] sm:$0xff] %v2012_v30 }
 0x1a1   : > { %2015 = vst [vmem:[%s3484_s6 + $0x170] sm:$0xff] %v2014_v31 }
 0x1a2   : > { %2017 = vst [vmem:[%s3484_s6 + $0x178] sm:$0xff] %v2016_v32 }
 0x1a3 PF: > { %s14_s19 = sadd.s32 1, %s2752_s19   ;;  %s3569_s15 = smov %s2740_s16 }
 0x1a4   : > { %p11_p11 = scmp.ge.s32.totalorder %s14_s19, 4   ;;  %s3570_s16 = smov %s2820_s25 }
 0x1a5   : > { %s3571_s17 = smov %s2748_s18  ;;  %s3572_s18 = smov %s3574_s20 }
 0x1a6   :  { %13 = sbr.rel (!%p11_p11) target bundleno = 3 (0x3), region = 126 }

// kernel: d_net128_forward.8
= control target key start
LH: loop header
LB: loop body
LE: loop exit
PB: predicated region body
PF: predicated region fallthrough
CT: control target
= control target key end

     0   :  { %s2851_s15 = smov 0   ;;  %s2853_s16 = smov 0   ;;  %s3647_s0 = inlined_call_operand.vmem [shape: bf16[32,256], index: 0, kind: input, shape index: {}]   ;;  %s3648_s1 = inlined_call_operand.vmem [shape: bf16[256,2048], index: 1, kind: input, shape index: {}]   ;;  %s3649_s2 = inlined_call_operand.vmem [shape: f32[32,1], index: 2, kind: input, shape index: {}]   ;;  %s3650_s3 = inlined_call_operand.vmem [shape: f32[32,1], index: 3, kind: input, shape index: {}]   ;;  %s3651_s4 = inlined_call_operand.vmem [shape: bf16[32,2048], index: 4, kind: output, shape index: {}]  }
   0x1   :  { %s2855_s17 = smov 0   ;;  %s2857_s18 = smov 0  }
   0x2   :  { %s2859_s19 = smov 0  }
   0x3 LB: > { %s23_s20 = sadd.s32 1, %s2819_s18  ;;  %s2061_s21 = sadd.s32 4294967295, %s2823_s19   ;;  %s2823_s19 = sphi %s2859_s19, %s14_s19   ;;  %s2819_s18 = sphi %s2857_s18, %s3656_s18   ;;  %s2815_s17 = sphi %s2855_s17, %s3655_s17   ;;  %s2811_s16 = sphi %s2853_s16, %s3654_s16   ;;  %s2807_s15 = sphi %s2851_s15, %s3653_s15  }
   0x4   : > { %p24_p0 = scmp.ge.s32.totalorder %s23_s20, 2  ;;  %p66_p1 = scmp.ne.s32.totalorder %s2811_s16, %s2807_s15 }
   0x5   : > { %p67_p2 = scmp.eq.s32.totalorder %s2823_s19, 0  ;;  %p150_p4 = scmp.eq.s32.totalorder %s2061_s21, 1 }
   0x6   : > { %s3658_s20 = smov (%p24_p0, %s23_s20), 0  ;;  %s59_s23 = sadd.s32 1, %s2811_s16 }
   0x7   : > { %p68_p3 = por %p67_p2, %p66_p1  ;;  %s56_s22 = ssub.s32 %s2819_s18, %s3658_s20 }
   0x8   : > { %p57_p5 = scmp.eq.s32.totalorder %s56_s22, 0  ;;  %p2886_p6 = por %p150_p4, %p66_p1 }
   0x9   : > { %p2067_p7 = scmp.ge.s32.totalorder %s2823_s19, 2 }
   0xa   : > { %s2891_s25 = scalar_select %p57_p5, %s2811_s16, %s59_s23  }
   0xb   : > { %200 = sbr.rel (%p2067_p7) target bundleno = 148 (0x94), region = 28 }
  0x10   : > { %203 = sbr.rel (!%p68_p3) target bundleno = 148 (0x94), region = 32  ;;  %s205_s26 = sand.u32 (%p68_p3), 1, %s2811_s16  }
  0x11   : > { %s2607_s27 = sshll.u32 (%p68_p3), %s2819_s18, 5  ;;  %s2068_s28 = sshll.u32 (%p68_p3), %s205_s26, 10 }
  0x12   : > { %s2899_s5 = scalar_lea.vmem (%p68_p3), %s3648_s1, %s2607_s27  ;;  %s2904_s6 = scalar_lea.vmem (%p68_p3), [#allocation2], %s2068_s28 }
  0x13   : > { %v223_v0 = vld [vmem:[%s2899_s5] sm:$0xff] (%p68_p3)  ;;  %v225_v1 = vld [vmem:[%s2899_s5 + $0x8] sm:$0xff] (%p68_p3)  ;;  %v227_v2 = vld [vmem:[%s2899_s5 + $0x10] sm:$0xff] (%p68_p3) }
  0x14   : > { %224 = vst [vmem:[%s2904_s6] sm:$0xff] (%p68_p3), %v223_v0  ;;  %v229_v3 = vld [vmem:[%s2899_s5 + $0x18] sm:$0xff] (%p68_p3)  ;;  %v231_v4 = vld [vmem:[%s2899_s5 + $0x40] sm:$0xff] (%p68_p3)  ;;  %v233_v5 = vld [vmem:[%s2899_s5 + $0x48] sm:$0xff] (%p68_p3) }
  0x15   : > { %226 = vst [vmem:[%s2904_s6 + $0x8] sm:$0xff] %v225_v1  ;;  %v235_v6 = vld [vmem:[%s2899_s5 + $0x50] sm:$0xff]  ;;  %v237_v7 = vld [vmem:[%s2899_s5 + $0x58] sm:$0xff]  ;;  %v239_v8 = vld [vmem:[%s2899_s5 + $0x80] sm:$0xff] }
  0x16   : > { %228 = vst [vmem:[%s2904_s6 + $0x10] sm:$0xff] %v227_v2  ;;  %v241_v9 = vld [vmem:[%s2899_s5 + $0x88] sm:$0xff]  ;;  %v243_v10 = vld [vmem:[%s2899_s5 + $0x90] sm:$0xff]  ;;  %v245_v11 = vld [vmem:[%s2899_s5 + $0x98] sm:$0xff] }
  0x17   : > { %230 = vst [vmem:[%s2904_s6 + $0x18] sm:$0xff] %v229_v3  ;;  %v247_v12 = vld [vmem:[%s2899_s5 + $0xc0] sm:$0xff]  ;;  %v249_v13 = vld [vmem:[%s2899_s5 + $0xc8] sm:$0xff]  ;;  %v251_v14 = vld [vmem:[%s2899_s5 + $0xd0] sm:$0xff] }
  0x18   : > { %232 = vst [vmem:[%s2904_s6 + $0x20] sm:$0xff] %v231_v4  ;;  %v253_v15 = vld [vmem:[%s2899_s5 + $0xd8] sm:$0xff]  ;;  %v255_v16 = vld [vmem:[%s2899_s5 + $0x100] sm:$0xff]  ;;  %v257_v17 = vld [vmem:[%s2899_s5 + $0x108] sm:$0xff] }
  0x19   : > { %234 = vst [vmem:[%s2904_s6 + $0x28] sm:$0xff] %v233_v5  ;;  %v259_v18 = vld [vmem:[%s2899_s5 + $0x110] sm:$0xff]  ;;  %v261_v19 = vld [vmem:[%s2899_s5 + $0x118] sm:$0xff]  ;;  %v263_v20 = vld [vmem:[%s2899_s5 + $0x140] sm:$0xff] }
  0x1a   : > { %236 = vst [vmem:[%s2904_s6 + $0x30] sm:$0xff] %v235_v6  ;;  %v265_v21 = vld [vmem:[%s2899_s5 + $0x148] sm:$0xff]  ;;  %v267_v22 = vld [vmem:[%s2899_s5 + $0x150] sm:$0xff]  ;;  %v269_v23 = vld [vmem:[%s2899_s5 + $0x158] sm:$0xff] }
  0x1b   : > { %238 = vst [vmem:[%s2904_s6 + $0x38] sm:$0xff] %v237_v7  ;;  %v271_v24 = vld [vmem:[%s2899_s5 + $0x180] sm:$0xff]  ;;  %v273_v25 = vld [vmem:[%s2899_s5 + $0x188] sm:$0xff]  ;;  %v275_v26 = vld [vmem:[%s2899_s5 + $0x190] sm:$0xff] }
  0x1c   : > { %240 = vst [vmem:[%s2904_s6 + $0x40] sm:$0xff] %v239_v8  ;;  %v277_v27 = vld [vmem:[%s2899_s5 + $0x198] sm:$0xff]  ;;  %v279_v28 = vld [vmem:[%s2899_s5 + $0x1c0] sm:$0xff]  ;;  %v281_v29 = vld [vmem:[%s2899_s5 + $0x1c8] sm:$0xff] }
  0x1d   : > { %242 = vst [vmem:[%s2904_s6 + $0x48] sm:$0xff] %v241_v9  ;;  %v283_v30 = vld [vmem:[%s2899_s5 + $0x1d0] sm:$0xff]  ;;  %v285_v31 = vld [vmem:[%s2899_s5 + $0x1d8] sm:$0xff]  ;;  %v287_v32 = vld [vmem:[%s2899_s5 + $0x200] sm:$0xff] }
  0x1e   : > { %244 = vst [vmem:[%s2904_s6 + $0x50] sm:$0xff] %v243_v10  ;;  %v289_v33 = vld [vmem:[%s2899_s5 + $0x208] sm:$0xff]  ;;  %v291_v34 = vld [vmem:[%s2899_s5 + $0x210] sm:$0xff]  ;;  %v293_v35 = vld [vmem:[%s2899_s5 + $0x218] sm:$0xff] }
  0x1f   : > { %246 = vst [vmem:[%s2904_s6 + $0x58] sm:$0xff] %v245_v11  ;;  %v295_v36 = vld [vmem:[%s2899_s5 + $0x240] sm:$0xff]  ;;  %v297_v37 = vld [vmem:[%s2899_s5 + $0x248] sm:$0xff]  ;;  %v299_v38 = vld [vmem:[%s2899_s5 + $0x250] sm:$0xff] }
  0x20   : > { %248 = vst [vmem:[%s2904_s6 + $0x60] sm:$0xff] %v247_v12  ;;  %v301_v39 = vld [vmem:[%s2899_s5 + $0x258] sm:$0xff]  ;;  %v303_v40 = vld [vmem:[%s2899_s5 + $0x280] sm:$0xff]  ;;  %v305_v41 = vld [vmem:[%s2899_s5 + $0x288] sm:$0xff] }
  0x21   : > { %250 = vst [vmem:[%s2904_s6 + $0x68] sm:$0xff] %v249_v13  ;;  %v307_v42 = vld [vmem:[%s2899_s5 + $0x290] sm:$0xff]  ;;  %v309_v43 = vld [vmem:[%s2899_s5 + $0x298] sm:$0xff]  ;;  %v311_v44 = vld [vmem:[%s2899_s5 + $0x2c0] sm:$0xff] }
  0x22   : > { %252 = vst [vmem:[%s2904_s6 + $0x70] sm:$0xff] %v251_v14  ;;  %v313_v45 = vld [vmem:[%s2899_s5 + $0x2c8] sm:$0xff]  ;;  %v315_v46 = vld [vmem:[%s2899_s5 + $0x2d0] sm:$0xff]  ;;  %v317_v47 = vld [vmem:[%s2899_s5 + $0x2d8] sm:$0xff] }
  0x23   : > { %254 = vst [vmem:[%s2904_s6 + $0x78] sm:$0xff] %v253_v15  ;;  %v319_v48 = vld [vmem:[%s2899_s5 + $0x300] sm:$0xff]  ;;  %v321_v49 = vld [vmem:[%s2899_s5 + $0x308] sm:$0xff]  ;;  %v323_v50 = vld [vmem:[%s2899_s5 + $0x310] sm:$0xff] }
  0x24   : > { %256 = vst [vmem:[%s2904_s6 + $0x80] sm:$0xff] %v255_v16  ;;  %v325_v51 = vld [vmem:[%s2899_s5 + $0x318] sm:$0xff]  ;;  %v327_v52 = vld [vmem:[%s2899_s5 + $0x340] sm:$0xff]  ;;  %v329_v53 = vld [vmem:[%s2899_s5 + $0x348] sm:$0xff] }
  0x25   : > { %258 = vst [vmem:[%s2904_s6 + $0x88] sm:$0xff] %v257_v17  ;;  %v331_v54 = vld [vmem:[%s2899_s5 + $0x350] sm:$0xff]  ;;  %v333_v55 = vld [vmem:[%s2899_s5 + $0x358] sm:$0xff]  ;;  %v335_v56 = vld [vmem:[%s2899_s5 + $0x380] sm:$0xff] }
  0x26   : > { %260 = vst [vmem:[%s2904_s6 + $0x90] sm:$0xff] %v259_v18  ;;  %v337_v57 = vld [vmem:[%s2899_s5 + $0x388] sm:$0xff]  ;;  %v339_v58 = vld [vmem:[%s2899_s5 + $0x390] sm:$0xff]  ;;  %v341_v59 = vld [vmem:[%s2899_s5 + $0x398] sm:$0xff] }
  0x27   : > { %262 = vst [vmem:[%s2904_s6 + $0x98] sm:$0xff] %v261_v19  ;;  %v343_v60 = vld [vmem:[%s2899_s5 + $0x3c0] sm:$0xff]  ;;  %v345_v61 = vld [vmem:[%s2899_s5 + $0x3c8] sm:$0xff]  ;;  %v347_v62 = vld [vmem:[%s2899_s5 + $0x3d0] sm:$0xff] }
  0x28   : > { %264 = vst [vmem:[%s2904_s6 + $0xa0] sm:$0xff] %v263_v20  ;;  %v349_v63 = vld [vmem:[%s2899_s5 + $0x3d8] sm:$0xff]  ;;  %v351_v0 = vld [vmem:[%s2899_s5 + $0x400] sm:$0xff]  ;;  %v353_v1 = vld [vmem:[%s2899_s5 + $0x408] sm:$0xff] }
  0x29   : > { %266 = vst [vmem:[%s2904_s6 + $0xa8] sm:$0xff] %v265_v21  ;;  %v355_v2 = vld [vmem:[%s2899_s5 + $0x410] sm:$0xff]  ;;  %v357_v3 = vld [vmem:[%s2899_s5 + $0x418] sm:$0xff]  ;;  %v359_v4 = vld [vmem:[%s2899_s5 + $0x440] sm:$0xff] }
  0x2a   : > { %268 = vst [vmem:[%s2904_s6 + $0xb0] sm:$0xff] %v267_v22  ;;  %v361_v5 = vld [vmem:[%s2899_s5 + $0x448] sm:$0xff]  ;;  %v363_v6 = vld [vmem:[%s2899_s5 + $0x450] sm:$0xff]  ;;  %v365_v7 = vld [vmem:[%s2899_s5 + $0x458] sm:$0xff] }
  0x2b   : > { %270 = vst [vmem:[%s2904_s6 + $0xb8] sm:$0xff] %v269_v23  ;;  %v367_v8 = vld [vmem:[%s2899_s5 + $0x480] sm:$0xff]  ;;  %v369_v9 = vld [vmem:[%s2899_s5 + $0x488] sm:$0xff]  ;;  %v371_v10 = vld [vmem:[%s2899_s5 + $0x490] sm:$0xff] }
  0x2c   : > { %272 = vst [vmem:[%s2904_s6 + $0xc0] sm:$0xff] %v271_v24  ;;  %v373_v11 = vld [vmem:[%s2899_s5 + $0x498] sm:$0xff]  ;;  %v375_v12 = vld [vmem:[%s2899_s5 + $0x4c0] sm:$0xff]  ;;  %v377_v13 = vld [vmem:[%s2899_s5 + $0x4c8] sm:$0xff] }
  0x2d   : > { %274 = vst [vmem:[%s2904_s6 + $0xc8] sm:$0xff] %v273_v25  ;;  %v379_v14 = vld [vmem:[%s2899_s5 + $0x4d0] sm:$0xff]  ;;  %v381_v15 = vld [vmem:[%s2899_s5 + $0x4d8] sm:$0xff]  ;;  %v383_v16 = vld [vmem:[%s2899_s5 + $0x500] sm:$0xff] }
  0x2e   : > { %276 = vst [vmem:[%s2904_s6 + $0xd0] sm:$0xff] %v275_v26  ;;  %v385_v17 = vld [vmem:[%s2899_s5 + $0x508] sm:$0xff]  ;;  %v387_v18 = vld [vmem:[%s2899_s5 + $0x510] sm:$0xff]  ;;  %v389_v19 = vld [vmem:[%s2899_s5 + $0x518] sm:$0xff] }
  0x2f   : > { %278 = vst [vmem:[%s2904_s6 + $0xd8] sm:$0xff] %v277_v27  ;;  %v391_v20 = vld [vmem:[%s2899_s5 + $0x540] sm:$0xff]  ;;  %v393_v21 = vld [vmem:[%s2899_s5 + $0x548] sm:$0xff]  ;;  %v395_v22 = vld [vmem:[%s2899_s5 + $0x550] sm:$0xff] }
  0x30   : > { %280 = vst [vmem:[%s2904_s6 + $0xe0] sm:$0xff] %v279_v28  ;;  %v397_v23 = vld [vmem:[%s2899_s5 + $0x558] sm:$0xff]  ;;  %v399_v24 = vld [vmem:[%s2899_s5 + $0x580] sm:$0xff]  ;;  %v401_v25 = vld [vmem:[%s2899_s5 + $0x588] sm:$0xff] }
  0x31   : > { %282 = vst [vmem:[%s2904_s6 + $0xe8] sm:$0xff] %v281_v29  ;;  %v403_v26 = vld [vmem:[%s2899_s5 + $0x590] sm:$0xff]  ;;  %v405_v27 = vld [vmem:[%s2899_s5 + $0x598] sm:$0xff]  ;;  %v407_v28 = vld [vmem:[%s2899_s5 + $0x5c0] sm:$0xff] }
  0x32   : > { %284 = vst [vmem:[%s2904_s6 + $0xf0] sm:$0xff] %v283_v30  ;;  %v409_v29 = vld [vmem:[%s2899_s5 + $0x5c8] sm:$0xff]  ;;  %v411_v30 = vld [vmem:[%s2899_s5 + $0x5d0] sm:$0xff] }
  0x33   : > { %286 = vst [vmem:[%s2904_s6 + $0xf8] sm:$0xff] %v285_v31  ;;  %v413_v31 = vld [vmem:[%s2899_s5 + $0x5d8] sm:$0xff] }
  0x34   : > { %288 = vst [vmem:[%s2904_s6 + $0x100] sm:$0xff] %v287_v32  ;;  %v415_v32 = vld [vmem:[%s2899_s5 + $0x600] sm:$0xff] }
  0x35   : > { %290 = vst [vmem:[%s2904_s6 + $0x108] sm:$0xff] %v289_v33  ;;  %v417_v33 = vld [vmem:[%s2899_s5 + $0x608] sm:$0xff] }
  0x36   : > { %292 = vst [vmem:[%s2904_s6 + $0x110] sm:$0xff] %v291_v34  ;;  %v419_v34 = vld [vmem:[%s2899_s5 + $0x610] sm:$0xff] }
  0x37   : > { %294 = vst [vmem:[%s2904_s6 + $0x118] sm:$0xff] %v293_v35  ;;  %v421_v35 = vld [vmem:[%s2899_s5 + $0x618] sm:$0xff] }
  0x38   : > { %296 = vst [vmem:[%s2904_s6 + $0x120] sm:$0xff] %v295_v36  ;;  %v423_v36 = vld [vmem:[%s2899_s5 + $0x640] sm:$0xff] }
  0x39   : > { %298 = vst [vmem:[%s2904_s6 + $0x128] sm:$0xff] %v297_v37  ;;  %v425_v37 = vld [vmem:[%s2899_s5 + $0x648] sm:$0xff] }
  0x3a   : > { %300 = vst [vmem:[%s2904_s6 + $0x130] sm:$0xff] %v299_v38  ;;  %v427_v38 = vld [vmem:[%s2899_s5 + $0x650] sm:$0xff] }
  0x3b   : > { %302 = vst [vmem:[%s2904_s6 + $0x138] sm:$0xff] %v301_v39  ;;  %v429_v39 = vld [vmem:[%s2899_s5 + $0x658] sm:$0xff] }
  0x3c   : > { %304 = vst [vmem:[%s2904_s6 + $0x140] sm:$0xff] %v303_v40  ;;  %v431_v40 = vld [vmem:[%s2899_s5 + $0x680] sm:$0xff] }
  0x3d   : > { %306 = vst [vmem:[%s2904_s6 + $0x148] sm:$0xff] %v305_v41  ;;  %v433_v41 = vld [vmem:[%s2899_s5 + $0x688] sm:$0xff] }
  0x3e   : > { %308 = vst [vmem:[%s2904_s6 + $0x150] sm:$0xff] %v307_v42  ;;  %v435_v42 = vld [vmem:[%s2899_s5 + $0x690] sm:$0xff] }
  0x3f   : > { %310 = vst [vmem:[%s2904_s6 + $0x158] sm:$0xff] %v309_v43  ;;  %v437_v43 = vld [vmem:[%s2899_s5 + $0x698] sm:$0xff] }
  0x40   : > { %312 = vst [vmem:[%s2904_s6 + $0x160] sm:$0xff] %v311_v44  ;;  %v439_v44 = vld [vmem:[%s2899_s5 + $0x6c0] sm:$0xff] }
  0x41   : > { %314 = vst [vmem:[%s2904_s6 + $0x168] sm:$0xff] %v313_v45  ;;  %v441_v45 = vld [vmem:[%s2899_s5 + $0x6c8] sm:$0xff] }
  0x42   : > { %316 = vst [vmem:[%s2904_s6 + $0x170] sm:$0xff] %v315_v46  ;;  %v443_v46 = vld [vmem:[%s2899_s5 + $0x6d0] sm:$0xff] }
  0x43   : > { %318 = vst [vmem:[%s2904_s6 + $0x178] sm:$0xff] %v317_v47  ;;  %v445_v47 = vld [vmem:[%s2899_s5 + $0x6d8] sm:$0xff] }
  0x44   : > { %320 = vst [vmem:[%s2904_s6 + $0x180] sm:$0xff] %v319_v48  ;;  %v447_v48 = vld [vmem:[%s2899_s5 + $0x700] sm:$0xff] }
  0x45   : > { %322 = vst [vmem:[%s2904_s6 + $0x188] sm:$0xff] %v321_v49  ;;  %v449_v49 = vld [vmem:[%s2899_s5 + $0x708] sm:$0xff] }
  0x46   : > { %324 = vst [vmem:[%s2904_s6 + $0x190] sm:$0xff] %v323_v50  ;;  %v451_v50 = vld [vmem:[%s2899_s5 + $0x710] sm:$0xff] }
  0x47   : > { %326 = vst [vmem:[%s2904_s6 + $0x198] sm:$0xff] %v325_v51  ;;  %v453_v51 = vld [vmem:[%s2899_s5 + $0x718] sm:$0xff] }
  0x48   : > { %328 = vst [vmem:[%s2904_s6 + $0x1a0] sm:$0xff] %v327_v52  ;;  %v455_v52 = vld [vmem:[%s2899_s5 + $0x740] sm:$0xff] }
  0x49   : > { %330 = vst [vmem:[%s2904_s6 + $0x1a8] sm:$0xff] %v329_v53  ;;  %v457_v53 = vld [vmem:[%s2899_s5 + $0x748] sm:$0xff] }
  0x4a   : > { %332 = vst [vmem:[%s2904_s6 + $0x1b0] sm:$0xff] %v331_v54  ;;  %v459_v54 = vld [vmem:[%s2899_s5 + $0x750] sm:$0xff] }
  0x4b   : > { %334 = vst [vmem:[%s2904_s6 + $0x1b8] sm:$0xff] %v333_v55  ;;  %v461_v55 = vld [vmem:[%s2899_s5 + $0x758] sm:$0xff] }
  0x4c   : > { %336 = vst [vmem:[%s2904_s6 + $0x1c0] sm:$0xff] %v335_v56  ;;  %v463_v56 = vld [vmem:[%s2899_s5 + $0x780] sm:$0xff] }
  0x4d   : > { %338 = vst [vmem:[%s2904_s6 + $0x1c8] sm:$0xff] %v337_v57  ;;  %v465_v57 = vld [vmem:[%s2899_s5 + $0x788] sm:$0xff] }
  0x4e   : > { %340 = vst [vmem:[%s2904_s6 + $0x1d0] sm:$0xff] %v339_v58  ;;  %v467_v58 = vld [vmem:[%s2899_s5 + $0x790] sm:$0xff] }
  0x4f   : > { %342 = vst [vmem:[%s2904_s6 + $0x1d8] sm:$0xff] %v341_v59  ;;  %v469_v59 = vld [vmem:[%s2899_s5 + $0x798] sm:$0xff] }
  0x50   : > { %344 = vst [vmem:[%s2904_s6 + $0x1e0] sm:$0xff] %v343_v60  ;;  %v471_v60 = vld [vmem:[%s2899_s5 + $0x7c0] sm:$0xff] }
  0x51   : > { %346 = vst [vmem:[%s2904_s6 + $0x1e8] sm:$0xff] %v345_v61  ;;  %v473_v61 = vld [vmem:[%s2899_s5 + $0x7c8] sm:$0xff] }
  0x52   : > { %348 = vst [vmem:[%s2904_s6 + $0x1f0] sm:$0xff] %v347_v62  ;;  %v475_v62 = vld [vmem:[%s2899_s5 + $0x7d0] sm:$0xff] }
  0x53   : > { %350 = vst [vmem:[%s2904_s6 + $0x1f8] sm:$0xff] %v349_v63  ;;  %v477_v63 = vld [vmem:[%s2899_s5 + $0x7d8] sm:$0xff] }
  0x54   : > { %352 = vst [vmem:[%s2904_s6 + $0x200] sm:$0xff] %v351_v0 }
  0x55   : > { %354 = vst [vmem:[%s2904_s6 + $0x208] sm:$0xff] %v353_v1 }
  0x56   : > { %356 = vst [vmem:[%s2904_s6 + $0x210] sm:$0xff] %v355_v2 }
  0x57   : > { %358 = vst [vmem:[%s2904_s6 + $0x218] sm:$0xff] %v357_v3 }
  0x58   : > { %360 = vst [vmem:[%s2904_s6 + $0x220] sm:$0xff] %v359_v4 }
  0x59   : > { %362 = vst [vmem:[%s2904_s6 + $0x228] sm:$0xff] %v361_v5 }
  0x5a   : > { %364 = vst [vmem:[%s2904_s6 + $0x230] sm:$0xff] %v363_v6 }
  0x5b   : > { %366 = vst [vmem:[%s2904_s6 + $0x238] sm:$0xff] %v365_v7 }
  0x5c   : > { %368 = vst [vmem:[%s2904_s6 + $0x240] sm:$0xff] %v367_v8 }
  0x5d   : > { %370 = vst [vmem:[%s2904_s6 + $0x248] sm:$0xff] %v369_v9 }
  0x5e   : > { %372 = vst [vmem:[%s2904_s6 + $0x250] sm:$0xff] %v371_v10 }
  0x5f   : > { %374 = vst [vmem:[%s2904_s6 + $0x258] sm:$0xff] %v373_v11 }
  0x60   : > { %376 = vst [vmem:[%s2904_s6 + $0x260] sm:$0xff] %v375_v12 }
  0x61   : > { %378 = vst [vmem:[%s2904_s6 + $0x268] sm:$0xff] %v377_v13 }
  0x62   : > { %380 = vst [vmem:[%s2904_s6 + $0x270] sm:$0xff] %v379_v14 }
  0x63   : > { %382 = vst [vmem:[%s2904_s6 + $0x278] sm:$0xff] %v381_v15 }
  0x64   : > { %384 = vst [vmem:[%s2904_s6 + $0x280] sm:$0xff] %v383_v16 }
  0x65   : > { %386 = vst [vmem:[%s2904_s6 + $0x288] sm:$0xff] %v385_v17 }
  0x66   : > { %388 = vst [vmem:[%s2904_s6 + $0x290] sm:$0xff] %v387_v18 }
  0x67   : > { %390 = vst [vmem:[%s2904_s6 + $0x298] sm:$0xff] %v389_v19 }
  0x68   : > { %392 = vst [vmem:[%s2904_s6 + $0x2a0] sm:$0xff] %v391_v20 }
  0x69   : > { %394 = vst [vmem:[%s2904_s6 + $0x2a8] sm:$0xff] %v393_v21 }
  0x6a   : > { %396 = vst [vmem:[%s2904_s6 + $0x2b0] sm:$0xff] %v395_v22 }
  0x6b   : > { %398 = vst [vmem:[%s2904_s6 + $0x2b8] sm:$0xff] %v397_v23 }
  0x6c   : > { %400 = vst [vmem:[%s2904_s6 + $0x2c0] sm:$0xff] %v399_v24 }
  0x6d   : > { %402 = vst [vmem:[%s2904_s6 + $0x2c8] sm:$0xff] %v401_v25 }
  0x6e   : > { %404 = vst [vmem:[%s2904_s6 + $0x2d0] sm:$0xff] %v403_v26 }
  0x6f   : > { %406 = vst [vmem:[%s2904_s6 + $0x2d8] sm:$0xff] %v405_v27 }
  0x70   : > { %408 = vst [vmem:[%s2904_s6 + $0x2e0] sm:$0xff] %v407_v28 }
  0x71   : > { %410 = vst [vmem:[%s2904_s6 + $0x2e8] sm:$0xff] %v409_v29 }
  0x72   : > { %412 = vst [vmem:[%s2904_s6 + $0x2f0] sm:$0xff] %v411_v30 }
  0x73   : > { %414 = vst [vmem:[%s2904_s6 + $0x2f8] sm:$0xff] %v413_v31 }
  0x74   : > { %416 = vst [vmem:[%s2904_s6 + $0x300] sm:$0xff] %v415_v32 }
  0x75   : > { %418 = vst [vmem:[%s2904_s6 + $0x308] sm:$0xff] %v417_v33 }
  0x76   : > { %420 = vst [vmem:[%s2904_s6 + $0x310] sm:$0xff] %v419_v34 }
  0x77   : > { %422 = vst [vmem:[%s2904_s6 + $0x318] sm:$0xff] %v421_v35 }
  0x78   : > { %424 = vst [vmem:[%s2904_s6 + $0x320] sm:$0xff] %v423_v36 }
  0x79   : > { %426 = vst [vmem:[%s2904_s6 + $0x328] sm:$0xff] %v425_v37 }
  0x7a   : > { %428 = vst [vmem:[%s2904_s6 + $0x330] sm:$0xff] %v427_v38 }
  0x7b   : > { %430 = vst [vmem:[%s2904_s6 + $0x338] sm:$0xff] %v429_v39 }
  0x7c   : > { %432 = vst [vmem:[%s2904_s6 + $0x340] sm:$0xff] %v431_v40 }
  0x7d   : > { %434 = vst [vmem:[%s2904_s6 + $0x348] sm:$0xff] %v433_v41 }
  0x7e   : > { %436 = vst [vmem:[%s2904_s6 + $0x350] sm:$0xff] %v435_v42 }
  0x7f   : > { %438 = vst [vmem:[%s2904_s6 + $0x358] sm:$0xff] %v437_v43 }
  0x80   : > { %440 = vst [vmem:[%s2904_s6 + $0x360] sm:$0xff] %v439_v44 }
  0x81   : > { %442 = vst [vmem:[%s2904_s6 + $0x368] sm:$0xff] %v441_v45 }
  0x82   : > { %444 = vst [vmem:[%s2904_s6 + $0x370] sm:$0xff] %v443_v46 }
  0x83   : > { %446 = vst [vmem:[%s2904_s6 + $0x378] sm:$0xff] %v445_v47 }
  0x84   : > { %448 = vst [vmem:[%s2904_s6 + $0x380] sm:$0xff] %v447_v48 }
  0x85   : > { %450 = vst [vmem:[%s2904_s6 + $0x388] sm:$0xff] %v449_v49 }
  0x86   : > { %452 = vst [vmem:[%s2904_s6 + $0x390] sm:$0xff] %v451_v50 }
  0x87   : > { %454 = vst [vmem:[%s2904_s6 + $0x398] sm:$0xff] %v453_v51 }
  0x88   : > { %456 = vst [vmem:[%s2904_s6 + $0x3a0] sm:$0xff] %v455_v52 }
  0x89   : > { %458 = vst [vmem:[%s2904_s6 + $0x3a8] sm:$0xff] %v457_v53 }
  0x8a   : > { %460 = vst [vmem:[%s2904_s6 + $0x3b0] sm:$0xff] %v459_v54 }
  0x8b   : > { %462 = vst [vmem:[%s2904_s6 + $0x3b8] sm:$0xff] %v461_v55 }
  0x8c   : > { %464 = vst [vmem:[%s2904_s6 + $0x3c0] sm:$0xff] %v463_v56 }
  0x8d   : > { %466 = vst [vmem:[%s2904_s6 + $0x3c8] sm:$0xff] %v465_v57 }
  0x8e   : > { %468 = vst [vmem:[%s2904_s6 + $0x3d0] sm:$0xff] %v467_v58 }
  0x8f   : > { %470 = vst [vmem:[%s2904_s6 + $0x3d8] sm:$0xff] %v469_v59 }
  0x90   : > { %472 = vst [vmem:[%s2904_s6 + $0x3e0] sm:$0xff] %v471_v60 }
  0x91   : > { %474 = vst [vmem:[%s2904_s6 + $0x3e8] sm:$0xff] %v473_v61 }
  0x92   : > { %476 = vst [vmem:[%s2904_s6 + $0x3f0] sm:$0xff] %v475_v62 }
  0x93   : > { %478 = vst [vmem:[%s2904_s6 + $0x3f8] sm:$0xff] %v477_v63 }
  0x94 PF: > { %p2071_p8 = scmp.ge.s32.totalorder %s2823_s19, 1  ;;  %p483_p9 = scmp.lt.s32.totalorder %s2823_s19, 3 }
  0x96   : > { %p484_p10 = pnand %p2071_p8, %p483_p9 }
  0x97   : > { %s490_s7 = sand.u32 (!%p484_p10), 1, %s2807_s15  }
  0x98   : > { %487 = sbr.rel (%p484_p10) target bundleno = 466 (0x1d2), region = 55  ;;  %s2072_s8 = sshll.u32 (!%p484_p10), %s490_s7, 10 }
  0x99   : > { %s3164_s9 = scalar_lea.vmem (!%p484_p10), [#allocation2], %s2072_s8 }
  0x9d   : > { %v2316_v0 = vld [vmem:[%s3164_s9 + $0x1c0] sm:$0xf]  ;;  %v2668_v5 = vld [vmem:[%s3164_s9 + $0x1c4] sm:$0xf] }
  0x9e   : > { %v2672_v1 = vld [vmem:[%s3164_s9 + $0x1dc] sm:$0xf0]  ;;  %v2318_v6 = vld [vmem:[%s3164_s9 + $0x1e0] sm:$0xf0] }
  0x9f   : > { %v2572_v2 = vld [vmem:[%s3164_s9 + $0x3c0] sm:$0xf]  ;;  %v2317_v3 = vor.u32 %v2672_v1, %v2316_v0  ;;  %v2321_v8 = vor.u32 %v2668_v5, %v2318_v6  ;;  %v2732_v9 = vld [vmem:[%s3164_s9 + $0x3c4] sm:$0xf] }
  0xa0   : > { %v2736_v4 = vld [vmem:[%s3164_s9 + $0x3dc] sm:$0xf0]  ;;  %v2574_v10 = vld [vmem:[%s3164_s9 + $0x3e0] sm:$0xf0] }
  0xa1   : > { %v2573_v7 = vor.u32 %v2736_v4, %v2572_v2  ;;  %v2284_v11 = vld [vmem:[%s3164_s9 + $0x180] sm:$0xf]  ;;  %1344 = vmatpush.bf16.msra.mxu0 %v2317_v3  ;;  %v2577_v12 = vor.u32 %v2732_v9, %v2574_v10  ;;  %1382 = vmatpush.bf16.msra.mxu2 %v2321_v8  ;;  %v2660_v18 = vld [vmem:[%s3164_s9 + $0x184] sm:$0xf] }
  0xa2   : > { %v2664_v13 = vld [vmem:[%s3164_s9 + $0x19c] sm:$0xf0]  ;;  %v2286_v19 = vld [vmem:[%s3164_s9 + $0x1a0] sm:$0xf0] }
  0xa3   : > { %v2540_v14 = vld [vmem:[%s3164_s9 + $0x380] sm:$0xf]  ;;  %1363 = vmatpush.bf16.msra.mxu1 %v2573_v7  ;;  %v2285_v16 = vor.u32 %v2664_v13, %v2284_v11  ;;  %v2724_v20 = vld [vmem:[%s3164_s9 + $0x384] sm:$0xf]  ;;  %1401 = vmatpush.bf16.msra.mxu3 %v2577_v12  ;;  %v2289_v21 = vor.u32 %v2660_v18, %v2286_v19 }
  0xa4   : > { %v2728_v15 = vld [vmem:[%s3164_s9 + $0x39c] sm:$0xf0]  ;;  %v2542_v22 = vld [vmem:[%s3164_s9 + $0x3a0] sm:$0xf0] }
  0xa5   : > { %v2541_v17 = vor.u32 %v2728_v15, %v2540_v14  ;;  %v2252_v23 = vld [vmem:[%s3164_s9 + $0x140] sm:$0xf]  ;;  %v2545_v25 = vor.u32 %v2724_v20, %v2542_v22  ;;  %v2652_v28 = vld [vmem:[%s3164_s9 + $0x144] sm:$0xf]  ;;  %1345 = vmatpush.bf16.msra.mxu0 %v2285_v16  ;;  %1383 = vmatpush.bf16.msra.mxu2 %v2289_v21 }
  0xa6   : > { %v2656_v24 = vld [vmem:[%s3164_s9 + $0x15c] sm:$0xf0]  ;;  %v2254_v30 = vld [vmem:[%s3164_s9 + $0x160] sm:$0xf0] }
  0xa7   : > { %v2508_v26 = vld [vmem:[%s3164_s9 + $0x340] sm:$0xf]  ;;  %v2253_v29 = vor.u32 %v2656_v24, %v2252_v23  ;;  %v2716_v31 = vld [vmem:[%s3164_s9 + $0x344] sm:$0xf]  ;;  %1364 = vmatpush.bf16.msra.mxu1 %v2541_v17  ;;  %v2257_v34 = vor.u32 %v2652_v28, %v2254_v30  ;;  %1402 = vmatpush.bf16.msra.mxu3 %v2545_v25  ;;  %v2326_v30 = vld [vmem:[%s3164_s9 + $0x1e8] sm:$0xf0] }
  0xa8   : > { %v2720_v27 = vld [vmem:[%s3164_s9 + $0x35c] sm:$0xf0]  ;;  %v2510_v32 = vld [vmem:[%s3164_s9 + $0x360] sm:$0xf0] }
  0xa9   : > { %v2509_v33 = vor.u32 %v2720_v27, %v2508_v26  ;;  %v2220_v35 = vld [vmem:[%s3164_s9 + $0x100] sm:$0xf]  ;;  %v2513_v38 = vor.u32 %v2716_v31, %v2510_v32  ;;  %v2644_v40 = vld [vmem:[%s3164_s9 + $0x104] sm:$0xf]  ;;  %1346 = vmatpush.bf16.msra.mxu0 %v2253_v29  ;;  %1384 = vmatpush.bf16.msra.mxu2 %v2257_v34  ;;  %v2669_v29 = vld [vmem:[%s3164_s9 + $0x1cc] sm:$0xf] }
  0xaa   : > { %v2648_v36 = vld [vmem:[%s3164_s9 + $0x11c] sm:$0xf0]  ;;  %v2222_v41 = vld [vmem:[%s3164_s9 + $0x120] sm:$0xf0]  ;;  %v2609_v32 = vld [vmem:[%s3647_s0 + $0x4] sm:$0xf0] }
  0xab   : > { %v2476_v37 = vld [vmem:[%s3164_s9 + $0x300] sm:$0xf]  ;;  %v2708_v42 = vld [vmem:[%s3164_s9 + $0x304] sm:$0xf]  ;;  %v2221_v44 = vor.u32 %v2648_v36, %v2220_v35  ;;  %1365 = vmatpush.bf16.msra.mxu1 %v2509_v33  ;;  %v2225_v46 = vor.u32 %v2644_v40, %v2222_v41  ;;  %1403 = vmatpush.bf16.msra.mxu3 %v2513_v38  ;;  %v2733_v33 = vld [vmem:[%s3164_s9 + $0x3cc] sm:$0xf]  ;;  %v2329_v41 = vor.u32 %v2669_v29, %v2326_v30 }
  0xac   : > { %v2712_v39 = vld [vmem:[%s3164_s9 + $0x31c] sm:$0xf0]  ;;  %v2478_v43 = vld [vmem:[%s3164_s9 + $0x320] sm:$0xf0]  ;;  %v2582_v34 = vld [vmem:[%s3164_s9 + $0x3e8] sm:$0xf0] }
  0xad   : > { %v2477_v45 = vor.u32 %v2712_v39, %v2476_v37  ;;  %v2188_v47 = vld [vmem:[%s3164_s9 + $0xc0] sm:$0xf]  ;;  %v2481_v50 = vor.u32 %v2708_v42, %v2478_v43  ;;  %v2636_v52 = vld [vmem:[%s3164_s9 + $0xc4] sm:$0xf]  ;;  %1347 = vmatpush.bf16.msra.mxu0 %v2221_v44  ;;  %1385 = vmatpush.bf16.msra.mxu2 %v2225_v46  ;;  %v2078_v38 = vld [vmem:[%s3647_s0 + $0x8] sm:$0xf0]  ;;  %v2585_v46 = vor.u32 %v2733_v33, %v2582_v34 }
  0xae   : > { %v2640_v48 = vld [vmem:[%s3164_s9 + $0xdc] sm:$0xf0]  ;;  %v2190_v53 = vld [vmem:[%s3164_s9 + $0xe0] sm:$0xf0]  ;;  %v2324_v39 = vld [vmem:[%s3164_s9 + $0x1c8] sm:$0xf] }
  0xaf   : > { %v2444_v49 = vld [vmem:[%s3164_s9 + $0x2c0] sm:$0xf]  ;;  %v2700_v54 = vld [vmem:[%s3164_s9 + $0x2c4] sm:$0xf]  ;;  %v2189_v56 = vor.u32 %v2640_v48, %v2188_v47  ;;  %1366 = vmatpush.bf16.msra.mxu1 %v2477_v45  ;;  %v2193_v58 = vor.u32 %v2636_v52, %v2190_v53  ;;  %1404 = vmatpush.bf16.msra.mxu3 %v2481_v50  ;;  %v2673_v42 = vld [vmem:[%s3164_s9 + $0x1e4] sm:$0xf0] }
  0xb0   : > { %v2704_v51 = vld [vmem:[%s3164_s9 + $0x2dc] sm:$0xf0]  ;;  %v2446_v55 = vld [vmem:[%s3164_s9 + $0x2e0] sm:$0xf0]  ;;  %v2580_v43 = vld [vmem:[%s3164_s9 + $0x3c8] sm:$0xf]  ;;  %v2325_v53 = vor.u32 %v2673_v42, %v2324_v39 }
  0xb1   : > { %v2445_v57 = vor.u32 %v2704_v51, %v2444_v49  ;;  %v2156_v59 = vld [vmem:[%s3164_s9 + $0x80] sm:$0xf]  ;;  %v2449_v62 = vor.u32 %v2700_v54, %v2446_v55  ;;  %v2628_v0 = vld [vmem:[%s3164_s9 + $0x84] sm:$0xf]  ;;  %1348 = vmatpush.bf16.msra.mxu0 %v2189_v56  ;;  %1386 = vmatpush.bf16.msra.mxu2 %v2193_v58  ;;  %v2737_v44 = vld [vmem:[%s3164_s9 + $0x3e4] sm:$0xf0] }
  0xb2   : > { %v2632_v60 = vld [vmem:[%s3164_s9 + $0x9c] sm:$0xf0]  ;;  %v2158_v1 = vld [vmem:[%s3164_s9 + $0xa0] sm:$0xf0]  ;;  %v2661_v47 = vld [vmem:[%s3164_s9 + $0x18c] sm:$0xf]  ;;  %v2581_v54 = vor.u32 %v2737_v44, %v2580_v43 }
  0xb3   : > { %v2412_v61 = vld [vmem:[%s3164_s9 + $0x280] sm:$0xf]  ;;  %v2692_v2 = vld [vmem:[%s3164_s9 + $0x284] sm:$0xf]  ;;  %v2157_v4 = vor.u32 %v2632_v60, %v2156_v59  ;;  %1367 = vmatpush.bf16.msra.mxu1 %v2445_v57  ;;  %v2161_v6 = vor.u32 %v2628_v0, %v2158_v1  ;;  %1405 = vmatpush.bf16.msra.mxu3 %v2449_v62  ;;  %v2294_v48 = vld [vmem:[%s3164_s9 + $0x1a8] sm:$0xf0] }
  0xb4   : > { %v2696_v63 = vld [vmem:[%s3164_s9 + $0x29c] sm:$0xf0]  ;;  %v2414_v3 = vld [vmem:[%s3164_s9 + $0x2a0] sm:$0xf0]  ;;  %v2725_v50 = vld [vmem:[%s3164_s9 + $0x38c] sm:$0xf]  ;;  %v2297_v55 = vor.u32 %v2661_v47, %v2294_v48 }
  0xb5   : > { %v2413_v5 = vor.u32 %v2696_v63, %v2412_v61  ;;  %v2124_v7 = vld [vmem:[%s3164_s9 + $0x40] sm:$0xf]  ;;  %v2417_v10 = vor.u32 %v2692_v2, %v2414_v3  ;;  %v2620_v12 = vld [vmem:[%s3164_s9 + $0x44] sm:$0xf]  ;;  %1349 = vmatpush.bf16.msra.mxu0 %v2157_v4  ;;  %1387 = vmatpush.bf16.msra.mxu2 %v2161_v6  ;;  %v2550_v51 = vld [vmem:[%s3164_s9 + $0x3a8] sm:$0xf0] }
  0xb6   : > { %v2624_v8 = vld [vmem:[%s3164_s9 + $0x5c] sm:$0xf0]  ;;  %v2126_v13 = vld [vmem:[%s3164_s9 + $0x60] sm:$0xf0]  ;;  %v2825_v52 = vmov 0   ;;  %v2553_v59 = vor.u32 %v2725_v50, %v2550_v51  ;;  %v1649_v29 = vld [vmem:[%s3649_s2 + $0x8] sm:$0xff] }
  0xb7   : > { %v2380_v9 = vld [vmem:[%s3164_s9 + $0x240] sm:$0xf]  ;;  %v2684_v14 = vld [vmem:[%s3164_s9 + $0x244] sm:$0xf]  ;;  %v2125_v16 = vor.u32 %v2624_v8, %v2124_v7  ;;  %1368 = vmatpush.bf16.msra.mxu1 %v2413_v5  ;;  %v2129_v20 = vor.u32 %v2620_v12, %v2126_v13  ;;  %1406 = vmatpush.bf16.msra.mxu3 %v2417_v10  ;;  %v2292_v56 = vld [vmem:[%s3164_s9 + $0x188] sm:$0xf] }
  0xb8   : > { %v2688_v11 = vld [vmem:[%s3164_s9 + $0x25c] sm:$0xf0]  ;;  %v2382_v15 = vld [vmem:[%s3164_s9 + $0x260] sm:$0xf0]  ;;  %2782 = vset.pattern.permute.xlu0 %v2825_v52  ;;  %v2665_v57 = vld [vmem:[%s3164_s9 + $0x1a4] sm:$0xf0]  ;;  %2783 = vset.pattern.permute.xlu1 %v2825_v52 }
  0xb9   : > { %v2092_v17 = vld [vmem:[%s3164_s9] sm:$0xf]  ;;  %v2381_v19 = vor.u32 %v2688_v11, %v2380_v9  ;;  %v2612_v23 = vld [vmem:[%s3164_s9 + $0x4] sm:$0xf]  ;;  %v2385_v24 = vor.u32 %v2684_v14, %v2382_v15  ;;  %1350 = vmatpush.bf16.msra.mxu0 %v2125_v16  ;;  %1388 = vmatpush.bf16.msra.mxu2 %v2129_v20  ;;  %v2548_v58 = vld [vmem:[%s3164_s9 + $0x388] sm:$0xf]  ;;  %v2293_v2 = vor.u32 %v2665_v57, %v2292_v56 }
  0xba   : > { %v2616_v18 = vld [vmem:[%s3164_s9 + $0x1c] sm:$0xf0]  ;;  %v2094_v25 = vld [vmem:[%s3164_s9 + $0x20] sm:$0xf0]  ;;  %v2729_v60 = vld [vmem:[%s3164_s9 + $0x3a4] sm:$0xf0]  ;;  %2784 = vset.pattern.permute.xlu2 %v2825_v52 }
  0xbb   : > { %v2348_v21 = vld [vmem:[%s3164_s9 + $0x200] sm:$0xf]  ;;  %v2676_v26 = vld [vmem:[%s3164_s9 + $0x204] sm:$0xf]  ;;  %v2093_v31 = vor.u32 %v2616_v18, %v2092_v17  ;;  %1369 = vmatpush.bf16.msra.mxu1 %v2381_v19  ;;  %v2097_v36 = vor.u32 %v2612_v23, %v2094_v25  ;;  %1407 = vmatpush.bf16.msra.mxu3 %v2385_v24  ;;  %v2653_v61 = vld [vmem:[%s3164_s9 + $0x14c] sm:$0xf]  ;;  %v2549_v3 = vor.u32 %v2729_v60, %v2548_v58 }
  0xbc   : > { %v2680_v22 = vld [vmem:[%s3164_s9 + $0x21c] sm:$0xf0]  ;;  %v2350_v27 = vld [vmem:[%s3164_s9 + $0x220] sm:$0xf0]  ;;  %v2262_v62 = vld [vmem:[%s3164_s9 + $0x168] sm:$0xf0] }
  0xbd   : > { %v2076_v28 = vld [vmem:[%s3647_s0] sm:$0xf]  ;;  %v2349_v35 = vor.u32 %v2680_v22, %v2348_v21  ;;  %v2608_v37 = vld [vmem:[%s3647_s0 + $0x4] sm:$0xf]  ;;  %v2353_v40 = vor.u32 %v2676_v26, %v2350_v27  ;;  %1351 = vmatpush.bf16.msra.mxu0 %v2093_v31  ;;  %1389 = vmatpush.bf16.msra.mxu2 %v2097_v36  ;;  %v2717_v63 = vld [vmem:[%s3164_s9 + $0x34c] sm:$0xf]  ;;  %v2265_v4 = vor.u32 %v2653_v61, %v2262_v62 }
  0xbe   : > { %v3250_v45 = vor.u32 %v2609_v32, %v2076_v28  ;;  %v3254_v49 = vor.u32 %v2608_v37, %v2078_v38  ;;  %v2518_v0 = vld [vmem:[%s3164_s9 + $0x368] sm:$0xf0]  ;;  %v1648_v1 = vld [vmem:[%s3649_s2] sm:$0xff]  ;;  %v2260_v5 = vld [vmem:[%s3164_s9 + $0x148] sm:$0xf] }
  0xbf   : > { %1370 = vmatpush.bf16.msra.mxu1 %v2349_v35  ;;  %1408 = vmatpush.bf16.msra.mxu3 %v2353_v40  ;;  %v2657_v6 = vld [vmem:[%s3164_s9 + $0x164] sm:$0xf0]  ;;  %v2521_v8 = vor.u32 %v2717_v63, %v2518_v0  ;;  %v2645_v10 = vld [vmem:[%s3164_s9 + $0x10c] sm:$0xf]  ;;  %v1650_v17 = vld [vmem:[%s3649_s2 + $0x10] sm:$0xff] }
  0xc0   : > { %1352 = vmatmul.bf16.vlgmr.msra.gmra.mxu0 %v3250_v45  ;;  %1390 = vmatmul.bf16.vlgmr.msra.gmra.mxu2 %v3250_v45  ;;  %v2516_v7 = vld [vmem:[%s3164_s9 + $0x348] sm:$0xf]  ;;  %v2230_v11 = vld [vmem:[%s3164_s9 + $0x128] sm:$0xf0]  ;;  %v2261_v14 = vor.u32 %v2657_v6, %v2260_v5  ;;  %v2084_v22 = vld [vmem:[%s3647_s0 + $0x10] sm:$0xf] }
  0xc1   : > { %1458 = vmatpush.bf16.msrb.mxu2 %v2329_v41  ;;  %1420 = vmatpush.bf16.msrb.mxu0 %v2325_v53  ;;  %v2721_v9 = vld [vmem:[%s3164_s9 + $0x364] sm:$0xf0]  ;;  %v2709_v12 = vld [vmem:[%s3164_s9 + $0x30c] sm:$0xf]  ;;  %v2233_v19 = vor.u32 %v2645_v10, %v2230_v11  ;;  %v2611_v24 = vld [vmem:[%s3647_s0 + $0x14] sm:$0xf0] }
  0xc2   : > { %1371 = vmatmul.bf16.vlgmr.msra.gmra.mxu1 %v3254_v49  ;;  %1409 = vmatmul.bf16.vlgmr.msra.gmra.mxu3 %v3254_v49  ;;  %v2486_v13 = vld [vmem:[%s3164_s9 + $0x328] sm:$0xf0]  ;;  %v2228_v15 = vld [vmem:[%s3164_s9 + $0x108] sm:$0xf]  ;;  %v2517_v18 = vor.u32 %v2721_v9, %v2516_v7  ;;  %v2610_v31 = vld [vmem:[%s3647_s0 + $0x14] sm:$0xf]  ;;  %v3310_v38 = vor.u32 %v2611_v24, %v2084_v22 }
  0xc3   : > { %1477 = vmatpush.bf16.msrb.mxu3 %v2585_v46  ;;  %1439 = vmatpush.bf16.msrb.mxu1 %v2581_v54  ;;  %v2649_v16 = vld [vmem:[%s3164_s9 + $0x124] sm:$0xf0]  ;;  %v2489_v23 = vor.u32 %v2709_v12, %v2486_v13  ;;  %v2637_v25 = vld [vmem:[%s3164_s9 + $0xcc] sm:$0xf]  ;;  %v2086_v32 = vld [vmem:[%s3647_s0 + $0x18] sm:$0xf0] }
  0xc4   : > { %1654 = vperm.xlu0 %2782, %v1648_v1   ;;  %v2484_v20 = vld [vmem:[%s3164_s9 + $0x308] sm:$0xf]  ;;  %v2198_v26 = vld [vmem:[%s3164_s9 + $0xe8] sm:$0xf0]  ;;  %1664 = vperm.xlu1 %2783, %v1650_v17   ;;  %v2229_v30 = vor.u32 %v2649_v16, %v2228_v15  ;;  %v3315_v43 = vor.u32 %v2610_v31, %v2086_v32  ;;  %v1651_v60 = vld [vmem:[%s3649_s2 + $0x18] sm:$0xff] }
  0xc5   : > { %1459 = vmatpush.bf16.msrb.mxu2 %v2297_v55  ;;  %1421 = vmatpush.bf16.msrb.mxu0 %v2293_v2  ;;  %v2713_v21 = vld [vmem:[%s3164_s9 + $0x324] sm:$0xf0]  ;;  %v2701_v27 = vld [vmem:[%s3164_s9 + $0x2cc] sm:$0xf]  ;;  %v2201_v34 = vor.u32 %v2637_v25, %v2198_v26  ;;  %v1706_v63 = vld [vmem:[%s3650_s3 + $0x10] sm:$0xff] }
  0xc6   : > { %v2454_v28 = vld [vmem:[%s3164_s9 + $0x2e8] sm:$0xf0]  ;;  %v2485_v33 = vor.u32 %v2713_v21, %v2484_v20  ;;  %v2196_v35 = vld [vmem:[%s3164_s9 + $0xc8] sm:$0xf]  ;;  %v1704_v0 = vld [vmem:[%s3650_s3] sm:$0xff] }
  0xc7   : > { %1478 = vmatpush.bf16.msrb.mxu3 %v2553_v59  ;;  %1440 = vmatpush.bf16.msrb.mxu1 %v2549_v3  ;;  %v2641_v36 = vld [vmem:[%s3164_s9 + $0xe4] sm:$0xf0]  ;;  %v2457_v39 = vor.u32 %v2701_v27, %v2454_v28  ;;  %v2629_v41 = vld [vmem:[%s3164_s9 + $0x8c] sm:$0xf]  ;;  %v2670_v11 = vld [vmem:[%s3164_s9 + $0x1d4] sm:$0xf] }
  0xc8   : > { %v2452_v37 = vld [vmem:[%s3164_s9 + $0x2c8] sm:$0xf]  ;;  %v2166_v42 = vld [vmem:[%s3164_s9 + $0xa8] sm:$0xf0]  ;;  %v2197_v47 = vor.u32 %v2641_v36, %v2196_v35  ;;  %v2334_v12 = vld [vmem:[%s3164_s9 + $0x1f0] sm:$0xf0]  ;;  %1710 = vperm.xlu2 %2784, %v1704_v0  }
  0xc9   : > { %1460 = vmatpush.bf16.msrb.mxu2 %v2265_v4  ;;  %1422 = vmatpush.bf16.msrb.mxu0 %v2261_v14  ;;  %v2705_v40 = vld [vmem:[%s3164_s9 + $0x2e4] sm:$0xf0]  ;;  %v2693_v44 = vld [vmem:[%s3164_s9 + $0x28c] sm:$0xf]  ;;  %v2169_v50 = vor.u32 %v2629_v41, %v2166_v42  ;;  %v2734_v15 = vld [vmem:[%s3164_s9 + $0x3d4] sm:$0xf] }
  0xca   : > { %v2422_v46 = vld [vmem:[%s3164_s9 + $0x2a8] sm:$0xf0]  ;;  %v2453_v48 = vor.u32 %v2705_v40, %v2452_v37  ;;  %v2164_v51 = vld [vmem:[%s3164_s9 + $0x88] sm:$0xf]  ;;  %v2590_v16 = vld [vmem:[%s3164_s9 + $0x3f0] sm:$0xf0] }
  0xcb   : > { %1479 = vmatpush.bf16.msrb.mxu3 %v2521_v8  ;;  %1441 = vmatpush.bf16.msrb.mxu1 %v2517_v18  ;;  %v2633_v52 = vld [vmem:[%s3164_s9 + $0xa4] sm:$0xf0]  ;;  %v2425_v54 = vor.u32 %v2693_v44, %v2422_v46  ;;  %v2621_v56 = vld [vmem:[%s3164_s9 + $0x4c] sm:$0xf]  ;;  %v2332_v24 = vld [vmem:[%s3164_s9 + $0x1d0] sm:$0xf]  ;;  %v2593_v27 = vor.u32 %v2734_v15, %v2590_v16 }
  0xcc   : > { %1659 = vperm.xlu0 %2782, %v1649_v29   ;;  %v2420_v53 = vld [vmem:[%s3164_s9 + $0x288] sm:$0xf]  ;;  %v2134_v57 = vld [vmem:[%s3164_s9 + $0x68] sm:$0xf0]  ;;  %v2165_v61 = vor.u32 %v2633_v52, %v2164_v51  ;;  %1669 = vperm.xlu1 %2783, %v1651_v60   ;;  %v2674_v25 = vld [vmem:[%s3164_s9 + $0x1ec] sm:$0xf0] }
  0xcd   : > { %1461 = vmatpush.bf16.msrb.mxu2 %v2233_v19  ;;  %1423 = vmatpush.bf16.msrb.mxu0 %v2229_v30  ;;  %v2697_v55 = vld [vmem:[%s3164_s9 + $0x2a4] sm:$0xf0]  ;;  %v2685_v58 = vld [vmem:[%s3164_s9 + $0x24c] sm:$0xf]  ;;  %v2137_v2 = vor.u32 %v2621_v56, %v2134_v57  ;;  %v2588_v26 = vld [vmem:[%s3164_s9 + $0x3d0] sm:$0xf] }
  0xce   : > { %v2390_v59 = vld [vmem:[%s3164_s9 + $0x268] sm:$0xf0]  ;;  %v2132_v62 = vld [vmem:[%s3164_s9 + $0x48] sm:$0xf]  ;;  %v2421_v1 = vor.u32 %v2697_v55, %v2420_v53  ;;  %v2738_v28 = vld [vmem:[%s3164_s9 + $0x3ec] sm:$0xf0] }
  0xcf   : > { %1480 = vmatpush.bf16.msrb.mxu3 %v2489_v23  ;;  %1442 = vmatpush.bf16.msrb.mxu1 %v2485_v33  ;;  %v2625_v3 = vld [vmem:[%s3164_s9 + $0x64] sm:$0xf0]  ;;  %v2393_v6 = vor.u32 %v2685_v58, %v2390_v59  ;;  %v2613_v7 = vld [vmem:[%s3164_s9 + $0xc] sm:$0xf]  ;;  %v2337_v23 = vor.u32 %v2670_v11, %v2334_v12  ;;  %v2662_v29 = vld [vmem:[%s3164_s9 + $0x194] sm:$0xf] }
  0xd0   : > { %1357 = vmatmul.bf16.gmra.mxu0 %v3310_v38  ;;  %1395 = vmatmul.bf16.gmra.mxu2 %v3310_v38  ;;  %v2388_v4 = vld [vmem:[%s3164_s9 + $0x248] sm:$0xf]  ;;  %v2102_v8 = vld [vmem:[%s3164_s9 + $0x28] sm:$0xf0]  ;;  %v2133_v13 = vor.u32 %v2625_v3, %v2132_v62  ;;  %v2302_v30 = vld [vmem:[%s3164_s9 + $0x1b0] sm:$0xf0] }
  0xd1   : > { %1462 = vmatpush.bf16.msrb.mxu2 %v2201_v34  ;;  %1424 = vmatpush.bf16.msrb.mxu0 %v2197_v47  ;;  %v2689_v5 = vld [vmem:[%s3164_s9 + $0x264] sm:$0xf0]  ;;  %v2677_v9 = vld [vmem:[%s3164_s9 + $0x20c] sm:$0xf]  ;;  %v2105_v18 = vor.u32 %v2613_v7, %v2102_v8  ;;  %v1707_v32 = vld [vmem:[%s3650_s3 + $0x18] sm:$0xff]  ;;  %v2333_v34 = vor.u32 %v2674_v25, %v2332_v24  ;;  %v2305_v40 = vor.u32 %v2662_v29, %v2302_v30 }
  0xd2   : > { %1376 = vmatmul.bf16.gmra.mxu1 %v3315_v43  ;;  %1414 = vmatmul.bf16.gmra.mxu3 %v3315_v43  ;;  %v2358_v10 = vld [vmem:[%s3164_s9 + $0x228] sm:$0xf0]  ;;  %v2100_v14 = vld [vmem:[%s3164_s9 + $0x8] sm:$0xf]  ;;  %v2389_v17 = vor.u32 %v2689_v5, %v2388_v4  ;;  %v2726_v35 = vld [vmem:[%s3164_s9 + $0x394] sm:$0xf] }
  0xd3   : > { %1481 = vmatpush.bf16.msrb.mxu3 %v2457_v39  ;;  %1443 = vmatpush.bf16.msrb.mxu1 %v2453_v48  ;;  %v2617_v19 = vld [vmem:[%s3164_s9 + $0x24] sm:$0xf0]  ;;  %v2361_v22 = vor.u32 %v2677_v9, %v2358_v10  ;;  %v2558_v36 = vld [vmem:[%s3164_s9 + $0x3b0] sm:$0xf0]  ;;  %v2589_v39 = vor.u32 %v2738_v28, %v2588_v26  ;;  %v2300_v41 = vld [vmem:[%s3164_s9 + $0x190] sm:$0xf] }
  0xd4   : > { %1720 = vperm.xlu0 %2782, %v1706_v63   ;;  %v2356_v20 = vld [vmem:[%s3164_s9 + $0x208] sm:$0xf]  ;;  %v2101_v31 = vor.u32 %v2617_v19, %v2100_v14  ;;  %v2666_v42 = vld [vmem:[%s3164_s9 + $0x1ac] sm:$0xf0]  ;;  %1725 = vperm.xlu1 %2783, %v1707_v32   ;;  %v2654_v47 = vld [vmem:[%s3164_s9 + $0x154] sm:$0xf] }
  0xd5   : > { %1463 = vmatpush.bf16.msrb.mxu2 %v2169_v50  ;;  %1425 = vmatpush.bf16.msrb.mxu0 %v2165_v61  ;;  %v2681_v21 = vld [vmem:[%s3164_s9 + $0x224] sm:$0xf0]  ;;  %v2556_v44 = vld [vmem:[%s3164_s9 + $0x390] sm:$0xf]  ;;  %v2270_v48 = vld [vmem:[%s3164_s9 + $0x170] sm:$0xf0]  ;;  %v2561_v50 = vor.u32 %v2726_v35, %v2558_v36  ;;  %v2301_v51 = vor.u32 %v2666_v42, %v2300_v41 }
  0xd6   : > { %v2357_v33 = vor.u32 %v2681_v21, %v2356_v20  ;;  %v1705_v37 = vld [vmem:[%s3650_s3 + $0x8] sm:$0xff]  ;;  %v2730_v46 = vld [vmem:[%s3164_s9 + $0x3ac] sm:$0xf0]  ;;  %v2718_v52 = vld [vmem:[%s3164_s9 + $0x354] sm:$0xf]  ;;  %v2273_v55 = vor.u32 %v2654_v47, %v2270_v48 }
  0xd7   : > { %1482 = vmatpush.bf16.msrb.mxu3 %v2425_v54  ;;  %1444 = vmatpush.bf16.msrb.mxu1 %v2421_v1  ;;  %v2526_v53 = vld [vmem:[%s3164_s9 + $0x370] sm:$0xf0]  ;;  %v2557_v54 = vor.u32 %v2730_v46, %v2556_v44  ;;  %v2268_v56 = vld [vmem:[%s3164_s9 + $0x150] sm:$0xf] }
  0xd8   : > { %1715 = vperm.xlu2 %2784, %v1705_v37   ;;  %v2658_v57 = vld [vmem:[%s3164_s9 + $0x16c] sm:$0xf0]  ;;  %v2646_v60 = vld [vmem:[%s3164_s9 + $0x114] sm:$0xf]  ;;  %v2529_v62 = vor.u32 %v2718_v52, %v2526_v53 }
  0xd9   : > { %1464 = vmatpush.bf16.msrb.mxu2 %v2137_v2  ;;  %1426 = vmatpush.bf16.msrb.mxu0 %v2133_v13  ;;  %v2524_v58 = vld [vmem:[%s3164_s9 + $0x350] sm:$0xf]  ;;  %v2238_v61 = vld [vmem:[%s3164_s9 + $0x130] sm:$0xf0]  ;;  %v2269_v63 = vor.u32 %v2658_v57, %v2268_v56 }
  0xda   : > { %v2722_v59 = vld [vmem:[%s3164_s9 + $0x36c] sm:$0xf0]  ;;  %v2710_v0 = vld [vmem:[%s3164_s9 + $0x314] sm:$0xf]  ;;  %v2241_v3 = vor.u32 %v2646_v60, %v2238_v61 }
  0xdb   : > { %1483 = vmatpush.bf16.msrb.mxu3 %v2393_v6  ;;  %1445 = vmatpush.bf16.msrb.mxu1 %v2389_v17  ;;  %v2494_v1 = vld [vmem:[%s3164_s9 + $0x330] sm:$0xf0]  ;;  %v2525_v2 = vor.u32 %v2722_v59, %v2524_v58  ;;  %v2236_v4 = vld [vmem:[%s3164_s9 + $0x110] sm:$0xf] }
  0xdc   : > { %v2650_v5 = vld [vmem:[%s3164_s9 + $0x12c] sm:$0xf0]  ;;  %v2638_v8 = vld [vmem:[%s3164_s9 + $0xd4] sm:$0xf]  ;;  %v2497_v10 = vor.u32 %v2710_v0, %v2494_v1  ;;  %v2598_v0 = vld [vmem:[%s3164_s9 + $0x3f8] sm:$0xf0] }
  0xdd   : > { %1465 = vmatpush.bf16.msrb.mxu2 %v2105_v18  ;;  %1427 = vmatpush.bf16.msrb.mxu0 %v2101_v31  ;;  %v2492_v6 = vld [vmem:[%s3164_s9 + $0x310] sm:$0xf]  ;;  %v2206_v9 = vld [vmem:[%s3164_s9 + $0xf0] sm:$0xf0]  ;;  %v2237_v11 = vor.u32 %v2650_v5, %v2236_v4  ;;  %v2340_v1 = vld [vmem:[%s3164_s9 + $0x1d8] sm:$0xf] }
  0xde   : > { %v2714_v7 = vld [vmem:[%s3164_s9 + $0x32c] sm:$0xf0]  ;;  %v2702_v12 = vld [vmem:[%s3164_s9 + $0x2d4] sm:$0xf]  ;;  %v2209_v15 = vor.u32 %v2638_v8, %v2206_v9  ;;  %v2739_v4 = vld [vmem:[%s3164_s9 + $0x3f4] sm:$0xf0] }
  0xdf   : > { %1484 = vmatpush.bf16.msrb.mxu3 %v2361_v22  ;;  %1446 = vmatpush.bf16.msrb.mxu1 %v2357_v33  ;;  %v2462_v13 = vld [vmem:[%s3164_s9 + $0x2f0] sm:$0xf0]  ;;  %v2493_v14 = vor.u32 %v2714_v7, %v2492_v6  ;;  %v2204_v16 = vld [vmem:[%s3164_s9 + $0xd0] sm:$0xf]  ;;  %v2663_v7 = vld [vmem:[%s3164_s9 + $0x19c] sm:$0xf] }
  0xe0   : > { %1428 = vmatmul.bf16.vlgmr.msrb.gmra.mxu0 %v3250_v45  ;;  %1466 = vmatmul.bf16.vlgmr.msrb.gmra.mxu2 %v3250_v45  ;;  %v2642_v17 = vld [vmem:[%s3164_s9 + $0xec] sm:$0xf0]  ;;  %v2630_v20 = vld [vmem:[%s3164_s9 + $0x94] sm:$0xf]  ;;  %v2465_v22 = vor.u32 %v2702_v12, %v2462_v13  ;;  %v2310_v8 = vld [vmem:[%s3164_s9 + $0x1b8] sm:$0xf0] }
  0xe1   : > { %1534 = vmatpush.bf16.msra.mxu2 %v2337_v23  ;;  %1496 = vmatpush.bf16.msra.mxu0 %v2333_v34  ;;  %v2460_v18 = vld [vmem:[%s3164_s9 + $0x2d0] sm:$0xf]  ;;  %v2174_v21 = vld [vmem:[%s3164_s9 + $0xb0] sm:$0xf0]  ;;  %v2205_v23 = vor.u32 %v2642_v17, %v2204_v16  ;;  %v2727_v13 = vld [vmem:[%s3164_s9 + $0x39c] sm:$0xf] }
  0xe2   : > { %1447 = vmatmul.bf16.vlgmr.msrb.gmra.mxu1 %v3254_v49  ;;  %1485 = vmatmul.bf16.vlgmr.msrb.gmra.mxu3 %v3254_v49  ;;  %v2706_v19 = vld [vmem:[%s3164_s9 + $0x2ec] sm:$0xf0]  ;;  %v2694_v24 = vld [vmem:[%s3164_s9 + $0x294] sm:$0xf]  ;;  %v2308_v16 = vld [vmem:[%s3164_s9 + $0x198] sm:$0xf] }
  0xe3   : > { %1553 = vmatpush.bf16.msra.mxu3 %v2593_v27  ;;  %1515 = vmatpush.bf16.msra.mxu1 %v2589_v39  ;;  %v2430_v25 = vld [vmem:[%s3164_s9 + $0x2b0] sm:$0xf0]  ;;  %v2461_v26 = vor.u32 %v2706_v19, %v2460_v18  ;;  %v2177_v27 = vor.u32 %v2630_v20, %v2174_v21  ;;  %v2172_v28 = vld [vmem:[%s3164_s9 + $0x90] sm:$0xf]  ;;  %v2667_v17 = vld [vmem:[%s3164_s9 + $0x1b4] sm:$0xf0] }
  0xe4   : > { %v2634_v29 = vld [vmem:[%s3164_s9 + $0xac] sm:$0xf0]  ;;  %v2622_v32 = vld [vmem:[%s3164_s9 + $0x54] sm:$0xf]  ;;  %v2433_v34 = vor.u32 %v2694_v24, %v2430_v25  ;;  %v2564_v19 = vld [vmem:[%s3164_s9 + $0x398] sm:$0xf]  ;;  %v2309_v25 = vor.u32 %v2667_v17, %v2308_v16 }
  0xe5   : > { %1535 = vmatpush.bf16.msra.mxu2 %v2305_v40  ;;  %1497 = vmatpush.bf16.msra.mxu0 %v2301_v51  ;;  %v2428_v30 = vld [vmem:[%s3164_s9 + $0x290] sm:$0xf]  ;;  %v2142_v33 = vld [vmem:[%s3164_s9 + $0x70] sm:$0xf0]  ;;  %v2173_v35 = vor.u32 %v2634_v29, %v2172_v28  ;;  %v2342_v51 = vld [vmem:[%s3164_s9 + $0x1f8] sm:$0xf0] }
  0xe6   : > { %v2698_v31 = vld [vmem:[%s3164_s9 + $0x2ac] sm:$0xf0]  ;;  %v2686_v36 = vld [vmem:[%s3164_s9 + $0x254] sm:$0xf]  ;;  %v2145_v40 = vor.u32 %v2622_v32, %v2142_v33  ;;  %v2731_v20 = vld [vmem:[%s3164_s9 + $0x3b4] sm:$0xf0] }
  0xe7   : > { %1554 = vmatpush.bf16.msra.mxu3 %v2561_v50  ;;  %1516 = vmatpush.bf16.msra.mxu1 %v2557_v54  ;;  %v2398_v37 = vld [vmem:[%s3164_s9 + $0x270] sm:$0xf0]  ;;  %v2429_v39 = vor.u32 %v2698_v31, %v2428_v30  ;;  %v2140_v41 = vld [vmem:[%s3164_s9 + $0x50] sm:$0xf]  ;;  %v2671_v50 = vld [vmem:[%s3164_s9 + $0x1dc] sm:$0xf] }
  0xe8   : > { %v2626_v42 = vld [vmem:[%s3164_s9 + $0x6c] sm:$0xf0]  ;;  %v2614_v47 = vld [vmem:[%s3164_s9 + $0x14] sm:$0xf]  ;;  %v2401_v52 = vor.u32 %v2686_v36, %v2398_v37  ;;  %v2655_v21 = vld [vmem:[%s3164_s9 + $0x15c] sm:$0xf] }
  0xe9   : > { %1536 = vmatpush.bf16.msra.mxu2 %v2273_v55  ;;  %1498 = vmatpush.bf16.msra.mxu0 %v2269_v63  ;;  %v2396_v44 = vld [vmem:[%s3164_s9 + $0x250] sm:$0xf]  ;;  %v2110_v48 = vld [vmem:[%s3164_s9 + $0x30] sm:$0xf0]  ;;  %v2141_v53 = vor.u32 %v2626_v42, %v2140_v41  ;;  %v2735_v63 = vld [vmem:[%s3164_s9 + $0x3dc] sm:$0xf] }
  0xea   : > { %v2690_v46 = vld [vmem:[%s3164_s9 + $0x26c] sm:$0xf0]  ;;  %v2678_v54 = vld [vmem:[%s3164_s9 + $0x214] sm:$0xf]  ;;  %v2113_v58 = vor.u32 %v2614_v47, %v2110_v48  ;;  %v2534_v24 = vld [vmem:[%s3164_s9 + $0x378] sm:$0xf0] }
  0xeb   : > { %1555 = vmatpush.bf16.msra.mxu3 %v2529_v62  ;;  %1517 = vmatpush.bf16.msra.mxu1 %v2525_v2  ;;  %v2366_v55 = vld [vmem:[%s3164_s9 + $0x230] sm:$0xf0]  ;;  %v2108_v56 = vld [vmem:[%s3164_s9 + $0x10] sm:$0xf]  ;;  %v2397_v57 = vor.u32 %v2690_v46, %v2396_v44  ;;  %v2345_v62 = vor.u32 %v2671_v50, %v2342_v51  ;;  %v2675_v2 = vld [vmem:[%s3164_s9 + $0x1f4] sm:$0xf0] }
  0xec   : > { %v2618_v59 = vld [vmem:[%s3164_s9 + $0x2c] sm:$0xf0]  ;;  %v2369_v5 = vor.u32 %v2678_v54, %v2366_v55  ;;  %v2659_v28 = vld [vmem:[%s3164_s9 + $0x174] sm:$0xf0]  ;;  %v2647_v33 = vld [vmem:[%s3164_s9 + $0x11c] sm:$0xf] }
  0xed   : > { %1537 = vmatpush.bf16.msra.mxu2 %v2241_v3  ;;  %1499 = vmatpush.bf16.msra.mxu0 %v2237_v11  ;;  %v2364_v60 = vld [vmem:[%s3164_s9 + $0x210] sm:$0xf]  ;;  %v2596_v3 = vld [vmem:[%s3164_s9 + $0x3d8] sm:$0xf]  ;;  %v2109_v6 = vor.u32 %v2618_v59, %v2108_v56  ;;  %v2341_v11 = vor.u32 %v2675_v2, %v2340_v1  ;;  %v2502_v36 = vld [vmem:[%s3164_s9 + $0x338] sm:$0xf0] }
  0xee   : > { %v2682_v61 = vld [vmem:[%s3164_s9 + $0x22c] sm:$0xf0]  ;;  %v2597_v12 = vor.u32 %v2739_v4, %v2596_v3  ;;  %v2532_v31 = vld [vmem:[%s3164_s9 + $0x358] sm:$0xf]  ;;  %v2639_v48 = vld [vmem:[%s3164_s9 + $0xdc] sm:$0xf] }
  0xef   : > { %1556 = vmatpush.bf16.msra.mxu3 %v2497_v10  ;;  %1518 = vmatpush.bf16.msra.mxu1 %v2493_v14  ;;  %v2365_v9 = vor.u32 %v2682_v61, %v2364_v60  ;;  %v2601_v10 = vor.u32 %v2735_v63, %v2598_v0  ;;  %v2566_v14 = vld [vmem:[%s3164_s9 + $0x3b8] sm:$0xf0]  ;;  %v2723_v32 = vld [vmem:[%s3164_s9 + $0x374] sm:$0xf0] }
  0xf0   : > { %1433 = vmatmul.bf16.gmra.mxu0 %v3310_v38  ;;  %1471 = vmatmul.bf16.gmra.mxu2 %v3310_v38  ;;  %v2569_v18 = vor.u32 %v2727_v13, %v2566_v14  ;;  %v2651_v41 = vld [vmem:[%s3164_s9 + $0x134] sm:$0xf0]  ;;  %v2214_v50 = vld [vmem:[%s3164_s9 + $0xf8] sm:$0xf0] }
  0xf1   : > { %1538 = vmatpush.bf16.msra.mxu2 %v2209_v15  ;;  %1500 = vmatpush.bf16.msra.mxu0 %v2205_v23  ;;  %v2313_v15 = vor.u32 %v2663_v7, %v2310_v8  ;;  %v2719_v23 = vld [vmem:[%s3164_s9 + $0x35c] sm:$0xf]  ;;  %v2500_v46 = vld [vmem:[%s3164_s9 + $0x318] sm:$0xf] }
  0xf2   : > { %1452 = vmatmul.bf16.gmra.mxu1 %v3315_v43  ;;  %1490 = vmatmul.bf16.gmra.mxu3 %v3315_v43  ;;  %v2537_v30 = vor.u32 %v2719_v23, %v2534_v24  ;;  %v2715_v47 = vld [vmem:[%s3164_s9 + $0x334] sm:$0xf0]  ;;  %v2703_v51 = vld [vmem:[%s3164_s9 + $0x2dc] sm:$0xf] }
  0xf3   : > { %1557 = vmatpush.bf16.msra.mxu3 %v2465_v22  ;;  %1519 = vmatpush.bf16.msra.mxu1 %v2461_v26  ;;  %v2278_v22 = vld [vmem:[%s3164_s9 + $0x178] sm:$0xf0]  ;;  %v2565_v26 = vor.u32 %v2731_v20, %v2564_v19  ;;  %v2501_v54 = vor.u32 %v2715_v47, %v2500_v46  ;;  %v2212_v55 = vld [vmem:[%s3164_s9 + $0xd8] sm:$0xf] }
  0xf4   : > { %v2281_v29 = vor.u32 %v2655_v21, %v2278_v22  ;;  %v2643_v56 = vld [vmem:[%s3164_s9 + $0xf4] sm:$0xf0]  ;;  %v2631_v61 = vld [vmem:[%s3164_s9 + $0x9c] sm:$0xf] }
  0xf5   : > { %1539 = vmatpush.bf16.msra.mxu2 %v2177_v27  ;;  %1501 = vmatpush.bf16.msra.mxu0 %v2173_v35  ;;  %v2276_v27 = vld [vmem:[%s3164_s9 + $0x158] sm:$0xf]  ;;  %v2711_v35 = vld [vmem:[%s3164_s9 + $0x31c] sm:$0xf]  ;;  %v2213_v1 = vor.u32 %v2643_v56, %v2212_v55 }
  0xf6   : > { %v2277_v37 = vor.u32 %v2659_v28, %v2276_v27  ;;  %v2505_v44 = vor.u32 %v2711_v35, %v2502_v36  ;;  %v2468_v59 = vld [vmem:[%s3164_s9 + $0x2d8] sm:$0xf]  ;;  %v2695_v63 = vld [vmem:[%s3164_s9 + $0x29c] sm:$0xf] }
  0xf7   : > { %1558 = vmatpush.bf16.msra.mxu3 %v2433_v34  ;;  %1520 = vmatpush.bf16.msra.mxu1 %v2429_v39  ;;  %v2246_v34 = vld [vmem:[%s3164_s9 + $0x138] sm:$0xf0]  ;;  %v2533_v39 = vor.u32 %v2723_v32, %v2532_v31  ;;  %v2707_v60 = vld [vmem:[%s3164_s9 + $0x2f4] sm:$0xf0] }
  0xf8   : > { %v2249_v42 = vor.u32 %v2647_v33, %v2246_v34  ;;  %v2438_v0 = vld [vmem:[%s3164_s9 + $0x2b8] sm:$0xf0]  ;;  %v2469_v2 = vor.u32 %v2707_v60, %v2468_v59  ;;  %v2180_v3 = vld [vmem:[%s3164_s9 + $0x98] sm:$0xf] }
  0xf9   : > { %1540 = vmatpush.bf16.msra.mxu2 %v2145_v40  ;;  %1502 = vmatpush.bf16.msra.mxu0 %v2141_v53  ;;  %v2244_v40 = vld [vmem:[%s3164_s9 + $0x118] sm:$0xf]  ;;  %v2615_v21 = vld [vmem:[%s3164_s9 + $0x1c] sm:$0xf] }
  0xfa   : > { %v2245_v53 = vor.u32 %v2651_v41, %v2244_v40  ;;  %v2635_v4 = vld [vmem:[%s3164_s9 + $0xb4] sm:$0xf0]  ;;  %v2118_v22 = vld [vmem:[%s3164_s9 + $0x38] sm:$0xf0] }
  0xfb   : > { %1559 = vmatpush.bf16.msra.mxu3 %v2401_v52  ;;  %1521 = vmatpush.bf16.msra.mxu1 %v2397_v57  ;;  %v2470_v52 = vld [vmem:[%s3164_s9 + $0x2f8] sm:$0xf0]  ;;  %v2217_v57 = vor.u32 %v2639_v48, %v2214_v50  ;;  %v2436_v7 = vld [vmem:[%s3164_s9 + $0x298] sm:$0xf]  ;;  %v2181_v13 = vor.u32 %v2635_v4, %v2180_v3  ;;  %v2121_v28 = vor.u32 %v2615_v21, %v2118_v22 }
  0xfc   : > { %v2699_v8 = vld [vmem:[%s3164_s9 + $0x2b4] sm:$0xf0]  ;;  %v2679_v23 = vld [vmem:[%s3164_s9 + $0x21c] sm:$0xf] }
  0xfd   : > { %1541 = vmatpush.bf16.msra.mxu2 %v2113_v58  ;;  %1503 = vmatpush.bf16.msra.mxu0 %v2109_v6  ;;  %v2473_v58 = vor.u32 %v2703_v51, %v2470_v52  ;;  %v2441_v6 = vor.u32 %v2695_v63, %v2438_v0  ;;  %v2437_v14 = vor.u32 %v2699_v8, %v2436_v7  ;;  %v2627_v16 = vld [vmem:[%s3164_s9 + $0x74] sm:$0xf0]  ;;  %v2374_v24 = vld [vmem:[%s3164_s9 + $0x238] sm:$0xf0] }
  0xfe   : > { %v2404_v19 = vld [vmem:[%s3164_s9 + $0x258] sm:$0xf] }
  0xff   : > { %1560 = vmatpush.bf16.msra.mxu3 %v2369_v5  ;;  %1522 = vmatpush.bf16.msra.mxu1 %v2365_v9  ;;  %v2623_v9 = vld [vmem:[%s3164_s9 + $0x5c] sm:$0xf]  ;;  %v2691_v20 = vld [vmem:[%s3164_s9 + $0x274] sm:$0xf0] }
 0x100   : > { %1504 = vmatmul.bf16.vlgmr.msra.gmra.mxu0 %v3250_v45  ;;  %1542 = vmatmul.bf16.vlgmr.msra.gmra.mxu2 %v3250_v45  ;;  %v2116_v27 = vld [vmem:[%s3164_s9 + $0x18] sm:$0xf] }
 0x101   : > { %1610 = vmatpush.bf16.msrb.mxu2 %v2345_v62  ;;  %1572 = vmatpush.bf16.msrb.mxu0 %v2341_v11  ;;  %v2182_v62 = vld [vmem:[%s3164_s9 + $0xb8] sm:$0xf0]  ;;  %v2372_v31 = vld [vmem:[%s3164_s9 + $0x218] sm:$0xf] }
 0x102   : > { %1523 = vmatmul.bf16.vlgmr.msra.gmra.mxu1 %v3254_v49  ;;  %1561 = vmatmul.bf16.vlgmr.msra.gmra.mxu3 %v3254_v49  ;;  %v2185_v5 = vor.u32 %v2631_v61, %v2182_v62  ;;  %v2687_v11 = vld [vmem:[%s3164_s9 + $0x25c] sm:$0xf]  ;;  %v2683_v32 = vld [vmem:[%s3164_s9 + $0x234] sm:$0xf0] }
 0x103   : > { %1629 = vmatpush.bf16.msrb.mxu3 %v2601_v10  ;;  %1591 = vmatpush.bf16.msrb.mxu1 %v2597_v12  ;;  %v2150_v10 = vld [vmem:[%s3164_s9 + $0x78] sm:$0xf0]  ;;  %v2373_v34 = vor.u32 %v2683_v32, %v2372_v31 }
 0x104   : > { %v2406_v12 = vld [vmem:[%s3164_s9 + $0x278] sm:$0xf0]  ;;  %v2153_v17 = vor.u32 %v2623_v9, %v2150_v10 }
 0x105   : > { %1611 = vmatpush.bf16.msrb.mxu2 %v2313_v15  ;;  %1573 = vmatpush.bf16.msrb.mxu0 %v2309_v25  ;;  %v2148_v15 = vld [vmem:[%s3164_s9 + $0x58] sm:$0xf] }
 0x106   : > { %v2149_v25 = vor.u32 %v2627_v16, %v2148_v15 }
 0x107   : > { %1630 = vmatpush.bf16.msrb.mxu3 %v2569_v18  ;;  %1592 = vmatpush.bf16.msrb.mxu1 %v2565_v26  ;;  %v2409_v18 = vor.u32 %v2687_v11, %v2406_v12  ;;  %v2405_v26 = vor.u32 %v2691_v20, %v2404_v19 }
 0x109   : > { %1612 = vmatpush.bf16.msrb.mxu2 %v2281_v29  ;;  %1574 = vmatpush.bf16.msrb.mxu0 %v2277_v37  ;;  %v2377_v29 = vor.u32 %v2679_v23, %v2374_v24 }
 0x10b   : > { %1631 = vmatpush.bf16.msrb.mxu3 %v2537_v30  ;;  %1593 = vmatpush.bf16.msrb.mxu1 %v2533_v39  ;;  %v2619_v30 = vld [vmem:[%s3164_s9 + $0x34] sm:$0xf0]  ;;  %s2073_s9 = sshll.u32 %s490_s7, 7  ;;  %s2740_s7 = sshll.u32 (%p2886_p6), %s2815_s17, 5 }
 0x10c   : > { %v2117_v33 = vor.u32 %v2619_v30, %v2116_v27  ;;  %s3529_s15 = scalar_lea.vmem [#allocation3], %s2073_s9  ;;  %s1900_s12 = scalar_lea.vmem (%p2886_p6), %s3651_s4, %s2740_s7 }
 0x10d   : > { %1613 = vmatpush.bf16.msrb.mxu2 %v2249_v42  ;;  %1575 = vmatpush.bf16.msrb.mxu0 %v2245_v53 }
 0x10f   : > { %1632 = vmatpush.bf16.msrb.mxu3 %v2505_v44  ;;  %1594 = vmatpush.bf16.msrb.mxu1 %v2501_v54 }
 0x110   : > { %1509 = vmatmul.bf16.gmra.mxu0 %v3310_v38  ;;  %1547 = vmatmul.bf16.gmra.mxu2 %v3310_v38 }
 0x111   : > { %1614 = vmatpush.bf16.msrb.mxu2 %v2217_v57  ;;  %1576 = vmatpush.bf16.msrb.mxu0 %v2213_v1 }
 0x112   : > { %1528 = vmatmul.bf16.gmra.mxu1 %v3315_v43  ;;  %1566 = vmatmul.bf16.gmra.mxu3 %v3315_v43 }
 0x113   : > { %1633 = vmatpush.bf16.msrb.mxu3 %v2473_v58  ;;  %1595 = vmatpush.bf16.msrb.mxu1 %v2469_v2 }
 0x115   : > { %1615 = vmatpush.bf16.msrb.mxu2 %v2185_v5  ;;  %1577 = vmatpush.bf16.msrb.mxu0 %v2181_v13 }
 0x117   : > { %1634 = vmatpush.bf16.msrb.mxu3 %v2441_v6  ;;  %1596 = vmatpush.bf16.msrb.mxu1 %v2437_v14 }
 0x119   : > { %1616 = vmatpush.bf16.msrb.mxu2 %v2153_v17  ;;  %1578 = vmatpush.bf16.msrb.mxu0 %v2149_v25 }
 0x11b   : > { %1635 = vmatpush.bf16.msrb.mxu3 %v2409_v18  ;;  %1597 = vmatpush.bf16.msrb.mxu1 %v2405_v26 }
 0x11d   : > { %1617 = vmatpush.bf16.msrb.mxu2 %v2121_v28  ;;  %1579 = vmatpush.bf16.msrb.mxu0 %v2117_v33 }
 0x11f   : > { %1636 = vmatpush.bf16.msrb.mxu3 %v2377_v29  ;;  %1598 = vmatpush.bf16.msrb.mxu1 %v2373_v34 }
 0x120   : > { %1580 = vmatmul.bf16.vlgmr.msrb.gmra.mxu0 %v3250_v45  ;;  %1618 = vmatmul.bf16.vlgmr.msrb.gmra.mxu2 %v3250_v45 }
 0x122   : > { %1599 = vmatmul.bf16.vlgmr.msrb.gmra.mxu1 %v3254_v49  ;;  %1637 = vmatmul.bf16.vlgmr.msrb.gmra.mxu3 %v3254_v49  ;;  %v3512_v40 = vpop.permute.xlu2 %1710 }
 0x130   : > { %1585 = vmatmul.bf16.gmra.mxu0 %v3310_v38  ;;  %1623 = vmatmul.bf16.gmra.mxu2 %v3310_v38 }
 0x132   : > { %1604 = vmatmul.bf16.gmra.mxu1 %v3315_v43  ;;  %1642 = vmatmul.bf16.gmra.mxu3 %v3315_v43  ;;  %v3525_v54 = vpop.permute.xlu2 %1715 }
 0x136   : > { %v3510_v36 = vpop.permute.xlu0 %1654  ;;  %v3518_v43 = vpop.permute.xlu1 %1664 }
 0x13d   : > { %v1353_v35 = vpop.f32.mrf.mxu0 }
 0x13e   : > { %v3516_v48 = vpop.permute.xlu0 %1659  ;;  %v3532_v3 = vpop.permute.xlu1 %1669 }
 0x13f   : > { %v1372_v37 = vpop.f32.mrf.mxu1 }
 0x140   : > { %v1373_v39 = vadd.f32 %v1372_v37, %v1353_v35 }
 0x142   : > { %v1672_v45 = vmul.f32 %v3510_v36, %v1373_v39 }
 0x143   : > { %v1391_v41 = vpop.f32.mrf.mxu2 }
 0x144   : > { %v1728_v38 = vadd.f32 %v3512_v40, %v1672_v45 }
 0x145   : > { %v1410_v49 = vpop.f32.mrf.mxu3  ;;  %v1355_v42 = vpop.f32.mrf.mxu0 }
 0x146   : > { %v1411_v44 = vadd.f32 %v1410_v49, %v1391_v41  ;;  %v1792_v52 = vmul.f32 0.2, %v1728_v38  ;;  %vm1760_vm0 = vcmp.gt.f32.partialorder %v1728_v38, 0.0  ;;  %v3536_v7 = vpop.permute.xlu0 %1720  ;;  %v3543_v23 = vpop.permute.xlu1 %1725 }
 0x147   : > { %v1374_v46 = vpop.f32.mrf.mxu1 }
 0x148   : > { %v1375_v47 = vadd.f32 %v1374_v46, %v1355_v42  ;;  %v1673_v50 = vmul.f32 %v3510_v36, %v1411_v44  ;;  %v1824_v59 = vsel %vm1760_vm0, %v1728_v38, %v1792_v52 }
 0x14a   : > { %v1729_v51 = vadd.f32 %v3512_v40, %v1673_v50  ;;  %v1680_v53 = vmul.f32 %v3516_v48, %v1375_v47 }
 0x14b   : > { %v1393_v56 = vpop.f32.mrf.mxu2 }
 0x14c   : > { %vm1761_vm1 = vcmp.gt.f32.partialorder %v1729_v51, 0.0  ;;  %v1793_v55 = vmul.f32 0.2, %v1729_v51  ;;  %v1736_v62 = vadd.f32 %v3525_v54, %v1680_v53 }
 0x14d   : > { %v1412_v57 = vpop.f32.mrf.mxu3  ;;  %v1358_v58 = vpop.f32.mrf.mxu0 }
 0x14e   : > { %v1825_v60 = vsel %vm1761_vm1, %v1729_v51, %v1793_v55  ;;  %v1413_v61 = vadd.f32 %v1412_v57, %v1393_v56  ;;  %v1800_v5 = vmul.f32 0.2, %v1736_v62  ;;  %vm1768_vm2 = vcmp.gt.f32.partialorder %v1736_v62, 0.0 }
 0x14f   : > { %v1377_v63 = vpop.f32.mrf.mxu1  ;;  %v1856_v0 = vpack.c.bf16 %v1825_v60, %v1824_v59 }
 0x150   : > { %v1378_v1 = vadd.f32 %v1377_v63, %v1358_v58  ;;  %v1681_v2 = vmul.f32 %v3516_v48, %v1413_v61  ;;  %v1832_v12 = vsel %vm1768_vm2, %v1736_v62, %v1800_v5 }
 0x151   : > { %1872 = vst [vmem:[%s3529_s15] sm:$0xff] %v1856_v0 }
 0x152   : > { %v1737_v4 = vadd.f32 %v3525_v54, %v1681_v2  ;;  %v1688_v6 = vmul.f32 %v3518_v43, %v1378_v1 }
 0x153   : > { %v1396_v9 = vpop.f32.mrf.mxu2 }
 0x154   : > { %vm1769_vm3 = vcmp.gt.f32.partialorder %v1737_v4, 0.0  ;;  %v1801_v8 = vmul.f32 0.2, %v1737_v4  ;;  %v1744_v15 = vadd.f32 %v3536_v7, %v1688_v6 }
 0x155   : > { %v1415_v10 = vpop.f32.mrf.mxu3  ;;  %v1360_v11 = vpop.f32.mrf.mxu0 }
 0x156   : > { %v1833_v13 = vsel %vm1769_vm3, %v1737_v4, %v1801_v8  ;;  %v1416_v14 = vadd.f32 %v1415_v10, %v1396_v9  ;;  %v1808_v21 = vmul.f32 0.2, %v1744_v15  ;;  %vm1776_vm4 = vcmp.gt.f32.partialorder %v1744_v15, 0.0 }
 0x157   : > { %v1379_v16 = vpop.f32.mrf.mxu1  ;;  %v1860_v17 = vpack.c.bf16 %v1833_v13, %v1832_v12 }
 0x158   : > { %v1380_v18 = vadd.f32 %v1379_v16, %v1360_v11  ;;  %v1689_v19 = vmul.f32 %v3518_v43, %v1416_v14  ;;  %v1840_v27 = vsel %vm1776_vm4, %v1744_v15, %v1808_v21 }
 0x159   : > { %1876 = vst [vmem:[%s3529_s15 + $0x20] sm:$0xff] %v1860_v17 }
 0x15a   : > { %v1745_v20 = vadd.f32 %v3536_v7, %v1689_v19  ;;  %v1696_v22 = vmul.f32 %v3532_v3, %v1380_v18 }
 0x15b   : > { %v1398_v25 = vpop.f32.mrf.mxu2 }
 0x15c   : > { %vm1777_vm5 = vcmp.gt.f32.partialorder %v1745_v20, 0.0  ;;  %v1809_v24 = vmul.f32 0.2, %v1745_v20  ;;  %v1752_v30 = vadd.f32 %v3543_v23, %v1696_v22 }
 0x15d   : > { %v1417_v26 = vpop.f32.mrf.mxu3  ;;  %v1429_v31 = vpop.f32.mrf.mxu0 }
 0x15e   : > { %v1841_v28 = vsel %vm1777_vm5, %v1745_v20, %v1809_v24  ;;  %v1418_v29 = vadd.f32 %v1417_v26, %v1398_v25  ;;  %v1816_v39 = vmul.f32 0.2, %v1752_v30  ;;  %vm1784_vm6 = vcmp.gt.f32.partialorder %v1752_v30, 0.0 }
 0x15f   : > { %v1864_v32 = vpack.c.bf16 %v1841_v28, %v1840_v27  ;;  %v1448_v33 = vpop.f32.mrf.mxu1 }
 0x160   : > { %v1697_v34 = vmul.f32 %v3532_v3, %v1418_v29  ;;  %v1449_v35 = vadd.f32 %v1448_v33, %v1429_v31  ;;  %v1848_v44 = vsel %vm1784_vm6, %v1752_v30, %v1816_v39 }
 0x161   : > { %1880 = vst [vmem:[%s3529_s15 + $0x40] sm:$0xff] %v1864_v32 }
 0x162   : > { %v1753_v37 = vadd.f32 %v3543_v23, %v1697_v34  ;;  %v1674_v45 = vmul.f32 %v3510_v36, %v1449_v35 }
 0x163   : > { %v1467_v49 = vpop.f32.mrf.mxu2 }
 0x164   : > { %vm1785_vm7 = vcmp.gt.f32.partialorder %v1753_v37, 0.0  ;;  %v1817_v41 = vmul.f32 0.2, %v1753_v37  ;;  %v1730_v46 = vadd.f32 %v3512_v40, %v1674_v45 }
 0x165   : > { %v1486_v42 = vpop.f32.mrf.mxu3  ;;  %v1431_v50 = vpop.f32.mrf.mxu0 }
 0x166   : > { %v1849_v38 = vsel %vm1785_vm7, %v1753_v37, %v1817_v41  ;;  %v1487_v47 = vadd.f32 %v1486_v42, %v1467_v49  ;;  %v1794_v56 = vmul.f32 0.2, %v1730_v46  ;;  %vm1762_vm8 = vcmp.gt.f32.partialorder %v1730_v46, 0.0 }
 0x167   : > { %v1868_v51 = vpack.c.bf16 %v1849_v38, %v1848_v44  ;;  %v1450_v52 = vpop.f32.mrf.mxu1 }
 0x168   : > { %v1675_v53 = vmul.f32 %v3510_v36, %v1487_v47  ;;  %v1451_v55 = vadd.f32 %v1450_v52, %v1431_v50  ;;  %v1826_v62 = vsel %vm1762_vm8, %v1730_v46, %v1794_v56 }
 0x169   : > { %1884 = vst [vmem:[%s3529_s15 + $0x60] sm:$0xff] %v1868_v51 }
 0x16a   : > { %v1731_v57 = vadd.f32 %v3512_v40, %v1675_v53  ;;  %v1682_v58 = vmul.f32 %v3516_v48, %v1451_v55 }
 0x16b   : > { %v1469_v60 = vpop.f32.mrf.mxu2 }
 0x16c   : > { %vm1763_vm9 = vcmp.gt.f32.partialorder %v1731_v57, 0.0  ;;  %v1795_v59 = vmul.f32 0.2, %v1731_v57  ;;  %v1738_v0 = vadd.f32 %v3525_v54, %v1682_v58 }
 0x16d   : > { %v1488_v61 = vpop.f32.mrf.mxu3  ;;  %v1434_v2 = vpop.f32.mrf.mxu0 }
 0x16e   : > { %v1827_v63 = vsel %vm1763_vm9, %v1731_v57, %v1795_v59  ;;  %v1489_v1 = vadd.f32 %v1488_v61, %v1469_v60  ;;  %v1802_v9 = vmul.f32 0.2, %v1738_v0  ;;  %vm1770_vm10 = vcmp.gt.f32.partialorder %v1738_v0, 0.0 }
 0x16f   : > { %v1857_v4 = vpack.c.bf16 %v1827_v63, %v1826_v62  ;;  %v1453_v5 = vpop.f32.mrf.mxu1 }
 0x170   : > { %v1683_v6 = vmul.f32 %v3516_v48, %v1489_v1  ;;  %v1454_v8 = vadd.f32 %v1453_v5, %v1434_v2  ;;  %v1834_v15 = vsel %vm1770_vm10, %v1738_v0, %v1802_v9 }
 0x171   : > { %1873 = vst [vmem:[%s3529_s15 + $0x8] sm:$0xff] %v1857_v4 }
 0x172   : > { %v1739_v10 = vadd.f32 %v3525_v54, %v1683_v6  ;;  %v1690_v11 = vmul.f32 %v3518_v43, %v1454_v8 }
 0x173   : > { %v1472_v13 = vpop.f32.mrf.mxu2 }
 0x174   : > { %vm1771_vm11 = vcmp.gt.f32.partialorder %v1739_v10, 0.0  ;;  %v1803_v12 = vmul.f32 0.2, %v1739_v10  ;;  %v1746_v17 = vadd.f32 %v3536_v7, %v1690_v11 }
 0x175   : > { %v1491_v14 = vpop.f32.mrf.mxu3  ;;  %v1436_v19 = vpop.f32.mrf.mxu0 }
 0x176   : > { %v1835_v16 = vsel %vm1771_vm11, %v1739_v10, %v1803_v12  ;;  %v1492_v18 = vadd.f32 %v1491_v14, %v1472_v13  ;;  %v1810_v25 = vmul.f32 0.2, %v1746_v17  ;;  %vm1778_vm12 = vcmp.gt.f32.partialorder %v1746_v17, 0.0 }
 0x177   : > { %v1861_v20 = vpack.c.bf16 %v1835_v16, %v1834_v15  ;;  %v1455_v21 = vpop.f32.mrf.mxu1 }
 0x178   : > { %v1691_v22 = vmul.f32 %v3518_v43, %v1492_v18  ;;  %v1456_v24 = vadd.f32 %v1455_v21, %v1436_v19  ;;  %v1842_v31 = vsel %vm1778_vm12, %v1746_v17, %v1810_v25 }
 0x179   : > { %1877 = vst [vmem:[%s3529_s15 + $0x28] sm:$0xff] %v1861_v20 }
 0x17a   : > { %v1747_v26 = vadd.f32 %v3536_v7, %v1691_v22  ;;  %v1698_v27 = vmul.f32 %v3532_v3, %v1456_v24 }
 0x17b   : > { %v1474_v29 = vpop.f32.mrf.mxu2 }
 0x17c   : > { %vm1779_vm13 = vcmp.gt.f32.partialorder %v1747_v26, 0.0  ;;  %v1811_v28 = vmul.f32 0.2, %v1747_v26  ;;  %v1754_v33 = vadd.f32 %v3543_v23, %v1698_v27 }
 0x17d   : > { %v1493_v30 = vpop.f32.mrf.mxu3  ;;  %v1505_v35 = vpop.f32.mrf.mxu0 }
 0x17e   : > { %v1843_v32 = vsel %vm1779_vm13, %v1747_v26, %v1811_v28  ;;  %v1494_v34 = vadd.f32 %v1493_v30, %v1474_v29  ;;  %v1818_v49 = vmul.f32 0.2, %v1754_v33  ;;  %vm1786_vm14 = vcmp.gt.f32.partialorder %v1754_v33, 0.0 }
 0x17f   : > { %v1865_v37 = vpack.c.bf16 %v1843_v32, %v1842_v31  ;;  %v1524_v39 = vpop.f32.mrf.mxu1 }
 0x180   : > { %v1699_v45 = vmul.f32 %v3532_v3, %v1494_v34  ;;  %v1525_v41 = vadd.f32 %v1524_v39, %v1505_v35  ;;  %v1850_v50 = vsel %vm1786_vm14, %v1754_v33, %v1818_v49 }
 0x181   : > { %1881 = vst [vmem:[%s3529_s15 + $0x48] sm:$0xff] %v1865_v37 }
 0x182   : > { %v1755_v42 = vadd.f32 %v3543_v23, %v1699_v45  ;;  %v1676_v44 = vmul.f32 %v3510_v36, %v1525_v41 }
 0x183   : > { %v1543_v46 = vpop.f32.mrf.mxu2 }
 0x184   : > { %vm1787_vm15 = vcmp.gt.f32.partialorder %v1755_v42, 0.0  ;;  %v1819_v38 = vmul.f32 0.2, %v1755_v42  ;;  %v1732_v52 = vadd.f32 %v3512_v40, %v1676_v44 }
 0x185   : > { %v1562_v47 = vpop.f32.mrf.mxu3  ;;  %v1507_v55 = vpop.f32.mrf.mxu0 }
 0x186   : > { %v1851_v51 = vsel %vm1787_vm15, %v1755_v42, %v1819_v38  ;;  %v1563_v53 = vadd.f32 %v1562_v47, %v1543_v46  ;;  %v1796_v60 = vmul.f32 0.2, %v1732_v52  ;;  %vm1764_vm0 = vcmp.gt.f32.partialorder %v1732_v52, 0.0 }
 0x187   : > { %v1869_v56 = vpack.c.bf16 %v1851_v51, %v1850_v50  ;;  %v1526_v57 = vpop.f32.mrf.mxu1 }
 0x188   : > { %v1677_v58 = vmul.f32 %v3510_v36, %v1563_v53  ;;  %v1527_v59 = vadd.f32 %v1526_v57, %v1507_v55  ;;  %v1828_v2 = vsel %vm1764_vm0, %v1732_v52, %v1796_v60 }
 0x189   : > { %1885 = vst [vmem:[%s3529_s15 + $0x68] sm:$0xff] %v1869_v56 }
 0x18a   : > { %v1733_v61 = vadd.f32 %v3512_v40, %v1677_v58  ;;  %v1684_v62 = vmul.f32 %v3516_v48, %v1527_v59 }
 0x18b   : > { %v1545_v0 = vpop.f32.mrf.mxu2 }
 0x18c   : > { %vm1765_vm1 = vcmp.gt.f32.partialorder %v1733_v61, 0.0  ;;  %v1797_v63 = vmul.f32 0.2, %v1733_v61  ;;  %v1740_v5 = vadd.f32 %v3525_v54, %v1684_v62 }
 0x18d   : > { %v1564_v1 = vpop.f32.mrf.mxu3  ;;  %v1510_v8 = vpop.f32.mrf.mxu0 }
 0x18e   : > { %v1829_v4 = vsel %vm1765_vm1, %v1733_v61, %v1797_v63  ;;  %v1565_v6 = vadd.f32 %v1564_v1, %v1545_v0  ;;  %v1804_v13 = vmul.f32 0.2, %v1740_v5  ;;  %vm1772_vm2 = vcmp.gt.f32.partialorder %v1740_v5, 0.0 }
 0x18f   : > { %v1858_v9 = vpack.c.bf16 %v1829_v4, %v1828_v2  ;;  %v1529_v10 = vpop.f32.mrf.mxu1 }
 0x190   : > { %v1685_v11 = vmul.f32 %v3516_v48, %v1565_v6  ;;  %v1530_v12 = vadd.f32 %v1529_v10, %v1510_v8  ;;  %v1836_v19 = vsel %vm1772_vm2, %v1740_v5, %v1804_v13 }
 0x191   : > { %1874 = vst [vmem:[%s3529_s15 + $0x10] sm:$0xff] %v1858_v9 }
 0x192   : > { %v1741_v14 = vadd.f32 %v3525_v54, %v1685_v11  ;;  %v1692_v15 = vmul.f32 %v3518_v43, %v1530_v12 }
 0x193   : > { %v1548_v17 = vpop.f32.mrf.mxu2 }
 0x194   : > { %vm1773_vm3 = vcmp.gt.f32.partialorder %v1741_v14, 0.0  ;;  %v1805_v16 = vmul.f32 0.2, %v1741_v14  ;;  %v1748_v21 = vadd.f32 %v3536_v7, %v1692_v15 }
 0x195   : > { %v1567_v18 = vpop.f32.mrf.mxu3  ;;  %v1512_v24 = vpop.f32.mrf.mxu0 }
 0x196   : > { %v1837_v20 = vsel %vm1773_vm3, %v1741_v14, %v1805_v16  ;;  %v1568_v22 = vadd.f32 %v1567_v18, %v1548_v17  ;;  %v1812_v29 = vmul.f32 0.2, %v1748_v21  ;;  %vm1780_vm4 = vcmp.gt.f32.partialorder %v1748_v21, 0.0 }
 0x197   : > { %v1862_v25 = vpack.c.bf16 %v1837_v20, %v1836_v19  ;;  %v1531_v26 = vpop.f32.mrf.mxu1 }
 0x198   : > { %v1693_v27 = vmul.f32 %v3518_v43, %v1568_v22  ;;  %v1532_v28 = vadd.f32 %v1531_v26, %v1512_v24  ;;  %v1844_v35 = vsel %vm1780_vm4, %v1748_v21, %v1812_v29 }
 0x199   : > { %1878 = vst [vmem:[%s3529_s15 + $0x30] sm:$0xff] %v1862_v25 }
 0x19a   : > { %v1749_v30 = vadd.f32 %v3536_v7, %v1693_v27  ;;  %v1700_v31 = vmul.f32 %v3532_v3, %v1532_v28 }
 0x19b   : > { %v1550_v33 = vpop.f32.mrf.mxu2 }
 0x19c   : > { %vm1781_vm5 = vcmp.gt.f32.partialorder %v1749_v30, 0.0  ;;  %v1813_v32 = vmul.f32 0.2, %v1749_v30  ;;  %v1756_v39 = vadd.f32 %v3543_v23, %v1700_v31 }
 0x19d   : > { %v1569_v34 = vpop.f32.mrf.mxu3  ;;  %v1581_v41 = vpop.f32.mrf.mxu0 }
 0x19e   : > { %v1845_v37 = vsel %vm1781_vm5, %v1749_v30, %v1813_v32  ;;  %v1570_v45 = vadd.f32 %v1569_v34, %v1550_v33  ;;  %v1820_v46 = vmul.f32 0.2, %v1756_v39  ;;  %vm1788_vm6 = vcmp.gt.f32.partialorder %v1756_v39, 0.0 }
 0x19f   : > { %v1866_v49 = vpack.c.bf16 %v1845_v37, %v1844_v35  ;;  %v1600_v42 = vpop.f32.mrf.mxu1 }
 0x1a0   : > { %v1701_v44 = vmul.f32 %v3532_v3, %v1570_v45  ;;  %v1601_v38 = vadd.f32 %v1600_v42, %v1581_v41  ;;  %v1852_v55 = vsel %vm1788_vm6, %v1756_v39, %v1820_v46 }
 0x1a1   : > { %1882 = vst [vmem:[%s3529_s15 + $0x50] sm:$0xff] %v1866_v49 }
 0x1a2   : > { %v1757_v47 = vadd.f32 %v3543_v23, %v1701_v44  ;;  %v1678_v50 = vmul.f32 %v3510_v36, %v1601_v38 }
 0x1a3   : > { %v1619_v52 = vpop.f32.mrf.mxu2 }
 0x1a4   : > { %vm1789_vm7 = vcmp.gt.f32.partialorder %v1757_v47, 0.0  ;;  %v1821_v51 = vmul.f32 0.2, %v1757_v47  ;;  %v1734_v57 = vadd.f32 %v3512_v40, %v1678_v50 }
 0x1a5   : > { %v1638_v53 = vpop.f32.mrf.mxu3  ;;  %v1583_v59 = vpop.f32.mrf.mxu0 }
 0x1a6   : > { %v1853_v56 = vsel %vm1789_vm7, %v1757_v47, %v1821_v51  ;;  %v1639_v58 = vadd.f32 %v1638_v53, %v1619_v52  ;;  %v1798_v0 = vmul.f32 0.2, %v1734_v57  ;;  %vm1766_vm8 = vcmp.gt.f32.partialorder %v1734_v57, 0.0  ;;  %v1917_v47 = vld [vmem:[%s3529_s15 + $0x10] sm:$0xff] (%p2886_p6)  ;;  %v1921_v51 = vld [vmem:[%s3529_s15 + $0x20] sm:$0xff] (%p2886_p6)  ;;  %v1923_v52 = vld [vmem:[%s3529_s15 + $0x28] sm:$0xff] (%p2886_p6) }
 0x1a7   : > { %v1870_v60 = vpack.c.bf16 %v1853_v56, %v1852_v55  ;;  %v1602_v61 = vpop.f32.mrf.mxu1  ;;  %1918 = vst [vmem:[%s1900_s12 + $0x10] sm:$0xff] (%p2886_p6), %v1917_v47  ;;  %v1925_v53 = vld [vmem:[%s3529_s15 + $0x30] sm:$0xff] (%p2886_p6)  ;;  %v1929_v56 = vld [vmem:[%s3529_s15 + $0x40] sm:$0xff] (%p2886_p6) }
 0x1a8   : > { %v1679_v62 = vmul.f32 %v3510_v36, %v1639_v58  ;;  %v1603_v63 = vadd.f32 %v1602_v61, %v1583_v59  ;;  %v1830_v8 = vsel %vm1766_vm8, %v1734_v57, %v1798_v0  ;;  %1922 = vst [vmem:[%s1900_s12 + $0x40] sm:$0xff] (%p2886_p6), %v1921_v51  ;;  %v1931_v57 = vld [vmem:[%s3529_s15 + $0x48] sm:$0xff] (%p2886_p6)  ;;  %v1933_v58 = vld [vmem:[%s3529_s15 + $0x50] sm:$0xff] (%p2886_p6) }
 0x1a9   : > { %1886 = vst [vmem:[%s3529_s15 + $0x70] sm:$0xff] %v1870_v60  ;;  %v1937_v60 = vld [vmem:[%s3529_s15 + $0x60] sm:$0xff] (%p2886_p6)  ;;  %v1939_v61 = vld [vmem:[%s3529_s15 + $0x68] sm:$0xff] (%p2886_p6) }
 0x1aa   : > { %v1735_v1 = vadd.f32 %v3512_v40, %v1679_v62  ;;  %v1686_v2 = vmul.f32 %v3516_v48, %v1603_v63  ;;  %1924 = vst [vmem:[%s1900_s12 + $0x48] sm:$0xff] (%p2886_p6), %v1923_v52 }
 0x1ab   : > { %v1621_v5 = vpop.f32.mrf.mxu2  ;;  %1926 = vst [vmem:[%s1900_s12 + $0x50] sm:$0xff] (%p2886_p6), %v1925_v53 }
 0x1ac   : > { %vm1767_vm9 = vcmp.gt.f32.partialorder %v1735_v1, 0.0  ;;  %v1799_v4 = vmul.f32 0.2, %v1735_v1  ;;  %v1742_v10 = vadd.f32 %v3525_v54, %v1686_v2  ;;  %1930 = vst [vmem:[%s1900_s12 + $0x80] sm:$0xff] (%p2886_p6), %v1929_v56 }
 0x1ad   : > { %v1640_v6 = vpop.f32.mrf.mxu3  ;;  %v1586_v12 = vpop.f32.mrf.mxu0  ;;  %1932 = vst [vmem:[%s1900_s12 + $0x88] sm:$0xff] (%p2886_p6), %v1931_v57 }
 0x1ae   : > { %v1831_v9 = vsel %vm1767_vm9, %v1735_v1, %v1799_v4  ;;  %v1641_v11 = vadd.f32 %v1640_v6, %v1621_v5  ;;  %v1806_v40 = vmul.f32 0.2, %v1742_v10  ;;  %vm1774_vm10 = vcmp.gt.f32.partialorder %v1742_v10, 0.0  ;;  %1934 = vst [vmem:[%s1900_s12 + $0x90] sm:$0xff] (%p2886_p6), %v1933_v58 }
 0x1af   : > { %v1859_v36 = vpack.c.bf16 %v1831_v9, %v1830_v8  ;;  %v1605_v13 = vpop.f32.mrf.mxu1  ;;  %1938 = vst [vmem:[%s1900_s12 + $0xc0] sm:$0xff] (%p2886_p6), %v1937_v60 }
 0x1b0   : > { %v1687_v14 = vmul.f32 %v3516_v48, %v1641_v11  ;;  %v1606_v15 = vadd.f32 %v1605_v13, %v1586_v12  ;;  %v1838_v21 = vsel %vm1774_vm10, %v1742_v10, %v1806_v40  ;;  %v1941_v62 = vld [vmem:[%s3529_s15 + $0x70] sm:$0xff] (%p2886_p6)  ;;  %1940 = vst [vmem:[%s1900_s12 + $0xc8] sm:$0xff] (%p2886_p6), %v1939_v61 }
 0x1b1   : > { %1875 = vst [vmem:[%s3529_s15 + $0x18] sm:$0xff] %v1859_v36 }
 0x1b2   : > { %v1743_v16 = vadd.f32 %v3525_v54, %v1687_v14  ;;  %v1694_v17 = vmul.f32 %v3518_v43, %v1606_v15  ;;  %1942 = vst [vmem:[%s1900_s12 + $0xd0] sm:$0xff] (%p2886_p6), %v1941_v62 }
 0x1b3   : > { %v1624_v19 = vpop.f32.mrf.mxu2 }
 0x1b4   : > { %vm1775_vm11 = vcmp.gt.f32.partialorder %v1743_v16, 0.0  ;;  %v1807_v18 = vmul.f32 0.2, %v1743_v16  ;;  %v1750_v24 = vadd.f32 %v3536_v7, %v1694_v17 }
 0x1b5   : > { %v1643_v20 = vpop.f32.mrf.mxu3  ;;  %v1588_v26 = vpop.f32.mrf.mxu0 }
 0x1b6   : > { %v1839_v22 = vsel %vm1775_vm11, %v1743_v16, %v1807_v18  ;;  %v1644_v25 = vadd.f32 %v1643_v20, %v1624_v19  ;;  %v1814_v54 = vmul.f32 0.2, %v1750_v24  ;;  %vm1782_vm12 = vcmp.gt.f32.partialorder %v1750_v24, 0.0 }
 0x1b7   : > { %v1863_v48 = vpack.c.bf16 %v1839_v22, %v1838_v21  ;;  %v1607_v27 = vpop.f32.mrf.mxu1 }
 0x1b8   : > { %v1695_v28 = vmul.f32 %v3518_v43, %v1644_v25  ;;  %v1608_v29 = vadd.f32 %v1607_v27, %v1588_v26  ;;  %v1846_v35 = vsel %vm1782_vm12, %v1750_v24, %v1814_v54  ;;  %v1919_v50 = vld [vmem:[%s3529_s15 + $0x18] sm:$0xff] (%p2886_p6) }
 0x1b9   : > { %1879 = vst [vmem:[%s3529_s15 + $0x38] sm:$0xff] %v1863_v48 }
 0x1ba   : > { %v1751_v30 = vadd.f32 %v3536_v7, %v1695_v28  ;;  %v1702_v31 = vmul.f32 %v3532_v3, %v1608_v29  ;;  %1920 = vst [vmem:[%s1900_s12 + $0x18] sm:$0xff] (%p2886_p6), %v1919_v50 }
 0x1bb   : > { %v1626_v33 = vpop.f32.mrf.mxu2 }
 0x1bc   : > { %vm1783_vm13 = vcmp.gt.f32.partialorder %v1751_v30, 0.0  ;;  %v1815_v32 = vmul.f32 0.2, %v1751_v30  ;;  %v1758_v39 = vadd.f32 %v3543_v23, %v1702_v31 }
 0x1bd   : > { %v1645_v34 = vpop.f32.mrf.mxu3 }
 0x1be   : > { %v1847_v37 = vsel %vm1783_vm13, %v1751_v30, %v1815_v32  ;;  %v1646_v45 = vadd.f32 %v1645_v34, %v1626_v33  ;;  %v1822_v49 = vmul.f32 0.2, %v1758_v39  ;;  %vm1790_vm14 = vcmp.gt.f32.partialorder %v1758_v39, 0.0 }
 0x1bf   : > { %v1867_v43 = vpack.c.bf16 %v1847_v37, %v1846_v35 }
 0x1c0   : > { %v1703_v41 = vmul.f32 %v3532_v3, %v1646_v45  ;;  %v1854_v44 = vsel %vm1790_vm14, %v1758_v39, %v1822_v49  ;;  %v1913_v3 = vld [vmem:[%s3529_s15] sm:$0xff] (%p2886_p6)  ;;  %v1927_v55 = vld [vmem:[%s3529_s15 + $0x38] sm:$0xff] (%p2886_p6) }
 0x1c1   : > { %1883 = vst [vmem:[%s3529_s15 + $0x58] sm:$0xff] %v1867_v43 }
 0x1c2   : > { %v1759_v7 = vadd.f32 %v3543_v23, %v1703_v41  ;;  %v1915_v23 = vld [vmem:[%s3529_s15 + $0x8] sm:$0xff] (%p2886_p6)  ;;  %1914 = vst [vmem:[%s1900_s12] sm:$0xff] (%p2886_p6), %v1913_v3 }
 0x1c3   : > { %1916 = vst [vmem:[%s1900_s12 + $0x8] sm:$0xff] (%p2886_p6), %v1915_v23 }
 0x1c4   : > { %vm1791_vm15 = vcmp.gt.f32.partialorder %v1759_v7, 0.0  ;;  %v1823_v42 = vmul.f32 0.2, %v1759_v7  ;;  %1928 = vst [vmem:[%s1900_s12 + $0x58] sm:$0xff] (%p2886_p6), %v1927_v55 }
 0x1c5   : > { %1894 = sbr.rel (!%p2886_p6) target bundleno = 466 (0x1d2), region = 63 }
 0x1c6   : > { %v1855_v38 = vsel %vm1791_vm15, %v1759_v7, %v1823_v42 }
 0x1c7   : > { %v1871_v46 = vpack.c.bf16 %v1855_v38, %v1854_v44 }
 0x1c8   : > { %v1935_v59 = vld [vmem:[%s3529_s15 + $0x58] sm:$0xff] (%p2886_p6) }
 0x1c9   : > { %1887 = vst [vmem:[%s3529_s15 + $0x78] sm:$0xff] %v1871_v46 }
 0x1ca   : > { %1936 = vst [vmem:[%s1900_s12 + $0x98] sm:$0xff] %v1935_v59 }
 0x1d0   : > { %v1943_v63 = vld [vmem:[%s3529_s15 + $0x78] sm:$0xff] }
 0x1d1   : > { %1944 = vst [vmem:[%s1900_s12 + $0xd8] sm:$0xff] %v1943_v63 }
 0x1d2 PF: > { %s14_s19 = sadd.s32 1, %s2823_s19   ;;  %s3653_s15 = smov %s2811_s16 }
 0x1d3   : > { %p11_p11 = scmp.ge.s32.totalorder %s14_s19, 4   ;;  %s3654_s16 = smov %s2891_s25 }
 0x1d4   : > { %s3655_s17 = smov %s2819_s18  ;;  %s3656_s18 = smov %s3658_s20 }
 0x1d5   :  { %13 = sbr.rel (!%p11_p11) target bundleno = 3 (0x3), region = 126 }

// kernel: d_net128_forward.9
= control target key start
LH: loop header
LB: loop body
LE: loop exit
PB: predicated region body
PF: predicated region fallthrough
CT: control target
= control target key end

     0   :  { %s2187_s15 = smov 0   ;;  %s2189_s16 = smov 0   ;;  %s2764_s0 = inlined_call_operand.vmem [shape: bf16[64,512], index: 0, kind: input, shape index: {}]   ;;  %s2765_s1 = inlined_call_operand.vmem [shape: bf16[512,512], index: 1, kind: input, shape index: {}]   ;;  %s2766_s2 = inlined_call_operand.vmem [shape: f32[64,1], index: 2, kind: input, shape index: {}]   ;;  %s2767_s3 = inlined_call_operand.vmem [shape: f32[64,1], index: 3, kind: input, shape index: {}]   ;;  %s2768_s4 = inlined_call_operand.vmem [shape: bf16[64,512], index: 4, kind: output, shape index: {}]  }
   0x1   :  { %s2191_s17 = smov 0   ;;  %s2193_s18 = smov 0  }
   0x2   :  { %s2195_s19 = smov 0  }
   0x3 LB: > { %s23_s20 = sadd.s32 1, %s2155_s18  ;;  %s1657_s21 = sadd.s32 4294967295, %s2159_s19   ;;  %s2159_s19 = sphi %s2195_s19, %s14_s19   ;;  %s2155_s18 = sphi %s2193_s18, %s2773_s18   ;;  %s2151_s17 = sphi %s2191_s17, %s2772_s17   ;;  %s2147_s16 = sphi %s2189_s16, %s2771_s16   ;;  %s2143_s15 = sphi %s2187_s15, %s2770_s15  }
   0x4   : > { %p24_p0 = scmp.ge.s32.totalorder %s23_s20, 2  ;;  %p66_p1 = scmp.ne.s32.totalorder %s2147_s16, %s2143_s15 }
   0x5   : > { %p67_p2 = scmp.eq.s32.totalorder %s2159_s19, 0  ;;  %p150_p4 = scmp.eq.s32.totalorder %s1657_s21, 1 }
   0x6   : > { %s2775_s20 = smov (%p24_p0, %s23_s20), 0  ;;  %s59_s23 = sadd.s32 1, %s2147_s16 }
   0x7   : > { %p68_p3 = por %p67_p2, %p66_p1  ;;  %s56_s22 = ssub.s32 %s2155_s18, %s2775_s20 }
   0x8   : > { %p57_p5 = scmp.eq.s32.totalorder %s56_s22, 0  ;;  %p2222_p6 = por %p150_p4, %p66_p1 }
   0x9   : > { %p1663_p7 = scmp.ge.s32.totalorder %s2159_s19, 2 }
   0xa   : > { %s2227_s25 = scalar_select %p57_p5, %s2147_s16, %s59_s23  }
   0xb   : > { %200 = sbr.rel (%p1663_p7) target bundleno = 84 (0x54), region = 28 }
  0x10   : > { %203 = sbr.rel (!%p68_p3) target bundleno = 84 (0x54), region = 32  ;;  %s205_s26 = sand.u32 (%p68_p3), 1, %s2147_s16  }
  0x11   : > { %s1995_s27 = sshll.u32 (%p68_p3), %s2155_s18, 3  ;;  %s1664_s28 = sshll.u32 (%p68_p3), %s205_s26, 9 }
  0x12   : > { %s2235_s5 = scalar_lea.vmem (%p68_p3), %s2765_s1, %s1995_s27  ;;  %s2240_s6 = scalar_lea.vmem (%p68_p3), [#allocation2], %s1664_s28 }
  0x13   : > { %v365_v0 = vld [vmem:[%s2235_s5] sm:$0xff] (%p68_p3)  ;;  %v367_v1 = vld [vmem:[%s2235_s5 + $0x10] sm:$0xff] (%p68_p3) }
  0x14   : > { %v369_v2 = vld [vmem:[%s2235_s5 + $0x20] sm:$0xff] (%p68_p3)  ;;  %366 = vst [vmem:[%s2240_s6] sm:$0xff] (%p68_p3), %v365_v0  ;;  %v371_v3 = vld [vmem:[%s2235_s5 + $0x30] sm:$0xff] (%p68_p3) }
  0x15   : > { %368 = vst [vmem:[%s2240_s6 + $0x8] sm:$0xff] %v367_v1  ;;  %v373_v4 = vld [vmem:[%s2235_s5 + $0x40] sm:$0xff]  ;;  %v375_v5 = vld [vmem:[%s2235_s5 + $0x50] sm:$0xff] }
  0x16   : > { %370 = vst [vmem:[%s2240_s6 + $0x10] sm:$0xff] %v369_v2  ;;  %v377_v6 = vld [vmem:[%s2235_s5 + $0x60] sm:$0xff]  ;;  %v379_v7 = vld [vmem:[%s2235_s5 + $0x70] sm:$0xff] }
  0x17   : > { %372 = vst [vmem:[%s2240_s6 + $0x18] sm:$0xff] %v371_v3  ;;  %v381_v8 = vld [vmem:[%s2235_s5 + $0x80] sm:$0xff]  ;;  %v383_v9 = vld [vmem:[%s2235_s5 + $0x90] sm:$0xff] }
  0x18   : > { %374 = vst [vmem:[%s2240_s6 + $0x20] sm:$0xff] %v373_v4  ;;  %v385_v10 = vld [vmem:[%s2235_s5 + $0xa0] sm:$0xff]  ;;  %v387_v11 = vld [vmem:[%s2235_s5 + $0xb0] sm:$0xff] }
  0x19   : > { %376 = vst [vmem:[%s2240_s6 + $0x28] sm:$0xff] %v375_v5  ;;  %v389_v12 = vld [vmem:[%s2235_s5 + $0xc0] sm:$0xff]  ;;  %v391_v13 = vld [vmem:[%s2235_s5 + $0xd0] sm:$0xff] }
  0x1a   : > { %378 = vst [vmem:[%s2240_s6 + $0x30] sm:$0xff] %v377_v6  ;;  %v393_v14 = vld [vmem:[%s2235_s5 + $0xe0] sm:$0xff]  ;;  %v395_v15 = vld [vmem:[%s2235_s5 + $0xf0] sm:$0xff] }
  0x1b   : > { %380 = vst [vmem:[%s2240_s6 + $0x38] sm:$0xff] %v379_v7  ;;  %v397_v16 = vld [vmem:[%s2235_s5 + $0x100] sm:$0xff]  ;;  %v399_v17 = vld [vmem:[%s2235_s5 + $0x110] sm:$0xff] }
  0x1c   : > { %382 = vst [vmem:[%s2240_s6 + $0x40] sm:$0xff] %v381_v8  ;;  %v401_v18 = vld [vmem:[%s2235_s5 + $0x120] sm:$0xff]  ;;  %v403_v19 = vld [vmem:[%s2235_s5 + $0x130] sm:$0xff] }
  0x1d   : > { %384 = vst [vmem:[%s2240_s6 + $0x48] sm:$0xff] %v383_v9  ;;  %v405_v20 = vld [vmem:[%s2235_s5 + $0x140] sm:$0xff]  ;;  %v407_v21 = vld [vmem:[%s2235_s5 + $0x150] sm:$0xff] }
  0x1e   : > { %386 = vst [vmem:[%s2240_s6 + $0x50] sm:$0xff] %v385_v10  ;;  %v409_v22 = vld [vmem:[%s2235_s5 + $0x160] sm:$0xff]  ;;  %v411_v23 = vld [vmem:[%s2235_s5 + $0x170] sm:$0xff] }
  0x1f   : > { %388 = vst [vmem:[%s2240_s6 + $0x58] sm:$0xff] %v387_v11  ;;  %v413_v24 = vld [vmem:[%s2235_s5 + $0x180] sm:$0xff]  ;;  %v415_v25 = vld [vmem:[%s2235_s5 + $0x190] sm:$0xff] }
  0x20   : > { %390 = vst [vmem:[%s2240_s6 + $0x60] sm:$0xff] %v389_v12  ;;  %v417_v26 = vld [vmem:[%s2235_s5 + $0x1a0] sm:$0xff]  ;;  %v419_v27 = vld [vmem:[%s2235_s5 + $0x1b0] sm:$0xff] }
  0x21   : > { %392 = vst [vmem:[%s2240_s6 + $0x68] sm:$0xff] %v391_v13  ;;  %v421_v28 = vld [vmem:[%s2235_s5 + $0x1c0] sm:$0xff]  ;;  %v423_v29 = vld [vmem:[%s2235_s5 + $0x1d0] sm:$0xff] }
  0x22   : > { %394 = vst [vmem:[%s2240_s6 + $0x70] sm:$0xff] %v393_v14  ;;  %v425_v30 = vld [vmem:[%s2235_s5 + $0x1e0] sm:$0xff]  ;;  %v427_v31 = vld [vmem:[%s2235_s5 + $0x1f0] sm:$0xff] }
  0x23   : > { %396 = vst [vmem:[%s2240_s6 + $0x78] sm:$0xff] %v395_v15  ;;  %v429_v32 = vld [vmem:[%s2235_s5 + $0x200] sm:$0xff]  ;;  %v431_v33 = vld [vmem:[%s2235_s5 + $0x210] sm:$0xff] }
  0x24   : > { %398 = vst [vmem:[%s2240_s6 + $0x80] sm:$0xff] %v397_v16  ;;  %v433_v34 = vld [vmem:[%s2235_s5 + $0x220] sm:$0xff]  ;;  %v435_v35 = vld [vmem:[%s2235_s5 + $0x230] sm:$0xff] }
  0x25   : > { %400 = vst [vmem:[%s2240_s6 + $0x88] sm:$0xff] %v399_v17  ;;  %v437_v36 = vld [vmem:[%s2235_s5 + $0x240] sm:$0xff]  ;;  %v439_v37 = vld [vmem:[%s2235_s5 + $0x250] sm:$0xff] }
  0x26   : > { %402 = vst [vmem:[%s2240_s6 + $0x90] sm:$0xff] %v401_v18  ;;  %v441_v38 = vld [vmem:[%s2235_s5 + $0x260] sm:$0xff]  ;;  %v443_v39 = vld [vmem:[%s2235_s5 + $0x270] sm:$0xff] }
  0x27   : > { %404 = vst [vmem:[%s2240_s6 + $0x98] sm:$0xff] %v403_v19  ;;  %v445_v40 = vld [vmem:[%s2235_s5 + $0x280] sm:$0xff]  ;;  %v447_v41 = vld [vmem:[%s2235_s5 + $0x290] sm:$0xff] }
  0x28   : > { %406 = vst [vmem:[%s2240_s6 + $0xa0] sm:$0xff] %v405_v20  ;;  %v449_v42 = vld [vmem:[%s2235_s5 + $0x2a0] sm:$0xff]  ;;  %v451_v43 = vld [vmem:[%s2235_s5 + $0x2b0] sm:$0xff] }
  0x29   : > { %408 = vst [vmem:[%s2240_s6 + $0xa8] sm:$0xff] %v407_v21  ;;  %v453_v44 = vld [vmem:[%s2235_s5 + $0x2c0] sm:$0xff]  ;;  %v455_v45 = vld [vmem:[%s2235_s5 + $0x2d0] sm:$0xff] }
  0x2a   : > { %410 = vst [vmem:[%s2240_s6 + $0xb0] sm:$0xff] %v409_v22  ;;  %v457_v46 = vld [vmem:[%s2235_s5 + $0x2e0] sm:$0xff]  ;;  %v459_v47 = vld [vmem:[%s2235_s5 + $0x2f0] sm:$0xff] }
  0x2b   : > { %412 = vst [vmem:[%s2240_s6 + $0xb8] sm:$0xff] %v411_v23  ;;  %v461_v48 = vld [vmem:[%s2235_s5 + $0x300] sm:$0xff]  ;;  %v463_v49 = vld [vmem:[%s2235_s5 + $0x310] sm:$0xff] }
  0x2c   : > { %414 = vst [vmem:[%s2240_s6 + $0xc0] sm:$0xff] %v413_v24  ;;  %v465_v50 = vld [vmem:[%s2235_s5 + $0x320] sm:$0xff]  ;;  %v467_v51 = vld [vmem:[%s2235_s5 + $0x330] sm:$0xff] }
  0x2d   : > { %416 = vst [vmem:[%s2240_s6 + $0xc8] sm:$0xff] %v415_v25  ;;  %v469_v52 = vld [vmem:[%s2235_s5 + $0x340] sm:$0xff]  ;;  %v471_v53 = vld [vmem:[%s2235_s5 + $0x350] sm:$0xff] }
  0x2e   : > { %418 = vst [vmem:[%s2240_s6 + $0xd0] sm:$0xff] %v417_v26  ;;  %v473_v54 = vld [vmem:[%s2235_s5 + $0x360] sm:$0xff]  ;;  %v475_v55 = vld [vmem:[%s2235_s5 + $0x370] sm:$0xff] }
  0x2f   : > { %420 = vst [vmem:[%s2240_s6 + $0xd8] sm:$0xff] %v419_v27  ;;  %v477_v56 = vld [vmem:[%s2235_s5 + $0x380] sm:$0xff]  ;;  %v479_v57 = vld [vmem:[%s2235_s5 + $0x390] sm:$0xff] }
  0x30   : > { %422 = vst [vmem:[%s2240_s6 + $0xe0] sm:$0xff] %v421_v28  ;;  %v481_v58 = vld [vmem:[%s2235_s5 + $0x3a0] sm:$0xff]  ;;  %v483_v59 = vld [vmem:[%s2235_s5 + $0x3b0] sm:$0xff] }
  0x31   : > { %424 = vst [vmem:[%s2240_s6 + $0xe8] sm:$0xff] %v423_v29  ;;  %v485_v60 = vld [vmem:[%s2235_s5 + $0x3c0] sm:$0xff]  ;;  %v487_v61 = vld [vmem:[%s2235_s5 + $0x3d0] sm:$0xff] }
  0x32   : > { %426 = vst [vmem:[%s2240_s6 + $0xf0] sm:$0xff] %v425_v30  ;;  %v489_v62 = vld [vmem:[%s2235_s5 + $0x3e0] sm:$0xff]  ;;  %v491_v63 = vld [vmem:[%s2235_s5 + $0x3f0] sm:$0xff] }
  0x33   : > { %428 = vst [vmem:[%s2240_s6 + $0xf8] sm:$0xff] %v427_v31 }
  0x34   : > { %430 = vst [vmem:[%s2240_s6 + $0x100] sm:$0xff] %v429_v32 }
  0x35   : > { %432 = vst [vmem:[%s2240_s6 + $0x108] sm:$0xff] %v431_v33 }
  0x36   : > { %434 = vst [vmem:[%s2240_s6 + $0x110] sm:$0xff] %v433_v34 }
  0x37   : > { %436 = vst [vmem:[%s2240_s6 + $0x118] sm:$0xff] %v435_v35 }
  0x38   : > { %438 = vst [vmem:[%s2240_s6 + $0x120] sm:$0xff] %v437_v36 }
  0x39   : > { %440 = vst [vmem:[%s2240_s6 + $0x128] sm:$0xff] %v439_v37 }
  0x3a   : > { %442 = vst [vmem:[%s2240_s6 + $0x130] sm:$0xff] %v441_v38 }
  0x3b   : > { %444 = vst [vmem:[%s2240_s6 + $0x138] sm:$0xff] %v443_v39 }
  0x3c   : > { %446 = vst [vmem:[%s2240_s6 + $0x140] sm:$0xff] %v445_v40 }
  0x3d   : > { %448 = vst [vmem:[%s2240_s6 + $0x148] sm:$0xff] %v447_v41 }
  0x3e   : > { %450 = vst [vmem:[%s2240_s6 + $0x150] sm:$0xff] %v449_v42 }
  0x3f   : > { %452 = vst [vmem:[%s2240_s6 + $0x158] sm:$0xff] %v451_v43 }
  0x40   : > { %454 = vst [vmem:[%s2240_s6 + $0x160] sm:$0xff] %v453_v44 }
  0x41   : > { %456 = vst [vmem:[%s2240_s6 + $0x168] sm:$0xff] %v455_v45 }
  0x42   : > { %458 = vst [vmem:[%s2240_s6 + $0x170] sm:$0xff] %v457_v46 }
  0x43   : > { %460 = vst [vmem:[%s2240_s6 + $0x178] sm:$0xff] %v459_v47 }
  0x44   : > { %462 = vst [vmem:[%s2240_s6 + $0x180] sm:$0xff] %v461_v48 }
  0x45   : > { %464 = vst [vmem:[%s2240_s6 + $0x188] sm:$0xff] %v463_v49 }
  0x46   : > { %466 = vst [vmem:[%s2240_s6 + $0x190] sm:$0xff] %v465_v50 }
  0x47   : > { %468 = vst [vmem:[%s2240_s6 + $0x198] sm:$0xff] %v467_v51 }
  0x48   : > { %470 = vst [vmem:[%s2240_s6 + $0x1a0] sm:$0xff] %v469_v52 }
  0x49   : > { %472 = vst [vmem:[%s2240_s6 + $0x1a8] sm:$0xff] %v471_v53 }
  0x4a   : > { %474 = vst [vmem:[%s2240_s6 + $0x1b0] sm:$0xff] %v473_v54 }
  0x4b   : > { %476 = vst [vmem:[%s2240_s6 + $0x1b8] sm:$0xff] %v475_v55 }
  0x4c   : > { %478 = vst [vmem:[%s2240_s6 + $0x1c0] sm:$0xff] %v477_v56 }
  0x4d   : > { %480 = vst [vmem:[%s2240_s6 + $0x1c8] sm:$0xff] %v479_v57 }
  0x4e   : > { %482 = vst [vmem:[%s2240_s6 + $0x1d0] sm:$0xff] %v481_v58 }
  0x4f   : > { %484 = vst [vmem:[%s2240_s6 + $0x1d8] sm:$0xff] %v483_v59 }
  0x50   : > { %486 = vst [vmem:[%s2240_s6 + $0x1e0] sm:$0xff] %v485_v60 }
  0x51   : > { %488 = vst [vmem:[%s2240_s6 + $0x1e8] sm:$0xff] %v487_v61 }
  0x52   : > { %490 = vst [vmem:[%s2240_s6 + $0x1f0] sm:$0xff] %v489_v62 }
  0x53   : > { %492 = vst [vmem:[%s2240_s6 + $0x1f8] sm:$0xff] %v491_v63 }
  0x54 PF: > { %p1667_p8 = scmp.ge.s32.totalorder %s2159_s19, 1  ;;  %p497_p9 = scmp.lt.s32.totalorder %s2159_s19, 3 }
  0x56   : > { %p498_p10 = pnand %p1667_p8, %p497_p9 }
  0x57   : > { %s504_s7 = sand.u32 (!%p498_p10), 1, %s2143_s15  }
  0x58   : > { %501 = sbr.rel (%p498_p10) target bundleno = 403 (0x193), region = 70  ;;  %s1668_s8 = sshll.u32 (!%p498_p10), %s504_s7, 9 }
  0x59   : > { %s2372_s9 = scalar_lea.vmem (!%p498_p10), [#allocation2], %s1668_s8  ;;  %s1669_s6 = sshll.u32 (!%p498_p10), %s504_s7, 6 }
  0x5a   : > { %s2707_s8 = scalar_lea.vmem (!%p498_p10), [#allocation3], %s1669_s6 }
  0x5d   : > { %v1792_v0 = vld [vmem:[%s2372_s9 + $0x70] sm:$0xf]  ;;  %v2027_v1 = vld [vmem:[%s2372_s9 + $0x74] sm:$0xf0]  ;;  %v1784_v11 = vld [vmem:[%s2372_s9 + $0x60] sm:$0xf] }
  0x5e   : > { %v1856_v2 = vld [vmem:[%s2372_s9 + $0xf0] sm:$0xf]  ;;  %v1793_v3 = vor.u32 %v2027_v1, %v1792_v0  ;;  %v2043_v4 = vld [vmem:[%s2372_s9 + $0xf4] sm:$0xf0]  ;;  %v2025_v13 = vld [vmem:[%s2372_s9 + $0x64] sm:$0xf0] }
  0x5f   : > { %v1920_v5 = vld [vmem:[%s2372_s9 + $0x170] sm:$0xf]  ;;  %v2059_v6 = vld [vmem:[%s2372_s9 + $0x174] sm:$0xf0]  ;;  %v1857_v7 = vor.u32 %v2043_v4, %v1856_v2  ;;  %v1848_v14 = vld [vmem:[%s2372_s9 + $0xe0] sm:$0xf]  ;;  %v1785_v16 = vor.u32 %v2025_v13, %v1784_v11 }
  0x60   : > { %v1921_v8 = vor.u32 %v2059_v6, %v1920_v5  ;;  %v1984_v9 = vld [vmem:[%s2372_s9 + $0x1f0] sm:$0xf]  ;;  %v2075_v10 = vld [vmem:[%s2372_s9 + $0x1f4] sm:$0xf0]  ;;  %1046 = vmatpush.bf16.msra.mxu0 %v1793_v3  ;;  %v2041_v15 = vld [vmem:[%s2372_s9 + $0xe4] sm:$0xf0] }
  0x61   : > { %v1985_v12 = vor.u32 %v2075_v10, %v1984_v9  ;;  %1075 = vmatpush.bf16.msra.mxu1 %v1857_v7  ;;  %v1849_v17 = vor.u32 %v2041_v15, %v1848_v14  ;;  %v1912_v18 = vld [vmem:[%s2372_s9 + $0x160] sm:$0xf]  ;;  %v2057_v19 = vld [vmem:[%s2372_s9 + $0x164] sm:$0xf0]  ;;  %v1776_v23 = vld [vmem:[%s2372_s9 + $0x50] sm:$0xf] }
  0x62   : > { %1104 = vmatpush.bf16.msra.mxu2 %v1921_v8  ;;  %v1976_v20 = vld [vmem:[%s2372_s9 + $0x1e0] sm:$0xf]  ;;  %v1913_v21 = vor.u32 %v2057_v19, %v1912_v18  ;;  %v2073_v22 = vld [vmem:[%s2372_s9 + $0x1e4] sm:$0xf0]  ;;  %v2023_v24 = vld [vmem:[%s2372_s9 + $0x54] sm:$0xf0] }
  0x63   : > { %1133 = vmatpush.bf16.msra.mxu3 %v1985_v12  ;;  %v1977_v25 = vor.u32 %v2073_v22, %v1976_v20  ;;  %v1840_v26 = vld [vmem:[%s2372_s9 + $0xd0] sm:$0xf]  ;;  %v2039_v27 = vld [vmem:[%s2372_s9 + $0xd4] sm:$0xf0]  ;;  %v1777_v29 = vor.u32 %v2023_v24, %v1776_v23  ;;  %v1768_v35 = vld [vmem:[%s2372_s9 + $0x40] sm:$0xf] }
  0x64   : > { %v1904_v28 = vld [vmem:[%s2372_s9 + $0x150] sm:$0xf]  ;;  %1047 = vmatpush.bf16.msra.mxu0 %v1785_v16  ;;  %v2055_v30 = vld [vmem:[%s2372_s9 + $0x154] sm:$0xf0]  ;;  %v1841_v33 = vor.u32 %v2039_v27, %v1840_v26  ;;  %v2021_v36 = vld [vmem:[%s2372_s9 + $0x44] sm:$0xf0] }
  0x65   : > { %v1968_v31 = vld [vmem:[%s2372_s9 + $0x1d0] sm:$0xf]  ;;  %v2071_v32 = vld [vmem:[%s2372_s9 + $0x1d4] sm:$0xf0]  ;;  %1076 = vmatpush.bf16.msra.mxu1 %v1849_v17  ;;  %v1905_v34 = vor.u32 %v2055_v30, %v1904_v28  ;;  %v1832_v37 = vld [vmem:[%s2372_s9 + $0xc0] sm:$0xf]  ;;  %v1769_v44 = vor.u32 %v2021_v36, %v1768_v35 }
  0x66   : > { %1105 = vmatpush.bf16.msra.mxu2 %v1913_v21  ;;  %v1969_v38 = vor.u32 %v2071_v32, %v1968_v31  ;;  %v2037_v39 = vld [vmem:[%s2372_s9 + $0xc4] sm:$0xf0]  ;;  %v1896_v40 = vld [vmem:[%s2372_s9 + $0x140] sm:$0xf]  ;;  %v1760_v47 = vld [vmem:[%s2372_s9 + $0x30] sm:$0xf] }
  0x67   : > { %1134 = vmatpush.bf16.msra.mxu3 %v1977_v25  ;;  %v2053_v41 = vld [vmem:[%s2372_s9 + $0x144] sm:$0xf0]  ;;  %v1960_v42 = vld [vmem:[%s2372_s9 + $0x1c0] sm:$0xf]  ;;  %v1833_v45 = vor.u32 %v2037_v39, %v1832_v37  ;;  %v2019_v48 = vld [vmem:[%s2372_s9 + $0x34] sm:$0xf0] }
  0x68   : > { %v2069_v43 = vld [vmem:[%s2372_s9 + $0x1c4] sm:$0xf0]  ;;  %1048 = vmatpush.bf16.msra.mxu0 %v1777_v29  ;;  %v1897_v46 = vor.u32 %v2053_v41, %v1896_v40  ;;  %v1824_v49 = vld [vmem:[%s2372_s9 + $0xb0] sm:$0xf]  ;;  %v2035_v51 = vld [vmem:[%s2372_s9 + $0xb4] sm:$0xf0]  ;;  %v1761_v56 = vor.u32 %v2019_v48, %v1760_v47 }
  0x69   : > { %1077 = vmatpush.bf16.msra.mxu1 %v1841_v33  ;;  %v1961_v50 = vor.u32 %v2069_v43, %v1960_v42  ;;  %v1888_v52 = vld [vmem:[%s2372_s9 + $0x130] sm:$0xf]  ;;  %v2051_v53 = vld [vmem:[%s2372_s9 + $0x134] sm:$0xf0]  ;;  %v1825_v57 = vor.u32 %v2035_v51, %v1824_v49  ;;  %v1752_v59 = vld [vmem:[%s2372_s9 + $0x20] sm:$0xf] }
  0x6a   : > { %1106 = vmatpush.bf16.msra.mxu2 %v1905_v34  ;;  %v1952_v54 = vld [vmem:[%s2372_s9 + $0x1b0] sm:$0xf]  ;;  %v2067_v55 = vld [vmem:[%s2372_s9 + $0x1b4] sm:$0xf0]  ;;  %v1889_v58 = vor.u32 %v2051_v53, %v1888_v52  ;;  %v2017_v60 = vld [vmem:[%s2372_s9 + $0x24] sm:$0xf0] }
  0x6b   : > { %1135 = vmatpush.bf16.msra.mxu3 %v1969_v38  ;;  %v1816_v61 = vld [vmem:[%s2372_s9 + $0xa0] sm:$0xf]  ;;  %v1953_v62 = vor.u32 %v2067_v55, %v1952_v54  ;;  %v2033_v63 = vld [vmem:[%s2372_s9 + $0xa4] sm:$0xf0]  ;;  %v1753_v4 = vor.u32 %v2017_v60, %v1752_v59  ;;  %v1744_v7 = vld [vmem:[%s2372_s9 + $0x10] sm:$0xf] }
  0x6c   : > { %1049 = vmatpush.bf16.msra.mxu0 %v1769_v44  ;;  %v1880_v0 = vld [vmem:[%s2372_s9 + $0x120] sm:$0xf]  ;;  %v2049_v1 = vld [vmem:[%s2372_s9 + $0x124] sm:$0xf0]  ;;  %v1817_v5 = vor.u32 %v2033_v63, %v1816_v61  ;;  %v2015_v8 = vld [vmem:[%s2372_s9 + $0x14] sm:$0xf0] }
  0x6d   : > { %1078 = vmatpush.bf16.msra.mxu1 %v1833_v45  ;;  %v1944_v2 = vld [vmem:[%s2372_s9 + $0x1a0] sm:$0xf]  ;;  %v2065_v3 = vld [vmem:[%s2372_s9 + $0x1a4] sm:$0xf0]  ;;  %v1881_v6 = vor.u32 %v2049_v1, %v1880_v0  ;;  %v1808_v9 = vld [vmem:[%s2372_s9 + $0x90] sm:$0xf]  ;;  %v1745_v17 = vor.u32 %v2015_v8, %v1744_v7 }
  0x6e   : > { %1107 = vmatpush.bf16.msra.mxu2 %v1897_v46  ;;  %v1945_v10 = vor.u32 %v2065_v3, %v1944_v2  ;;  %v2031_v11 = vld [vmem:[%s2372_s9 + $0x94] sm:$0xf0]  ;;  %v1872_v12 = vld [vmem:[%s2372_s9 + $0x110] sm:$0xf]  ;;  %v1736_v16 = vld [vmem:[%s2372_s9] sm:$0xf] }
  0x6f   : > { %1136 = vmatpush.bf16.msra.mxu3 %v1961_v50  ;;  %v2047_v13 = vld [vmem:[%s2372_s9 + $0x114] sm:$0xf0]  ;;  %v1936_v14 = vld [vmem:[%s2372_s9 + $0x190] sm:$0xf]  ;;  %v2013_v18 = vld [vmem:[%s2372_s9 + $0x4] sm:$0xf0]  ;;  %v1809_v21 = vor.u32 %v2031_v11, %v1808_v9 }
  0x70   : > { %1050 = vmatpush.bf16.msra.mxu0 %v1761_v56  ;;  %v2063_v15 = vld [vmem:[%s2372_s9 + $0x194] sm:$0xf0]  ;;  %v1800_v19 = vld [vmem:[%s2372_s9 + $0x80] sm:$0xf]  ;;  %v2029_v20 = vld [vmem:[%s2372_s9 + $0x84] sm:$0xf0]  ;;  %v1873_v22 = vor.u32 %v2047_v13, %v1872_v12  ;;  %v1737_v36 = vor.u32 %v2013_v18, %v1736_v16 }
  0x71   : > { %1079 = vmatpush.bf16.msra.mxu1 %v1825_v57  ;;  %v1864_v23 = vld [vmem:[%s2372_s9 + $0x100] sm:$0xf]  ;;  %v2045_v24 = vld [vmem:[%s2372_s9 + $0x104] sm:$0xf0]  ;;  %v1937_v26 = vor.u32 %v2063_v15, %v1936_v14  ;;  %v1998_v29 = vld [vmem:[%s2764_s0 + $0xc] sm:$0xf0]  ;;  %v1801_v41 = vor.u32 %v2029_v20, %v1800_v19 }
  0x72   : > { %1108 = vmatpush.bf16.msra.mxu2 %v1889_v58  ;;  %v1928_v25 = vld [vmem:[%s2372_s9 + $0x180] sm:$0xf]  ;;  %v2061_v27 = vld [vmem:[%s2372_s9 + $0x184] sm:$0xf0]  ;;  %v1996_v30 = vld [vmem:[%s2764_s0 + $0x4] sm:$0xf]  ;;  %v1865_v42 = vor.u32 %v2045_v24, %v1864_v23 }
  0x73   : > { %1137 = vmatpush.bf16.msra.mxu3 %v1953_v62  ;;  %v1672_v28 = vld [vmem:[%s2764_s0] sm:$0xf]  ;;  %v1674_v31 = vld [vmem:[%s2764_s0 + $0x10] sm:$0xf0]  ;;  %v1680_v32 = vld [vmem:[%s2764_s0 + $0x8] sm:$0xf]  ;;  %v1929_v46 = vor.u32 %v2061_v27, %v1928_v25 }
  0x74   : > { %1051 = vmatpush.bf16.msra.mxu0 %v1753_v4  ;;  %v2058_v33 = vld [vmem:[%s2372_s9 + $0x174] sm:$0xf]  ;;  %v1922_v34 = vld [vmem:[%s2372_s9 + $0x178] sm:$0xf0]  ;;  %v1278_v35 = vld [vmem:[%s2766_s2] sm:$0xff]  ;;  %v2161_v40 = vmov 0   ;;  %v2475_v51 = vor.u32 %v1998_v29, %v1672_v28  ;;  %v2480_v56 = vor.u32 %v1996_v30, %v1674_v31 }
  0x75   : > { %1080 = vmatpush.bf16.msra.mxu1 %v1817_v5  ;;  %v1999_v37 = vld [vmem:[%s2764_s0 + $0x14] sm:$0xf0]  ;;  %v2074_v38 = vld [vmem:[%s2372_s9 + $0x1f4] sm:$0xf]  ;;  %v1986_v39 = vld [vmem:[%s2372_s9 + $0x1f8] sm:$0xf0]  ;;  %2118 = vset.pattern.permute.xlu0 %v2161_v40  ;;  %v1925_v47 = vor.u32 %v2058_v33, %v1922_v34 }
  0x76   : > { %1109 = vmatpush.bf16.msra.mxu2 %v1881_v6  ;;  %v1997_v43 = vld [vmem:[%s2764_s0 + $0xc] sm:$0xf]  ;;  %v1682_v44 = vld [vmem:[%s2764_s0 + $0x18] sm:$0xf0]  ;;  %v2026_v45 = vld [vmem:[%s2372_s9 + $0x74] sm:$0xf]  ;;  %1288 = vperm.xlu0 %2118, %v1278_v35   ;;  %v1989_v52 = vor.u32 %v2074_v38, %v1986_v39  ;;  %v2482_v57 = vor.u32 %v1999_v37, %v1680_v32 }
  0x77   : > { %1138 = vmatpush.bf16.msra.mxu3 %v1945_v10  ;;  %v1794_v48 = vld [vmem:[%s2372_s9 + $0x78] sm:$0xf0]  ;;  %v2042_v49 = vld [vmem:[%s2372_s9 + $0xf4] sm:$0xf]  ;;  %v2056_v54 = vld [vmem:[%s2372_s9 + $0x164] sm:$0xf]  ;;  %2119 = vset.pattern.permute.xlu1 %v2161_v40  ;;  %v2486_v60 = vor.u32 %v1997_v43, %v1682_v44 }
  0x78   : > { %1052 = vmatpush.bf16.msra.mxu0 %v1745_v17  ;;  %v1280_v50 = vld [vmem:[%s2766_s2 + $0x10] sm:$0xff]  ;;  %v1858_v53 = vld [vmem:[%s2372_s9 + $0xf8] sm:$0xf0]  ;;  %v1914_v55 = vld [vmem:[%s2372_s9 + $0x168] sm:$0xf0]  ;;  %2120 = vset.pattern.permute.xlu2 %v2161_v40  ;;  %v1797_v61 = vor.u32 %v2026_v45, %v1794_v48  ;;  %s2076_s15 = sshll.u32 (%p2222_p6), %s2151_s17, 3 }
  0x79   : > { %1081 = vmatpush.bf16.msra.mxu1 %v1809_v21  ;;  %v2072_v58 = vld [vmem:[%s2372_s9 + $0x1e4] sm:$0xf]  ;;  %v1978_v59 = vld [vmem:[%s2372_s9 + $0x1e8] sm:$0xf0]  ;;  %1298 = vperm.xlu1 %2119, %v1280_v50   ;;  %v1861_v62 = vor.u32 %v2042_v49, %v1858_v53  ;;  %v1917_v63 = vor.u32 %v2056_v54, %v1914_v55  ;;  %v2054_v5 = vld [vmem:[%s2372_s9 + $0x154] sm:$0xf]  ;;  %s1482_s11 = scalar_lea.vmem (%p2222_p6), %s2768_s4, %s2076_s15 }
  0x7a   : > { %1110 = vmatpush.bf16.msra.mxu2 %v1873_v22  ;;  %v2024_v0 = vld [vmem:[%s2372_s9 + $0x64] sm:$0xf]  ;;  %v1786_v1 = vld [vmem:[%s2372_s9 + $0x68] sm:$0xf0]  ;;  %v1981_v3 = vor.u32 %v2072_v58, %v1978_v59  ;;  %v1906_v6 = vld [vmem:[%s2372_s9 + $0x158] sm:$0xf0] }
  0x7b   : > { %1139 = vmatpush.bf16.msra.mxu3 %v1937_v26  ;;  %v2040_v2 = vld [vmem:[%s2372_s9 + $0xe4] sm:$0xf]  ;;  %v1850_v4 = vld [vmem:[%s2372_s9 + $0xe8] sm:$0xf0]  ;;  %v2070_v8 = vld [vmem:[%s2372_s9 + $0x1d4] sm:$0xf]  ;;  %v1789_v10 = vor.u32 %v2024_v0, %v1786_v1  ;;  %v1909_v13 = vor.u32 %v2054_v5, %v1906_v6 }
  0x7c   : > { %1053 = vmatpush.bf16.msra.mxu0 %v1737_v36  ;;  %v1279_v7 = vld [vmem:[%s2766_s2 + $0x8] sm:$0xff]  ;;  %v1970_v9 = vld [vmem:[%s2372_s9 + $0x1d8] sm:$0xf0]  ;;  %v1853_v12 = vor.u32 %v2040_v2, %v1850_v4  ;;  %v2022_v14 = vld [vmem:[%s2372_s9 + $0x54] sm:$0xf] }
  0x7d   : > { %1082 = vmatpush.bf16.msra.mxu1 %v1801_v41  ;;  %v1281_v11 = vld [vmem:[%s2766_s2 + $0x18] sm:$0xff]  ;;  %v2038_v16 = vld [vmem:[%s2372_s9 + $0xd4] sm:$0xf]  ;;  %v1973_v17 = vor.u32 %v2070_v8, %v1970_v9  ;;  %v2052_v19 = vld [vmem:[%s2372_s9 + $0x144] sm:$0xf] }
  0x7e   : > { %1111 = vmatpush.bf16.msra.mxu2 %v1865_v42  ;;  %v1778_v15 = vld [vmem:[%s2372_s9 + $0x58] sm:$0xf0]  ;;  %1293 = vperm.xlu0 %2118, %v1279_v7   ;;  %v1898_v20 = vld [vmem:[%s2372_s9 + $0x148] sm:$0xf0]  ;;  %v2068_v21 = vld [vmem:[%s2372_s9 + $0x1c4] sm:$0xf] }
  0x7f   : > { %1140 = vmatpush.bf16.msra.mxu3 %v1929_v46  ;;  %1054 = vmatmul.bf16.vlgmr.msra.gmra.mxu0 %v2475_v51  ;;  %v1842_v18 = vld [vmem:[%s2372_s9 + $0xd8] sm:$0xf0]  ;;  %v1962_v22 = vld [vmem:[%s2372_s9 + $0x1c8] sm:$0xf0]  ;;  %v1282_v23 = vld [vmem:[%s2766_s2 + $0x20] sm:$0xff]  ;;  %v1781_v24 = vor.u32 %v2022_v14, %v1778_v15  ;;  %v1901_v29 = vor.u32 %v2052_v19, %v1898_v20 }
  0x80   : > { %1083 = vmatmul.bf16.vlgmr.msra.gmra.mxu1 %v2480_v56  ;;  %1162 = vmatpush.bf16.msrb.mxu0 %v1797_v61  ;;  %v1688_v25 = vld [vmem:[%s2764_s0 + $0x20] sm:$0xf]  ;;  %v2002_v26 = vld [vmem:[%s2764_s0 + $0x2c] sm:$0xf0]  ;;  %v1845_v27 = vor.u32 %v2038_v16, %v1842_v18  ;;  %v2020_v30 = vld [vmem:[%s2372_s9 + $0x44] sm:$0xf]  ;;  %v1965_v36 = vor.u32 %v2068_v21, %v1962_v22 }
  0x81   : > { %1112 = vmatmul.bf16.vlgmr.msra.gmra.mxu2 %v2482_v57  ;;  %1191 = vmatpush.bf16.msrb.mxu1 %v1861_v62  ;;  %v1284_v28 = vld [vmem:[%s2766_s2 + $0x30] sm:$0xff]  ;;  %v1770_v31 = vld [vmem:[%s2372_s9 + $0x48] sm:$0xf0]  ;;  %v2000_v32 = vld [vmem:[%s2764_s0 + $0x24] sm:$0xf]  ;;  %v2561_v54 = vor.u32 %v2002_v26, %v1688_v25 }
  0x82   : > { %1220 = vmatpush.bf16.msrb.mxu2 %v1925_v47  ;;  %1141 = vmatmul.bf16.vlgmr.msra.gmra.mxu3 %v2486_v60  ;;  %v1690_v33 = vld [vmem:[%s2764_s0 + $0x30] sm:$0xf0]  ;;  %v1696_v34 = vld [vmem:[%s2764_s0 + $0x28] sm:$0xf]  ;;  %v2003_v35 = vld [vmem:[%s2764_s0 + $0x34] sm:$0xf0]  ;;  %v1773_v45 = vor.u32 %v2020_v30, %v1770_v31 }
  0x83   : > { %1249 = vmatpush.bf16.msrb.mxu3 %v1989_v52  ;;  %1303 = vperm.xlu1 %2119, %v1281_v11   ;;  %v2036_v37 = vld [vmem:[%s2372_s9 + $0xc4] sm:$0xf]  ;;  %v1834_v38 = vld [vmem:[%s2372_s9 + $0xc8] sm:$0xf0]  ;;  %v2050_v39 = vld [vmem:[%s2372_s9 + $0x134] sm:$0xf]  ;;  %v2566_v62 = vor.u32 %v2000_v32, %v1690_v33 }
  0x84   : > { %1163 = vmatpush.bf16.msrb.mxu0 %v1789_v10  ;;  %1308 = vperm.xlu2 %2120, %v1282_v23   ;;  %v2001_v40 = vld [vmem:[%s2764_s0 + $0x2c] sm:$0xf]  ;;  %v1890_v41 = vld [vmem:[%s2372_s9 + $0x138] sm:$0xf0]  ;;  %v2066_v42 = vld [vmem:[%s2372_s9 + $0x1b4] sm:$0xf]  ;;  %v1837_v48 = vor.u32 %v2036_v37, %v1834_v38 }
  0x85   : > { %1192 = vmatpush.bf16.msrb.mxu1 %v1853_v12  ;;  %v1954_v43 = vld [vmem:[%s2372_s9 + $0x1b8] sm:$0xf0]  ;;  %v2018_v47 = vld [vmem:[%s2372_s9 + $0x34] sm:$0xf]  ;;  %v1893_v49 = vor.u32 %v2050_v39, %v1890_v41  ;;  %v1283_v53 = vld [vmem:[%s2766_s2 + $0x28] sm:$0xff] }
  0x86   : > { %1221 = vmatpush.bf16.msrb.mxu2 %v1917_v63  ;;  %v1698_v44 = vld [vmem:[%s2764_s0 + $0x38] sm:$0xf0]  ;;  %v2034_v52 = vld [vmem:[%s2372_s9 + $0xb4] sm:$0xf]  ;;  %1318 = vperm.xlu0 %2118, %v1284_v28   ;;  %v1957_v55 = vor.u32 %v2066_v42, %v1954_v43  ;;  %v2048_v59 = vld [vmem:[%s2372_s9 + $0x124] sm:$0xf]  ;;  %v2568_v63 = vor.u32 %v2003_v35, %v1696_v34 }
  0x87   : > { %1250 = vmatpush.bf16.msrb.mxu3 %v1981_v3  ;;  %v1285_v46 = vld [vmem:[%s2766_s2 + $0x38] sm:$0xff]  ;;  %v1882_v61 = vld [vmem:[%s2372_s9 + $0x128] sm:$0xf0]  ;;  %v2064_v0 = vld [vmem:[%s2372_s9 + $0x1a4] sm:$0xf]  ;;  %v2572_v2 = vor.u32 %v2001_v40, %v1698_v44 }
  0x88   : > { %1164 = vmatpush.bf16.msrb.mxu0 %v1781_v24  ;;  %v1762_v50 = vld [vmem:[%s2372_s9 + $0x38] sm:$0xf0]  ;;  %v1946_v1 = vld [vmem:[%s2372_s9 + $0x1a8] sm:$0xf0]  ;;  %v1885_v5 = vor.u32 %v2048_v59, %v1882_v61  ;;  %v2016_v6 = vld [vmem:[%s2372_s9 + $0x24] sm:$0xf] }
  0x89   : > { %1193 = vmatpush.bf16.msrb.mxu1 %v1845_v27  ;;  %v1826_v58 = vld [vmem:[%s2372_s9 + $0xb8] sm:$0xf0]  ;;  %v1765_v3 = vor.u32 %v2018_v47, %v1762_v50  ;;  %v1754_v7 = vld [vmem:[%s2372_s9 + $0x28] sm:$0xf0]  ;;  %v1949_v8 = vor.u32 %v2064_v0, %v1946_v1  ;;  %v2032_v9 = vld [vmem:[%s2372_s9 + $0xa4] sm:$0xf] }
  0x8a   : > { %1222 = vmatpush.bf16.msrb.mxu2 %v1909_v13  ;;  %v1829_v4 = vor.u32 %v2034_v52, %v1826_v58  ;;  %v1818_v10 = vld [vmem:[%s2372_s9 + $0xa8] sm:$0xf0]  ;;  %v1344_v12 = vld [vmem:[%s2767_s3 + $0x10] sm:$0xff]  ;;  %v1342_v13 = vld [vmem:[%s2767_s3] sm:$0xff]  ;;  %v1757_v14 = vor.u32 %v2016_v6, %v1754_v7 }
  0x8b   : > { %1251 = vmatpush.bf16.msrb.mxu3 %v1973_v17  ;;  %1323 = vperm.xlu1 %2119, %v1285_v46   ;;  %v1343_v11 = vld [vmem:[%s2767_s3 + $0x8] sm:$0xff]  ;;  %v2046_v15 = vld [vmem:[%s2372_s9 + $0x114] sm:$0xf]  ;;  %v1874_v16 = vld [vmem:[%s2372_s9 + $0x118] sm:$0xf0]  ;;  %v1821_v18 = vor.u32 %v2032_v9, %v1818_v10 }
  0x8c   : > { %1165 = vmatpush.bf16.msrb.mxu0 %v1773_v45  ;;  %1313 = vperm.xlu2 %2120, %v1283_v53   ;;  %v2062_v17 = vld [vmem:[%s2372_s9 + $0x194] sm:$0xf]  ;;  %v1877_v19 = vor.u32 %v2046_v15, %v1874_v16  ;;  %v1938_v20 = vld [vmem:[%s2372_s9 + $0x198] sm:$0xf0]  ;;  %v2044_v26 = vld [vmem:[%s2372_s9 + $0x104] sm:$0xf] }
  0x8d   : > { %1194 = vmatpush.bf16.msrb.mxu1 %v1837_v48  ;;  %v2014_v21 = vld [vmem:[%s2372_s9 + $0x14] sm:$0xf]  ;;  %v1746_v22 = vld [vmem:[%s2372_s9 + $0x18] sm:$0xf0]  ;;  %v1941_v23 = vor.u32 %v2062_v17, %v1938_v20  ;;  %v1866_v27 = vld [vmem:[%s2372_s9 + $0x108] sm:$0xf0] }
  0x8e   : > { %1223 = vmatpush.bf16.msrb.mxu2 %v1901_v29  ;;  %1357 = vperm.xlu0 %2118, %v1343_v11   ;;  %v2030_v24 = vld [vmem:[%s2372_s9 + $0x94] sm:$0xf]  ;;  %v1810_v25 = vld [vmem:[%s2372_s9 + $0x98] sm:$0xf0]  ;;  %v2060_v28 = vld [vmem:[%s2372_s9 + $0x184] sm:$0xf]  ;;  %v1749_v29 = vor.u32 %v2014_v21, %v1746_v22  ;;  %v1869_v33 = vor.u32 %v2044_v26, %v1866_v27 }
  0x8f   : > { %1252 = vmatpush.bf16.msrb.mxu3 %v1965_v36  ;;  %1059 = vmatmul.bf16.gmra.mxu0 %v2561_v54  ;;  %v1930_v30 = vld [vmem:[%s2372_s9 + $0x188] sm:$0xf0]  ;;  %v1704_v31 = vld [vmem:[%s2764_s0 + $0x40] sm:$0xf]  ;;  %v1813_v32 = vor.u32 %v2030_v24, %v1810_v25  ;;  %v2012_v34 = vld [vmem:[%s2372_s9 + $0x4] sm:$0xf] }
  0x90   : > { %1088 = vmatmul.bf16.gmra.mxu1 %v2566_v62  ;;  %1166 = vmatpush.bf16.msrb.mxu0 %v1765_v3  ;;  %v1738_v35 = vld [vmem:[%s2372_s9 + $0x8] sm:$0xf0]  ;;  %v2006_v36 = vld [vmem:[%s2764_s0 + $0x4c] sm:$0xf0]  ;;  %v1933_v37 = vor.u32 %v2060_v28, %v1930_v30  ;;  %v2028_v38 = vld [vmem:[%s2372_s9 + $0x84] sm:$0xf] }
  0x91   : > { %1117 = vmatmul.bf16.gmra.mxu2 %v2568_v63  ;;  %1195 = vmatpush.bf16.msrb.mxu1 %v1829_v4  ;;  %v1802_v39 = vld [vmem:[%s2372_s9 + $0x88] sm:$0xf0]  ;;  %v2004_v40 = vld [vmem:[%s2764_s0 + $0x44] sm:$0xf]  ;;  %v1706_v41 = vld [vmem:[%s2764_s0 + $0x50] sm:$0xf0]  ;;  %v1741_v45 = vor.u32 %v2012_v34, %v1738_v35  ;;  %v1705_v50 = vor.u32 %v2006_v36, %v1704_v31 }
  0x92   : > { %1224 = vmatpush.bf16.msrb.mxu2 %v1893_v49  ;;  %1146 = vmatmul.bf16.gmra.mxu3 %v2572_v2  ;;  %v1346_v42 = vld [vmem:[%s2767_s3 + $0x20] sm:$0xff]  ;;  %v1712_v43 = vld [vmem:[%s2764_s0 + $0x48] sm:$0xf]  ;;  %v2007_v44 = vld [vmem:[%s2764_s0 + $0x54] sm:$0xf0]  ;;  %v1805_v49 = vor.u32 %v2028_v38, %v1802_v39  ;;  %v1709_v52 = vor.u32 %v2004_v40, %v1706_v41 }
  0x93   : > { %1253 = vmatpush.bf16.msrb.mxu3 %v1957_v55  ;;  %1362 = vperm.xlu1 %2119, %v1344_v12   ;;  %v1347_v46 = vld [vmem:[%s2767_s3 + $0x28] sm:$0xff]  ;;  %v1714_v48 = vld [vmem:[%s2764_s0 + $0x58] sm:$0xf0]  ;;  %v1713_v53 = vor.u32 %v2007_v44, %v1712_v43  ;;  %v1720_v61 = vld [vmem:[%s2764_s0 + $0x60] sm:$0xf] }
  0x94   : > { %1167 = vmatpush.bf16.msrb.mxu0 %v1757_v14  ;;  %1352 = vperm.xlu2 %2120, %v1342_v13   ;;  %v2005_v47 = vld [vmem:[%s2764_s0 + $0x4c] sm:$0xf]  ;;  %v1345_v58 = vld [vmem:[%s2767_s3 + $0x18] sm:$0xff]  ;;  %v2010_v0 = vld [vmem:[%s2764_s0 + $0x6c] sm:$0xf0] }
  0x95   : > { %1196 = vmatpush.bf16.msrb.mxu1 %v1821_v18  ;;  %v1717_v55 = vor.u32 %v2005_v47, %v1714_v48  ;;  %v1349_v59 = vld [vmem:[%s2767_s3 + $0x38] sm:$0xff]  ;;  %v2008_v1 = vld [vmem:[%s2764_s0 + $0x64] sm:$0xf]  ;;  %v1722_v3 = vld [vmem:[%s2764_s0 + $0x70] sm:$0xf0] }
  0x96   : > { %1225 = vmatpush.bf16.msrb.mxu2 %v1885_v5  ;;  %1372 = vperm.xlu0 %2118, %v1346_v42   ;;  %v1728_v4 = vld [vmem:[%s2764_s0 + $0x68] sm:$0xf]  ;;  %v2011_v5 = vld [vmem:[%s2764_s0 + $0x74] sm:$0xf0]  ;;  %v2009_v6 = vld [vmem:[%s2764_s0 + $0x6c] sm:$0xf]  ;;  %v1725_v9 = vor.u32 %v2008_v1, %v1722_v3 }
  0x97   : > { %1254 = vmatpush.bf16.msrb.mxu3 %v1949_v8  ;;  %v1730_v7 = vld [vmem:[%s2764_s0 + $0x78] sm:$0xf0]  ;;  %v1721_v8 = vor.u32 %v2010_v0, %v1720_v61  ;;  %v1729_v10 = vor.u32 %v2011_v5, %v1728_v4  ;;  %v1348_v12 = vld [vmem:[%s2767_s3 + $0x30] sm:$0xff] }
  0x98   : > { %1168 = vmatpush.bf16.msrb.mxu0 %v1749_v29  ;;  %v1733_v11 = vor.u32 %v2009_v6, %v1730_v7 }
  0x99   : > { %1197 = vmatpush.bf16.msrb.mxu1 %v1813_v32 }
  0x9a   : > { %1226 = vmatpush.bf16.msrb.mxu2 %v1877_v19 }
  0x9b   : > { %1255 = vmatpush.bf16.msrb.mxu3 %v1941_v23  ;;  %1377 = vperm.xlu1 %2119, %v1347_v46  }
  0x9c   : > { %1169 = vmatpush.bf16.msrb.mxu0 %v1741_v45  ;;  %1367 = vperm.xlu2 %2120, %v1345_v58  }
  0x9d   : > { %1198 = vmatpush.bf16.msrb.mxu1 %v1805_v49 }
  0x9e   : > { %1227 = vmatpush.bf16.msrb.mxu2 %v1869_v33  ;;  %1387 = vperm.xlu0 %2118, %v1349_v59  }
  0x9f   : > { %1256 = vmatpush.bf16.msrb.mxu3 %v1933_v37  ;;  %1064 = vmatmul.bf16.gmra.mxu0 %v1705_v50 }
  0xa0   : > { %1093 = vmatmul.bf16.gmra.mxu1 %v1709_v52 }
  0xa1   : > { %1122 = vmatmul.bf16.gmra.mxu2 %v1713_v53 }
  0xa2   : > { %1151 = vmatmul.bf16.gmra.mxu3 %v1717_v55 }
  0xa4   : > { %1382 = vperm.xlu2 %2120, %v1348_v12  }
  0xaf   : > { %1069 = vmatmul.bf16.gmra.mxu0 %v1721_v8 }
  0xb0   : > { %1098 = vmatmul.bf16.gmra.mxu1 %v1725_v9 }
  0xb1   : > { %1127 = vmatmul.bf16.gmra.mxu2 %v1729_v10 }
  0xb2   : > { %1156 = vmatmul.bf16.gmra.mxu3 %v1733_v11 }
  0xbf   : > { %1170 = vmatmul.bf16.vlgmr.msrb.gmra.mxu0 %v2475_v51 }
  0xc0   : > { %1199 = vmatmul.bf16.vlgmr.msrb.gmra.mxu1 %v2480_v56 }
  0xc1   : > { %1228 = vmatmul.bf16.vlgmr.msrb.gmra.mxu2 %v2482_v57 }
  0xc2   : > { %1257 = vmatmul.bf16.vlgmr.msrb.gmra.mxu3 %v2486_v60 }
  0xcf   : > { %1175 = vmatmul.bf16.gmra.mxu0 %v2561_v54 }
  0xd0   : > { %1204 = vmatmul.bf16.gmra.mxu1 %v2566_v62 }
  0xd1   : > { %1233 = vmatmul.bf16.gmra.mxu2 %v2568_v63 }
  0xd2   : > { %1262 = vmatmul.bf16.gmra.mxu3 %v2572_v2 }
  0xdf   : > { %1180 = vmatmul.bf16.gmra.mxu0 %v1705_v50 }
  0xe0   : > { %1209 = vmatmul.bf16.gmra.mxu1 %v1709_v52  ;;  %v2688_v52 = vpop.permute.xlu2 %1308 }
  0xe1   : > { %1238 = vmatmul.bf16.gmra.mxu2 %v1713_v53 }
  0xe2   : > { %1267 = vmatmul.bf16.gmra.mxu3 %v1717_v55 }
  0xe8   : > { %v1289_v47 = vpop.permute.xlu0 %1288  ;;  %v2694_v5 = vpop.permute.xlu2 %1313 }
  0xeb   : > { %v2690_v61 = vpop.permute.xlu1 %1298 }
  0xef   : > { %1185 = vmatmul.bf16.gmra.mxu0 %v1721_v8 }
  0xf0   : > { %1214 = vmatmul.bf16.gmra.mxu1 %v1725_v9  ;;  %v1294_v4 = vpop.permute.xlu0 %1293 }
  0xf1   : > { %1243 = vmatmul.bf16.gmra.mxu2 %v1729_v10 }
  0xf2   : > { %1272 = vmatmul.bf16.gmra.mxu3 %v1733_v11 }
  0xf5   : > { %v2698_v12 = vpop.permute.xlu1 %1303 }
  0xfc   : > { %v1055_v51 = vpop.f32.mrf.mxu0 }
  0xfd   : > { %v1084_v56 = vpop.f32.mrf.mxu1 }
  0xfe   : > { %v1085_v57 = vadd.f32 %v1084_v56, %v1055_v51  ;;  %v2700_v56 = vpop.permute.xlu0 %1318 }
 0x104   : > { %v1113_v60 = vpop.f32.mrf.mxu2  ;;  %v1057_v14 = vpop.f32.mrf.mxu0 }
 0x105   : > { %v1114_v13 = vadd.f32 %v1113_v60, %v1085_v57  ;;  %v1142_v54 = vpop.f32.mrf.mxu3  ;;  %v1086_v62 = vpop.f32.mrf.mxu1 }
 0x106   : > { %v1087_v63 = vadd.f32 %v1086_v62, %v1057_v14  ;;  %v1353_v60 = vpop.permute.xlu2 %1352 }
 0x107   : > { %v1143_v15 = vadd.f32 %v1142_v54, %v1114_v13 }
 0x109   : > { %v1326_v57 = vmul.f32 %v1289_v47, %v1143_v15 }
 0x10c   : > { %v1115_v16 = vpop.f32.mrf.mxu2  ;;  %v1060_v18 = vpop.f32.mrf.mxu0 }
 0x10d   : > { %v1116_v2 = vadd.f32 %v1115_v16, %v1087_v63  ;;  %v1144_v17 = vpop.f32.mrf.mxu3  ;;  %v1089_v19 = vpop.f32.mrf.mxu1  ;;  %v1390_v16 = vadd.f32 %v1353_v60, %v1326_v57 }
 0x10e   : > { %v1090_v21 = vadd.f32 %v1089_v19, %v1060_v18  ;;  %v2702_v18 = vpop.permute.xlu1 %1323 }
 0x10f   : > { %v2678_v20 = vadd.f32 %v1144_v17, %v1116_v2  ;;  %v1422_v19 = vmul.f32 0.2, %v1390_v16  ;;  %vm1406_vm0 = vcmp.gt.f32.partialorder %v1390_v16, 0.0 }
 0x114   : > { %v1118_v22 = vpop.f32.mrf.mxu2  ;;  %v1062_v25 = vpop.f32.mrf.mxu0 }
 0x115   : > { %v1119_v23 = vadd.f32 %v1118_v22, %v1090_v21  ;;  %v1147_v24 = vpop.f32.mrf.mxu3  ;;  %v1091_v26 = vpop.f32.mrf.mxu1  ;;  %v1328_v21 = vmul.f32 %v1294_v4, %v2678_v20 }
 0x116   : > { %v1092_v28 = vadd.f32 %v1091_v26, %v1062_v25 }
 0x117   : > { %v2680_v27 = vadd.f32 %v1147_v24, %v1119_v23  ;;  %v1358_v24 = vpop.permute.xlu0 %1357 }
 0x11c   : > { %v1120_v29 = vpop.f32.mrf.mxu2  ;;  %v1065_v32 = vpop.f32.mrf.mxu0 }
 0x11d   : > { %v1121_v30 = vadd.f32 %v1120_v29, %v1092_v28  ;;  %v1149_v31 = vpop.f32.mrf.mxu3  ;;  %v1094_v33 = vpop.f32.mrf.mxu1 }
 0x11e   : > { %v1095_v35 = vadd.f32 %v1094_v33, %v1065_v32  ;;  %v1392_v32 = vadd.f32 %v1358_v24, %v1328_v21 }
 0x11f   : > { %v2682_v34 = vadd.f32 %v1149_v31, %v1121_v30  ;;  %v1438_v31 = vsel %vm1406_vm0, %v1390_v16, %v1422_v19  ;;  %v1373_v19 = vpop.permute.xlu0 %1372 }
 0x120   : > { %vm1408_vm2 = vcmp.gt.f32.partialorder %v1392_v32, 0.0 }
 0x124   : > { %v1123_v36 = vpop.f32.mrf.mxu2  ;;  %v1067_v39 = vpop.f32.mrf.mxu0 }
 0x125   : > { %v1124_v37 = vadd.f32 %v1123_v36, %v1095_v35  ;;  %v1152_v38 = vpop.f32.mrf.mxu3  ;;  %v1096_v40 = vpop.f32.mrf.mxu1 }
 0x126   : > { %v1097_v42 = vadd.f32 %v1096_v40, %v1067_v39  ;;  %v1330_v39 = vmul.f32 %v2690_v61, %v2680_v27 }
 0x127   : > { %v2684_v41 = vadd.f32 %v1152_v38, %v1124_v37  ;;  %v1424_v38 = vmul.f32 0.2, %v1392_v32 }
 0x12c   : > { %v1125_v43 = vpop.f32.mrf.mxu2  ;;  %v1070_v46 = vpop.f32.mrf.mxu0 }
 0x12d   : > { %v1126_v44 = vadd.f32 %v1125_v43, %v1097_v42  ;;  %v1154_v45 = vpop.f32.mrf.mxu3  ;;  %v1099_v48 = vpop.f32.mrf.mxu1 }
 0x12e   : > { %v1100_v50 = vadd.f32 %v1099_v48, %v1070_v46  ;;  %v1363_v42 = vpop.permute.xlu1 %1362 }
 0x12f   : > { %v2686_v49 = vadd.f32 %v1154_v45, %v1126_v44 }
 0x134   : > { %v1128_v53 = vpop.f32.mrf.mxu2  ;;  %v1072_v59 = vpop.f32.mrf.mxu0 }
 0x135   : > { %v1129_v55 = vadd.f32 %v1128_v53, %v1100_v50  ;;  %v1157_v58 = vpop.f32.mrf.mxu3  ;;  %v1101_v0 = vpop.f32.mrf.mxu1  ;;  %v1440_v50 = vsel %vm1408_vm2, %v1392_v32, %v1424_v38  ;;  %v1394_v53 = vadd.f32 %v1363_v42, %v1330_v39  ;;  %v1336_v32 = vmul.f32 %v2694_v5, %v2686_v49 }
 0x136   : > { %v1102_v3 = vadd.f32 %v1101_v0, %v1072_v59 }
 0x137   : > { %v2692_v1 = vadd.f32 %v1157_v58, %v1129_v55  ;;  %v1426_v27 = vmul.f32 0.2, %v1394_v53  ;;  %vm1410_vm4 = vcmp.gt.f32.partialorder %v1394_v53, 0.0 }
 0x13c   : > { %v1130_v6 = vpop.f32.mrf.mxu2  ;;  %v1171_v9 = vpop.f32.mrf.mxu0 }
 0x13d   : > { %v1131_v7 = vadd.f32 %v1130_v6, %v1102_v3  ;;  %v1159_v8 = vpop.f32.mrf.mxu3  ;;  %v1200_v10 = vpop.f32.mrf.mxu1  ;;  %v1332_v3 = vmul.f32 %v2698_v12, %v2682_v34 }
 0x13e   : > { %v1201_v51 = vadd.f32 %v1200_v10, %v1171_v9 }
 0x13f   : > { %v2696_v11 = vadd.f32 %v1159_v8, %v1131_v7  ;;  %v1368_v7 = vpop.permute.xlu2 %1367 }
 0x144   : > { %v1229_v13 = vpop.f32.mrf.mxu2  ;;  %v1173_v62 = vpop.f32.mrf.mxu0 }
 0x145   : > { %v1230_v54 = vadd.f32 %v1229_v13, %v1201_v51  ;;  %v1258_v14 = vpop.f32.mrf.mxu3  ;;  %v1202_v63 = vpop.f32.mrf.mxu1  ;;  %v1442_v13 = vsel %vm1410_vm4, %v1394_v53, %v1426_v27 }
 0x146   : > { %v1203_v23 = vadd.f32 %v1202_v63, %v1173_v62 }
 0x147   : > { %v1259_v2 = vadd.f32 %v1258_v14, %v1230_v54  ;;  %v1396_v54 = vadd.f32 %v1368_v7, %v1332_v3 }
 0x149   : > { %v1327_v17 = vmul.f32 %v1289_v47, %v1259_v2  ;;  %v1428_v16 = vmul.f32 0.2, %v1396_v54  ;;  %v1334_v2 = vmul.f32 %v2688_v52, %v2684_v41  ;;  %vm1412_vm6 = vcmp.gt.f32.partialorder %v1396_v54, 0.0 }
 0x14b   : > { %v1391_v22 = vadd.f32 %v1353_v60, %v1327_v17 }
 0x14c   : > { %v1231_v15 = vpop.f32.mrf.mxu2  ;;  %v1176_v29 = vpop.f32.mrf.mxu0 }
 0x14d   : > { %vm1407_vm1 = vcmp.gt.f32.partialorder %v1391_v22, 0.0  ;;  %v1423_v25 = vmul.f32 0.2, %v1391_v22  ;;  %v1232_v26 = vadd.f32 %v1231_v15, %v1203_v23  ;;  %v1260_v28 = vpop.f32.mrf.mxu3  ;;  %v1205_v30 = vpop.f32.mrf.mxu1 }
 0x14e   : > { %v1206_v20 = vadd.f32 %v1205_v30, %v1176_v29 }
 0x14f   : > { %v1439_v33 = vsel %vm1407_vm1, %v1391_v22, %v1423_v25  ;;  %v1261_v35 = vadd.f32 %v1260_v28, %v1232_v26  ;;  %v1444_v26 = vsel %vm1412_vm6, %v1396_v54, %v1428_v16  ;;  %v1398_v28 = vadd.f32 %v1373_v19, %v1334_v2 }
 0x150   : > { %v1454_v36 = vpack.c.bf16 %v1439_v33, %v1438_v31 }
 0x151   : > { %v1329_v37 = vmul.f32 %v1294_v4, %v1261_v35  ;;  %v1430_v41 = vmul.f32 0.2, %v1398_v28  ;;  %vm1414_vm8 = vcmp.gt.f32.partialorder %v1398_v28, 0.0 }
 0x152   : > { %1462 = vst [vmem:[%s2707_s8] sm:$0xff] %v1454_v36  ;;  %v1378_v36 = vpop.permute.xlu1 %1377 }
 0x153   : > { %v1393_v40 = vadd.f32 %v1358_v24, %v1329_v37 }
 0x154   : > { %v1234_v43 = vpop.f32.mrf.mxu2  ;;  %v1178_v47 = vpop.f32.mrf.mxu0 }
 0x155   : > { %vm1409_vm3 = vcmp.gt.f32.partialorder %v1393_v40, 0.0  ;;  %v1425_v44 = vmul.f32 0.2, %v1393_v40  ;;  %v1235_v45 = vadd.f32 %v1234_v43, %v1206_v20  ;;  %v1263_v46 = vpop.f32.mrf.mxu3  ;;  %v1207_v48 = vpop.f32.mrf.mxu1  ;;  %v1446_v43 = vsel %vm1414_vm8, %v1398_v28, %v1430_v41 }
 0x156   : > { %v1208_v6 = vadd.f32 %v1207_v48, %v1178_v47 }
 0x157   : > { %v1441_v55 = vsel %vm1409_vm3, %v1393_v40, %v1425_v44  ;;  %v1264_v58 = vadd.f32 %v1263_v46, %v1235_v45  ;;  %v1400_v44 = vadd.f32 %v1378_v36, %v1336_v32 }
 0x158   : > { %v1455_v59 = vpack.c.bf16 %v1441_v55, %v1440_v50  ;;  %v1338_v50 = vmul.f32 %v2700_v56, %v2692_v1  ;;  %v1383_v55 = vpop.permute.xlu2 %1382 }
 0x159   : > { %v1331_v0 = vmul.f32 %v2690_v61, %v1264_v58  ;;  %v1432_v48 = vmul.f32 0.2, %v1400_v44  ;;  %vm1416_vm10 = vcmp.gt.f32.partialorder %v1400_v44, 0.0 }
 0x15a   : > { %1463 = vst [vmem:[%s2707_s8 + $0x8] sm:$0xff] %v1455_v59 }
 0x15b   : > { %v1395_v4 = vadd.f32 %v1363_v42, %v1331_v0  ;;  %v1448_v3 = vsel %vm1416_vm10, %v1400_v44, %v1432_v48 }
 0x15c   : > { %v1236_v8 = vpop.f32.mrf.mxu2  ;;  %v1181_v57 = vpop.f32.mrf.mxu0 }
 0x15d   : > { %vm1411_vm5 = vcmp.gt.f32.partialorder %v1395_v4, 0.0  ;;  %v1427_v9 = vmul.f32 0.2, %v1395_v4  ;;  %v1237_v10 = vadd.f32 %v1236_v8, %v1208_v6  ;;  %v1265_v51 = vpop.f32.mrf.mxu3  ;;  %v1210_v60 = vpop.f32.mrf.mxu1 }
 0x15e   : > { %v1211_v34 = vadd.f32 %v1210_v60, %v1181_v57 }
 0x15f   : > { %v1443_v61 = vsel %vm1411_vm5, %v1395_v4, %v1427_v9  ;;  %v1266_v14 = vadd.f32 %v1265_v51, %v1237_v10  ;;  %v1402_v4 = vadd.f32 %v1383_v55, %v1338_v50  ;;  %v1340_v51 = vmul.f32 %v2702_v18, %v2696_v11 }
 0x160   : > { %v1456_v62 = vpack.c.bf16 %v1443_v61, %v1442_v13  ;;  %v1388_v13 = vpop.permute.xlu0 %1387 }
 0x161   : > { %v1333_v63 = vmul.f32 %v2698_v12, %v1266_v14  ;;  %v1434_v1 = vmul.f32 0.2, %v1402_v4  ;;  %vm1418_vm12 = vcmp.gt.f32.partialorder %v1402_v4, 0.0 }
 0x162   : > { %1464 = vst [vmem:[%s2707_s8 + $0x10] sm:$0xff] %v1456_v62 }
 0x163   : > { %v1397_v17 = vadd.f32 %v1368_v7, %v1333_v63  ;;  %v1450_v63 = vsel %vm1418_vm12, %v1402_v4, %v1434_v1 }
 0x164   : > { %v1239_v21 = vpop.f32.mrf.mxu2  ;;  %v1183_v15 = vpop.f32.mrf.mxu0 }
 0x165   : > { %vm1413_vm7 = vcmp.gt.f32.partialorder %v1397_v17, 0.0  ;;  %v1429_v22 = vmul.f32 0.2, %v1397_v17  ;;  %v1240_v23 = vadd.f32 %v1239_v21, %v1211_v34  ;;  %v1268_v24 = vpop.f32.mrf.mxu3  ;;  %v1212_v25 = vpop.f32.mrf.mxu1  ;;  %v1404_v34 = vadd.f32 %v1388_v13, %v1340_v51 }
 0x166   : > { %v1213_v35 = vadd.f32 %v1212_v25, %v1183_v15  ;;  %v1527_v15 = vld [vmem:[%s2707_s8 + $0x8] sm:$0xff] (%p2222_p6) }
 0x167   : > { %v1445_v12 = vsel %vm1413_vm7, %v1397_v17, %v1429_v22  ;;  %v1269_v29 = vadd.f32 %v1268_v24, %v1240_v23  ;;  %v1436_v11 = vmul.f32 0.2, %v1404_v34  ;;  %vm1420_vm14 = vcmp.gt.f32.partialorder %v1404_v34, 0.0  ;;  %1528 = vst [vmem:[%s1482_s11 + $0x10] sm:$0xff] (%p2222_p6), %v1527_v15 }
 0x168   : > { %v1457_v30 = vpack.c.bf16 %v1445_v12, %v1444_v26 }
 0x169   : > { %v1335_v31 = vmul.f32 %v2688_v52, %v1269_v29  ;;  %v1452_v22 = vsel %vm1420_vm14, %v1404_v34, %v1436_v11  ;;  %v1529_v25 = vld [vmem:[%s2707_s8 + $0x10] sm:$0xff] (%p2222_p6) }
 0x16a   : > { %1465 = vst [vmem:[%s2707_s8 + $0x18] sm:$0xff] %v1457_v30 }
 0x16b   : > { %v1399_v33 = vadd.f32 %v1373_v19, %v1335_v31  ;;  %1530 = vst [vmem:[%s1482_s11 + $0x20] sm:$0xff] (%p2222_p6), %v1529_v25 }
 0x16c   : > { %v1241_v37 = vpop.f32.mrf.mxu2  ;;  %v1186_v40 = vpop.f32.mrf.mxu0 }
 0x16d   : > { %vm1415_vm9 = vcmp.gt.f32.partialorder %v1399_v33, 0.0  ;;  %v1431_v20 = vmul.f32 0.2, %v1399_v33  ;;  %v1242_v38 = vadd.f32 %v1241_v37, %v1213_v35  ;;  %v1270_v39 = vpop.f32.mrf.mxu3  ;;  %v1215_v42 = vpop.f32.mrf.mxu1 }
 0x16e   : > { %v1216_v49 = vadd.f32 %v1215_v42, %v1186_v40 }
 0x16f   : > { %v1447_v52 = vsel %vm1415_vm9, %v1399_v33, %v1431_v20  ;;  %v1271_v45 = vadd.f32 %v1270_v39, %v1242_v38 }
 0x170   : > { %v1458_v46 = vpack.c.bf16 %v1447_v52, %v1446_v43 }
 0x171   : > { %v1337_v47 = vmul.f32 %v2694_v5, %v1271_v45  ;;  %v1531_v26 = vld [vmem:[%s2707_s8 + $0x18] sm:$0xff] (%p2222_p6) }
 0x172   : > { %1466 = vst [vmem:[%s2707_s8 + $0x20] sm:$0xff] %v1458_v46 }
 0x173   : > { %v1401_v53 = vadd.f32 %v1378_v36, %v1337_v47  ;;  %1532 = vst [vmem:[%s1482_s11 + $0x30] sm:$0xff] (%p2222_p6), %v1531_v26 }
 0x174   : > { %v1244_v58 = vpop.f32.mrf.mxu2  ;;  %v1188_v8 = vpop.f32.mrf.mxu0 }
 0x175   : > { %vm1417_vm11 = vcmp.gt.f32.partialorder %v1401_v53, 0.0  ;;  %v1433_v59 = vmul.f32 0.2, %v1401_v53  ;;  %v1245_v0 = vadd.f32 %v1244_v58, %v1216_v49  ;;  %v1273_v27 = vpop.f32.mrf.mxu3  ;;  %v1217_v9 = vpop.f32.mrf.mxu1 }
 0x176   : > { %v1218_v60 = vadd.f32 %v1217_v9, %v1188_v8 }
 0x177   : > { %v1449_v6 = vsel %vm1417_vm11, %v1401_v53, %v1433_v59  ;;  %v1274_v7 = vadd.f32 %v1273_v27, %v1245_v0 }
 0x178   : > { %v1459_v5 = vpack.c.bf16 %v1449_v6, %v1448_v3 }
 0x179   : > { %v1339_v10 = vmul.f32 %v2700_v56, %v1274_v7  ;;  %v1533_v28 = vld [vmem:[%s2707_s8 + $0x20] sm:$0xff] (%p2222_p6) }
 0x17a   : > { %1467 = vst [vmem:[%s2707_s8 + $0x28] sm:$0xff] %v1459_v5 }
 0x17b   : > { %v1403_v57 = vadd.f32 %v1383_v55, %v1339_v10  ;;  %1534 = vst [vmem:[%s1482_s11 + $0x40] sm:$0xff] (%p2222_p6), %v1533_v28 }
 0x17c   : > { %v1246_v54 = vpop.f32.mrf.mxu2 }
 0x17d   : > { %vm1419_vm13 = vcmp.gt.f32.partialorder %v1403_v57, 0.0  ;;  %v1435_v61 = vmul.f32 0.2, %v1403_v57  ;;  %v1247_v14 = vadd.f32 %v1246_v54, %v1218_v60  ;;  %v1275_v62 = vpop.f32.mrf.mxu3 }
 0x17f   : > { %v1451_v16 = vsel %vm1419_vm13, %v1403_v57, %v1435_v61  ;;  %v1276_v56 = vadd.f32 %v1275_v62, %v1247_v14 }
 0x180   : > { %v1460_v2 = vpack.c.bf16 %v1451_v16, %v1450_v63 }
 0x181   : > { %v1341_v17 = vmul.f32 %v2702_v18, %v1276_v56  ;;  %v1525_v18 = vld [vmem:[%s2707_s8] sm:$0xff] (%p2222_p6)  ;;  %v1535_v12 = vld [vmem:[%s2707_s8 + $0x28] sm:$0xff] (%p2222_p6) }
 0x182   : > { %1468 = vst [vmem:[%s2707_s8 + $0x30] sm:$0xff] %v1460_v2 }
 0x183   : > { %v1405_v19 = vadd.f32 %v1388_v13, %v1341_v17  ;;  %1526 = vst [vmem:[%s1482_s11] sm:$0xff] (%p2222_p6), %v1525_v18 }
 0x184   : > { %1536 = vst [vmem:[%s1482_s11 + $0x50] sm:$0xff] (%p2222_p6), %v1535_v12 }
 0x185   : > { %vm1421_vm15 = vcmp.gt.f32.partialorder %v1405_v19, 0.0  ;;  %v1437_v21 = vmul.f32 0.2, %v1405_v19 }
 0x186   : > { %1476 = sbr.rel (!%p2222_p6) target bundleno = 403 (0x193), region = 78 }
 0x187   : > { %v1453_v23 = vsel %vm1421_vm15, %v1405_v19, %v1437_v21 }
 0x188   : > { %v1461_v24 = vpack.c.bf16 %v1453_v23, %v1452_v22 }
 0x189   : > { %v1537_v29 = vld [vmem:[%s2707_s8 + $0x30] sm:$0xff] (%p2222_p6) }
 0x18a   : > { %1469 = vst [vmem:[%s2707_s8 + $0x38] sm:$0xff] %v1461_v24 }
 0x18b   : > { %1538 = vst [vmem:[%s1482_s11 + $0x60] sm:$0xff] %v1537_v29 }
 0x191   : > { %v1539_v30 = vld [vmem:[%s2707_s8 + $0x38] sm:$0xff] }
 0x192   : > { %1540 = vst [vmem:[%s1482_s11 + $0x70] sm:$0xff] %v1539_v30 }
 0x193 PF: > { %s14_s19 = sadd.s32 1, %s2159_s19   ;;  %s2770_s15 = smov %s2147_s16 }
 0x194   : > { %p11_p11 = scmp.ge.s32.totalorder %s14_s19, 4   ;;  %s2771_s16 = smov %s2227_s25 }
 0x195   : > { %s2772_s17 = smov %s2155_s18  ;;  %s2773_s18 = smov %s2775_s20 }
 0x196   :  { %13 = sbr.rel (!%p11_p11) target bundleno = 3 (0x3), region = 156 }

// kernel: d_net128_forward.10
= control target key start
LH: loop header
LB: loop body
LE: loop exit
PB: predicated region body
PF: predicated region fallthrough
CT: control target
= control target key end

     0   :  { %s2086_s15 = smov 0   ;;  %s2088_s16 = smov 0   ;;  %s2466_s0 = inlined_call_operand.vmem [shape: bf16[128,1024], index: 0, kind: input, shape index: {}]   ;;  %s2467_s1 = inlined_call_operand.vmem [shape: bf16[1024,128], index: 1, kind: input, shape index: {}]   ;;  %s2468_s2 = inlined_call_operand.vmem [shape: f32[128,1], index: 2, kind: input, shape index: {}]   ;;  %s2469_s3 = inlined_call_operand.vmem [shape: f32[128,1], index: 3, kind: input, shape index: {}]   ;;  %s2470_s4 = inlined_call_operand.vmem [shape: bf16[128,128], index: 4, kind: output, shape index: {}]  }
   0x1   :  { %s2090_s17 = smov 0  }
   0x2 LB: > { %s26_s18 = sadd.s32 1, %s2054_s16  ;;  %p1492_p0 = scmp.ge.s32.totalorder %s2058_s17, 1  ;;  %s2058_s17 = sphi %s2090_s17, %s14_s17   ;;  %s2054_s16 = sphi %s2088_s16, %s2472_s16   ;;  %s2050_s15 = sphi %s2086_s15, %s2471_s15  }
   0x3   : > { %p28_p1 = scmp.ge.s32.totalorder %s26_s18, 2  ;;  %p209_p2 = scmp.lt.s32.totalorder %s2058_s17, 3 }
   0x5   : > { %s2474_s18 = smov (%p28_p1, %s26_s18), 0  ;;  %p210_p3 = pnand %p1492_p0, %p209_p2 }
   0x6   : > { %s1493_s21 = sshll.u32 (!%p210_p3), %s2050_s15, 3 }
   0x7   : > { %213 = sbr.rel (%p210_p3) target bundleno = 312 (0x138), region = 36  ;;  %p254_p4 = scmp.lt.s32.totalorder (!%p210_p3), %s1493_s21, 15 }
   0xc   : > { %v1928_v0 = vld [vmem:[%s2467_s1 + $0x38] sm:$0xff]  ;;  %v1927_v4 = vld [vmem:[%s2467_s1 + $0x30] sm:$0xff]  ;;  %v1926_v8 = vld [vmem:[%s2467_s1 + $0x28] sm:$0xff]  ;;  %s2476_s21 = smov (!%p254_p4, %s1493_s21), 15 }
   0xd   : > { %v1936_v1 = vld [vmem:[%s2467_s1 + $0x78] sm:$0xff]  ;;  %989 = vmatpush.bf16.msra.mxu0 %v1928_v0  ;;  %v1935_v5 = vld [vmem:[%s2467_s1 + $0x70] sm:$0xff]  ;;  %v1934_v9 = vld [vmem:[%s2467_s1 + $0x68] sm:$0xff]  ;;  %s1888_s24 = sshll.u32 %s2476_s21, 5  ;;  %s1497_s11 = sshll.u32 %s2476_s21, 3 }
   0xe   : > { %v1944_v2 = vld [vmem:[%s2467_s1 + $0xb8] sm:$0xff]  ;;  %1018 = vmatpush.bf16.msra.mxu1 %v1936_v1  ;;  %v1943_v6 = vld [vmem:[%s2467_s1 + $0xb0] sm:$0xff]  ;;  %v1942_v10 = vld [vmem:[%s2467_s1 + $0xa8] sm:$0xff]  ;;  %s2191_s30 = scalar_lea.vmem %s2466_s0, %s1888_s24  ;;  %s2299_s27 = scalar_lea.vmem %s2468_s2, %s1497_s11 }
   0xf   : > { %v1952_v3 = vld [vmem:[%s2467_s1 + $0xf8] sm:$0xff]  ;;  %1047 = vmatpush.bf16.msra.mxu2 %v1944_v2  ;;  %v1951_v7 = vld [vmem:[%s2467_s1 + $0xf0] sm:$0xff]  ;;  %v1950_v11 = vld [vmem:[%s2467_s1 + $0xe8] sm:$0xff]  ;;  %s2356_s5 = scalar_lea.vmem %s2469_s3, %s1497_s11 }
  0x10   : > { %1076 = vmatpush.bf16.msra.mxu3 %v1952_v3  ;;  %v1925_v12 = vld [vmem:[%s2467_s1 + $0x20] sm:$0xff]  ;;  %v1924_v16 = vld [vmem:[%s2467_s1 + $0x18] sm:$0xff]  ;;  %v1923_v20 = vld [vmem:[%s2467_s1 + $0x10] sm:$0xff] }
  0x11   : > { %990 = vmatpush.bf16.msra.mxu0 %v1927_v4  ;;  %v1933_v13 = vld [vmem:[%s2467_s1 + $0x60] sm:$0xff]  ;;  %v1932_v17 = vld [vmem:[%s2467_s1 + $0x58] sm:$0xff]  ;;  %v1931_v21 = vld [vmem:[%s2467_s1 + $0x50] sm:$0xff] }
  0x12   : > { %1019 = vmatpush.bf16.msra.mxu1 %v1935_v5  ;;  %v1941_v14 = vld [vmem:[%s2467_s1 + $0xa0] sm:$0xff]  ;;  %v1940_v18 = vld [vmem:[%s2467_s1 + $0x98] sm:$0xff]  ;;  %v1939_v22 = vld [vmem:[%s2467_s1 + $0x90] sm:$0xff] }
  0x13   : > { %1048 = vmatpush.bf16.msra.mxu2 %v1943_v6  ;;  %v1949_v15 = vld [vmem:[%s2467_s1 + $0xe0] sm:$0xff]  ;;  %v1948_v19 = vld [vmem:[%s2467_s1 + $0xd8] sm:$0xff]  ;;  %v1947_v23 = vld [vmem:[%s2467_s1 + $0xd0] sm:$0xff] }
  0x14   : > { %1077 = vmatpush.bf16.msra.mxu3 %v1951_v7  ;;  %v1922_v24 = vld [vmem:[%s2467_s1 + $0x8] sm:$0xff]  ;;  %v1921_v28 = vld [vmem:[%s2467_s1] sm:$0xff]  ;;  %v1976_v40 = vld [vmem:[%s2467_s1 + $0x1b8] sm:$0xff] }
  0x15   : > { %991 = vmatpush.bf16.msra.mxu0 %v1926_v8  ;;  %v1930_v25 = vld [vmem:[%s2467_s1 + $0x48] sm:$0xff]  ;;  %v1929_v29 = vld [vmem:[%s2467_s1 + $0x40] sm:$0xff]  ;;  %v1960_v41 = vld [vmem:[%s2467_s1 + $0x138] sm:$0xff] }
  0x16   : > { %1020 = vmatpush.bf16.msra.mxu1 %v1934_v9  ;;  %v1938_v26 = vld [vmem:[%s2467_s1 + $0x88] sm:$0xff]  ;;  %v1937_v30 = vld [vmem:[%s2467_s1 + $0x80] sm:$0xff]  ;;  %v1984_v46 = vld [vmem:[%s2467_s1 + $0x1f8] sm:$0xff] }
  0x17   : > { %1049 = vmatpush.bf16.msra.mxu2 %v1942_v10  ;;  %v1946_v27 = vld [vmem:[%s2467_s1 + $0xc8] sm:$0xff]  ;;  %v1945_v31 = vld [vmem:[%s2467_s1 + $0xc0] sm:$0xff]  ;;  %v1968_v47 = vld [vmem:[%s2467_s1 + $0x178] sm:$0xff] }
  0x18   : > { %1078 = vmatpush.bf16.msra.mxu3 %v1950_v11  ;;  %v1504_v32 = vld [vmem:[%s2191_s30] sm:$0xf]  ;;  %v1889_v34 = vld [vmem:[%s2191_s30 + $0x4] sm:$0xf]  ;;  %v1512_v36 = vld [vmem:[%s2191_s30 + $0x8] sm:$0xf] }
  0x19   : > { %992 = vmatpush.bf16.msra.mxu0 %v1925_v12  ;;  %v1893_v33 = vld [vmem:[%s2191_s30 + $0x1c] sm:$0xf0]  ;;  %v1506_v35 = vld [vmem:[%s2191_s30 + $0x20] sm:$0xf0]  ;;  %v1894_v37 = vld [vmem:[%s2191_s30 + $0x24] sm:$0xf0] }
  0x1a   : > { %1021 = vmatpush.bf16.msra.mxu1 %v1933_v13  ;;  %v1890_v38 = vld [vmem:[%s2191_s30 + $0xc] sm:$0xf]  ;;  %v1505_v42 = vor.u32 %v1893_v33, %v1504_v32  ;;  %v1509_v43 = vor.u32 %v1889_v34, %v1506_v35  ;;  %v1513_v44 = vor.u32 %v1894_v37, %v1512_v36  ;;  %v1975_v48 = vld [vmem:[%s2467_s1 + $0x1b0] sm:$0xff]  ;;  %v1536_v56 = vld [vmem:[%s2191_s30 + $0x40] sm:$0xf] }
  0x1b   : > { %1050 = vmatpush.bf16.msra.mxu2 %v1941_v14  ;;  %v1514_v39 = vld [vmem:[%s2191_s30 + $0x28] sm:$0xf0]  ;;  %v1959_v49 = vld [vmem:[%s2467_s1 + $0x130] sm:$0xff]  ;;  %v1973_v57 = vld [vmem:[%s2467_s1 + $0x1a0] sm:$0xff] }
  0x1c   : > { %1079 = vmatpush.bf16.msra.mxu3 %v1949_v15  ;;  %v1517_v45 = vor.u32 %v1890_v38, %v1514_v39  ;;  %v1983_v50 = vld [vmem:[%s2467_s1 + $0x1f0] sm:$0xff]  ;;  %v1974_v52 = vld [vmem:[%s2467_s1 + $0x1a8] sm:$0xff]  ;;  %v1957_v58 = vld [vmem:[%s2467_s1 + $0x120] sm:$0xff] }
  0x1d   : > { %993 = vmatpush.bf16.msra.mxu0 %v1924_v16  ;;  %v1967_v51 = vld [vmem:[%s2467_s1 + $0x170] sm:$0xff]  ;;  %v1958_v53 = vld [vmem:[%s2467_s1 + $0x128] sm:$0xff]  ;;  %v1901_v59 = vld [vmem:[%s2191_s30 + $0x5c] sm:$0xf0] }
  0x1e   : > { %1022 = vmatpush.bf16.msra.mxu1 %v1932_v17  ;;  %v1982_v54 = vld [vmem:[%s2467_s1 + $0x1e8] sm:$0xff]  ;;  %v1897_v60 = vld [vmem:[%s2191_s30 + $0x44] sm:$0xf]  ;;  %v1972_v4 = vld [vmem:[%s2467_s1 + $0x198] sm:$0xff]  ;;  %v1537_v6 = vor.u32 %v1901_v59, %v1536_v56 }
  0x1f   : > { %1051 = vmatpush.bf16.msra.mxu2 %v1940_v18  ;;  %v1966_v55 = vld [vmem:[%s2467_s1 + $0x168] sm:$0xff]  ;;  %v1538_v61 = vld [vmem:[%s2191_s30 + $0x60] sm:$0xf0]  ;;  %v1956_v5 = vld [vmem:[%s2467_s1 + $0x118] sm:$0xff] }
  0x20   : > { %1080 = vmatpush.bf16.msra.mxu3 %v1948_v19  ;;  %v1544_v62 = vld [vmem:[%s2191_s30 + $0x48] sm:$0xf]  ;;  %v1898_v0 = vld [vmem:[%s2191_s30 + $0x4c] sm:$0xf]  ;;  %v1981_v2 = vld [vmem:[%s2467_s1 + $0x1e0] sm:$0xff]  ;;  %v1541_v7 = vor.u32 %v1897_v60, %v1538_v61  ;;  %v2060_v19 = vmov 0  }
  0x21   : > { %994 = vmatpush.bf16.msra.mxu0 %v1923_v20  ;;  %v1902_v63 = vld [vmem:[%s2191_s30 + $0x64] sm:$0xf0]  ;;  %v1546_v1 = vld [vmem:[%s2191_s30 + $0x68] sm:$0xf0]  ;;  %v1965_v3 = vld [vmem:[%s2467_s1 + $0x160] sm:$0xff]  ;;  %2033 = vset.pattern.permute.xlu0 %v2060_v19 }
  0x22   : > { %1023 = vmatpush.bf16.msra.mxu1 %v1931_v21  ;;  %v1545_v8 = vor.u32 %v1902_v63, %v1544_v62  ;;  %v1549_v9 = vor.u32 %v1898_v0, %v1546_v1  ;;  %v1980_v10 = vld [vmem:[%s2467_s1 + $0x1d8] sm:$0xff]  ;;  %v1971_v12 = vld [vmem:[%s2467_s1 + $0x190] sm:$0xff]  ;;  %v1970_v16 = vld [vmem:[%s2467_s1 + $0x188] sm:$0xff]  ;;  %2034 = vset.pattern.permute.xlu1 %v2060_v19 }
  0x23   : > { %1052 = vmatpush.bf16.msra.mxu2 %v1939_v22  ;;  %v1964_v11 = vld [vmem:[%s2467_s1 + $0x158] sm:$0xff]  ;;  %v1955_v13 = vld [vmem:[%s2467_s1 + $0x110] sm:$0xff]  ;;  %v1954_v17 = vld [vmem:[%s2467_s1 + $0x108] sm:$0xff]  ;;  %2035 = vset.pattern.permute.xlu2 %v2060_v19 }
  0x24   : > { %1081 = vmatpush.bf16.msra.mxu3 %v1947_v23  ;;  %v1979_v14 = vld [vmem:[%s2467_s1 + $0x1d0] sm:$0xff]  ;;  %v1221_v18 = vld [vmem:[%s2299_s27] sm:$0xff]  ;;  %v1978_v20 = vld [vmem:[%s2467_s1 + $0x1c8] sm:$0xff] }
  0x25   : > { %995 = vmatpush.bf16.msra.mxu0 %v1922_v24  ;;  %v1963_v15 = vld [vmem:[%s2467_s1 + $0x150] sm:$0xff]  ;;  %1231 = vperm.xlu0 %2033, %v1221_v18   ;;  %v1962_v21 = vld [vmem:[%s2467_s1 + $0x148] sm:$0xff]  ;;  %v1568_v22 = vld [vmem:[%s2191_s30 + $0x80] sm:$0xf] }
  0x26   : > { %1024 = vmatpush.bf16.msra.mxu1 %v1930_v25  ;;  %v1969_v23 = vld [vmem:[%s2467_s1 + $0x180] sm:$0xff]  ;;  %v1222_v38 = vld [vmem:[%s2299_s27 + $0x8] sm:$0xff]  ;;  %v1223_v39 = vld [vmem:[%s2299_s27 + $0x10] sm:$0xff] }
  0x27   : > { %1053 = vmatpush.bf16.msra.mxu2 %v1938_v26  ;;  %v1953_v24 = vld [vmem:[%s2467_s1 + $0x100] sm:$0xff]  ;;  %1241 = vperm.xlu1 %2034, %v1223_v39   ;;  %v1228_v56 = vld [vmem:[%s2299_s27 + $0x38] sm:$0xff]  ;;  %v1895_v59 = vld [vmem:[%s2191_s30 + $0x2c] sm:$0xf0] }
  0x28   : > { %1082 = vmatpush.bf16.msra.mxu3 %v1946_v27  ;;  %v1909_v25 = vld [vmem:[%s2191_s30 + $0x9c] sm:$0xf0]  ;;  %v1905_v26 = vld [vmem:[%s2191_s30 + $0x84] sm:$0xf]  ;;  %v1891_v60 = vld [vmem:[%s2191_s30 + $0x14] sm:$0xf] }
  0x29   : > { %996 = vmatpush.bf16.msra.mxu0 %v1921_v28  ;;  %v1570_v27 = vld [vmem:[%s2191_s30 + $0xa0] sm:$0xf0]  ;;  %v1576_v28 = vld [vmem:[%s2191_s30 + $0x88] sm:$0xf]  ;;  %v1569_v34 = vor.u32 %v1909_v25, %v1568_v22  ;;  %v1522_v61 = vld [vmem:[%s2191_s30 + $0x30] sm:$0xf0] }
  0x2a   : > { %1025 = vmatpush.bf16.msra.mxu1 %v1929_v29  ;;  %v1910_v29 = vld [vmem:[%s2191_s30 + $0xa4] sm:$0xf0]  ;;  %v1977_v32 = vld [vmem:[%s2467_s1 + $0x1c0] sm:$0xff]  ;;  %v1573_v35 = vor.u32 %v1905_v26, %v1570_v27  ;;  %v1528_v62 = vld [vmem:[%s2191_s30 + $0x18] sm:$0xf] }
  0x2b   : > { %1054 = vmatpush.bf16.msra.mxu2 %v1937_v30  ;;  %v1906_v30 = vld [vmem:[%s2191_s30 + $0x8c] sm:$0xf]  ;;  %v1961_v33 = vld [vmem:[%s2467_s1 + $0x140] sm:$0xff]  ;;  %v1577_v36 = vor.u32 %v1910_v29, %v1576_v28  ;;  %v1896_v63 = vld [vmem:[%s2191_s30 + $0x34] sm:$0xf0] }
  0x2c   : > { %1083 = vmatpush.bf16.msra.mxu3 %v1945_v31  ;;  %997 = vmatmul.bf16.vlgmr.msra.gmra.mxu0 %v1505_v42  ;;  %v1578_v31 = vld [vmem:[%s2191_s30 + $0xa8] sm:$0xf0]  ;;  %v1917_v42 = vld [vmem:[%s2191_s30 + $0xdc] sm:$0xf0]  ;;  %v1892_v0 = vld [vmem:[%s2191_s30 + $0x1c] sm:$0xf] }
  0x2d   : > { %1105 = vmatpush.bf16.msrb.mxu0 %v1960_v41  ;;  %1026 = vmatmul.bf16.vlgmr.msra.gmra.mxu1 %v1509_v43  ;;  %v1581_v37 = vor.u32 %v1906_v30, %v1578_v31  ;;  %v1600_v41 = vld [vmem:[%s2191_s30 + $0xc0] sm:$0xf]  ;;  %v1913_v43 = vld [vmem:[%s2191_s30 + $0xc4] sm:$0xf]  ;;  %v1530_v1 = vld [vmem:[%s2191_s30 + $0x38] sm:$0xf0] }
  0x2e   : > { %1055 = vmatmul.bf16.vlgmr.msra.gmra.mxu2 %v1513_v44  ;;  %1134 = vmatpush.bf16.msrb.mxu1 %v1968_v47  ;;  %v1602_v44 = vld [vmem:[%s2191_s30 + $0xe0] sm:$0xf0]  ;;  %v1914_v47 = vld [vmem:[%s2191_s30 + $0xcc] sm:$0xf]  ;;  %v1562_v18 = vld [vmem:[%s2191_s30 + $0x78] sm:$0xf0] }
  0x2f   : > { %1163 = vmatpush.bf16.msrb.mxu2 %v1976_v40  ;;  %1084 = vmatmul.bf16.vlgmr.msra.gmra.mxu3 %v1517_v45  ;;  %v1227_v40 = vld [vmem:[%s2299_s27 + $0x30] sm:$0xff]  ;;  %v1608_v45 = vld [vmem:[%s2191_s30 + $0xc8] sm:$0xf]  ;;  %v1592_v27 = vld [vmem:[%s2191_s30 + $0x98] sm:$0xf] }
  0x30   : > { %1192 = vmatpush.bf16.msrb.mxu3 %v1984_v46  ;;  %1236 = vperm.xlu0 %2033, %v1222_v38   ;;  %v1918_v46 = vld [vmem:[%s2191_s30 + $0xe4] sm:$0xf0]  ;;  %v1907_v25 = vld [vmem:[%s2191_s30 + $0x94] sm:$0xf]  ;;  %v1912_v28 = vld [vmem:[%s2191_s30 + $0xb4] sm:$0xf0] }
  0x31   : > { %1106 = vmatpush.bf16.msrb.mxu0 %v1959_v49  ;;  %v1601_v49 = vor.u32 %v1917_v42, %v1600_v41  ;;  %v1586_v26 = vld [vmem:[%s2191_s30 + $0xb0] sm:$0xf0]  ;;  %v1908_v29 = vld [vmem:[%s2191_s30 + $0x9c] sm:$0xf]  ;;  %v1919_v38 = vld [vmem:[%s2191_s30 + $0xec] sm:$0xf0] }
  0x32   : > { %1135 = vmatpush.bf16.msrb.mxu1 %v1967_v51  ;;  %v1609_v51 = vor.u32 %v1918_v46, %v1608_v45  ;;  %v1594_v30 = vld [vmem:[%s2191_s30 + $0xb8] sm:$0xf0]  ;;  %v1915_v39 = vld [vmem:[%s2191_s30 + $0xd4] sm:$0xf]  ;;  %v1624_v41 = vld [vmem:[%s2191_s30 + $0xd8] sm:$0xf] }
  0x33   : > { %1164 = vmatpush.bf16.msrb.mxu2 %v1975_v48  ;;  %v1610_v48 = vld [vmem:[%s2191_s30 + $0xe8] sm:$0xf0]  ;;  %v1920_v42 = vld [vmem:[%s2191_s30 + $0xf4] sm:$0xf0] }
  0x34   : > { %1193 = vmatpush.bf16.msrb.mxu3 %v1983_v50  ;;  %v1605_v50 = vor.u32 %v1913_v43, %v1602_v44  ;;  %v1916_v43 = vld [vmem:[%s2191_s30 + $0xdc] sm:$0xf] }
  0x35   : > { %1107 = vmatpush.bf16.msrb.mxu0 %v1958_v53  ;;  %v1224_v53 = vld [vmem:[%s2299_s27 + $0x18] sm:$0xff] }
  0x36   : > { %1136 = vmatpush.bf16.msrb.mxu1 %v1966_v55  ;;  %v1225_v55 = vld [vmem:[%s2299_s27 + $0x20] sm:$0xff]  ;;  %1246 = vperm.xlu1 %2034, %v1224_v53   ;;  %v1626_v44 = vld [vmem:[%s2191_s30 + $0xf8] sm:$0xf0] }
  0x37   : > { %1165 = vmatpush.bf16.msrb.mxu2 %v1974_v52  ;;  %v1613_v52 = vor.u32 %v1914_v47, %v1610_v48  ;;  %1251 = vperm.xlu2 %2035, %v1225_v55   ;;  %v1625_v47 = vor.u32 %v1920_v42, %v1624_v41  ;;  %v1629_v48 = vor.u32 %v1916_v43, %v1626_v44 }
  0x38   : > { %1194 = vmatpush.bf16.msrb.mxu3 %v1982_v54  ;;  %1261 = vperm.xlu0 %2033, %v1227_v40   ;;  %v1278_v54 = vld [vmem:[%s2356_s5 + $0x8] sm:$0xff]  ;;  %v1618_v40 = vld [vmem:[%s2191_s30 + $0xf0] sm:$0xf0] }
  0x39   : > { %1108 = vmatpush.bf16.msrb.mxu0 %v1957_v58  ;;  %v1520_v58 = vld [vmem:[%s2191_s30 + $0x10] sm:$0xf]  ;;  %v1621_v46 = vor.u32 %v1915_v39, %v1618_v40 }
  0x3a   : > { %1137 = vmatpush.bf16.msrb.mxu1 %v1965_v3  ;;  %v1525_v3 = vor.u32 %v1891_v60, %v1522_v61 }
  0x3b   : > { %1166 = vmatpush.bf16.msrb.mxu2 %v1973_v57  ;;  %v1281_v57 = vld [vmem:[%s2356_s5 + $0x20] sm:$0xff] }
  0x3c   : > { %1195 = vmatpush.bf16.msrb.mxu3 %v1981_v2  ;;  %1002 = vmatmul.bf16.gmra.mxu0 %v1537_v6  ;;  %v1521_v2 = vor.u32 %v1895_v59, %v1520_v58  ;;  %v1226_v6 = vld [vmem:[%s2299_s27 + $0x28] sm:$0xff] }
  0x3d   : > { %1109 = vmatpush.bf16.msrb.mxu0 %v1956_v5  ;;  %1031 = vmatmul.bf16.gmra.mxu1 %v1541_v7  ;;  %v1533_v5 = vor.u32 %v1892_v0, %v1530_v1  ;;  %v1279_v7 = vld [vmem:[%s2356_s5 + $0x10] sm:$0xff] }
  0x3e   : > { %1060 = vmatmul.bf16.gmra.mxu2 %v1545_v8  ;;  %1138 = vmatpush.bf16.msrb.mxu1 %v1964_v11  ;;  %v1284_v8 = vld [vmem:[%s2356_s5 + $0x38] sm:$0xff]  ;;  %v1552_v11 = vld [vmem:[%s2191_s30 + $0x50] sm:$0xf] }
  0x3f   : > { %1167 = vmatpush.bf16.msrb.mxu2 %v1972_v4  ;;  %1089 = vmatmul.bf16.gmra.mxu3 %v1549_v9  ;;  %v1529_v4 = vor.u32 %v1896_v63, %v1528_v62  ;;  %v1277_v9 = vld [vmem:[%s2356_s5] sm:$0xff] }
  0x40   : > { %1196 = vmatpush.bf16.msrb.mxu3 %v1980_v10  ;;  %1292 = vperm.xlu0 %2033, %v1278_v54   ;;  %v1282_v10 = vld [vmem:[%s2356_s5 + $0x28] sm:$0xff] }
  0x41   : > { %1110 = vmatpush.bf16.msrb.mxu0 %v1955_v13  ;;  %1266 = vperm.xlu1 %2034, %v1228_v56   ;;  %v1899_v13 = vld [vmem:[%s2191_s30 + $0x54] sm:$0xf] }
  0x42   : > { %1139 = vmatpush.bf16.msrb.mxu1 %v1963_v15  ;;  %1256 = vperm.xlu2 %2035, %v1226_v6   ;;  %v1560_v15 = vld [vmem:[%s2191_s30 + $0x58] sm:$0xf] }
  0x43   : > { %1168 = vmatpush.bf16.msrb.mxu2 %v1971_v12  ;;  %v1903_v12 = vld [vmem:[%s2191_s30 + $0x6c] sm:$0xf0] }
  0x44   : > { %1197 = vmatpush.bf16.msrb.mxu3 %v1979_v14  ;;  %v1554_v14 = vld [vmem:[%s2191_s30 + $0x70] sm:$0xf0]  ;;  %v1553_v19 = vor.u32 %v1903_v12, %v1552_v11 }
  0x45   : > { %1111 = vmatpush.bf16.msrb.mxu0 %v1954_v17  ;;  %v1900_v17 = vld [vmem:[%s2191_s30 + $0x5c] sm:$0xf] }
  0x46   : > { %1140 = vmatpush.bf16.msrb.mxu1 %v1962_v21  ;;  %v1565_v22 = vor.u32 %v1900_v17, %v1562_v18 }
  0x47   : > { %1169 = vmatpush.bf16.msrb.mxu2 %v1970_v16  ;;  %v1904_v16 = vld [vmem:[%s2191_s30 + $0x74] sm:$0xf0] }
  0x48   : > { %1198 = vmatpush.bf16.msrb.mxu3 %v1978_v20  ;;  %1307 = vperm.xlu0 %2033, %v1281_v57   ;;  %v1557_v20 = vor.u32 %v1899_v13, %v1554_v14  ;;  %v1561_v21 = vor.u32 %v1904_v16, %v1560_v15 }
  0x49   : > { %1112 = vmatpush.bf16.msrb.mxu0 %v1953_v24  ;;  %1297 = vperm.xlu1 %2034, %v1279_v7   ;;  %v1911_v24 = vld [vmem:[%s2191_s30 + $0xac] sm:$0xf0] }
  0x4a   : > { %1141 = vmatpush.bf16.msrb.mxu1 %v1961_v33  ;;  %1287 = vperm.xlu2 %2035, %v1277_v9   ;;  %v1593_v33 = vor.u32 %v1912_v28, %v1592_v27 }
  0x4b   : > { %1170 = vmatpush.bf16.msrb.mxu2 %v1969_v23  ;;  %v1584_v23 = vld [vmem:[%s2191_s30 + $0x90] sm:$0xf] }
  0x4c   : > { %1199 = vmatpush.bf16.msrb.mxu3 %v1977_v32  ;;  %1007 = vmatmul.bf16.gmra.mxu0 %v1569_v34  ;;  %v1585_v31 = vor.u32 %v1911_v24, %v1584_v23  ;;  %v1589_v32 = vor.u32 %v1907_v25, %v1586_v26  ;;  %v1597_v34 = vor.u32 %v1908_v29, %v1594_v30 }
  0x4d   : > { %1036 = vmatmul.bf16.gmra.mxu1 %v1573_v35  ;;  %v1280_v35 = vld [vmem:[%s2356_s5 + $0x18] sm:$0xff] }
  0x4e   : > { %1065 = vmatmul.bf16.gmra.mxu2 %v1577_v36  ;;  %v1283_v36 = vld [vmem:[%s2356_s5 + $0x30] sm:$0xff] }
  0x4f   : > { %1094 = vmatmul.bf16.gmra.mxu3 %v1581_v37  ;;  %v1616_v37 = vld [vmem:[%s2191_s30 + $0xd0] sm:$0xf]  ;;  %s1501_s30 = sshll.u32 %s2476_s21, 2 }
  0x50   : > { %1322 = vperm.xlu0 %2033, %v1284_v8   ;;  %v1617_v45 = vor.u32 %v1919_v38, %v1616_v37  ;;  %s2437_s6 = scalar_lea.vmem %s2470_s4, %s1501_s30 }
  0x51   : > { %1312 = vperm.xlu1 %2034, %v1282_v10  }
  0x52   : > { %1302 = vperm.xlu2 %2035, %v1280_v35  }
  0x5a   : > { %1317 = vperm.xlu2 %2035, %v1283_v36  }
  0x5c   : > { %1012 = vmatmul.bf16.gmra.mxu0 %v1601_v49 }
  0x5d   : > { %1041 = vmatmul.bf16.gmra.mxu1 %v1605_v50 }
  0x5e   : > { %1070 = vmatmul.bf16.gmra.mxu2 %v1609_v51 }
  0x5f   : > { %1099 = vmatmul.bf16.gmra.mxu3 %v1613_v52 }
  0x6c   : > { %1113 = vmatmul.bf16.vlgmr.msrb.gmra.mxu0 %v1521_v2 }
  0x6d   : > { %1142 = vmatmul.bf16.vlgmr.msrb.gmra.mxu1 %v1525_v3 }
  0x6e   : > { %1171 = vmatmul.bf16.vlgmr.msrb.gmra.mxu2 %v1529_v4 }
  0x6f   : > { %1200 = vmatmul.bf16.vlgmr.msrb.gmra.mxu3 %v1533_v5 }
  0x7c   : > { %1118 = vmatmul.bf16.gmra.mxu0 %v1553_v19 }
  0x7d   : > { %1147 = vmatmul.bf16.gmra.mxu1 %v1557_v20 }
  0x7e   : > { %1176 = vmatmul.bf16.gmra.mxu2 %v1561_v21 }
  0x7f   : > { %1205 = vmatmul.bf16.gmra.mxu3 %v1565_v22 }
  0x8c   : > { %1123 = vmatmul.bf16.gmra.mxu0 %v1585_v31 }
  0x8d   : > { %1152 = vmatmul.bf16.gmra.mxu1 %v1589_v32 }
  0x8e   : > { %1181 = vmatmul.bf16.gmra.mxu2 %v1593_v33 }
  0x8f   : > { %1210 = vmatmul.bf16.gmra.mxu3 %v1597_v34 }
  0x91   : > { %v2420_v28 = vpop.permute.xlu2 %1251 }
  0x97   : > { %v1232_v21 = vpop.permute.xlu0 %1231 }
  0x99   : > { %v1242_v29 = vpop.permute.xlu1 %1241 }
  0x9c   : > { %1128 = vmatmul.bf16.gmra.mxu0 %v1617_v45  ;;  %v2426_v38 = vpop.permute.xlu2 %1256 }
  0x9d   : > { %1157 = vmatmul.bf16.gmra.mxu1 %v1621_v46 }
  0x9e   : > { %1186 = vmatmul.bf16.gmra.mxu2 %v1625_v47 }
  0x9f   : > { %1215 = vmatmul.bf16.gmra.mxu3 %v1629_v48 }
  0xa2   : > { %v1237_v34 = vpop.permute.xlu0 %1236 }
  0xa8   : > { %v1247_v48 = vpop.permute.xlu1 %1246 }
  0xa9   : > { %v998_v49 = vpop.f32.mrf.mxu0 }
  0xaa   : > { %v1027_v50 = vpop.f32.mrf.mxu1 }
  0xab   : > { %v1028_v51 = vadd.f32 %v1027_v50, %v998_v49  ;;  %v2428_v49 = vpop.permute.xlu0 %1261 }
  0xb1   : > { %v1056_v52 = vpop.f32.mrf.mxu2  ;;  %v1000_v55 = vpop.f32.mrf.mxu0 }
  0xb2   : > { %v1085_v53 = vpop.f32.mrf.mxu3  ;;  %v1057_v54 = vadd.f32 %v1056_v52, %v1028_v51  ;;  %v1029_v56 = vpop.f32.mrf.mxu1 }
  0xb3   : > { %v1030_v35 = vadd.f32 %v1029_v56, %v1000_v55  ;;  %v1288_v51 = vpop.permute.xlu2 %1287 }
  0xb4   : > { %v1086_v57 = vadd.f32 %v1085_v53, %v1057_v54 }
  0xb9   : > { %v1058_v58 = vpop.f32.mrf.mxu2  ;;  %v1003_v60 = vpop.f32.mrf.mxu0 }
  0xba   : > { %v1087_v59 = vpop.f32.mrf.mxu3  ;;  %v1032_v61 = vpop.f32.mrf.mxu1  ;;  %v1059_v37 = vadd.f32 %v1058_v58, %v1030_v35 }
  0xbb   : > { %v1033_v62 = vadd.f32 %v1032_v61, %v1003_v60 }
  0xbc   : > { %v1088_v42 = vadd.f32 %v1087_v59, %v1059_v37 }
  0xc1   : > { %v1061_v63 = vpop.f32.mrf.mxu2  ;;  %v1005_v2 = vpop.f32.mrf.mxu0 }
  0xc2   : > { %v1090_v0 = vpop.f32.mrf.mxu3  ;;  %v1062_v1 = vadd.f32 %v1061_v63, %v1033_v62  ;;  %v1034_v3 = vpop.f32.mrf.mxu1 }
  0xc3   : > { %v1035_v58 = vadd.f32 %v1034_v3, %v1005_v2 }
  0xc4   : > { %v1091_v4 = vadd.f32 %v1090_v0, %v1062_v1  ;;  %v2430_v0 = vpop.permute.xlu1 %1266  ;;  %v1293_v1 = vpop.permute.xlu0 %1292 }
  0xc9   : > { %v1063_v5 = vpop.f32.mrf.mxu2  ;;  %v1008_v7 = vpop.f32.mrf.mxu0 }
  0xca   : > { %v2402_v6 = vpop.f32.mrf.mxu3  ;;  %v1037_v8 = vpop.f32.mrf.mxu1  ;;  %v1064_v62 = vadd.f32 %v1063_v5, %v1035_v58 }
  0xcb   : > { %v1038_v9 = vadd.f32 %v1037_v8, %v1008_v7 }
  0xd1   : > { %v1066_v10 = vpop.f32.mrf.mxu2  ;;  %v2404_v13 = vpop.f32.mrf.mxu0 }
  0xd2   : > { %v1095_v11 = vpop.f32.mrf.mxu3  ;;  %v1067_v12 = vadd.f32 %v1066_v10, %v1038_v9  ;;  %v2406_v14 = vpop.f32.mrf.mxu1 }
  0xd3   : > { %v1040_v37 = vadd.f32 %v2406_v14, %v2404_v13 }
  0xd4   : > { %v2408_v15 = vadd.f32 %v1095_v11, %v1067_v12  ;;  %v1093_v12 = vadd.f32 %v2402_v6, %v1064_v62  ;;  %v1308_v62 = vpop.permute.xlu0 %1307 }
  0xd9   : > { %v2410_v16 = vpop.f32.mrf.mxu2  ;;  %v1013_v18 = vpop.f32.mrf.mxu0 }
  0xda   : > { %v2412_v17 = vpop.f32.mrf.mxu3  ;;  %v1042_v19 = vpop.f32.mrf.mxu1 }
  0xdb   : > { %v1043_v20 = vadd.f32 %v1042_v19, %v1013_v18 }
  0xe1   : > { %v1071_v22 = vpop.f32.mrf.mxu2  ;;  %v2414_v25 = vpop.f32.mrf.mxu0 }
  0xe2   : > { %v1100_v23 = vpop.f32.mrf.mxu3  ;;  %v1072_v24 = vadd.f32 %v1071_v22, %v1043_v20  ;;  %v2416_v26 = vpop.f32.mrf.mxu1 }
  0xe4   : > { %v2418_v27 = vadd.f32 %v1100_v23, %v1072_v24  ;;  %v1298_v24 = vpop.permute.xlu1 %1297 }
  0xe9   : > { %v2422_v30 = vpop.f32.mrf.mxu2  ;;  %v1114_v32 = vpop.f32.mrf.mxu0 }
  0xea   : > { %v2424_v31 = vpop.f32.mrf.mxu3  ;;  %v1143_v33 = vpop.f32.mrf.mxu1  ;;  %v1115_v36 = vadd.f32 %v1114_v32, %v1086_v57 }
  0xec   : > { %v1144_v39 = vadd.f32 %v1143_v33, %v1115_v36 }
  0xf1   : > { %v1172_v40 = vpop.f32.mrf.mxu2  ;;  %v1116_v44 = vpop.f32.mrf.mxu0 }
  0xf2   : > { %v1201_v41 = vpop.f32.mrf.mxu3  ;;  %v1173_v43 = vadd.f32 %v1172_v40, %v1144_v39  ;;  %v1145_v45 = vpop.f32.mrf.mxu1  ;;  %v1117_v47 = vadd.f32 %v1116_v44, %v1088_v42  ;;  %v1069_v42 = vadd.f32 %v2410_v16, %v1040_v37 }
  0xf3   : > { %v1303_v44 = vpop.permute.xlu2 %1302 }
  0xf4   : > { %v1202_v46 = vadd.f32 %v1201_v41, %v1173_v43  ;;  %v1146_v50 = vadd.f32 %v1145_v45, %v1117_v47 }
  0xf6   : > { %v1269_v52 = vmul.f32 %v1232_v21, %v1202_v46 }
  0xf8   : > { %v1325_v60 = vadd.f32 %v1288_v51, %v1269_v52  ;;  %v1098_v51 = vadd.f32 %v2412_v17, %v1069_v42  ;;  %v1045_v17 = vadd.f32 %v2416_v26, %v2414_v25 }
  0xf9   : > { %v1174_v53 = vpop.f32.mrf.mxu2  ;;  %v1119_v56 = vpop.f32.mrf.mxu0 }
  0xfa   : > { %v1203_v54 = vpop.f32.mrf.mxu3  ;;  %v1175_v55 = vadd.f32 %v1174_v53, %v1146_v50  ;;  %v1148_v57 = vpop.f32.mrf.mxu1  ;;  %v1120_v61 = vadd.f32 %v1119_v56, %v1091_v4  ;;  %v1341_v7 = vmul.f32 0.2, %v1325_v60  ;;  %vm1333_vm0 = vcmp.gt.f32.partialorder %v1325_v60, 0.0 }
  0xfc   : > { %v1204_v59 = vadd.f32 %v1203_v54, %v1175_v55  ;;  %v1149_v9 = vadd.f32 %v1148_v57, %v1120_v61  ;;  %v1349_v4 = vsel %vm1333_vm0, %v1325_v60, %v1341_v7 }
  0xfe   : > { %v1270_v63 = vmul.f32 %v1237_v34, %v1204_v59 }
 0x100   : > { %v1326_v8 = vadd.f32 %v1293_v1, %v1270_v63 }
 0x101   : > { %v1177_v10 = vpop.f32.mrf.mxu2  ;;  %v1121_v3 = vpop.f32.mrf.mxu0 }
 0x102   : > { %v1206_v11 = vpop.f32.mrf.mxu3  ;;  %vm1334_vm1 = vcmp.gt.f32.partialorder %v1326_v8, 0.0  ;;  %v1342_v18 = vmul.f32 0.2, %v1326_v8  ;;  %v1178_v2 = vadd.f32 %v1177_v10, %v1149_v9  ;;  %v1150_v19 = vpop.f32.mrf.mxu1  ;;  %v1122_v21 = vadd.f32 %v1121_v3, %v1093_v12 }
 0x103   : > { %v1074_v9 = vadd.f32 %v2422_v30, %v1045_v17 }
 0x104   : > { %v1350_v5 = vsel %vm1334_vm1, %v1326_v8, %v1342_v18  ;;  %v1207_v20 = vadd.f32 %v1206_v11, %v1178_v2  ;;  %v1151_v23 = vadd.f32 %v1150_v19, %v1122_v21  ;;  %v1313_v11 = vpop.permute.xlu1 %1312 }
 0x105   : > { %v1988_v22 = vpack.c.bf16 %v1350_v5, %v1349_v4  ;;  %v1103_v19 = vadd.f32 %v2424_v31, %v1074_v9 }
 0x106   : > { %v1271_v6 = vmul.f32 %v1242_v29, %v1207_v20 }
 0x107   : > { %1989 = vst [vmem:[%s2437_s6] sm:$0xff] %v1988_v22  }
 0x108   : > { %v1327_v39 = vadd.f32 %v1298_v24, %v1271_v6 }
 0x109   : > { %v1179_v32 = vpop.f32.mrf.mxu2  ;;  %v1124_v35 = vpop.f32.mrf.mxu0 }
 0x10a   : > { %v1208_v33 = vpop.f32.mrf.mxu3  ;;  %v1180_v34 = vadd.f32 %v1179_v32, %v1151_v23  ;;  %v1153_v36 = vpop.f32.mrf.mxu1  ;;  %v1125_v41 = vadd.f32 %v1124_v35, %v2408_v15  ;;  %v1343_v45 = vmul.f32 0.2, %v1327_v39  ;;  %vm1335_vm2 = vcmp.gt.f32.partialorder %v1327_v39, 0.0 }
 0x10b   : > { %v1318_v32 = vpop.permute.xlu2 %1317 }
 0x10c   : > { %v1209_v40 = vadd.f32 %v1208_v33, %v1180_v34  ;;  %v1154_v29 = vadd.f32 %v1153_v36, %v1125_v41  ;;  %v1351_v54 = vsel %vm1335_vm2, %v1327_v39, %v1343_v45  ;;  %v1323_v36 = vpop.permute.xlu0 %1322 }
 0x10e   : > { %v1272_v43 = vmul.f32 %v1247_v48, %v1209_v40 }
 0x110   : > { %v1328_v46 = vadd.f32 %v1303_v44, %v1272_v43 }
 0x111   : > { %v1182_v47 = vpop.f32.mrf.mxu2  ;;  %v1126_v14 = vpop.f32.mrf.mxu0 }
 0x112   : > { %v1211_v50 = vpop.f32.mrf.mxu3  ;;  %vm1336_vm3 = vcmp.gt.f32.partialorder %v1328_v46, 0.0  ;;  %v1344_v52 = vmul.f32 0.2, %v1328_v46  ;;  %v1183_v13 = vadd.f32 %v1182_v47, %v1154_v29  ;;  %v1155_v53 = vpop.f32.mrf.mxu1  ;;  %v1127_v16 = vadd.f32 %v1126_v14, %v1098_v51 }
 0x114   : > { %v1352_v15 = vsel %vm1336_vm3, %v1328_v46, %v1344_v52  ;;  %v1212_v55 = vadd.f32 %v1211_v50, %v1183_v13  ;;  %v1156_v57 = vadd.f32 %v1155_v53, %v1127_v16 }
 0x115   : > { %v1993_v48 = vpack.c.bf16 %v1352_v15, %v1351_v54 }
 0x116   : > { %v1273_v56 = vmul.f32 %v2420_v28, %v1212_v55 }
 0x117   : > { %2005 = vst [vmem:[%s2437_s6 + $0x8] sm:$0xff] %v1993_v48  }
 0x118   : > { %v1329_v63 = vadd.f32 %v1308_v62, %v1273_v56 }
 0x119   : > { %v1184_v58 = vpop.f32.mrf.mxu2  ;;  %v1129_v61 = vpop.f32.mrf.mxu0 }
 0x11a   : > { %v1213_v60 = vpop.f32.mrf.mxu3  ;;  %v1185_v59 = vadd.f32 %v1184_v58, %v1156_v57  ;;  %v1130_v7 = vadd.f32 %v1129_v61, %v2418_v27  ;;  %v1158_v8 = vpop.f32.mrf.mxu1  ;;  %v1345_v28 = vmul.f32 0.2, %v1329_v63  ;;  %vm1337_vm4 = vcmp.gt.f32.partialorder %v1329_v63, 0.0 }
 0x11c   : > { %v1214_v1 = vadd.f32 %v1213_v60, %v1185_v59  ;;  %v1159_v18 = vadd.f32 %v1158_v8, %v1130_v7  ;;  %v1353_v27 = vsel %vm1337_vm4, %v1329_v63, %v1345_v28 }
 0x11e   : > { %v1274_v10 = vmul.f32 %v2426_v38, %v1214_v1 }
 0x120   : > { %v1330_v12 = vadd.f32 %v1313_v11, %v1274_v10 }
 0x121   : > { %v1187_v2 = vpop.f32.mrf.mxu2  ;;  %v1131_v4 = vpop.f32.mrf.mxu0 }
 0x122   : > { %v1216_v3 = vpop.f32.mrf.mxu3  ;;  %vm1338_vm5 = vcmp.gt.f32.partialorder %v1330_v12, 0.0  ;;  %v1346_v25 = vmul.f32 0.2, %v1330_v12  ;;  %v1188_v26 = vadd.f32 %v1187_v2, %v1159_v18  ;;  %v1132_v30 = vadd.f32 %v1131_v4, %v1103_v19  ;;  %v1160_v38 = vpop.f32.mrf.mxu1 }
 0x124   : > { %v1354_v5 = vsel %vm1338_vm5, %v1330_v12, %v1346_v25  ;;  %v1217_v20 = vadd.f32 %v1216_v3, %v1188_v26  ;;  %v1161_v23 = vadd.f32 %v1160_v38, %v1132_v30 }
 0x125   : > { %v1998_v21 = vpack.c.bf16 %v1354_v5, %v1353_v27 }
 0x126   : > { %v1275_v22 = vmul.f32 %v2428_v49, %v1217_v20 }
 0x127   : > { %2006 = vst [vmem:[%s2437_s6 + $0x10] sm:$0xff] %v1998_v21  }
 0x128   : > { %v1331_v31 = vadd.f32 %v1318_v32, %v1275_v22 }
 0x129   : > { %v1189_v24 = vpop.f32.mrf.mxu2 }
 0x12a   : > { %v1190_v6 = vadd.f32 %v1189_v24, %v1161_v23  ;;  %v1218_v33 = vpop.f32.mrf.mxu3  ;;  %v1347_v37 = vmul.f32 0.2, %v1331_v31  ;;  %vm1339_vm6 = vcmp.gt.f32.partialorder %v1331_v31, 0.0 }
 0x12c   : > { %v1219_v34 = vadd.f32 %v1218_v33, %v1190_v6  ;;  %v1355_v41 = vsel %vm1339_vm6, %v1331_v31, %v1347_v37 }
 0x12e   : > { %v1276_v35 = vmul.f32 %v2430_v0, %v1219_v34 }
 0x130   : > { %v1332_v39 = vadd.f32 %v1323_v36, %v1276_v35 }
 0x132   : > { %vm1340_vm7 = vcmp.gt.f32.partialorder %v1332_v39, 0.0  ;;  %v1348_v40 = vmul.f32 0.2, %v1332_v39 }
 0x134   : > { %v1356_v42 = vsel %vm1340_vm7, %v1332_v39, %v1348_v40 }
 0x135   : > { %v2003_v43 = vpack.c.bf16 %v1356_v42, %v1355_v41 }
 0x137   : > { %2007 = vst [vmem:[%s2437_s6 + $0x18] sm:$0xff] %v2003_v43  }
 0x138 PF: > { %s14_s17 = sadd.s32 1, %s2058_s17   ;;  %s2471_s15 = smov %s2054_s16 }
 0x139   : > { %p11_p5 = scmp.ge.s32.totalorder %s14_s17, 4   ;;  %s2472_s16 = smov %s2474_s18 }
 0x13b   :  { %13 = sbr.rel (!%p11_p5) target bundleno = 2 (0x2), region = 75 }

// kernel: d_net128_forward.11
= control target key start
LH: loop header
LB: loop body
LE: loop exit
PB: predicated region body
PF: predicated region fallthrough
CT: control target
= control target key end

     0   :  { %s4656_s15 = smov 0   ;;  %s4658_s16 = smov 0   ;;  %s5611_s0 = inlined_call_operand.vmem [shape: bf16[256,2048], index: 0, kind: input, shape index: {}]   ;;  %s5612_s1 = inlined_call_operand.vmem [shape: bf16[2048,32], index: 1, kind: input, shape index: {}]   ;;  %s5613_s2 = inlined_call_operand.vmem [shape: f32[256,1], index: 2, kind: input, shape index: {}]   ;;  %s5614_s3 = inlined_call_operand.vmem [shape: f32[256,1], index: 3, kind: input, shape index: {}]   ;;  %s5615_s4 = inlined_call_operand.vmem [shape: bf16[256,32], index: 4, kind: output, shape index: {}]  }
   0x1   :  { %s4660_s17 = smov 0  }
   0x2 LB: > { %s26_s18 = sadd.s32 1, %s4624_s16  ;;  %p3285_p0 = scmp.ge.s32.totalorder %s4628_s17, 1  ;;  %s4628_s17 = sphi %s4660_s17, %s14_s17   ;;  %s4624_s16 = sphi %s4658_s16, %s5617_s16   ;;  %s4620_s15 = sphi %s4656_s15, %s5616_s15  }
   0x3   : > { %p28_p1 = scmp.ge.s32.totalorder %s26_s18, 2  ;;  %p209_p2 = scmp.lt.s32.totalorder %s4628_s17, 3 }
   0x5   : > { %s5619_s18 = smov (%p28_p1, %s26_s18), 0  ;;  %p210_p3 = pnand %p3285_p0, %p209_p2 }
   0x6   : > { %s3286_s21 = sshll.u32 (!%p210_p3), %s4620_s15, 4 }
   0x7   : > { %213 = sbr.rel (%p210_p3) target bundleno = 696 (0x2b8), region = 36  ;;  %p254_p4 = scmp.lt.s32.totalorder (!%p210_p3), %s3286_s21, 31 }
   0xc   : > { %v4457_v0 = vld [vmem:[%s5612_s1 + $0x38] sm:$0xff]  ;;  %v4456_v4 = vld [vmem:[%s5612_s1 + $0x30] sm:$0xff]  ;;  %v4455_v8 = vld [vmem:[%s5612_s1 + $0x28] sm:$0xff]  ;;  %s5621_s21 = smov (!%p254_p4, %s3286_s21), 31  ;;  %vm3149_vm1 = vcmask 257024  }
   0xd   : > { %v4465_v1 = vld [vmem:[%s5612_s1 + $0x78] sm:$0xff]  ;;  %2077 = vmatpush.bf16.msra.mxu0 %v4457_v0  ;;  %v4464_v5 = vld [vmem:[%s5612_s1 + $0x70] sm:$0xff]  ;;  %v4463_v9 = vld [vmem:[%s5612_s1 + $0x68] sm:$0xff]  ;;  %s4321_s24 = sshll.u32 %s5621_s21, 6  ;;  %s3290_s12 = sshll.u32 %s5621_s21, 3 }
   0xe   : > { %v4473_v2 = vld [vmem:[%s5612_s1 + $0xb8] sm:$0xff]  ;;  %2126 = vmatpush.bf16.msra.mxu1 %v4465_v1  ;;  %v4472_v6 = vld [vmem:[%s5612_s1 + $0xb0] sm:$0xff]  ;;  %v4471_v10 = vld [vmem:[%s5612_s1 + $0xa8] sm:$0xff]  ;;  %s4761_s30 = scalar_lea.vmem %s5611_s0, %s4321_s24  ;;  %s5299_s19 = scalar_lea.vmem %s5613_s2, %s3290_s12 }
   0xf   : > { %v4481_v3 = vld [vmem:[%s5612_s1 + $0xf8] sm:$0xff]  ;;  %2175 = vmatpush.bf16.msra.mxu2 %v4473_v2  ;;  %v4480_v7 = vld [vmem:[%s5612_s1 + $0xf0] sm:$0xff]  ;;  %v4479_v11 = vld [vmem:[%s5612_s1 + $0xe8] sm:$0xff]  ;;  %s5360_s5 = scalar_lea.vmem %s5614_s3, %s3290_s12 }
  0x10   : > { %2224 = vmatpush.bf16.msra.mxu3 %v4481_v3  ;;  %v4454_v12 = vld [vmem:[%s5612_s1 + $0x20] sm:$0xff]  ;;  %v4453_v16 = vld [vmem:[%s5612_s1 + $0x18] sm:$0xff]  ;;  %v4452_v20 = vld [vmem:[%s5612_s1 + $0x10] sm:$0xff] }
  0x11   : > { %2078 = vmatpush.bf16.msra.mxu0 %v4456_v4  ;;  %v4462_v13 = vld [vmem:[%s5612_s1 + $0x60] sm:$0xff]  ;;  %v4461_v17 = vld [vmem:[%s5612_s1 + $0x58] sm:$0xff]  ;;  %v4460_v21 = vld [vmem:[%s5612_s1 + $0x50] sm:$0xff] }
  0x12   : > { %2127 = vmatpush.bf16.msra.mxu1 %v4464_v5  ;;  %v4470_v14 = vld [vmem:[%s5612_s1 + $0xa0] sm:$0xff]  ;;  %v4469_v18 = vld [vmem:[%s5612_s1 + $0x98] sm:$0xff]  ;;  %v4468_v22 = vld [vmem:[%s5612_s1 + $0x90] sm:$0xff] }
  0x13   : > { %2176 = vmatpush.bf16.msra.mxu2 %v4472_v6  ;;  %v4478_v15 = vld [vmem:[%s5612_s1 + $0xe0] sm:$0xff]  ;;  %v4477_v19 = vld [vmem:[%s5612_s1 + $0xd8] sm:$0xff]  ;;  %v4476_v23 = vld [vmem:[%s5612_s1 + $0xd0] sm:$0xff] }
  0x14   : > { %2225 = vmatpush.bf16.msra.mxu3 %v4480_v7  ;;  %v4451_v24 = vld [vmem:[%s5612_s1 + $0x8] sm:$0xff]  ;;  %v4450_v28 = vld [vmem:[%s5612_s1] sm:$0xff]  ;;  %v4505_v40 = vld [vmem:[%s5612_s1 + $0x1b8] sm:$0xff] }
  0x15   : > { %2079 = vmatpush.bf16.msra.mxu0 %v4455_v8  ;;  %v4459_v25 = vld [vmem:[%s5612_s1 + $0x48] sm:$0xff]  ;;  %v4458_v29 = vld [vmem:[%s5612_s1 + $0x40] sm:$0xff]  ;;  %v4489_v41 = vld [vmem:[%s5612_s1 + $0x138] sm:$0xff] }
  0x16   : > { %2128 = vmatpush.bf16.msra.mxu1 %v4463_v9  ;;  %v4467_v26 = vld [vmem:[%s5612_s1 + $0x88] sm:$0xff]  ;;  %v4466_v30 = vld [vmem:[%s5612_s1 + $0x80] sm:$0xff]  ;;  %v4513_v46 = vld [vmem:[%s5612_s1 + $0x1f8] sm:$0xff] }
  0x17   : > { %2177 = vmatpush.bf16.msra.mxu2 %v4471_v10  ;;  %v4475_v27 = vld [vmem:[%s5612_s1 + $0xc8] sm:$0xff]  ;;  %v4474_v31 = vld [vmem:[%s5612_s1 + $0xc0] sm:$0xff]  ;;  %v4497_v47 = vld [vmem:[%s5612_s1 + $0x178] sm:$0xff] }
  0x18   : > { %2226 = vmatpush.bf16.msra.mxu3 %v4479_v11  ;;  %v3297_v32 = vld [vmem:[%s4761_s30] sm:$0xf]  ;;  %v4322_v34 = vld [vmem:[%s4761_s30 + $0x4] sm:$0xf]  ;;  %v3305_v36 = vld [vmem:[%s4761_s30 + $0x8] sm:$0xf] }
  0x19   : > { %2080 = vmatpush.bf16.msra.mxu0 %v4454_v12  ;;  %v4330_v33 = vld [vmem:[%s4761_s30 + $0x3c] sm:$0xf0]  ;;  %v3299_v35 = vld [vmem:[%s4761_s30 + $0x40] sm:$0xf0]  ;;  %v4331_v37 = vld [vmem:[%s4761_s30 + $0x44] sm:$0xf0] }
  0x1a   : > { %2129 = vmatpush.bf16.msra.mxu1 %v4462_v13  ;;  %v4323_v38 = vld [vmem:[%s4761_s30 + $0xc] sm:$0xf]  ;;  %v3298_v42 = vor.u32 %v4330_v33, %v3297_v32  ;;  %v3302_v43 = vor.u32 %v4322_v34, %v3299_v35  ;;  %v3306_v44 = vor.u32 %v4331_v37, %v3305_v36  ;;  %v4504_v48 = vld [vmem:[%s5612_s1 + $0x1b0] sm:$0xff]  ;;  %v3361_v56 = vld [vmem:[%s4761_s30 + $0x80] sm:$0xf] }
  0x1b   : > { %2178 = vmatpush.bf16.msra.mxu2 %v4470_v14  ;;  %v3307_v39 = vld [vmem:[%s4761_s30 + $0x48] sm:$0xf0]  ;;  %v4488_v49 = vld [vmem:[%s5612_s1 + $0x130] sm:$0xff]  ;;  %v4346_v57 = vld [vmem:[%s4761_s30 + $0xbc] sm:$0xf0] }
  0x1c   : > { %2227 = vmatpush.bf16.msra.mxu3 %v4478_v15  ;;  %v3310_v45 = vor.u32 %v4323_v38, %v3307_v39  ;;  %v4512_v50 = vld [vmem:[%s5612_s1 + $0x1f0] sm:$0xff]  ;;  %v4503_v52 = vld [vmem:[%s5612_s1 + $0x1a8] sm:$0xff]  ;;  %v4338_v58 = vld [vmem:[%s4761_s30 + $0x84] sm:$0xf]  ;;  %v3362_v0 = vor.u32 %v4346_v57, %v3361_v56 }
  0x1d   : > { %2081 = vmatpush.bf16.msra.mxu0 %v4453_v16  ;;  %v4496_v51 = vld [vmem:[%s5612_s1 + $0x170] sm:$0xff]  ;;  %v4487_v53 = vld [vmem:[%s5612_s1 + $0x128] sm:$0xff]  ;;  %v3363_v59 = vld [vmem:[%s4761_s30 + $0xc0] sm:$0xf0] }
  0x1e   : > { %2130 = vmatpush.bf16.msra.mxu1 %v4461_v17  ;;  %v4511_v54 = vld [vmem:[%s5612_s1 + $0x1e8] sm:$0xff]  ;;  %v3366_v1 = vor.u32 %v4338_v58, %v3363_v59  ;;  %v4502_v4 = vld [vmem:[%s5612_s1 + $0x1a0] sm:$0xff]  ;;  %v4500_v36 = vld [vmem:[%s5612_s1 + $0x190] sm:$0xff] }
  0x1f   : > { %2179 = vmatpush.bf16.msra.mxu2 %v4469_v18  ;;  %v4495_v55 = vld [vmem:[%s5612_s1 + $0x168] sm:$0xff]  ;;  %v4486_v5 = vld [vmem:[%s5612_s1 + $0x120] sm:$0xff]  ;;  %v4484_v37 = vld [vmem:[%s5612_s1 + $0x110] sm:$0xff] }
  0x20   : > { %2228 = vmatpush.bf16.msra.mxu3 %v4477_v19  ;;  %v3369_v60 = vld [vmem:[%s4761_s30 + $0x88] sm:$0xf]  ;;  %v4339_v62 = vld [vmem:[%s4761_s30 + $0x8c] sm:$0xf]  ;;  %v4510_v6 = vld [vmem:[%s5612_s1 + $0x1e0] sm:$0xff] }
  0x21   : > { %2082 = vmatpush.bf16.msra.mxu0 %v4452_v20  ;;  %v4347_v61 = vld [vmem:[%s4761_s30 + $0xc4] sm:$0xf0]  ;;  %v3371_v63 = vld [vmem:[%s4761_s30 + $0xc8] sm:$0xf0]  ;;  %v4494_v7 = vld [vmem:[%s5612_s1 + $0x160] sm:$0xff] }
  0x22   : > { %2131 = vmatpush.bf16.msra.mxu1 %v4460_v21  ;;  %v3370_v2 = vor.u32 %v4347_v61, %v3369_v60  ;;  %v3374_v3 = vor.u32 %v4339_v62, %v3371_v63  ;;  %v3425_v8 = vld [vmem:[%s4761_s30 + $0x100] sm:$0xf]  ;;  %v4354_v10 = vld [vmem:[%s4761_s30 + $0x104] sm:$0xf]  ;;  %v3433_v12 = vld [vmem:[%s4761_s30 + $0x108] sm:$0xf] }
  0x23   : > { %2180 = vmatpush.bf16.msra.mxu2 %v4468_v22  ;;  %v4362_v9 = vld [vmem:[%s4761_s30 + $0x13c] sm:$0xf0]  ;;  %v3427_v11 = vld [vmem:[%s4761_s30 + $0x140] sm:$0xf0]  ;;  %v4363_v13 = vld [vmem:[%s4761_s30 + $0x144] sm:$0xf0] }
  0x24   : > { %2229 = vmatpush.bf16.msra.mxu3 %v4476_v23  ;;  %v4355_v14 = vld [vmem:[%s4761_s30 + $0x10c] sm:$0xf]  ;;  %v3426_v16 = vor.u32 %v4362_v9, %v3425_v8  ;;  %v3430_v17 = vor.u32 %v4354_v10, %v3427_v11  ;;  %v3434_v18 = vor.u32 %v4363_v13, %v3433_v12  ;;  %v4501_v20 = vld [vmem:[%s5612_s1 + $0x198] sm:$0xff]  ;;  %v4508_v38 = vld [vmem:[%s5612_s1 + $0x1d0] sm:$0xff] }
  0x25   : > { %2083 = vmatpush.bf16.msra.mxu0 %v4451_v24  ;;  %v3435_v15 = vld [vmem:[%s4761_s30 + $0x148] sm:$0xf0]  ;;  %v4485_v21 = vld [vmem:[%s5612_s1 + $0x118] sm:$0xff]  ;;  %v3489_v24 = vld [vmem:[%s4761_s30 + $0x180] sm:$0xf] }
  0x26   : > { %2132 = vmatpush.bf16.msra.mxu1 %v4459_v25  ;;  %v3438_v19 = vor.u32 %v4355_v14, %v3435_v15  ;;  %v4509_v22 = vld [vmem:[%s5612_s1 + $0x1d8] sm:$0xff]  ;;  %v4378_v25 = vld [vmem:[%s4761_s30 + $0x1bc] sm:$0xf0]  ;;  %v4492_v39 = vld [vmem:[%s5612_s1 + $0x150] sm:$0xff] }
  0x27   : > { %2181 = vmatpush.bf16.msra.mxu2 %v4467_v26  ;;  %v4493_v23 = vld [vmem:[%s5612_s1 + $0x158] sm:$0xff]  ;;  %v4370_v26 = vld [vmem:[%s4761_s30 + $0x184] sm:$0xf]  ;;  %v3490_v32 = vor.u32 %v4378_v25, %v3489_v24  ;;  %v3617_v56 = vld [vmem:[%s4761_s30 + $0x280] sm:$0xf] }
  0x28   : > { %2230 = vmatpush.bf16.msra.mxu3 %v4475_v27  ;;  %v3491_v27 = vld [vmem:[%s4761_s30 + $0x1c0] sm:$0xf0]  ;;  %v4410_v57 = vld [vmem:[%s4761_s30 + $0x2bc] sm:$0xf0]  ;;  %v3625_v60 = vld [vmem:[%s4761_s30 + $0x288] sm:$0xf] }
  0x29   : > { %2084 = vmatpush.bf16.msra.mxu0 %v4450_v28  ;;  %v3497_v28 = vld [vmem:[%s4761_s30 + $0x188] sm:$0xf]  ;;  %v3494_v33 = vor.u32 %v4370_v26, %v3491_v27  ;;  %v4402_v58 = vld [vmem:[%s4761_s30 + $0x284] sm:$0xf]  ;;  %v4403_v62 = vld [vmem:[%s4761_s30 + $0x28c] sm:$0xf] }
  0x2a   : > { %2133 = vmatpush.bf16.msra.mxu1 %v4458_v29  ;;  %v4379_v29 = vld [vmem:[%s4761_s30 + $0x1c4] sm:$0xf0]  ;;  %v3619_v59 = vld [vmem:[%s4761_s30 + $0x2c0] sm:$0xf0]  ;;  %v3627_v63 = vld [vmem:[%s4761_s30 + $0x2c8] sm:$0xf0] }
  0x2b   : > { %2182 = vmatpush.bf16.msra.mxu2 %v4466_v30  ;;  %v4371_v30 = vld [vmem:[%s4761_s30 + $0x18c] sm:$0xf]  ;;  %v3498_v34 = vor.u32 %v4379_v29, %v3497_v28  ;;  %v4411_v61 = vld [vmem:[%s4761_s30 + $0x2c4] sm:$0xf0]  ;;  %v3681_v8 = vld [vmem:[%s4761_s30 + $0x300] sm:$0xf] }
  0x2c   : > { %2231 = vmatpush.bf16.msra.mxu3 %v4474_v31  ;;  %2085 = vmatmul.bf16.vlgmr.msra.gmra.mxu0 %v3298_v42  ;;  %v3499_v31 = vld [vmem:[%s4761_s30 + $0x1c8] sm:$0xf0]  ;;  %v4386_v42 = vld [vmem:[%s4761_s30 + $0x204] sm:$0xf]  ;;  %v4426_v9 = vld [vmem:[%s4761_s30 + $0x33c] sm:$0xf0] }
  0x2d   : > { %2273 = vmatpush.bf16.msrb.mxu0 %v4489_v41  ;;  %2134 = vmatmul.bf16.vlgmr.msra.gmra.mxu1 %v3302_v43  ;;  %v3502_v35 = vor.u32 %v4371_v30, %v3499_v31  ;;  %v4394_v41 = vld [vmem:[%s4761_s30 + $0x23c] sm:$0xf0]  ;;  %v3555_v43 = vld [vmem:[%s4761_s30 + $0x240] sm:$0xf0]  ;;  %v3689_v12 = vld [vmem:[%s4761_s30 + $0x308] sm:$0xf] }
  0x2e   : > { %2183 = vmatmul.bf16.vlgmr.msra.gmra.mxu2 %v3306_v44  ;;  %2322 = vmatpush.bf16.msrb.mxu1 %v4497_v47  ;;  %v3561_v44 = vld [vmem:[%s4761_s30 + $0x208] sm:$0xf]  ;;  %v3563_v47 = vld [vmem:[%s4761_s30 + $0x248] sm:$0xf0]  ;;  %v4418_v10 = vld [vmem:[%s4761_s30 + $0x304] sm:$0xf] }
  0x2f   : > { %2371 = vmatpush.bf16.msrb.mxu2 %v4505_v40  ;;  %2232 = vmatmul.bf16.vlgmr.msra.gmra.mxu3 %v3310_v45  ;;  %v3553_v40 = vld [vmem:[%s4761_s30 + $0x200] sm:$0xf]  ;;  %v4395_v45 = vld [vmem:[%s4761_s30 + $0x244] sm:$0xf0]  ;;  %v3683_v11 = vld [vmem:[%s4761_s30 + $0x340] sm:$0xf0] }
  0x30   : > { %2420 = vmatpush.bf16.msrb.mxu3 %v4513_v46  ;;  %v4387_v46 = vld [vmem:[%s4761_s30 + $0x20c] sm:$0xf]  ;;  %v4427_v13 = vld [vmem:[%s4761_s30 + $0x344] sm:$0xf0]  ;;  %v3745_v24 = vld [vmem:[%s4761_s30 + $0x380] sm:$0xf] }
  0x31   : > { %2274 = vmatpush.bf16.msrb.mxu0 %v4488_v49  ;;  %v3558_v49 = vor.u32 %v4386_v42, %v3555_v43  ;;  %v4419_v14 = vld [vmem:[%s4761_s30 + $0x30c] sm:$0xf]  ;;  %v4442_v25 = vld [vmem:[%s4761_s30 + $0x3bc] sm:$0xf0]  ;;  %v4434_v26 = vld [vmem:[%s4761_s30 + $0x384] sm:$0xf] }
  0x32   : > { %2323 = vmatpush.bf16.msrb.mxu1 %v4496_v51  ;;  %v3566_v51 = vor.u32 %v4387_v46, %v3563_v47  ;;  %v3691_v15 = vld [vmem:[%s4761_s30 + $0x348] sm:$0xf0]  ;;  %v3747_v27 = vld [vmem:[%s4761_s30 + $0x3c0] sm:$0xf0]  ;;  %v3753_v28 = vld [vmem:[%s4761_s30 + $0x388] sm:$0xf] }
  0x33   : > { %2372 = vmatpush.bf16.msrb.mxu2 %v4504_v48  ;;  %v3554_v48 = vor.u32 %v4394_v41, %v3553_v40  ;;  %v4443_v29 = vld [vmem:[%s4761_s30 + $0x3c4] sm:$0xf0]  ;;  %v4435_v30 = vld [vmem:[%s4761_s30 + $0x38c] sm:$0xf]  ;;  %v3313_v40 = vld [vmem:[%s4761_s30 + $0x10] sm:$0xf] }
  0x34   : > { %2421 = vmatpush.bf16.msrb.mxu3 %v4512_v50  ;;  %v3562_v50 = vor.u32 %v4395_v45, %v3561_v44  ;;  %v3755_v31 = vld [vmem:[%s4761_s30 + $0x3c8] sm:$0xf0]  ;;  %v4332_v41 = vld [vmem:[%s4761_s30 + $0x4c] sm:$0xf0]  ;;  %v4324_v42 = vld [vmem:[%s4761_s30 + $0x14] sm:$0xf] }
  0x35   : > { %2275 = vmatpush.bf16.msrb.mxu0 %v4487_v53  ;;  %v4483_v53 = vld [vmem:[%s5612_s1 + $0x108] sm:$0xff]  ;;  %v3315_v43 = vld [vmem:[%s4761_s30 + $0x50] sm:$0xf0]  ;;  %v3321_v44 = vld [vmem:[%s4761_s30 + $0x18] sm:$0xf] }
  0x36   : > { %2324 = vmatpush.bf16.msrb.mxu1 %v4495_v55  ;;  %v4491_v55 = vld [vmem:[%s5612_s1 + $0x148] sm:$0xff]  ;;  %v4333_v45 = vld [vmem:[%s4761_s30 + $0x54] sm:$0xf0]  ;;  %v4325_v46 = vld [vmem:[%s4761_s30 + $0x1c] sm:$0xf] }
  0x37   : > { %2373 = vmatpush.bf16.msrb.mxu2 %v4503_v52  ;;  %v4499_v52 = vld [vmem:[%s5612_s1 + $0x188] sm:$0xff]  ;;  %v3323_v47 = vld [vmem:[%s4761_s30 + $0x58] sm:$0xf0] }
  0x38   : > { %2422 = vmatpush.bf16.msrb.mxu3 %v4511_v54  ;;  %v4507_v54 = vld [vmem:[%s5612_s1 + $0x1c8] sm:$0xff] }
  0x39   : > { %2276 = vmatpush.bf16.msrb.mxu0 %v4486_v5  ;;  %v4482_v5 = vld [vmem:[%s5612_s1 + $0x100] sm:$0xff] }
  0x3a   : > { %2325 = vmatpush.bf16.msrb.mxu1 %v4494_v7  ;;  %v4490_v7 = vld [vmem:[%s5612_s1 + $0x140] sm:$0xff] }
  0x3b   : > { %2374 = vmatpush.bf16.msrb.mxu2 %v4502_v4  ;;  %v4498_v4 = vld [vmem:[%s5612_s1 + $0x180] sm:$0xff] }
  0x3c   : > { %2090 = vmatmul.bf16.gmra.mxu0 %v3362_v0  ;;  %2423 = vmatpush.bf16.msrb.mxu3 %v4510_v6  ;;  %v3618_v0 = vor.u32 %v4410_v57, %v3617_v56  ;;  %v4506_v6 = vld [vmem:[%s5612_s1 + $0x1c0] sm:$0xff]  ;;  %v4519_v56 = vld [vmem:[%s5612_s1 + $0x228] sm:$0xff] }
  0x3d   : > { %2139 = vmatmul.bf16.gmra.mxu1 %v3366_v1  ;;  %2277 = vmatpush.bf16.msrb.mxu0 %v4485_v21  ;;  %v3622_v1 = vor.u32 %v4402_v58, %v3619_v59  ;;  %v4521_v21 = vld [vmem:[%s5612_s1 + $0x238] sm:$0xff]  ;;  %v4543_v57 = vld [vmem:[%s5612_s1 + $0x2e8] sm:$0xff] }
  0x3e   : > { %2188 = vmatmul.bf16.gmra.mxu2 %v3370_v2  ;;  %2326 = vmatpush.bf16.msrb.mxu1 %v4493_v23  ;;  %v3626_v2 = vor.u32 %v4411_v61, %v3625_v60  ;;  %v4529_v23 = vld [vmem:[%s5612_s1 + $0x278] sm:$0xff] }
  0x3f   : > { %2237 = vmatmul.bf16.gmra.mxu3 %v3374_v3  ;;  %2375 = vmatpush.bf16.msrb.mxu2 %v4501_v20  ;;  %v3630_v3 = vor.u32 %v4403_v62, %v3627_v63  ;;  %v4537_v20 = vld [vmem:[%s5612_s1 + $0x2b8] sm:$0xff] }
  0x40   : > { %2424 = vmatpush.bf16.msrb.mxu3 %v4509_v22  ;;  %v4545_v22 = vld [vmem:[%s5612_s1 + $0x2f8] sm:$0xff] }
  0x41   : > { %2278 = vmatpush.bf16.msrb.mxu0 %v4484_v37  ;;  %v4520_v37 = vld [vmem:[%s5612_s1 + $0x230] sm:$0xff] }
  0x42   : > { %2327 = vmatpush.bf16.msrb.mxu1 %v4492_v39  ;;  %v4528_v39 = vld [vmem:[%s5612_s1 + $0x270] sm:$0xff] }
  0x43   : > { %2376 = vmatpush.bf16.msrb.mxu2 %v4500_v36  ;;  %v4536_v36 = vld [vmem:[%s5612_s1 + $0x2b0] sm:$0xff] }
  0x44   : > { %2425 = vmatpush.bf16.msrb.mxu3 %v4508_v38  ;;  %v4544_v38 = vld [vmem:[%s5612_s1 + $0x2f0] sm:$0xff] }
  0x45   : > { %2279 = vmatpush.bf16.msrb.mxu0 %v4483_v53  ;;  %v3326_v53 = vor.u32 %v4325_v46, %v3323_v47 }
  0x46   : > { %2328 = vmatpush.bf16.msrb.mxu1 %v4491_v55  ;;  %v4535_v55 = vld [vmem:[%s5612_s1 + $0x2a8] sm:$0xff] }
  0x47   : > { %2377 = vmatpush.bf16.msrb.mxu2 %v4499_v52  ;;  %v3322_v52 = vor.u32 %v4333_v45, %v3321_v44 }
  0x48   : > { %2426 = vmatpush.bf16.msrb.mxu3 %v4507_v54 }
  0x49   : > { %2280 = vmatpush.bf16.msrb.mxu0 %v4482_v5  ;;  %v3379_v5 = vld [vmem:[%s4761_s30 + $0xd0] sm:$0xf0] }
  0x4a   : > { %2329 = vmatpush.bf16.msrb.mxu1 %v4490_v7  ;;  %v4349_v7 = vld [vmem:[%s4761_s30 + $0xd4] sm:$0xf0] }
  0x4b   : > { %2378 = vmatpush.bf16.msrb.mxu2 %v4498_v4  ;;  %v4340_v4 = vld [vmem:[%s4761_s30 + $0x94] sm:$0xf] }
  0x4c   : > { %2095 = vmatmul.bf16.gmra.mxu0 %v3426_v16  ;;  %2427 = vmatpush.bf16.msrb.mxu3 %v4506_v6  ;;  %v3682_v16 = vor.u32 %v4426_v9, %v3681_v8  ;;  %v3385_v6 = vld [vmem:[%s4761_s30 + $0x98] sm:$0xf]  ;;  %v4341_v8 = vld [vmem:[%s4761_s30 + $0x9c] sm:$0xf] }
  0x4d   : > { %2144 = vmatmul.bf16.gmra.mxu1 %v3430_v17  ;;  %v3686_v17 = vor.u32 %v4418_v10, %v3683_v11  ;;  %2469 = vmatpush.bf16.msra.mxu0 %v4521_v21  ;;  %v3387_v9 = vld [vmem:[%s4761_s30 + $0xd8] sm:$0xf0]  ;;  %v4534_v21 = vld [vmem:[%s5612_s1 + $0x2a0] sm:$0xff] }
  0x4e   : > { %2193 = vmatmul.bf16.gmra.mxu2 %v3434_v18  ;;  %v3690_v18 = vor.u32 %v4427_v13, %v3689_v12  ;;  %2518 = vmatpush.bf16.msra.mxu1 %v4529_v23  ;;  %v3382_v13 = vor.u32 %v4340_v4, %v3379_v5  ;;  %v4542_v23 = vld [vmem:[%s5612_s1 + $0x2e0] sm:$0xff]  ;;  %v4381_v4 = vld [vmem:[%s4761_s30 + $0x1d4] sm:$0xf0]  ;;  %v4373_v5 = vld [vmem:[%s4761_s30 + $0x19c] sm:$0xf] }
  0x4f   : > { %2242 = vmatmul.bf16.gmra.mxu3 %v3438_v19  ;;  %v3694_v19 = vor.u32 %v4419_v14, %v3691_v15  ;;  %2567 = vmatpush.bf16.msra.mxu2 %v4537_v20 }
  0x50   : > { %2616 = vmatpush.bf16.msra.mxu3 %v4545_v22  ;;  %v4518_v22 = vld [vmem:[%s5612_s1 + $0x220] sm:$0xff] }
  0x51   : > { %2470 = vmatpush.bf16.msra.mxu0 %v4520_v37  ;;  %v4365_v37 = vld [vmem:[%s4761_s30 + $0x154] sm:$0xf0] }
  0x52   : > { %2519 = vmatpush.bf16.msra.mxu1 %v4528_v39  ;;  %v3451_v39 = vld [vmem:[%s4761_s30 + $0x158] sm:$0xf0] }
  0x53   : > { %2568 = vmatpush.bf16.msra.mxu2 %v4536_v36  ;;  %v3449_v36 = vld [vmem:[%s4761_s30 + $0x118] sm:$0xf] }
  0x54   : > { %2617 = vmatpush.bf16.msra.mxu3 %v4544_v38  ;;  %v4357_v38 = vld [vmem:[%s4761_s30 + $0x11c] sm:$0xf]  ;;  %v3450_v47 = vor.u32 %v4365_v37, %v3449_v36  ;;  %v4397_v36 = vld [vmem:[%s4761_s30 + $0x254] sm:$0xf0] }
  0x55   : > { %2471 = vmatpush.bf16.msra.mxu0 %v4519_v56  ;;  %v4389_v37 = vld [vmem:[%s4761_s30 + $0x21c] sm:$0xf] }
  0x57   : > { %2569 = vmatpush.bf16.msra.mxu2 %v4535_v55 }
  0x58   : > { %2618 = vmatpush.bf16.msra.mxu3 %v4543_v57 }
  0x59   : > { %2472 = vmatpush.bf16.msra.mxu0 %v4518_v22 }
  0x5b   : > { %2570 = vmatpush.bf16.msra.mxu2 %v4534_v21  ;;  %v4540_v21 = vld [vmem:[%s5612_s1 + $0x2d0] sm:$0xff] }
  0x5c   : > { %2100 = vmatmul.bf16.gmra.mxu0 %v3490_v32  ;;  %v3746_v32 = vor.u32 %v4442_v25, %v3745_v24  ;;  %2619 = vmatpush.bf16.msra.mxu3 %v4542_v23 }
  0x5d   : > { %2149 = vmatmul.bf16.gmra.mxu1 %v3494_v33  ;;  %v3750_v33 = vor.u32 %v4434_v26, %v3747_v27 }
  0x5e   : > { %2198 = vmatmul.bf16.gmra.mxu2 %v3498_v34  ;;  %v3754_v34 = vor.u32 %v4443_v29, %v3753_v28 }
  0x5f   : > { %2247 = vmatmul.bf16.gmra.mxu3 %v3502_v35  ;;  %v3758_v35 = vor.u32 %v4435_v30, %v3755_v31  ;;  %v4526_v31 = vld [vmem:[%s5612_s1 + $0x260] sm:$0xff] }
  0x6c   : > { %2105 = vmatmul.bf16.gmra.mxu0 %v3554_v48  ;;  %v3314_v48 = vor.u32 %v4332_v41, %v3313_v40 }
  0x6d   : > { %2154 = vmatmul.bf16.gmra.mxu1 %v3558_v49  ;;  %v3318_v49 = vor.u32 %v4324_v42, %v3315_v43 }
  0x6e   : > { %2203 = vmatmul.bf16.gmra.mxu2 %v3562_v50 }
  0x6f   : > { %2252 = vmatmul.bf16.gmra.mxu3 %v3566_v51 }
  0x7c   : > { %2110 = vmatmul.bf16.gmra.mxu0 %v3618_v0 }
  0x7d   : > { %2159 = vmatmul.bf16.gmra.mxu1 %v3622_v1  ;;  %v4527_v1 = vld [vmem:[%s5612_s1 + $0x268] sm:$0xff] }
  0x7e   : > { %2208 = vmatmul.bf16.gmra.mxu2 %v3626_v2  ;;  %v3377_v2 = vld [vmem:[%s4761_s30 + $0x90] sm:$0xf]  ;;  %2520 = vmatpush.bf16.msra.mxu1 %v4527_v1  ;;  %v4372_v1 = vld [vmem:[%s4761_s30 + $0x194] sm:$0xf] }
  0x7f   : > { %2257 = vmatmul.bf16.gmra.mxu3 %v3630_v3  ;;  %v4348_v3 = vld [vmem:[%s4761_s30 + $0xcc] sm:$0xf0] }
  0x80   : > { %v3378_v12 = vor.u32 %v4348_v3, %v3377_v2  ;;  %v3507_v2 = vld [vmem:[%s4761_s30 + $0x1d0] sm:$0xf0]  ;;  %v3513_v3 = vld [vmem:[%s4761_s30 + $0x198] sm:$0xf] }
  0x82   : > { %2521 = vmatpush.bf16.msra.mxu1 %v4526_v31  ;;  %v3569_v31 = vld [vmem:[%s4761_s30 + $0x210] sm:$0xf] }
  0x8c   : > { %2115 = vmatmul.bf16.gmra.mxu0 %v3682_v16 }
  0x8d   : > { %2164 = vmatmul.bf16.gmra.mxu1 %v3686_v17  ;;  %v3386_v17 = vor.u32 %v4349_v7, %v3385_v6  ;;  %v3515_v6 = vld [vmem:[%s4761_s30 + $0x1d8] sm:$0xf0] }
  0x8e   : > { %2213 = vmatmul.bf16.gmra.mxu2 %v3690_v18  ;;  %v3390_v18 = vor.u32 %v4341_v8, %v3387_v9 }
  0x8f   : > { %2262 = vmatmul.bf16.gmra.mxu3 %v3694_v19 }
  0x9c   : > { %2120 = vmatmul.bf16.gmra.mxu0 %v3746_v32  ;;  %v3441_v32 = vld [vmem:[%s4761_s30 + $0x110] sm:$0xf] }
  0x9d   : > { %2169 = vmatmul.bf16.gmra.mxu1 %v3750_v33  ;;  %v4364_v33 = vld [vmem:[%s4761_s30 + $0x14c] sm:$0xf0] }
  0x9e   : > { %2218 = vmatmul.bf16.gmra.mxu2 %v3754_v34  ;;  %v4356_v34 = vld [vmem:[%s4761_s30 + $0x114] sm:$0xf]  ;;  %v3442_v42 = vor.u32 %v4364_v33, %v3441_v32  ;;  %v4396_v32 = vld [vmem:[%s4761_s30 + $0x24c] sm:$0xf0] }
  0x9f   : > { %2267 = vmatmul.bf16.gmra.mxu3 %v3758_v35  ;;  %v3443_v35 = vld [vmem:[%s4761_s30 + $0x150] sm:$0xf0] }
  0xa0   : > { %v3446_v43 = vor.u32 %v4356_v34, %v3443_v35  ;;  %v4388_v33 = vld [vmem:[%s4761_s30 + $0x214] sm:$0xf]  ;;  %v3577_v35 = vld [vmem:[%s4761_s30 + $0x218] sm:$0xf] }
  0xa1   : > { %v3571_v34 = vld [vmem:[%s4761_s30 + $0x250] sm:$0xf0] }
  0xa9   : > { %v2086_v50 = vpop.f32.mrf.mxu0 }
  0xaa   : > { %v2135_v51 = vpop.f32.mrf.mxu1 }
  0xab   : > { %v2136_v54 = vadd.f32 %v2135_v51, %v2086_v50  ;;  %v4533_v51 = vld [vmem:[%s5612_s1 + $0x298] sm:$0xff] }
  0xac   : > { %2281 = vmatmul.bf16.vlgmr.msrb.gmra.mxu0 %v3314_v48  ;;  %v3454_v48 = vor.u32 %v4357_v38, %v3451_v39  ;;  %2571 = vmatpush.bf16.msra.mxu2 %v4533_v51  ;;  %v3579_v38 = vld [vmem:[%s4761_s30 + $0x258] sm:$0xf0]  ;;  %v4531_v51 = vld [vmem:[%s5612_s1 + $0x288] sm:$0xff] }
  0xad   : > { %2330 = vmatmul.bf16.vlgmr.msrb.gmra.mxu1 %v3318_v49 }
  0xae   : > { %2379 = vmatmul.bf16.vlgmr.msrb.gmra.mxu2 %v3322_v52  ;;  %v4517_v52 = vld [vmem:[%s5612_s1 + $0x218] sm:$0xff] }
  0xaf   : > { %2428 = vmatmul.bf16.vlgmr.msrb.gmra.mxu3 %v3326_v53  ;;  %v4541_v53 = vld [vmem:[%s5612_s1 + $0x2d8] sm:$0xff]  ;;  %2473 = vmatpush.bf16.msra.mxu0 %v4517_v52  ;;  %v4515_v52 = vld [vmem:[%s5612_s1 + $0x208] sm:$0xff] }
  0xb0   : > { %2620 = vmatpush.bf16.msra.mxu3 %v4541_v53  ;;  %v4539_v53 = vld [vmem:[%s5612_s1 + $0x2c8] sm:$0xff] }
  0xb1   : > { %v2184_v58 = vpop.f32.mrf.mxu2  ;;  %v2088_v61 = vpop.f32.mrf.mxu0 }
  0xb2   : > { %v2233_v59 = vpop.f32.mrf.mxu3  ;;  %v2185_v60 = vadd.f32 %v2184_v58, %v2136_v54  ;;  %v2137_v62 = vpop.f32.mrf.mxu1 }
  0xb3   : > { %v2138_v63 = vadd.f32 %v2137_v62, %v2088_v61  ;;  %v4525_v61 = vld [vmem:[%s5612_s1 + $0x258] sm:$0xff]  ;;  %v3505_v62 = vld [vmem:[%s4761_s30 + $0x190] sm:$0xf] }
  0xb4   : > { %v4982_v0 = vadd.f32 %v2233_v59, %v2185_v60  ;;  %2522 = vmatpush.bf16.msra.mxu1 %v4525_v61  ;;  %2621 = vmatpush.bf16.msra.mxu3 %v4540_v21  ;;  %v4530_v21 = vld [vmem:[%s5612_s1 + $0x280] sm:$0xff] }
  0xb8   : > { %2622 = vmatpush.bf16.msra.mxu3 %v4539_v53 }
  0xb9   : > { %v2186_v10 = vpop.f32.mrf.mxu2  ;;  %v2091_v15 = vpop.f32.mrf.mxu0 }
  0xba   : > { %v2235_v11 = vpop.f32.mrf.mxu3  ;;  %v2187_v14 = vadd.f32 %v2186_v10, %v2138_v63  ;;  %v2140_v16 = vpop.f32.mrf.mxu1  ;;  %v4380_v63 = vld [vmem:[%s4761_s30 + $0x1cc] sm:$0xf0]  ;;  %v3510_v10 = vor.u32 %v4372_v1, %v3507_v2  ;;  %v4404_v2 = vld [vmem:[%s4761_s30 + $0x294] sm:$0xf] }
  0xbb   : > { %v2141_v19 = vadd.f32 %v2140_v16, %v2091_v15  ;;  %v3506_v9 = vor.u32 %v4380_v63, %v3505_v62  ;;  %v3518_v15 = vor.u32 %v4373_v5, %v3515_v6  ;;  %v4523_v62 = vld [vmem:[%s5612_s1 + $0x248] sm:$0xff]  ;;  %v3633_v63 = vld [vmem:[%s4761_s30 + $0x290] sm:$0xf]  ;;  %v4413_v5 = vld [vmem:[%s4761_s30 + $0x2d4] sm:$0xf0] }
  0xbc   : > { %v4995_v20 = vadd.f32 %v2235_v11, %v2187_v14  ;;  %2286 = vmatmul.bf16.gmra.mxu0 %v3378_v12  ;;  %v3514_v14 = vor.u32 %v4381_v4, %v3513_v3  ;;  %v4412_v1 = vld [vmem:[%s4761_s30 + $0x2cc] sm:$0xf0]  ;;  %v3635_v3 = vld [vmem:[%s4761_s30 + $0x2d0] sm:$0xf0]  ;;  %v3641_v4 = vld [vmem:[%s4761_s30 + $0x298] sm:$0xf] }
  0xbd   : > { %2335 = vmatmul.bf16.gmra.mxu1 %v3382_v13  ;;  %v4405_v6 = vld [vmem:[%s4761_s30 + $0x29c] sm:$0xf] }
  0xbe   : > { %2384 = vmatmul.bf16.gmra.mxu2 %v3386_v17 }
  0xbf   : > { %2433 = vmatmul.bf16.gmra.mxu3 %v3390_v18  ;;  %v4532_v18 = vld [vmem:[%s5612_s1 + $0x290] sm:$0xff] }
  0xc0   : > { %2572 = vmatpush.bf16.msra.mxu2 %v4532_v18 }
  0xc1   : > { %v2189_v24 = vpop.f32.mrf.mxu2  ;;  %v2093_v27 = vpop.f32.mrf.mxu0 }
  0xc2   : > { %v2238_v25 = vpop.f32.mrf.mxu3  ;;  %v2190_v26 = vadd.f32 %v2189_v24, %v2141_v19  ;;  %v2142_v28 = vpop.f32.mrf.mxu1  ;;  %v4516_v19 = vld [vmem:[%s5612_s1 + $0x210] sm:$0xff] }
  0xc3   : > { %v2143_v29 = vadd.f32 %v2142_v28, %v2093_v27  ;;  %2474 = vmatpush.bf16.msra.mxu0 %v4516_v19 }
  0xc4   : > { %v5006_v30 = vadd.f32 %v2238_v25, %v2190_v26  ;;  %2573 = vmatpush.bf16.msra.mxu2 %v4531_v51 }
  0xc7   : > { %2475 = vmatpush.bf16.msra.mxu0 %v4515_v52 }
  0xc8   : > { %2574 = vmatpush.bf16.msra.mxu2 %v4530_v21 }
  0xc9   : > { %v2191_v40 = vpop.f32.mrf.mxu2  ;;  %v2096_v45 = vpop.f32.mrf.mxu0 }
  0xca   : > { %v2240_v41 = vpop.f32.mrf.mxu3  ;;  %v2192_v44 = vadd.f32 %v2191_v40, %v2143_v29  ;;  %v2145_v46 = vpop.f32.mrf.mxu1  ;;  %v4524_v29 = vld [vmem:[%s5612_s1 + $0x250] sm:$0xff] }
  0xcb   : > { %v2146_v49 = vadd.f32 %v2145_v46, %v2096_v45  ;;  %2523 = vmatpush.bf16.msra.mxu1 %v4524_v29  ;;  %v3578_v46 = vor.u32 %v4397_v36, %v3577_v35  ;;  %v4428_v35 = vld [vmem:[%s4761_s30 + $0x34c] sm:$0xf0]  ;;  %v4420_v36 = vld [vmem:[%s4761_s30 + $0x314] sm:$0xf] }
  0xcc   : > { %v5019_v50 = vadd.f32 %v2240_v41, %v2192_v44  ;;  %2291 = vmatmul.bf16.gmra.mxu0 %v3442_v42  ;;  %v3570_v41 = vor.u32 %v4396_v32, %v3569_v31  ;;  %v3574_v42 = vor.u32 %v4388_v33, %v3571_v34  ;;  %v4522_v33 = vld [vmem:[%s5612_s1 + $0x240] sm:$0xff]  ;;  %v3697_v34 = vld [vmem:[%s4761_s30 + $0x310] sm:$0xf] }
  0xcd   : > { %2340 = vmatmul.bf16.gmra.mxu1 %v3446_v43 }
  0xce   : > { %2389 = vmatmul.bf16.gmra.mxu2 %v3450_v47  ;;  %v3582_v47 = vor.u32 %v4389_v37, %v3579_v38  ;;  %v3699_v37 = vld [vmem:[%s4761_s30 + $0x350] sm:$0xf0]  ;;  %v3705_v38 = vld [vmem:[%s4761_s30 + $0x318] sm:$0xf] }
  0xcf   : > { %2438 = vmatmul.bf16.gmra.mxu3 %v3454_v48  ;;  %2524 = vmatpush.bf16.msra.mxu1 %v4523_v62 }
  0xd1   : > { %v2194_v54 = vpop.f32.mrf.mxu2  ;;  %v2098_v57 = vpop.f32.mrf.mxu0 }
  0xd2   : > { %v2243_v55 = vpop.f32.mrf.mxu3  ;;  %v2195_v56 = vadd.f32 %v2194_v54, %v2146_v49  ;;  %v2147_v58 = vpop.f32.mrf.mxu1 }
  0xd3   : > { %v2148_v59 = vadd.f32 %v2147_v58, %v2098_v57  ;;  %2525 = vmatpush.bf16.msra.mxu1 %v4522_v33 }
  0xd4   : > { %v5030_v60 = vadd.f32 %v2243_v55, %v2195_v56 }
  0xd9   : > { %v2196_v7 = vpop.f32.mrf.mxu2  ;;  %v2101_v12 = vpop.f32.mrf.mxu0 }
  0xda   : > { %v2245_v8 = vpop.f32.mrf.mxu3  ;;  %v2197_v11 = vadd.f32 %v2196_v7, %v2148_v59  ;;  %v2150_v13 = vpop.f32.mrf.mxu1  ;;  %v3643_v7 = vld [vmem:[%s4761_s30 + $0x2d8] sm:$0xf0] }
  0xdb   : > { %v2151_v16 = vadd.f32 %v2150_v13, %v2101_v12 }
  0xdc   : > { %v5043_v17 = vadd.f32 %v2245_v8, %v2197_v11  ;;  %2296 = vmatmul.bf16.gmra.mxu0 %v3506_v9  ;;  %v3638_v11 = vor.u32 %v4404_v2, %v3635_v3 }
  0xdd   : > { %2345 = vmatmul.bf16.gmra.mxu1 %v3510_v10  ;;  %v3634_v10 = vor.u32 %v4412_v1, %v3633_v63 }
  0xde   : > { %2394 = vmatmul.bf16.gmra.mxu2 %v3514_v14 }
  0xdf   : > { %2443 = vmatmul.bf16.gmra.mxu3 %v3518_v15  ;;  %v3642_v15 = vor.u32 %v4413_v5, %v3641_v4  ;;  %v4561_v4 = vld [vmem:[%s5612_s1 + $0x378] sm:$0xff]  ;;  %v3761_v5 = vld [vmem:[%s4761_s30 + $0x390] sm:$0xf] }
  0xe0   : > { %2714 = vmatpush.bf16.msrb.mxu1 %v4561_v4  ;;  %v4567_v4 = vld [vmem:[%s5612_s1 + $0x3a8] sm:$0xff] }
  0xe1   : > { %v2199_v22 = vpop.f32.mrf.mxu2  ;;  %v2103_v25 = vpop.f32.mrf.mxu0 }
  0xe2   : > { %v2248_v23 = vpop.f32.mrf.mxu3  ;;  %v2200_v24 = vadd.f32 %v2199_v22, %v2151_v16  ;;  %v2152_v26 = vpop.f32.mrf.mxu1  ;;  %v3646_v16 = vor.u32 %v4405_v6, %v3643_v7  ;;  %v4514_v22 = vld [vmem:[%s5612_s1 + $0x200] sm:$0xff]  ;;  %v4444_v6 = vld [vmem:[%s4761_s30 + $0x3cc] sm:$0xf0]  ;;  %v4436_v7 = vld [vmem:[%s4761_s30 + $0x394] sm:$0xf] }
  0xe3   : > { %v2153_v27 = vadd.f32 %v2152_v26, %v2103_v25  ;;  %2476 = vmatpush.bf16.msra.mxu0 %v4514_v22 }
  0xe4   : > { %v5054_v28 = vadd.f32 %v2248_v23, %v2200_v24  ;;  %v4538_v23 = vld [vmem:[%s5612_s1 + $0x2c0] sm:$0xff] }
  0xe5   : > { %2623 = vmatpush.bf16.msra.mxu3 %v4538_v23 }
  0xe9   : > { %v2201_v39 = vpop.f32.mrf.mxu2  ;;  %v2106_v44 = vpop.f32.mrf.mxu0 }
  0xea   : > { %v2250_v40 = vpop.f32.mrf.mxu3  ;;  %v2202_v43 = vadd.f32 %v2201_v39, %v2153_v27  ;;  %v2155_v45 = vpop.f32.mrf.mxu1  ;;  %v4429_v39 = vld [vmem:[%s4761_s30 + $0x354] sm:$0xf0] }
  0xeb   : > { %v2156_v48 = vadd.f32 %v2155_v45, %v2106_v44  ;;  %v3698_v44 = vor.u32 %v4428_v35, %v3697_v34  ;;  %v3702_v45 = vor.u32 %v4420_v36, %v3699_v37  ;;  %v3706_v51 = vor.u32 %v4429_v39, %v3705_v38 }
  0xec   : > { %v5067_v49 = vadd.f32 %v2250_v40, %v2202_v43  ;;  %2301 = vmatmul.bf16.gmra.mxu0 %v3570_v41  ;;  %v4421_v40 = vld [vmem:[%s4761_s30 + $0x31c] sm:$0xf] }
  0xed   : > { %2350 = vmatmul.bf16.gmra.mxu1 %v3574_v42  ;;  %v3707_v41 = vld [vmem:[%s4761_s30 + $0x358] sm:$0xf0] }
  0xee   : > { %2399 = vmatmul.bf16.gmra.mxu2 %v3578_v46  ;;  %v3710_v52 = vor.u32 %v4421_v40, %v3707_v41  ;;  %v4560_v40 = vld [vmem:[%s5612_s1 + $0x370] sm:$0xff]  ;;  %v3329_v41 = vld [vmem:[%s4761_s30 + $0x20] sm:$0xf] }
  0xef   : > { %2448 = vmatmul.bf16.gmra.mxu3 %v3582_v47  ;;  %2715 = vmatpush.bf16.msrb.mxu1 %v4560_v40 }
  0xf1   : > { %v2204_v54 = vpop.f32.mrf.mxu2  ;;  %v2108_v57 = vpop.f32.mrf.mxu0 }
  0xf2   : > { %v2253_v55 = vpop.f32.mrf.mxu3  ;;  %v2205_v56 = vadd.f32 %v2204_v54, %v2156_v48  ;;  %v2157_v58 = vpop.f32.mrf.mxu1 }
  0xf3   : > { %v2158_v59 = vadd.f32 %v2157_v58, %v2108_v57  ;;  %v4577_v57 = vld [vmem:[%s5612_s1 + $0x3f8] sm:$0xff] }
  0xf4   : > { %v5078_v61 = vadd.f32 %v2253_v55, %v2205_v56  ;;  %v4569_v55 = vld [vmem:[%s5612_s1 + $0x3b8] sm:$0xff]  ;;  %2812 = vmatpush.bf16.msrb.mxu3 %v4577_v57 }
  0xf5   : > { %v4553_v56 = vld [vmem:[%s5612_s1 + $0x338] sm:$0xff]  ;;  %2763 = vmatpush.bf16.msrb.mxu2 %v4569_v55 }
  0xf6   : > { %2665 = vmatpush.bf16.msrb.mxu0 %v4553_v56 }
  0xf9   : > { %v2206_v8 = vpop.f32.mrf.mxu2  ;;  %v2111_v13 = vpop.f32.mrf.mxu0 }
  0xfa   : > { %v2255_v9 = vpop.f32.mrf.mxu3  ;;  %v2207_v12 = vadd.f32 %v2206_v8, %v2158_v59  ;;  %v2160_v14 = vpop.f32.mrf.mxu1  ;;  %v3763_v8 = vld [vmem:[%s4761_s30 + $0x3d0] sm:$0xf0] }
  0xfb   : > { %v2161_v18 = vadd.f32 %v2160_v14, %v2111_v13 }
  0xfc   : > { %v5091_v19 = vadd.f32 %v2255_v9, %v2207_v12  ;;  %2306 = vmatmul.bf16.gmra.mxu0 %v3634_v10  ;;  %v3769_v9 = vld [vmem:[%s4761_s30 + $0x398] sm:$0xf]  ;;  %v3771_v12 = vld [vmem:[%s4761_s30 + $0x3d8] sm:$0xf0] }
  0xfd   : > { %2355 = vmatmul.bf16.gmra.mxu1 %v3638_v11  ;;  %v4445_v10 = vld [vmem:[%s4761_s30 + $0x3d4] sm:$0xf0]  ;;  %v4437_v11 = vld [vmem:[%s4761_s30 + $0x39c] sm:$0xf] }
  0xfe   : > { %2404 = vmatmul.bf16.gmra.mxu2 %v3642_v15  ;;  %v3762_v15 = vor.u32 %v4444_v6, %v3761_v5  ;;  %v3770_v23 = vor.u32 %v4445_v10, %v3769_v9  ;;  %v4551_v5 = vld [vmem:[%s5612_s1 + $0x328] sm:$0xff] }
  0xff   : > { %2453 = vmatmul.bf16.gmra.mxu3 %v3646_v16  ;;  %v3766_v16 = vor.u32 %v4436_v7, %v3763_v8 }
 0x101   : > { %v2209_v24 = vpop.f32.mrf.mxu2  ;;  %v2113_v27 = vpop.f32.mrf.mxu0 }
 0x102   : > { %v2258_v25 = vpop.f32.mrf.mxu3  ;;  %v2210_v26 = vadd.f32 %v2209_v24, %v2161_v18  ;;  %v2162_v29 = vpop.f32.mrf.mxu1  ;;  %v3774_v24 = vor.u32 %v4437_v11, %v3771_v12 }
 0x103   : > { %v2163_v31 = vadd.f32 %v2162_v29, %v2113_v27  ;;  %v4568_v27 = vld [vmem:[%s5612_s1 + $0x3b0] sm:$0xff] }
 0x104   : > { %v5102_v32 = vadd.f32 %v2258_v25, %v2210_v26  ;;  %v4552_v29 = vld [vmem:[%s5612_s1 + $0x330] sm:$0xff]  ;;  %2764 = vmatpush.bf16.msrb.mxu2 %v4568_v27 }
 0x105   : > { %2666 = vmatpush.bf16.msrb.mxu0 %v4552_v29 }
 0x108   : > { %2765 = vmatpush.bf16.msrb.mxu2 %v4567_v4  ;;  %v3467_v4 = vld [vmem:[%s4761_s30 + $0x168] sm:$0xf0] }
 0x109   : > { %v2211_v42 = vpop.f32.mrf.mxu2  ;;  %v2116_v47 = vpop.f32.mrf.mxu0  ;;  %2667 = vmatpush.bf16.msrb.mxu0 %v4551_v5 }
 0x10a   : > { %v2260_v43 = vpop.f32.mrf.mxu3  ;;  %v2212_v46 = vadd.f32 %v2211_v42, %v2163_v31  ;;  %v2165_v48 = vpop.f32.mrf.mxu1  ;;  %v4576_v31 = vld [vmem:[%s5612_s1 + $0x3f0] sm:$0xff]  ;;  %v4334_v42 = vld [vmem:[%s4761_s30 + $0x5c] sm:$0xf0] }
 0x10b   : > { %v2166_v53 = vadd.f32 %v2165_v48, %v2116_v47  ;;  %2813 = vmatpush.bf16.msrb.mxu3 %v4576_v31  ;;  %v4327_v47 = vld [vmem:[%s4761_s30 + $0x2c] sm:$0xf] }
 0x10c   : > { %v5115_v54 = vadd.f32 %v2260_v43, %v2212_v46  ;;  %2311 = vmatmul.bf16.gmra.mxu0 %v3698_v44  ;;  %v4326_v43 = vld [vmem:[%s4761_s30 + $0x24] sm:$0xf]  ;;  %v4335_v46 = vld [vmem:[%s4761_s30 + $0x64] sm:$0xf0]  ;;  %v3339_v48 = vld [vmem:[%s4761_s30 + $0x68] sm:$0xf0] }
 0x10d   : > { %2360 = vmatmul.bf16.gmra.mxu1 %v3702_v45  ;;  %v3331_v44 = vld [vmem:[%s4761_s30 + $0x60] sm:$0xf0]  ;;  %v3337_v45 = vld [vmem:[%s4761_s30 + $0x28] sm:$0xf] }
 0x10e   : > { %2409 = vmatmul.bf16.gmra.mxu2 %v3706_v51  ;;  %v3334_v55 = vor.u32 %v4326_v43, %v3331_v44  ;;  %v4550_v43 = vld [vmem:[%s5612_s1 + $0x320] sm:$0xff] }
 0x10f   : > { %2458 = vmatmul.bf16.gmra.mxu3 %v3710_v52  ;;  %2668 = vmatpush.bf16.msrb.mxu0 %v4550_v43 }
 0x111   : > { %v2214_v58 = vpop.f32.mrf.mxu2  ;;  %v2118_v63 = vpop.f32.mrf.mxu0 }
 0x112   : > { %v2263_v59 = vpop.f32.mrf.mxu3  ;;  %v2215_v62 = vadd.f32 %v2214_v58, %v2166_v53  ;;  %v2167_v1 = vpop.f32.mrf.mxu1  ;;  %v3330_v53 = vor.u32 %v4334_v42, %v3329_v41  ;;  %v4566_v42 = vld [vmem:[%s5612_s1 + $0x3a0] sm:$0xff] }
 0x113   : > { %v2168_v2 = vadd.f32 %v2167_v1, %v2118_v63  ;;  %2766 = vmatpush.bf16.msrb.mxu2 %v4566_v42  ;;  %v3531_v42 = vld [vmem:[%s4761_s30 + $0x1e8] sm:$0xf0] }
 0x114   : > { %v5126_v3 = vadd.f32 %v2263_v59, %v2215_v62  ;;  %v3338_v59 = vor.u32 %v4335_v46, %v3337_v45  ;;  %v3342_v62 = vor.u32 %v4327_v47, %v3339_v48 }
 0x119   : > { %v2216_v13 = vpop.f32.mrf.mxu2  ;;  %v2121_v21 = vpop.f32.mrf.mxu0 }
 0x11a   : > { %v2265_v14 = vpop.f32.mrf.mxu3  ;;  %v2217_v18 = vadd.f32 %v2216_v13, %v2168_v2  ;;  %v2170_v22 = vpop.f32.mrf.mxu1  ;;  %v4559_v13 = vld [vmem:[%s5612_s1 + $0x368] sm:$0xff] }
 0x11b   : > { %v2171_v25 = vadd.f32 %v2170_v22, %v2121_v21  ;;  %v3395_v21 = vld [vmem:[%s4761_s30 + $0xe0] sm:$0xf0]  ;;  %v3401_v22 = vld [vmem:[%s4761_s30 + $0xa8] sm:$0xf]  ;;  %2716 = vmatpush.bf16.msrb.mxu1 %v4559_v13 }
 0x11c   : > { %v5139_v26 = vadd.f32 %v2265_v14, %v2217_v18  ;;  %2316 = vmatmul.bf16.gmra.mxu0 %v3762_v15  ;;  %v3393_v15 = vld [vmem:[%s4761_s30 + $0xa0] sm:$0xf]  ;;  %v4342_v18 = vld [vmem:[%s4761_s30 + $0xa4] sm:$0xf] }
 0x11d   : > { %2365 = vmatmul.bf16.gmra.mxu1 %v3766_v16  ;;  %v4350_v16 = vld [vmem:[%s4761_s30 + $0xdc] sm:$0xf0] }
 0x11e   : > { %2414 = vmatmul.bf16.gmra.mxu2 %v3770_v23  ;;  %v4351_v23 = vld [vmem:[%s4761_s30 + $0xe4] sm:$0xf0]  ;;  %v3394_v31 = vor.u32 %v4350_v16, %v3393_v15  ;;  %v4565_v16 = vld [vmem:[%s5612_s1 + $0x398] sm:$0xff] }
 0x11f   : > { %2463 = vmatmul.bf16.gmra.mxu3 %v3774_v24  ;;  %v4343_v24 = vld [vmem:[%s4761_s30 + $0xac] sm:$0xf]  ;;  %2767 = vmatpush.bf16.msrb.mxu2 %v4565_v16 }
 0x120   : > { %v3595_v16 = vld [vmem:[%s4761_s30 + $0x268] sm:$0xf0] }
 0x121   : > { %v2219_v33 = vpop.f32.mrf.mxu2  ;;  %v2123_v36 = vpop.f32.mrf.mxu0 }
 0x122   : > { %v2268_v34 = vpop.f32.mrf.mxu3  ;;  %v2220_v35 = vadd.f32 %v2219_v33, %v2171_v25  ;;  %v2172_v37 = vpop.f32.mrf.mxu1  ;;  %v3403_v25 = vld [vmem:[%s4761_s30 + $0xe8] sm:$0xf0] }
 0x123   : > { %v2173_v38 = vadd.f32 %v2172_v37, %v2123_v36  ;;  %v3402_v36 = vor.u32 %v4351_v23, %v3401_v22  ;;  %v3406_v37 = vor.u32 %v4343_v24, %v3403_v25 }
 0x124   : > { %v5150_v39 = vadd.f32 %v2268_v34, %v2220_v35 }
 0x129   : > { %v2221_v51 = vpop.f32.mrf.mxu2  ;;  %v2282_v57 = vpop.f32.mrf.mxu0 }
 0x12a   : > { %v2270_v52 = vpop.f32.mrf.mxu3  ;;  %v2222_v56 = vadd.f32 %v2221_v51, %v2173_v38  ;;  %v2331_v58 = vpop.f32.mrf.mxu1  ;;  %v2283_v63 = vadd.f32 %v2282_v57, %v4982_v0  ;;  %v4575_v0 = vld [vmem:[%s5612_s1 + $0x3e8] sm:$0xff]  ;;  %v4366_v57 = vld [vmem:[%s4761_s30 + $0x15c] sm:$0xf0] }
 0x12b   : > { %2814 = vmatpush.bf16.msrb.mxu3 %v4575_v0 }
 0x12c   : > { %v5164_v1 = vadd.f32 %v2270_v52, %v2222_v56  ;;  %v2332_v2 = vadd.f32 %v2331_v58, %v2283_v63  ;;  %2477 = vmatmul.bf16.vlgmr.msra.gmra.mxu0 %v3330_v53  ;;  %v4558_v53 = vld [vmem:[%s5612_s1 + $0x360] sm:$0xff]  ;;  %v4367_v63 = vld [vmem:[%s4761_s30 + $0x164] sm:$0xf0] }
 0x12d   : > { %2526 = vmatmul.bf16.vlgmr.msra.gmra.mxu1 %v3334_v55  ;;  %v3457_v56 = vld [vmem:[%s4761_s30 + $0x120] sm:$0xf]  ;;  %v4358_v58 = vld [vmem:[%s4761_s30 + $0x124] sm:$0xf] }
 0x12e   : > { %2575 = vmatmul.bf16.vlgmr.msra.gmra.mxu2 %v3338_v59  ;;  %v3459_v59 = vld [vmem:[%s4761_s30 + $0x160] sm:$0xf0]  ;;  %2717 = vmatpush.bf16.msrb.mxu1 %v4558_v53 }
 0x12f   : > { %2624 = vmatmul.bf16.vlgmr.msra.gmra.mxu3 %v3342_v62  ;;  %v3465_v62 = vld [vmem:[%s4761_s30 + $0x128] sm:$0xf] }
 0x131   : > { %v2380_v6 = vpop.f32.mrf.mxu2  ;;  %v2284_v9 = vpop.f32.mrf.mxu0 }
 0x132   : > { %v2429_v7 = vpop.f32.mrf.mxu3  ;;  %v2381_v8 = vadd.f32 %v2380_v6, %v2332_v2  ;;  %v2333_v10 = vpop.f32.mrf.mxu1  ;;  %v2285_v11 = vadd.f32 %v2284_v9, %v4995_v20  ;;  %v3398_v20 = vor.u32 %v4342_v18, %v3395_v21  ;;  %v4359_v2 = vld [vmem:[%s4761_s30 + $0x12c] sm:$0xf]  ;;  %v3458_v6 = vor.u32 %v4366_v57, %v3457_v56  ;;  %v4549_v18 = vld [vmem:[%s5612_s1 + $0x318] sm:$0xff]  ;;  %v4564_v57 = vld [vmem:[%s5612_s1 + $0x390] sm:$0xff] }
 0x133   : > { %2669 = vmatpush.bf16.msrb.mxu0 %v4549_v18  ;;  %2768 = vmatpush.bf16.msrb.mxu2 %v4564_v57  ;;  %v3659_v57 = vld [vmem:[%s4761_s30 + $0x2e8] sm:$0xf0] }
 0x134   : > { %v5176_v12 = vadd.f32 %v2429_v7, %v2381_v8  ;;  %v2334_v14 = vadd.f32 %v2333_v10, %v2285_v11  ;;  %v3466_v10 = vor.u32 %v4367_v63, %v3465_v62  ;;  %v3470_v11 = vor.u32 %v4359_v2, %v3467_v4 }
 0x139   : > { %v2382_v27 = vpop.f32.mrf.mxu2  ;;  %v2287_v34 = vpop.f32.mrf.mxu0 }
 0x13a   : > { %v2431_v29 = vpop.f32.mrf.mxu3  ;;  %v2383_v33 = vadd.f32 %v2382_v27, %v2334_v14  ;;  %v2336_v35 = vpop.f32.mrf.mxu1  ;;  %v2288_v38 = vadd.f32 %v2287_v34, %v5006_v30  ;;  %v4574_v30 = vld [vmem:[%s5612_s1 + $0x3e0] sm:$0xff] }
 0x13b   : > { %2815 = vmatpush.bf16.msrb.mxu3 %v4574_v30  ;;  %v4382_v34 = vld [vmem:[%s4761_s30 + $0x1dc] sm:$0xf0] }
 0x13c   : > { %v5190_v40 = vadd.f32 %v2431_v29, %v2383_v33  ;;  %v2337_v41 = vadd.f32 %v2336_v35, %v2288_v38  ;;  %2482 = vmatmul.bf16.gmra.mxu0 %v3394_v31  ;;  %v4557_v31 = vld [vmem:[%s5612_s1 + $0x358] sm:$0xff]  ;;  %v3521_v33 = vld [vmem:[%s4761_s30 + $0x1a0] sm:$0xf]  ;;  %v4374_v35 = vld [vmem:[%s4761_s30 + $0x1a4] sm:$0xf] }
 0x13d   : > { %2531 = vmatmul.bf16.gmra.mxu1 %v3398_v20  ;;  %v4383_v38 = vld [vmem:[%s4761_s30 + $0x1e4] sm:$0xf0] }
 0x13e   : > { %2580 = vmatmul.bf16.gmra.mxu2 %v3402_v36  ;;  %v3523_v36 = vld [vmem:[%s4761_s30 + $0x1e0] sm:$0xf0]  ;;  %2718 = vmatpush.bf16.msrb.mxu1 %v4557_v31 }
 0x13f   : > { %2629 = vmatmul.bf16.gmra.mxu3 %v3406_v37  ;;  %v3529_v37 = vld [vmem:[%s4761_s30 + $0x1a8] sm:$0xf] }
 0x141   : > { %v2385_v44 = vpop.f32.mrf.mxu2  ;;  %v2289_v47 = vpop.f32.mrf.mxu0 }
 0x142   : > { %v2434_v45 = vpop.f32.mrf.mxu3  ;;  %v2386_v46 = vadd.f32 %v2385_v44, %v2337_v41  ;;  %v2338_v48 = vpop.f32.mrf.mxu1  ;;  %v2290_v51 = vadd.f32 %v2289_v47, %v5019_v50  ;;  %v3462_v50 = vor.u32 %v4358_v58, %v3459_v59  ;;  %v4375_v41 = vld [vmem:[%s4761_s30 + $0x1ac] sm:$0xf]  ;;  %v3522_v44 = vor.u32 %v4382_v34, %v3521_v33  ;;  %v4548_v58 = vld [vmem:[%s5612_s1 + $0x310] sm:$0xff] }
 0x143   : > { %2670 = vmatpush.bf16.msrb.mxu0 %v4548_v58  ;;  %v4563_v34 = vld [vmem:[%s5612_s1 + $0x388] sm:$0xff] }
 0x144   : > { %v5202_v52 = vadd.f32 %v2434_v45, %v2386_v46  ;;  %v2339_v55 = vadd.f32 %v2338_v48, %v2290_v51  ;;  %v3530_v48 = vor.u32 %v4383_v38, %v3529_v37  ;;  %v3534_v51 = vor.u32 %v4375_v41, %v3531_v42  ;;  %2769 = vmatpush.bf16.msrb.mxu2 %v4563_v34  ;;  %v4422_v34 = vld [vmem:[%s4761_s30 + $0x324] sm:$0xf] }
 0x149   : > { %v2387_v5 = vpop.f32.mrf.mxu2  ;;  %v2292_v8 = vpop.f32.mrf.mxu0 }
 0x14a   : > { %v2436_v0 = vpop.f32.mrf.mxu3  ;;  %v2388_v7 = vadd.f32 %v2387_v5, %v2339_v55  ;;  %v2341_v9 = vpop.f32.mrf.mxu1  ;;  %v2293_v13 = vadd.f32 %v2292_v8, %v5030_v60  ;;  %v4573_v60 = vld [vmem:[%s5612_s1 + $0x3d8] sm:$0xff]  ;;  %v4398_v8 = vld [vmem:[%s4761_s30 + $0x25c] sm:$0xf0] }
 0x14b   : > { %2816 = vmatpush.bf16.msrb.mxu3 %v4573_v60 }
 0x14c   : > { %v5216_v14 = vadd.f32 %v2436_v0, %v2388_v7  ;;  %v2342_v15 = vadd.f32 %v2341_v9, %v2293_v13  ;;  %2487 = vmatmul.bf16.gmra.mxu0 %v3458_v6  ;;  %v4556_v6 = vld [vmem:[%s5612_s1 + $0x350] sm:$0xff]  ;;  %v3585_v7 = vld [vmem:[%s4761_s30 + $0x220] sm:$0xf]  ;;  %v4390_v9 = vld [vmem:[%s4761_s30 + $0x224] sm:$0xf] }
 0x14d   : > { %2536 = vmatmul.bf16.gmra.mxu1 %v3462_v50  ;;  %v4399_v13 = vld [vmem:[%s4761_s30 + $0x264] sm:$0xf0] }
 0x14e   : > { %2585 = vmatmul.bf16.gmra.mxu2 %v3466_v10  ;;  %v3587_v10 = vld [vmem:[%s4761_s30 + $0x260] sm:$0xf0]  ;;  %2719 = vmatpush.bf16.msrb.mxu1 %v4556_v6 }
 0x14f   : > { %2634 = vmatmul.bf16.gmra.mxu3 %v3470_v11  ;;  %v3593_v11 = vld [vmem:[%s4761_s30 + $0x228] sm:$0xf] }
 0x151   : > { %v2390_v21 = vpop.f32.mrf.mxu2  ;;  %v2294_v24 = vpop.f32.mrf.mxu0 }
 0x152   : > { %v2439_v22 = vpop.f32.mrf.mxu3  ;;  %v2391_v23 = vadd.f32 %v2390_v21, %v2342_v15  ;;  %v2343_v25 = vpop.f32.mrf.mxu1  ;;  %v2295_v27 = vadd.f32 %v2294_v24, %v5043_v17  ;;  %v3526_v17 = vor.u32 %v4374_v35, %v3523_v36  ;;  %v4391_v15 = vld [vmem:[%s4761_s30 + $0x22c] sm:$0xf]  ;;  %v3586_v21 = vor.u32 %v4398_v8, %v3585_v7  ;;  %v2863_v8 = vld [vmem:[%s5299_s19 + $0x10] sm:$0xff] }
 0x153   : > { %v4547_v35 = vld [vmem:[%s5612_s1 + $0x308] sm:$0xff]  ;;  %v4630_v7 = vmov 0  }
 0x154   : > { %v5228_v29 = vadd.f32 %v2439_v22, %v2391_v23  ;;  %v2344_v20 = vadd.f32 %v2343_v25, %v2295_v27  ;;  %v3594_v25 = vor.u32 %v4399_v13, %v3593_v11  ;;  %v3598_v27 = vor.u32 %v4391_v15, %v3595_v16  ;;  %2671 = vmatpush.bf16.msrb.mxu0 %v4547_v35  ;;  %v4562_v11 = vld [vmem:[%s5612_s1 + $0x380] sm:$0xff] }
 0x155   : > { %4604 = vset.pattern.permute.xlu1 %v4630_v7  ;;  %4603 = vset.pattern.permute.xlu0 %v4630_v7  ;;  %v4570_v13 = vld [vmem:[%s5612_s1 + $0x3c0] sm:$0xff] }
 0x156   : > { %2889 = vperm.xlu1 %4604, %v2863_v8   ;;  %2770 = vmatpush.bf16.msrb.mxu2 %v4562_v11  ;;  %v3715_v35 = vld [vmem:[%s4761_s30 + $0x360] sm:$0xf0]  ;;  %v4447_v11 = vld [vmem:[%s4761_s30 + $0x3e4] sm:$0xf0] }
 0x157   : > { %4605 = vset.pattern.permute.xlu2 %v4630_v7  ;;  %v4446_v7 = vld [vmem:[%s4761_s30 + $0x3dc] sm:$0xf0]  ;;  %v4438_v8 = vld [vmem:[%s4761_s30 + $0x3a4] sm:$0xf] }
 0x159   : > { %v2392_v43 = vpop.f32.mrf.mxu2  ;;  %v2297_v46 = vpop.f32.mrf.mxu0 }
 0x15a   : > { %v2441_v30 = vpop.f32.mrf.mxu3  ;;  %v2393_v45 = vadd.f32 %v2392_v43, %v2344_v20  ;;  %v2346_v47 = vpop.f32.mrf.mxu1  ;;  %v2298_v53 = vadd.f32 %v2297_v46, %v5054_v28  ;;  %v4572_v28 = vld [vmem:[%s5612_s1 + $0x3d0] sm:$0xff]  ;;  %v4414_v46 = vld [vmem:[%s4761_s30 + $0x2dc] sm:$0xf0] }
 0x15b   : > { %2817 = vmatpush.bf16.msrb.mxu3 %v4572_v28 }
 0x15c   : > { %v5242_v55 = vadd.f32 %v2441_v30, %v2393_v45  ;;  %v2347_v56 = vadd.f32 %v2346_v47, %v2298_v53  ;;  %2492 = vmatmul.bf16.gmra.mxu0 %v3522_v44  ;;  %v4555_v44 = vld [vmem:[%s5612_s1 + $0x348] sm:$0xff]  ;;  %v3649_v45 = vld [vmem:[%s4761_s30 + $0x2a0] sm:$0xf]  ;;  %v4406_v47 = vld [vmem:[%s4761_s30 + $0x2a4] sm:$0xf] }
 0x15d   : > { %2541 = vmatmul.bf16.gmra.mxu1 %v3526_v17  ;;  %v4415_v53 = vld [vmem:[%s4761_s30 + $0x2e4] sm:$0xf0]  ;;  %v3650_v28 = vor.u32 %v4414_v46, %v3649_v45 }
 0x15e   : > { %2590 = vmatmul.bf16.gmra.mxu2 %v3530_v48  ;;  %v3651_v48 = vld [vmem:[%s4761_s30 + $0x2e0] sm:$0xf0]  ;;  %2720 = vmatpush.bf16.msrb.mxu1 %v4555_v44 }
 0x15f   : > { %2639 = vmatmul.bf16.gmra.mxu3 %v3534_v51  ;;  %v3657_v51 = vld [vmem:[%s4761_s30 + $0x2a8] sm:$0xf] }
 0x161   : > { %v2395_v59 = vpop.f32.mrf.mxu2  ;;  %v2299_v2 = vpop.f32.mrf.mxu0 }
 0x162   : > { %v2444_v62 = vpop.f32.mrf.mxu3  ;;  %v2396_v63 = vadd.f32 %v2395_v59, %v2347_v56  ;;  %v2348_v4 = vpop.f32.mrf.mxu1  ;;  %v2300_v5 = vadd.f32 %v2299_v2, %v5067_v49  ;;  %v3590_v49 = vor.u32 %v4390_v9, %v3587_v10  ;;  %v4407_v56 = vld [vmem:[%s4761_s30 + $0x2ac] sm:$0xf]  ;;  %v3654_v59 = vor.u32 %v4406_v47, %v3651_v48  ;;  %v2861_v9 = vld [vmem:[%s5299_s19] sm:$0xff] }
 0x163   : > { %2879 = vperm.xlu0 %4603, %v2861_v9   ;;  %v3779_v9 = vld [vmem:[%s4761_s30 + $0x3e0] sm:$0xf0] }
 0x164   : > { %v5254_v0 = vadd.f32 %v2444_v62, %v2396_v63  ;;  %v2349_v50 = vadd.f32 %v2348_v4, %v2300_v5  ;;  %v3658_v4 = vor.u32 %v4415_v53, %v3657_v51  ;;  %v3662_v5 = vor.u32 %v4407_v56, %v3659_v57  ;;  %v2868_v53 = vld [vmem:[%s5299_s19 + $0x38] sm:$0xff]  ;;  %v2867_v56 = vld [vmem:[%s5299_s19 + $0x30] sm:$0xff] }
 0x169   : > { %v2397_v18 = vpop.f32.mrf.mxu2  ;;  %v2302_v23 = vpop.f32.mrf.mxu0 }
 0x16a   : > { %v2446_v60 = vpop.f32.mrf.mxu3  ;;  %v2398_v22 = vadd.f32 %v2397_v18, %v2349_v50  ;;  %v2351_v24 = vpop.f32.mrf.mxu1  ;;  %v2303_v31 = vadd.f32 %v2302_v23, %v5078_v61  ;;  %v4571_v61 = vld [vmem:[%s5612_s1 + $0x3c8] sm:$0xff]  ;;  %v4554_v23 = vld [vmem:[%s5612_s1 + $0x340] sm:$0xff] }
 0x16b   : > { %2818 = vmatpush.bf16.msrb.mxu3 %v4571_v61  ;;  %v3721_v61 = vld [vmem:[%s4761_s30 + $0x328] sm:$0xf]  ;;  %2721 = vmatpush.bf16.msrb.mxu1 %v4554_v23 }
 0x16c   : > { %v5268_v20 = vadd.f32 %v2446_v60, %v2398_v22  ;;  %v2352_v33 = vadd.f32 %v2351_v24, %v2303_v31  ;;  %2497 = vmatmul.bf16.gmra.mxu0 %v3586_v21  ;;  %v2864_v24 = vld [vmem:[%s5299_s19 + $0x18] sm:$0xff]  ;;  %v3713_v31 = vld [vmem:[%s4761_s30 + $0x320] sm:$0xf] }
 0x16d   : > { %2546 = vmatmul.bf16.gmra.mxu1 %v3590_v49  ;;  %2894 = vperm.xlu1 %4604, %v2864_v24  }
 0x16e   : > { %2595 = vmatmul.bf16.gmra.mxu2 %v3594_v25  ;;  %v2862_v25 = vld [vmem:[%s5299_s19 + $0x8] sm:$0xff] }
 0x16f   : > { %2644 = vmatmul.bf16.gmra.mxu3 %v3598_v27  ;;  %2884 = vperm.xlu0 %4603, %v2862_v25  }
 0x170   : > { %2819 = vmatpush.bf16.msrb.mxu3 %v4570_v13  ;;  %v3787_v13 = vld [vmem:[%s4761_s30 + $0x3e8] sm:$0xf0] }
 0x171   : > { %v2400_v36 = vpop.f32.mrf.mxu2  ;;  %v2304_v41 = vpop.f32.mrf.mxu0 }
 0x172   : > { %v2449_v37 = vpop.f32.mrf.mxu3  ;;  %v2401_v38 = vadd.f32 %v2400_v36, %v2352_v33  ;;  %v2353_v42 = vpop.f32.mrf.mxu1  ;;  %v2305_v43 = vadd.f32 %v2304_v41, %v5091_v19  ;;  %v4430_v33 = vld [vmem:[%s4761_s30 + $0x35c] sm:$0xf0]  ;;  %v4431_v36 = vld [vmem:[%s4761_s30 + $0x364] sm:$0xf0] }
 0x173   : > { %v3722_v46 = vor.u32 %v4431_v36, %v3721_v61 }
 0x174   : > { %v5280_v30 = vadd.f32 %v2449_v37, %v2401_v38  ;;  %v2354_v17 = vadd.f32 %v2353_v42, %v2305_v43  ;;  %v4423_v37 = vld [vmem:[%s4761_s30 + $0x32c] sm:$0xf]  ;;  %v3714_v42 = vor.u32 %v4430_v33, %v3713_v31  ;;  %v3718_v43 = vor.u32 %v4422_v34, %v3715_v35  ;;  %v2865_v31 = vld [vmem:[%s5299_s19 + $0x20] sm:$0xff] }
 0x175   : > { %2914 = vperm.xlu1 %4604, %v2868_v53   ;;  %v2874_v33 = vld [vmem:[%s5299_s19 + $0x68] sm:$0xff]  ;;  %v2873_v35 = vld [vmem:[%s5299_s19 + $0x60] sm:$0xff]  ;;  %2899 = vperm.xlu2 %4605, %v2865_v31   ;;  %v3353_v53 = vld [vmem:[%s4761_s30 + $0x38] sm:$0xf] }
 0x176   : > { %v4344_v31 = vld [vmem:[%s4761_s30 + $0xb4] sm:$0xf] }
 0x177   : > { %2909 = vperm.xlu0 %4603, %v2867_v56   ;;  %v4337_v56 = vld [vmem:[%s4761_s30 + $0x74] sm:$0xf0] }
 0x179   : > { %v2402_v58 = vpop.f32.mrf.mxu2  ;;  %v2307_v63 = vpop.f32.mrf.mxu0 }
 0x17a   : > { %v2451_v19 = vpop.f32.mrf.mxu3  ;;  %v2403_v62 = vadd.f32 %v2402_v58, %v2354_v17  ;;  %v2356_v2 = vpop.f32.mrf.mxu1  ;;  %v2308_v6 = vadd.f32 %v2307_v63, %v5102_v32  ;;  %v4546_v32 = vld [vmem:[%s5612_s1 + $0x300] sm:$0xff] }
 0x17b   : > { %2672 = vmatpush.bf16.msrb.mxu0 %v4546_v32  ;;  %v4439_v32 = vld [vmem:[%s4761_s30 + $0x3ac] sm:$0xf] }
 0x17c   : > { %v5302_v50 = vadd.f32 %v2451_v19, %v2403_v62  ;;  %v2357_v10 = vadd.f32 %v2356_v2, %v2308_v6  ;;  %2502 = vmatmul.bf16.gmra.mxu0 %v3650_v28  ;;  %v2871_v2 = vld [vmem:[%s5299_s19 + $0x50] sm:$0xff]  ;;  %v3777_v6 = vld [vmem:[%s4761_s30 + $0x3a0] sm:$0xf]  ;;  %v3790_v24 = vor.u32 %v4439_v32, %v3787_v13 }
 0x17d   : > { %2551 = vmatmul.bf16.gmra.mxu1 %v3654_v59  ;;  %2929 = vperm.xlu1 %4604, %v2871_v2  }
 0x17e   : > { %2600 = vmatmul.bf16.gmra.mxu2 %v3658_v4  ;;  %v2870_v4 = vld [vmem:[%s5299_s19 + $0x48] sm:$0xff] }
 0x17f   : > { %2649 = vmatmul.bf16.gmra.mxu3 %v3662_v5  ;;  %2924 = vperm.xlu0 %4603, %v2870_v4   ;;  %v3354_v4 = vor.u32 %v4337_v56, %v3353_v53  ;;  %v2981_v56 = vld [vmem:[%s5360_s5 + $0x40] sm:$0xff] }
 0x181   : > { %v2405_v15 = vpop.f32.mrf.mxu2  ;;  %v2309_v60 = vpop.f32.mrf.mxu0 }
 0x182   : > { %v2454_v16 = vpop.f32.mrf.mxu3  ;;  %v2406_v18 = vadd.f32 %v2405_v15, %v2357_v10  ;;  %v2358_v21 = vpop.f32.mrf.mxu1  ;;  %v2310_v49 = vadd.f32 %v2309_v60, %v5115_v54  ;;  %v3723_v54 = vld [vmem:[%s4761_s30 + $0x368] sm:$0xf0]  ;;  %v3785_v10 = vld [vmem:[%s4761_s30 + $0x3a8] sm:$0xf] }
 0x183   : > { %v3726_v47 = vor.u32 %v4423_v37, %v3723_v54  ;;  %v3786_v23 = vor.u32 %v4447_v11, %v3785_v10  ;;  %v2975_v11 = vld [vmem:[%s5360_s5 + $0x10] sm:$0xff] }
 0x184   : > { %v5316_v22 = vadd.f32 %v2454_v16, %v2406_v18  ;;  %v2359_v27 = vadd.f32 %v2358_v21, %v2310_v49  ;;  %v3778_v16 = vor.u32 %v4446_v7, %v3777_v6  ;;  %v3782_v18 = vor.u32 %v4438_v8, %v3779_v9  ;;  %v2869_v8 = vld [vmem:[%s5299_s19 + $0x40] sm:$0xff]  ;;  %v2976_v9 = vld [vmem:[%s5360_s5 + $0x18] sm:$0xff] }
 0x185   : > { %2944 = vperm.xlu1 %4604, %v2874_v33   ;;  %v3411_v33 = vld [vmem:[%s4761_s30 + $0xf0] sm:$0xf0] }
 0x187   : > { %2939 = vperm.xlu0 %4603, %v2873_v35   ;;  %v4353_v35 = vld [vmem:[%s4761_s30 + $0xf4] sm:$0xf0] }
 0x189   : > { %v2407_v38 = vpop.f32.mrf.mxu2  ;;  %v2312_v17 = vpop.f32.mrf.mxu0 }
 0x18a   : > { %v2456_v41 = vpop.f32.mrf.mxu3  ;;  %v2408_v44 = vadd.f32 %v2407_v38, %v2359_v27  ;;  %v2361_v45 = vpop.f32.mrf.mxu1  ;;  %v2313_v48 = vadd.f32 %v2312_v17, %v5126_v3  ;;  %v3345_v17 = vld [vmem:[%s4761_s30 + $0x30] sm:$0xf] }
 0x18c   : > { %v5332_v51 = vadd.f32 %v2456_v41, %v2408_v44  ;;  %v2362_v57 = vadd.f32 %v2361_v45, %v2313_v48  ;;  %2507 = vmatmul.bf16.gmra.mxu0 %v3714_v42  ;;  %v2866_v42 = vld [vmem:[%s5299_s19 + $0x28] sm:$0xff]  ;;  %v4336_v45 = vld [vmem:[%s4761_s30 + $0x6c] sm:$0xf0]  ;;  %v3347_v48 = vld [vmem:[%s4761_s30 + $0x70] sm:$0xf0] }
 0x18d   : > { %2556 = vmatmul.bf16.gmra.mxu1 %v3718_v43  ;;  %v2973_v43 = vld [vmem:[%s5360_s5] sm:$0xff]  ;;  %2904 = vperm.xlu2 %4605, %v2866_v42  }
 0x18e   : > { %2605 = vmatmul.bf16.gmra.mxu2 %v3722_v46  ;;  %v2876_v46 = vld [vmem:[%s5299_s19 + $0x78] sm:$0xff]  ;;  %2991 = vperm.xlu1 %4604, %v2973_v43  }
 0x18f   : > { %2654 = vmatmul.bf16.gmra.mxu3 %v3726_v47  ;;  %v4328_v47 = vld [vmem:[%s4761_s30 + $0x34] sm:$0xf]  ;;  %2954 = vperm.xlu0 %4603, %v2876_v46  }
 0x191   : > { %v2410_v3 = vpop.f32.mrf.mxu2  ;;  %v2314_v28 = vpop.f32.mrf.mxu0 }
 0x192   : > { %v2459_v58 = vpop.f32.mrf.mxu3  ;;  %v2411_v19 = vadd.f32 %v2410_v3, %v2362_v57  ;;  %v2363_v59 = vpop.f32.mrf.mxu1  ;;  %v2315_v62 = vadd.f32 %v2314_v28, %v5139_v26  ;;  %v4329_v57 = vld [vmem:[%s4761_s30 + $0x3c] sm:$0xf]  ;;  %v3350_v28 = vor.u32 %v4328_v47, %v3347_v48  ;;  %v2875_v47 = vld [vmem:[%s5299_s19 + $0x70] sm:$0xff]  ;;  %v2982_v48 = vld [vmem:[%s5360_s5 + $0x48] sm:$0xff] }
 0x193   : > { %v3355_v3 = vld [vmem:[%s4761_s30 + $0x78] sm:$0xf0] }
 0x194   : > { %v5337_v63 = vadd.f32 %v2459_v58, %v2411_v19  ;;  %v2364_v5 = vadd.f32 %v2363_v59, %v2315_v62  ;;  %v3346_v19 = vor.u32 %v4336_v45, %v3345_v17 }
 0x195   : > { %2919 = vperm.xlu2 %4605, %v2869_v8   ;;  %v4360_v8 = vld [vmem:[%s4761_s30 + $0x134] sm:$0xf] }
 0x196   : > { %3006 = vperm.xlu1 %4604, %v2976_v9   ;;  %v3475_v9 = vld [vmem:[%s4761_s30 + $0x170] sm:$0xf0] }
 0x197   : > { %3001 = vperm.xlu0 %4603, %v2975_v11   ;;  %v4369_v11 = vld [vmem:[%s4761_s30 + $0x174] sm:$0xf0] }
 0x199   : > { %v2412_v15 = vpop.f32.mrf.mxu2  ;;  %v2317_v21 = vpop.f32.mrf.mxu0 }
 0x19a   : > { %v2461_v26 = vpop.f32.mrf.mxu3  ;;  %v2413_v60 = vadd.f32 %v2412_v15, %v2364_v5  ;;  %v2366_v49 = vpop.f32.mrf.mxu1  ;;  %v2318_v25 = vadd.f32 %v2317_v21, %v5150_v39  ;;  %v3358_v5 = vor.u32 %v4329_v57, %v3355_v3  ;;  %v2979_v21 = vld [vmem:[%s5360_s5 + $0x30] sm:$0xff] }
 0x19c   : > { %v5350_v27 = vadd.f32 %v2461_v26, %v2413_v60  ;;  %v2367_v34 = vadd.f32 %v2366_v49, %v2318_v25  ;;  %2512 = vmatmul.bf16.gmra.mxu0 %v3778_v16  ;;  %v2872_v60 = vld [vmem:[%s5299_s19 + $0x58] sm:$0xff]  ;;  %v2978_v25 = vld [vmem:[%s5360_s5 + $0x28] sm:$0xff] }
 0x19d   : > { %2561 = vmatmul.bf16.gmra.mxu1 %v3782_v18  ;;  %2934 = vperm.xlu2 %4605, %v2872_v60  }
 0x19e   : > { %2610 = vmatmul.bf16.gmra.mxu2 %v3786_v23  ;;  %v3409_v23 = vld [vmem:[%s4761_s30 + $0xb0] sm:$0xf]  ;;  %3021 = vperm.xlu1 %4604, %v2979_v21  }
 0x19f   : > { %2659 = vmatmul.bf16.gmra.mxu3 %v3790_v24  ;;  %v4352_v24 = vld [vmem:[%s4761_s30 + $0xec] sm:$0xf0]  ;;  %3016 = vperm.xlu0 %4603, %v2978_v25  }
 0x1a1   : > { %v2415_v39 = vpop.f32.mrf.mxu2  ;;  %v2319_v37 = vpop.f32.mrf.mxu0 }
 0x1a2   : > { %v2464_v61 = vpop.f32.mrf.mxu3  ;;  %v2416_v36 = vadd.f32 %v2415_v39, %v2367_v34  ;;  %v2368_v54 = vpop.f32.mrf.mxu1  ;;  %v2320_v38 = vadd.f32 %v2319_v37, %v5164_v1  ;;  %v3417_v34 = vld [vmem:[%s4761_s30 + $0xb8] sm:$0xf]  ;;  %v4345_v39 = vld [vmem:[%s4761_s30 + $0xbc] sm:$0xf]  ;;  %v3410_v37 = vor.u32 %v4352_v24, %v3409_v23 }
 0x1a4   : > { %v5363_v41 = vadd.f32 %v2464_v61, %v2416_v36  ;;  %v2369_v44 = vadd.f32 %v2368_v54, %v2320_v38  ;;  %v3419_v61 = vld [vmem:[%s4761_s30 + $0xf8] sm:$0xf0]  ;;  %v3414_v54 = vor.u32 %v4344_v31, %v3411_v33 }
 0x1a5   : > { %v3422_v17 = vor.u32 %v4345_v39, %v3419_v61  ;;  %2949 = vperm.xlu2 %4605, %v2875_v47   ;;  %v2988_v31 = vld [vmem:[%s5360_s5 + $0x78] sm:$0xff] }
 0x1a6   : > { %3036 = vperm.xlu1 %4604, %v2982_v48   ;;  %v4385_v47 = vld [vmem:[%s4761_s30 + $0x1f4] sm:$0xf0]  ;;  %v4377_v48 = vld [vmem:[%s4761_s30 + $0x1bc] sm:$0xf] }
 0x1a7   : > { %3031 = vperm.xlu0 %4603, %v2981_v56  }
 0x1a9   : > { %v2417_v1 = vpop.f32.mrf.mxu2  ;;  %v2478_v62 = vpop.f32.mrf.mxu0 }
 0x1aa   : > { %v2466_v58 = vpop.f32.mrf.mxu3  ;;  %v2418_v59 = vadd.f32 %v2417_v1, %v2369_v44  ;;  %v2527_v2 = vpop.f32.mrf.mxu1  ;;  %v2479_v6 = vadd.f32 %v2478_v62, %v5176_v12  ;;  %v3418_v44 = vor.u32 %v4353_v35, %v3417_v34  ;;  %v2985_v62 = vld [vmem:[%s5360_s5 + $0x60] sm:$0xff]  ;;  %v2987_v34 = vld [vmem:[%s5360_s5 + $0x70] sm:$0xff] }
 0x1ac   : > { %v5377_v7 = vadd.f32 %v2466_v58, %v2418_v59  ;;  %v2528_v10 = vadd.f32 %v2527_v2, %v2479_v6  ;;  %2673 = vmatmul.bf16.vlgmr.msrb.gmra.mxu0 %v3346_v19  ;;  %v2974_v59 = vld [vmem:[%s5360_s5 + $0x8] sm:$0xff]  ;;  %v2984_v6 = vld [vmem:[%s5360_s5 + $0x58] sm:$0xff] }
 0x1ad   : > { %2722 = vmatmul.bf16.vlgmr.msrb.gmra.mxu1 %v3350_v28  ;;  %2996 = vperm.xlu2 %4605, %v2974_v59  }
 0x1ae   : > { %2771 = vmatmul.bf16.vlgmr.msrb.gmra.mxu2 %v3354_v4  ;;  %v3473_v4 = vld [vmem:[%s4761_s30 + $0x130] sm:$0xf]  ;;  %3051 = vperm.xlu1 %4604, %v2985_v62  }
 0x1af   : > { %2820 = vmatmul.bf16.vlgmr.msrb.gmra.mxu3 %v3358_v5  ;;  %v4368_v5 = vld [vmem:[%s4761_s30 + $0x16c] sm:$0xf0]  ;;  %3046 = vperm.xlu0 %4603, %v2984_v6  }
 0x1b1   : > { %v2576_v12 = vpop.f32.mrf.mxu2  ;;  %v2480_v15 = vpop.f32.mrf.mxu0 }
 0x1b2   : > { %v2625_v32 = vpop.f32.mrf.mxu3  ;;  %v2577_v13 = vadd.f32 %v2576_v12, %v2528_v10  ;;  %v2529_v26 = vpop.f32.mrf.mxu1  ;;  %v2481_v16 = vadd.f32 %v2480_v15, %v5190_v40  ;;  %v3481_v10 = vld [vmem:[%s4761_s30 + $0x138] sm:$0xf]  ;;  %v4361_v12 = vld [vmem:[%s4761_s30 + $0x13c] sm:$0xf]  ;;  %v3474_v15 = vor.u32 %v4368_v5, %v3473_v4 }
 0x1b3   : > { %v2980_v4 = vld [vmem:[%s5360_s5 + $0x38] sm:$0xff] }
 0x1b4   : > { %v5383_v18 = vadd.f32 %v2625_v32, %v2577_v13  ;;  %v2530_v49 = vadd.f32 %v2529_v26, %v2481_v16  ;;  %v3483_v32 = vld [vmem:[%s4761_s30 + $0x178] sm:$0xf0]  ;;  %v3478_v26 = vor.u32 %v4360_v8, %v3475_v9 }
 0x1b5   : > { %v3486_v23 = vor.u32 %v4361_v12, %v3483_v32  ;;  %v2983_v32 = vld [vmem:[%s5360_s5 + $0x50] sm:$0xff] }
 0x1b6   : > { %3066 = vperm.xlu1 %4604, %v2988_v31  }
 0x1b7   : > { %3061 = vperm.xlu0 %4603, %v2987_v34  }
 0x1b9   : > { %v2578_v40 = vpop.f32.mrf.mxu2  ;;  %v2483_v42 = vpop.f32.mrf.mxu0 }
 0x1ba   : > { %v2627_v36 = vpop.f32.mrf.mxu3  ;;  %v2579_v38 = vadd.f32 %v2578_v40, %v2530_v49  ;;  %v2532_v43 = vpop.f32.mrf.mxu1  ;;  %v2484_v45 = vadd.f32 %v2483_v42, %v5202_v52  ;;  %v3482_v49 = vor.u32 %v4369_v11, %v3481_v10  ;;  %v3537_v42 = vld [vmem:[%s4761_s30 + $0x1b0] sm:$0xf] }
 0x1bc   : > { %v5397_v46 = vadd.f32 %v2627_v36, %v2579_v38  ;;  %v2533_v53 = vadd.f32 %v2532_v43, %v2484_v45  ;;  %2678 = vmatmul.bf16.gmra.mxu0 %v3410_v37  ;;  %v4384_v43 = vld [vmem:[%s4761_s30 + $0x1ec] sm:$0xf0]  ;;  %v3545_v45 = vld [vmem:[%s4761_s30 + $0x1b8] sm:$0xf] }
 0x1bd   : > { %2727 = vmatmul.bf16.gmra.mxu1 %v3414_v54  ;;  %v2977_v54 = vld [vmem:[%s5360_s5 + $0x20] sm:$0xff] }
 0x1be   : > { %2776 = vmatmul.bf16.gmra.mxu2 %v3418_v44  ;;  %3011 = vperm.xlu2 %4605, %v2977_v54   ;;  %v4376_v44 = vld [vmem:[%s4761_s30 + $0x1b4] sm:$0xf]  ;;  %v2986_v54 = vld [vmem:[%s5360_s5 + $0x68] sm:$0xff] }
 0x1bf   : > { %2825 = vmatmul.bf16.gmra.mxu3 %v3422_v17  ;;  %v3539_v17 = vld [vmem:[%s4761_s30 + $0x1f0] sm:$0xf0] }
 0x1c1   : > { %v2581_v52 = vpop.f32.mrf.mxu2  ;;  %v2485_v1 = vpop.f32.mrf.mxu0 }
 0x1c2   : > { %v2630_v57 = vpop.f32.mrf.mxu3  ;;  %v2582_v3 = vadd.f32 %v2581_v52, %v2533_v53  ;;  %v2534_v58 = vpop.f32.mrf.mxu1  ;;  %v2486_v19 = vadd.f32 %v2485_v1, %v5216_v14  ;;  %v3547_v53 = vld [vmem:[%s4761_s30 + $0x1f8] sm:$0xf0] }
 0x1c3   : > { %v3550_v59 = vor.u32 %v4377_v48, %v3547_v53  ;;  %v3665_v53 = vld [vmem:[%s4761_s30 + $0x2b0] sm:$0xf] }
 0x1c4   : > { %v5403_v28 = vadd.f32 %v2630_v57, %v2582_v3  ;;  %v2535_v2 = vadd.f32 %v2534_v58, %v2486_v19  ;;  %v3538_v57 = vor.u32 %v4384_v43, %v3537_v42  ;;  %v3542_v3 = vor.u32 %v4376_v44, %v3539_v17 }
 0x1c5   : > { %v3546_v19 = vor.u32 %v4385_v47, %v3545_v45 }
 0x1c6   : > { %3026 = vperm.xlu2 %4605, %v2980_v4  }
 0x1c9   : > { %v2583_v14 = vpop.f32.mrf.mxu2  ;;  %v2488_v60 = vpop.f32.mrf.mxu0 }
 0x1ca   : > { %v2632_v13 = vpop.f32.mrf.mxu3  ;;  %v2584_v16 = vadd.f32 %v2583_v14, %v2535_v2  ;;  %v2537_v21 = vpop.f32.mrf.mxu1  ;;  %v2489_v24 = vadd.f32 %v2488_v60, %v5228_v29  ;;  %v3609_v60 = vld [vmem:[%s4761_s30 + $0x238] sm:$0xf] }
 0x1cc   : > { %v5417_v25 = vadd.f32 %v2632_v13, %v2584_v16  ;;  %v2538_v33 = vadd.f32 %v2537_v21, %v2489_v24  ;;  %2683 = vmatmul.bf16.gmra.mxu0 %v3474_v15  ;;  %v3601_v13 = vld [vmem:[%s4761_s30 + $0x230] sm:$0xf]  ;;  %v3603_v16 = vld [vmem:[%s4761_s30 + $0x270] sm:$0xf0]  ;;  %v4401_v21 = vld [vmem:[%s4761_s30 + $0x274] sm:$0xf0] }
 0x1cd   : > { %2732 = vmatmul.bf16.gmra.mxu1 %v3478_v26  ;;  %v4400_v15 = vld [vmem:[%s4761_s30 + $0x26c] sm:$0xf0]  ;;  %v4392_v26 = vld [vmem:[%s4761_s30 + $0x234] sm:$0xf] }
 0x1ce   : > { %2781 = vmatmul.bf16.gmra.mxu2 %v3482_v49  ;;  %v4393_v49 = vld [vmem:[%s4761_s30 + $0x23c] sm:$0xf]  ;;  %3041 = vperm.xlu2 %4605, %v2983_v32   ;;  %v3606_v34 = vor.u32 %v4392_v26, %v3603_v16  ;;  %v5467_v32 = vpop.permute.xlu1 %2889 }
 0x1cf   : > { %2830 = vmatmul.bf16.gmra.mxu3 %v3486_v23  ;;  %v3611_v23 = vld [vmem:[%s4761_s30 + $0x278] sm:$0xf0] }
 0x1d1   : > { %v2586_v35 = vpop.f32.mrf.mxu2  ;;  %v2490_v61 = vpop.f32.mrf.mxu0 }
 0x1d2   : > { %v2635_v29 = vpop.f32.mrf.mxu3  ;;  %v2587_v39 = vadd.f32 %v2586_v35, %v2538_v33  ;;  %v2539_v40 = vpop.f32.mrf.mxu1  ;;  %v2491_v36 = vadd.f32 %v2490_v61, %v5242_v55  ;;  %v3602_v33 = vor.u32 %v4400_v15, %v3601_v13  ;;  %v3614_v61 = vor.u32 %v4393_v49, %v3611_v23  ;;  %v3729_v49 = vld [vmem:[%s4761_s30 + $0x330] sm:$0xf] }
 0x1d3   : > { %v4432_v23 = vld [vmem:[%s4761_s30 + $0x36c] sm:$0xf0] }
 0x1d4   : > { %v5422_v37 = vadd.f32 %v2635_v29, %v2587_v39  ;;  %v2540_v38 = vadd.f32 %v2539_v40, %v2491_v36  ;;  %v3610_v39 = vor.u32 %v4401_v21, %v3609_v60 }
 0x1d6   : > { %3056 = vperm.xlu2 %4605, %v2986_v54   ;;  %v3730_v54 = vor.u32 %v4432_v23, %v3729_v49 }
 0x1d9   : > { %v2588_v56 = vpop.f32.mrf.mxu2  ;;  %v2493_v55 = vpop.f32.mrf.mxu0 }
 0x1da   : > { %v2637_v52 = vpop.f32.mrf.mxu3  ;;  %v2589_v1 = vadd.f32 %v2588_v56, %v2540_v38  ;;  %v2542_v58 = vpop.f32.mrf.mxu1  ;;  %v2494_v62 = vadd.f32 %v2493_v55, %v5254_v0  ;;  %v4416_v56 = vld [vmem:[%s4761_s30 + $0x2ec] sm:$0xf0]  ;;  %v4409_v55 = vld [vmem:[%s4761_s30 + $0x2bc] sm:$0xf] }
 0x1dc   : > { %v5434_v2 = vadd.f32 %v2637_v52, %v2589_v1  ;;  %v2543_v5 = vadd.f32 %v2542_v58, %v2494_v62  ;;  %2688 = vmatmul.bf16.gmra.mxu0 %v3538_v57  ;;  %v4408_v52 = vld [vmem:[%s4761_s30 + $0x2b4] sm:$0xf]  ;;  %v4417_v1 = vld [vmem:[%s4761_s30 + $0x2f4] sm:$0xf0]  ;;  %v3675_v58 = vld [vmem:[%s4761_s30 + $0x2f8] sm:$0xf0]  ;;  %v3666_v62 = vor.u32 %v4416_v56, %v3665_v53 }
 0x1dd   : > { %2737 = vmatmul.bf16.gmra.mxu1 %v3542_v3  ;;  %v3667_v57 = vld [vmem:[%s4761_s30 + $0x2f0] sm:$0xf0]  ;;  %v3673_v3 = vld [vmem:[%s4761_s30 + $0x2b8] sm:$0xf] }
 0x1de   : > { %2786 = vmatmul.bf16.gmra.mxu2 %v3546_v19  ;;  %v3670_v4 = vor.u32 %v4408_v52, %v3667_v57 }
 0x1df   : > { %2835 = vmatmul.bf16.gmra.mxu3 %v3550_v59 }
 0x1e1   : > { %v2591_v6 = vpop.f32.mrf.mxu2  ;;  %v2495_v9 = vpop.f32.mrf.mxu0 }
 0x1e2   : > { %v2640_v0 = vpop.f32.mrf.mxu3  ;;  %v2592_v8 = vadd.f32 %v2591_v6, %v2543_v5  ;;  %v2544_v10 = vpop.f32.mrf.mxu1  ;;  %v2496_v11 = vadd.f32 %v2495_v9, %v5268_v20 }
 0x1e4   : > { %v5438_v12 = vadd.f32 %v2640_v0, %v2592_v8  ;;  %v2545_v14 = vadd.f32 %v2544_v10, %v2496_v11  ;;  %v3674_v8 = vor.u32 %v4417_v1, %v3673_v3 }
 0x1e9   : > { %v2593_v24 = vpop.f32.mrf.mxu2  ;;  %v2498_v20 = vpop.f32.mrf.mxu0 }
 0x1ea   : > { %v2642_v31 = vpop.f32.mrf.mxu3  ;;  %v2594_v35 = vadd.f32 %v2593_v24, %v2545_v14  ;;  %v2547_v29 = vpop.f32.mrf.mxu1  ;;  %v2499_v40 = vadd.f32 %v2498_v20, %v5280_v30  ;;  %v4424_v24 = vld [vmem:[%s4761_s30 + $0x334] sm:$0xf]  ;;  %v3739_v20 = vld [vmem:[%s4761_s30 + $0x378] sm:$0xf0] }
 0x1ec   : > { %v5450_v36 = vadd.f32 %v2642_v31, %v2594_v35  ;;  %v2548_v38 = vadd.f32 %v2547_v29, %v2499_v40  ;;  %2693 = vmatmul.bf16.gmra.mxu0 %v3602_v33  ;;  %v3731_v31 = vld [vmem:[%s4761_s30 + $0x370] sm:$0xf0]  ;;  %v3737_v33 = vld [vmem:[%s4761_s30 + $0x338] sm:$0xf]  ;;  %v4425_v35 = vld [vmem:[%s4761_s30 + $0x33c] sm:$0xf]  ;;  %v5480_v29 = vpop.permute.xlu0 %2879 }
 0x1ed   : > { %2742 = vmatmul.bf16.gmra.mxu1 %v3606_v34  ;;  %v4433_v34 = vld [vmem:[%s4761_s30 + $0x374] sm:$0xf0] }
 0x1ee   : > { %2791 = vmatmul.bf16.gmra.mxu2 %v3610_v39  ;;  %v5482_v39 = vpop.permute.xlu2 %2899 }
 0x1ef   : > { %2840 = vmatmul.bf16.gmra.mxu3 %v3614_v61 }
 0x1f1   : > { %v2596_v42 = vpop.f32.mrf.mxu2  ;;  %v2500_v44 = vpop.f32.mrf.mxu0 }
 0x1f2   : > { %v2645_v43 = vpop.f32.mrf.mxu3  ;;  %v2597_v30 = vadd.f32 %v2596_v42, %v2548_v38  ;;  %v2549_v17 = vpop.f32.mrf.mxu1  ;;  %v2501_v45 = vadd.f32 %v2500_v44, %v5302_v50  ;;  %v3678_v50 = vor.u32 %v4409_v55, %v3675_v58  ;;  %v3734_v38 = vor.u32 %v4424_v24, %v3731_v31 }
 0x1f3   : > { %v3742_v44 = vor.u32 %v4425_v35, %v3739_v20 }
 0x1f4   : > { %v5454_v47 = vadd.f32 %v2645_v43, %v2597_v30  ;;  %v2550_v48 = vadd.f32 %v2549_v17, %v2501_v45  ;;  %v3738_v30 = vor.u32 %v4433_v34, %v3737_v33  ;;  %v5492_v58 = vpop.permute.xlu0 %2884 }
 0x1f9   : > { %v2598_v19 = vpop.f32.mrf.mxu2  ;;  %v2503_v6 = vpop.f32.mrf.mxu0 }
 0x1fa   : > { %v2647_v59 = vpop.f32.mrf.mxu3  ;;  %v2599_v5 = vadd.f32 %v2598_v19, %v2550_v48  ;;  %v2552_v0 = vpop.f32.mrf.mxu1  ;;  %v2504_v9 = vadd.f32 %v2503_v6, %v5316_v22  ;;  %v3795_v6 = vld [vmem:[%s4761_s30 + $0x3f0] sm:$0xf0] }
 0x1fb   : > { %v5487_v48 = vpop.permute.xlu1 %2894  ;;  %v5494_v19 = vpop.permute.xlu2 %2904 }
 0x1fc   : > { %v5465_v10 = vadd.f32 %v2647_v59, %v2599_v5  ;;  %v2553_v11 = vadd.f32 %v2552_v0, %v2504_v9  ;;  %2698 = vmatmul.bf16.gmra.mxu0 %v3666_v62  ;;  %v3793_v62 = vld [vmem:[%s4761_s30 + $0x3b0] sm:$0xf]  ;;  %v4440_v5 = vld [vmem:[%s4761_s30 + $0x3b4] sm:$0xf]  ;;  %v3801_v0 = vld [vmem:[%s4761_s30 + $0x3b8] sm:$0xf]  ;;  %v5509_v33 = vpop.permute.xlu0 %2909 }
 0x1fd   : > { %2747 = vmatmul.bf16.gmra.mxu1 %v3670_v4  ;;  %v4448_v4 = vld [vmem:[%s4761_s30 + $0x3ec] sm:$0xf0]  ;;  %v4441_v9 = vld [vmem:[%s4761_s30 + $0x3bc] sm:$0xf] }
 0x1fe   : > { %2796 = vmatmul.bf16.gmra.mxu2 %v3674_v8 }
 0x1ff   : > { %2845 = vmatmul.bf16.gmra.mxu3 %v3678_v50  ;;  %v4449_v50 = vld [vmem:[%s4761_s30 + $0x3f4] sm:$0xf0] }
 0x201   : > { %v2601_v14 = vpop.f32.mrf.mxu2  ;;  %v2505_v15 = vpop.f32.mrf.mxu0 }
 0x202   : > { %v2650_v13 = vpop.f32.mrf.mxu3  ;;  %v2602_v22 = vadd.f32 %v2601_v14, %v2553_v11  ;;  %v2554_v26 = vpop.f32.mrf.mxu1  ;;  %v2506_v16 = vadd.f32 %v2505_v15, %v5332_v51  ;;  %v3803_v11 = vld [vmem:[%s4761_s30 + $0x3f8] sm:$0xf0]  ;;  %s3294_s30 = sshll.u32 %s5621_s21, 2 }
 0x203   : > { %v5501_v8 = vpop.permute.xlu1 %2914  ;;  %v3806_v49 = vor.u32 %v4441_v9, %v3803_v11  ;;  %v5511_v34 = vpop.permute.xlu2 %2919  ;;  %s5537_s8 = scalar_lea.vmem %s5615_s4, %s3294_s30 }
 0x204   : > { %v5470_v60 = vadd.f32 %v2650_v13, %v2602_v22  ;;  %v2555_v21 = vadd.f32 %v2554_v26, %v2506_v16  ;;  %v3798_v22 = vor.u32 %v4440_v5, %v3795_v6 }
 0x209   : > { %v2603_v61 = vpop.f32.mrf.mxu2  ;;  %v2508_v42 = vpop.f32.mrf.mxu0 }
 0x20a   : > { %v2652_v40 = vpop.f32.mrf.mxu3  ;;  %v2604_v51 = vadd.f32 %v2603_v61, %v2555_v21  ;;  %v2557_v43 = vpop.f32.mrf.mxu1  ;;  %v2509_v17 = vadd.f32 %v2508_v42, %v5337_v63  ;;  %v3802_v21 = vor.u32 %v4449_v50, %v3801_v0 }
 0x20b   : > { %v5513_v35 = vpop.permute.xlu1 %2929 }
 0x20c   : > { %v5485_v45 = vadd.f32 %v2652_v40, %v2604_v51  ;;  %v2558_v53 = vadd.f32 %v2557_v43, %v2509_v17  ;;  %2703 = vmatmul.bf16.gmra.mxu0 %v3730_v54  ;;  %v5518_v43 = vpop.permute.xlu0 %2924 }
 0x20d   : > { %2752 = vmatmul.bf16.gmra.mxu1 %v3734_v38 }
 0x20e   : > { %2801 = vmatmul.bf16.gmra.mxu2 %v3738_v30  ;;  %v5520_v30 = vpop.permute.xlu2 %2934 }
 0x20f   : > { %2850 = vmatmul.bf16.gmra.mxu3 %v3742_v44 }
 0x211   : > { %v2606_v56 = vpop.f32.mrf.mxu2  ;;  %v2510_v63 = vpop.f32.mrf.mxu0 }
 0x212   : > { %v2655_v52 = vpop.f32.mrf.mxu3  ;;  %v2607_v57 = vadd.f32 %v2606_v56, %v2558_v53  ;;  %v2559_v3 = vpop.f32.mrf.mxu1  ;;  %v2511_v1 = vadd.f32 %v2510_v63, %v5350_v27  ;;  %v3794_v27 = vor.u32 %v4448_v4, %v3793_v62 }
 0x214   : > { %v5490_v55 = vadd.f32 %v2655_v52, %v2607_v57  ;;  %v2560_v59 = vadd.f32 %v2559_v3, %v2511_v1  ;;  %v5522_v57 = vpop.permute.xlu1 %2944  ;;  %v5527_v6 = vpop.permute.xlu0 %2939 }
 0x216   : > { %v5529_v0 = vpop.permute.xlu2 %2949 }
 0x219   : > { %v2608_v14 = vpop.f32.mrf.mxu2  ;;  %v2513_v26 = vpop.f32.mrf.mxu0 }
 0x21a   : > { %v2657_v13 = vpop.f32.mrf.mxu3  ;;  %v2609_v15 = vadd.f32 %v2608_v14, %v2560_v59  ;;  %v2562_v16 = vpop.f32.mrf.mxu1  ;;  %v2514_v23 = vadd.f32 %v2513_v26, %v5363_v41 }
 0x21c   : > { %v5507_v24 = vadd.f32 %v2657_v13, %v2609_v15  ;;  %v2563_v31 = vadd.f32 %v2562_v16, %v2514_v23  ;;  %2708 = vmatmul.bf16.gmra.mxu0 %v3794_v27  ;;  %v2992_v11 = vpop.permute.xlu1 %2991 }
 0x21d   : > { %2757 = vmatmul.bf16.gmra.mxu1 %v3798_v22 }
 0x21e   : > { %2806 = vmatmul.bf16.gmra.mxu2 %v3802_v21 }
 0x21f   : > { %2855 = vmatmul.bf16.gmra.mxu3 %v3806_v49 }
 0x221   : > { %v2611_v20 = vpop.f32.mrf.mxu2  ;;  %v2515_v54 = vpop.f32.mrf.mxu0 }
 0x222   : > { %v2660_v61 = vpop.f32.mrf.mxu3  ;;  %v2612_v40 = vadd.f32 %v2611_v20, %v2563_v31  ;;  %v2564_v38 = vpop.f32.mrf.mxu1  ;;  %v2516_v41 = vadd.f32 %v2515_v54, %v5377_v7 }
 0x223   : > { %v5540_v31 = vpop.permute.xlu0 %2954  ;;  %v2997_v20 = vpop.permute.xlu2 %2996 }
 0x224   : > { %v5516_v51 = vadd.f32 %v2660_v61, %v2612_v40  ;;  %v2565_v42 = vadd.f32 %v2564_v38, %v2516_v41 }
 0x229   : > { %v2613_v44 = vpop.f32.mrf.mxu2  ;;  %v2674_v56 = vpop.f32.mrf.mxu0 }
 0x22a   : > { %v2662_v17 = vpop.f32.mrf.mxu3  ;;  %v2614_v53 = vadd.f32 %v2613_v44, %v2565_v42  ;;  %v2723_v52 = vpop.f32.mrf.mxu1  ;;  %v2675_v3 = vadd.f32 %v2674_v56, %v5383_v18 }
 0x22c   : > { %v5524_v63 = vadd.f32 %v2662_v17, %v2614_v53  ;;  %v2724_v7 = vadd.f32 %v2723_v52, %v2675_v3 }
 0x231   : > { %v2772_v1 = vpop.f32.mrf.mxu2  ;;  %v2676_v4 = vpop.f32.mrf.mxu0 }
 0x232   : > { %v2821_v59 = vpop.f32.mrf.mxu3  ;;  %v2773_v62 = vadd.f32 %v2772_v1, %v2724_v7  ;;  %v2725_v5 = vpop.f32.mrf.mxu1  ;;  %v2677_v9 = vadd.f32 %v2676_v4, %v5397_v46 }
 0x234   : > { %v2822_v50 = vadd.f32 %v2821_v59, %v2773_v62  ;;  %v2726_v13 = vadd.f32 %v2725_v5, %v2677_v9 }
 0x236   : > { %v2957_v14 = vmul.f32 %v5480_v29, %v2822_v50 }
 0x238   : > { %v3069_v27 = vadd.f32 %v2992_v11, %v2957_v14 }
 0x239   : > { %v2774_v18 = vpop.f32.mrf.mxu2  ;;  %v2679_v16 = vpop.f32.mrf.mxu0 }
 0x23a   : > { %v2823_v22 = vpop.f32.mrf.mxu3  ;;  %vm3085_vm0 = vcmp.gt.f32.partialorder %v3069_v27, 0.0  ;;  %v3101_v15 = vmul.f32 0.2, %v3069_v27  ;;  %v2775_v26 = vadd.f32 %v2774_v18, %v2726_v13  ;;  %v2728_v21 = vpop.f32.mrf.mxu1  ;;  %v2680_v29 = vadd.f32 %v2679_v16, %v5403_v28 }
 0x23b   : > { %v3007_v18 = vpop.permute.xlu1 %3006 }
 0x23c   : > { %v3117_v46 = vsel %vm3085_vm0, %v3069_v27, %v3101_v15  ;;  %v2824_v49 = vadd.f32 %v2823_v22, %v2775_v26  ;;  %v2729_v40 = vadd.f32 %v2728_v21, %v2680_v29 }
 0x23d   : > { %v3133_v23 = vpack.c.bf16 %v3117_v46, %v3117_v46 }
 0x23e   : > { %v2958_v61 = vmul.f32 %v5492_v58, %v2824_v49  ;;  %v3002_v58 = vpop.permute.xlu0 %3001 }
 0x23f   : > { %3150 = vst.msk [vmem:[%s5537_s8] sm:$0xf] %vm3149_vm1, %v3133_v23 }
 0x240   : > { %v3070_v54 = vadd.f32 %v2997_v20, %v2958_v61 }
 0x241   : > { %v2777_v38 = vpop.f32.mrf.mxu2  ;;  %v2681_v17 = vpop.f32.mrf.mxu0 }
 0x242   : > { %v2826_v41 = vpop.f32.mrf.mxu3  ;;  %vm3086_vm2 = vcmp.gt.f32.partialorder %v3070_v54, 0.0  ;;  %v3102_v42 = vmul.f32 0.2, %v3070_v54  ;;  %v2778_v44 = vadd.f32 %v2777_v38, %v2729_v40  ;;  %v2730_v53 = vpop.f32.mrf.mxu1  ;;  %v2682_v52 = vadd.f32 %v2681_v17, %v5417_v25 }
 0x243   : > { %v3012_v40 = vpop.permute.xlu2 %3011 }
 0x244   : > { %v3118_v56 = vsel %vm3086_vm2, %v3070_v54, %v3102_v42  ;;  %v2827_v28 = vadd.f32 %v2826_v41, %v2778_v44  ;;  %v2731_v59 = vadd.f32 %v2730_v53, %v2682_v52 }
 0x245   : > { %v3134_v3 = vpack.c.bf16 %v3118_v56, %v3118_v56 }
 0x246   : > { %v2959_v7 = vmul.f32 %v5467_v32, %v2827_v28 }
 0x247   : > { %3151 = vst.msk [vmem:[%s5537_s8 + $0x4] sm:$0xf] %vm3149_vm1, %v3134_v3 }
 0x248   : > { %v3071_v1 = vadd.f32 %v3002_v58, %v2959_v7  ;;  %v3017_v7 = vpop.permute.xlu0 %3016 }
 0x249   : > { %v2779_v62 = vpop.f32.mrf.mxu2  ;;  %v2684_v9 = vpop.f32.mrf.mxu0 }
 0x24a   : > { %v2828_v4 = vpop.f32.mrf.mxu3  ;;  %vm3087_vm3 = vcmp.gt.f32.partialorder %v3071_v1, 0.0  ;;  %v3103_v5 = vmul.f32 0.2, %v3071_v1  ;;  %v2780_v50 = vadd.f32 %v2779_v62, %v2731_v59  ;;  %v2733_v11 = vpop.f32.mrf.mxu1  ;;  %v2685_v25 = vadd.f32 %v2684_v9, %v5422_v37 }
 0x24c   : > { %v3119_v14 = vsel %vm3087_vm3, %v3071_v1, %v3103_v5  ;;  %v2829_v13 = vadd.f32 %v2828_v4, %v2780_v50  ;;  %v2734_v15 = vadd.f32 %v2733_v11, %v2685_v25  ;;  %v3022_v25 = vpop.permute.xlu1 %3021 }
 0x24d   : > { %v3135_v27 = vpack.c.bf16 %v3119_v14, %v3119_v14 }
 0x24e   : > { %v2960_v32 = vmul.f32 %v5487_v48, %v2829_v13 }
 0x24f   : > { %3152 = vst.msk [vmem:[%s5537_s8 + $0x8] sm:$0xf] %vm3149_vm1, %v3135_v27 }
 0x250   : > { %v3072_v22 = vadd.f32 %v3007_v18, %v2960_v32 }
 0x251   : > { %v2782_v26 = vpop.f32.mrf.mxu2  ;;  %v2686_v49 = vpop.f32.mrf.mxu0 }
 0x252   : > { %v2831_v16 = vpop.f32.mrf.mxu3  ;;  %vm3088_vm4 = vcmp.gt.f32.partialorder %v3072_v22, 0.0  ;;  %v3104_v21 = vmul.f32 0.2, %v3072_v22  ;;  %v2783_v46 = vadd.f32 %v2782_v26, %v2734_v15  ;;  %v2735_v29 = vpop.f32.mrf.mxu1  ;;  %v2687_v37 = vadd.f32 %v2686_v49, %v5434_v2 }
 0x254   : > { %v3120_v23 = vsel %vm3088_vm4, %v3072_v22, %v3104_v21  ;;  %v2832_v20 = vadd.f32 %v2831_v16, %v2783_v46  ;;  %v2736_v38 = vadd.f32 %v2735_v29, %v2687_v37 }
 0x255   : > { %v3136_v61 = vpack.c.bf16 %v3120_v23, %v3120_v23  ;;  %v3027_v23 = vpop.permute.xlu2 %3026 }
 0x256   : > { %v2961_v48 = vmul.f32 %v5482_v39, %v2832_v20 }
 0x257   : > { %3153 = vst.msk [vmem:[%s5537_s8 + $0xc] sm:$0xf] %vm3149_vm1, %v3136_v61 }
 0x258   : > { %v3073_v54 = vadd.f32 %v3012_v40, %v2961_v48 }
 0x259   : > { %v2784_v41 = vpop.f32.mrf.mxu2  ;;  %v2689_v53 = vpop.f32.mrf.mxu0 }
 0x25a   : > { %v2833_v42 = vpop.f32.mrf.mxu3  ;;  %vm3089_vm5 = vcmp.gt.f32.partialorder %v3073_v54, 0.0  ;;  %v3105_v44 = vmul.f32 0.2, %v3073_v54  ;;  %v2785_v17 = vadd.f32 %v2784_v41, %v2736_v38  ;;  %v2738_v56 = vpop.f32.mrf.mxu1  ;;  %v2690_v2 = vadd.f32 %v2689_v53, %v5438_v12 }
 0x25b   : > { %v3032_v53 = vpop.permute.xlu0 %3031 }
 0x25c   : > { %v3121_v28 = vsel %vm3089_vm5, %v3073_v54, %v3105_v44  ;;  %v2834_v52 = vadd.f32 %v2833_v42, %v2785_v17  ;;  %v2739_v1 = vadd.f32 %v2738_v56, %v2690_v2 }
 0x25d   : > { %v3137_v3 = vpack.c.bf16 %v3121_v28, %v3121_v28 }
 0x25e   : > { %v2962_v39 = vmul.f32 %v5494_v19, %v2834_v52 }
 0x25f   : > { %3154 = vst.msk [vmem:[%s5537_s8 + $0x10] sm:$0xf] %vm3149_vm1, %v3137_v3 }
 0x260   : > { %v3074_v58 = vadd.f32 %v3017_v7, %v2962_v39 }
 0x261   : > { %v2787_v59 = vpop.f32.mrf.mxu2  ;;  %v2691_v50 = vpop.f32.mrf.mxu0 }
 0x262   : > { %v2836_v62 = vpop.f32.mrf.mxu3  ;;  %vm3090_vm6 = vcmp.gt.f32.partialorder %v3074_v58, 0.0  ;;  %v3106_v4 = vmul.f32 0.2, %v3074_v58  ;;  %v2788_v5 = vadd.f32 %v2787_v59, %v2739_v1  ;;  %v2740_v9 = vpop.f32.mrf.mxu1  ;;  %v2692_v12 = vadd.f32 %v2691_v50, %v5450_v36 }
 0x264   : > { %v3122_v11 = vsel %vm3090_vm6, %v3074_v58, %v3106_v4  ;;  %v2837_v14 = vadd.f32 %v2836_v62, %v2788_v5  ;;  %v2741_v32 = vadd.f32 %v2740_v9, %v2692_v12  ;;  %v3037_v4 = vpop.permute.xlu1 %3036 }
 0x265   : > { %v3138_v13 = vpack.c.bf16 %v3122_v11, %v3122_v11 }
 0x266   : > { %v2963_v19 = vmul.f32 %v5509_v33, %v2837_v14 }
 0x267   : > { %3155 = vst.msk [vmem:[%s5537_s8 + $0x14] sm:$0xf] %vm3149_vm1, %v3138_v13 }
 0x268   : > { %v3075_v27 = vadd.f32 %v3022_v25, %v2963_v19 }
 0x269   : > { %v2789_v18 = vpop.f32.mrf.mxu2  ;;  %v2694_v16 = vpop.f32.mrf.mxu0 }
 0x26a   : > { %v2838_v22 = vpop.f32.mrf.mxu3  ;;  %vm3091_vm7 = vcmp.gt.f32.partialorder %v3075_v27, 0.0  ;;  %v3107_v15 = vmul.f32 0.2, %v3075_v27  ;;  %v2790_v26 = vadd.f32 %v2789_v18, %v2741_v32  ;;  %v2743_v21 = vpop.f32.mrf.mxu1  ;;  %v2695_v36 = vadd.f32 %v2694_v16, %v5454_v47 }
 0x26b   : > { %v3042_v18 = vpop.permute.xlu2 %3041 }
 0x26c   : > { %v3123_v46 = vsel %vm3091_vm7, %v3075_v27, %v3107_v15  ;;  %v2839_v49 = vadd.f32 %v2838_v22, %v2790_v26  ;;  %v2744_v37 = vadd.f32 %v2743_v21, %v2695_v36 }
 0x26d   : > { %v3139_v29 = vpack.c.bf16 %v3123_v46, %v3123_v46 }
 0x26e   : > { %v2964_v33 = vmul.f32 %v5501_v8, %v2839_v49 }
 0x26f   : > { %3156 = vst.msk [vmem:[%s5537_s8 + $0x18] sm:$0xf] %vm3149_vm1, %v3139_v29 }
 0x270   : > { %v3076_v20 = vadd.f32 %v3027_v23, %v2964_v33 }
 0x271   : > { %v2792_v61 = vpop.f32.mrf.mxu2  ;;  %v2696_v38 = vpop.f32.mrf.mxu0 }
 0x272   : > { %v2841_v48 = vpop.f32.mrf.mxu3  ;;  %vm3092_vm8 = vcmp.gt.f32.partialorder %v3076_v20, 0.0  ;;  %v3108_v40 = vmul.f32 0.2, %v3076_v20  ;;  %v2793_v54 = vadd.f32 %v2792_v61, %v2744_v37  ;;  %v2745_v41 = vpop.f32.mrf.mxu1  ;;  %v2697_v47 = vadd.f32 %v2696_v38, %v5465_v10 }
 0x274   : > { %v3124_v42 = vsel %vm3092_vm8, %v3076_v20, %v3108_v40  ;;  %v2842_v44 = vadd.f32 %v2841_v48, %v2793_v54  ;;  %v2746_v28 = vadd.f32 %v2745_v41, %v2697_v47  ;;  %v3047_v20 = vpop.permute.xlu0 %3046 }
 0x275   : > { %v3140_v17 = vpack.c.bf16 %v3124_v42, %v3124_v42 }
 0x276   : > { %v2965_v8 = vmul.f32 %v5511_v34, %v2842_v44 }
 0x277   : > { %3157 = vst.msk [vmem:[%s5537_s8 + $0x1c] sm:$0xf] %vm3149_vm1, %v3140_v17 }
 0x278   : > { %v3077_v56 = vadd.f32 %v3032_v53, %v2965_v8  ;;  %v3052_v8 = vpop.permute.xlu1 %3051 }
 0x279   : > { %v2794_v52 = vpop.f32.mrf.mxu2  ;;  %v2699_v7 = vpop.f32.mrf.mxu0 }
 0x27a   : > { %v2843_v2 = vpop.f32.mrf.mxu3  ;;  %vm3093_vm9 = vcmp.gt.f32.partialorder %v3077_v56, 0.0  ;;  %v3109_v3 = vmul.f32 0.2, %v3077_v56  ;;  %v2795_v39 = vadd.f32 %v2794_v52, %v2746_v28  ;;  %v2748_v58 = vpop.f32.mrf.mxu1  ;;  %v2700_v10 = vadd.f32 %v2699_v7, %v5470_v60 }
 0x27c   : > { %v3125_v1 = vsel %vm3093_vm9, %v3077_v56, %v3109_v3  ;;  %v2844_v59 = vadd.f32 %v2843_v2, %v2795_v39  ;;  %v2749_v50 = vadd.f32 %v2748_v58, %v2700_v10  ;;  %v3057_v10 = vpop.permute.xlu2 %3056 }
 0x27d   : > { %v3141_v62 = vpack.c.bf16 %v3125_v1, %v3125_v1 }
 0x27e   : > { %v2966_v34 = vmul.f32 %v5518_v43, %v2844_v59 }
 0x27f   : > { %3158 = vst.msk [vmem:[%s5537_s8 + $0x20] sm:$0xf] %vm3149_vm1, %v3141_v62 }
 0x280   : > { %v3078_v5 = vadd.f32 %v3037_v4, %v2966_v34 }
 0x281   : > { %v2797_v9 = vpop.f32.mrf.mxu2  ;;  %v2701_v13 = vpop.f32.mrf.mxu0 }
 0x282   : > { %v2846_v11 = vpop.f32.mrf.mxu3  ;;  %vm3094_vm10 = vcmp.gt.f32.partialorder %v3078_v5, 0.0  ;;  %v3110_v14 = vmul.f32 0.2, %v3078_v5  ;;  %v2798_v12 = vadd.f32 %v2797_v9, %v2749_v50  ;;  %v2750_v19 = vpop.f32.mrf.mxu1  ;;  %v2702_v60 = vadd.f32 %v2701_v13, %v5485_v45 }
 0x284   : > { %v3126_v25 = vsel %vm3094_vm10, %v3078_v5, %v3110_v14  ;;  %v2847_v27 = vadd.f32 %v2846_v11, %v2798_v12  ;;  %v2751_v15 = vadd.f32 %v2750_v19, %v2702_v60 }
 0x285   : > { %v3142_v32 = vpack.c.bf16 %v3126_v25, %v3126_v25 }
 0x286   : > { %v2967_v43 = vmul.f32 %v5513_v35, %v2847_v27 }
 0x287   : > { %3159 = vst.msk [vmem:[%s5537_s8 + $0x24] sm:$0xf] %vm3149_vm1, %v3142_v32 }
 0x288   : > { %v3079_v22 = vadd.f32 %v3042_v18, %v2967_v43 }
 0x289   : > { %v2799_v26 = vpop.f32.mrf.mxu2  ;;  %v2704_v49 = vpop.f32.mrf.mxu0 }
 0x28a   : > { %v2848_v16 = vpop.f32.mrf.mxu3  ;;  %vm3095_vm11 = vcmp.gt.f32.partialorder %v3079_v22, 0.0  ;;  %v3111_v21 = vmul.f32 0.2, %v3079_v22  ;;  %v2800_v46 = vadd.f32 %v2799_v26, %v2751_v15  ;;  %v2753_v36 = vpop.f32.mrf.mxu1  ;;  %v2705_v45 = vadd.f32 %v2704_v49, %v5490_v55 }
 0x28c   : > { %v3127_v29 = vsel %vm3095_vm11, %v3079_v22, %v3111_v21  ;;  %v2849_v33 = vadd.f32 %v2848_v16, %v2800_v46  ;;  %v2754_v61 = vadd.f32 %v2753_v36, %v2705_v45  ;;  %v3067_v21 = vpop.permute.xlu1 %3066 }
 0x28d   : > { %v3143_v23 = vpack.c.bf16 %v3127_v29, %v3127_v29 }
 0x28e   : > { %v2968_v35 = vmul.f32 %v5520_v30, %v2849_v33 }
 0x28f   : > { %3160 = vst.msk [vmem:[%s5537_s8 + $0x28] sm:$0xf] %vm3149_vm1, %v3143_v23 }
 0x290   : > { %v3080_v37 = vadd.f32 %v3047_v20, %v2968_v35 }
 0x291   : > { %v2802_v48 = vpop.f32.mrf.mxu2  ;;  %v2706_v41 = vpop.f32.mrf.mxu0 }
 0x292   : > { %v2851_v40 = vpop.f32.mrf.mxu3  ;;  %vm3096_vm12 = vcmp.gt.f32.partialorder %v3080_v37, 0.0  ;;  %v3112_v54 = vmul.f32 0.2, %v3080_v37  ;;  %v2803_v38 = vadd.f32 %v2802_v48, %v2754_v61  ;;  %v2755_v42 = vpop.f32.mrf.mxu1  ;;  %v2707_v55 = vadd.f32 %v2706_v41, %v5507_v24 }
 0x294   : > { %v3128_v44 = vsel %vm3096_vm12, %v3080_v37, %v3112_v54  ;;  %v2852_v47 = vadd.f32 %v2851_v40, %v2803_v38  ;;  %v2756_v56 = vadd.f32 %v2755_v42, %v2707_v55 }
 0x295   : > { %v3144_v17 = vpack.c.bf16 %v3128_v44, %v3128_v44 }
 0x296   : > { %v2969_v30 = vmul.f32 %v5527_v6, %v2852_v47 }
 0x297   : > { %3161 = vst.msk [vmem:[%s5537_s8 + $0x2c] sm:$0xf] %vm3149_vm1, %v3144_v17 }
 0x298   : > { %v3081_v53 = vadd.f32 %v3052_v8, %v2969_v30 }
 0x299   : > { %v2804_v28 = vpop.f32.mrf.mxu2  ;;  %v2709_v39 = vpop.f32.mrf.mxu0 }
 0x29a   : > { %v2853_v52 = vpop.f32.mrf.mxu3  ;;  %vm3097_vm13 = vcmp.gt.f32.partialorder %v3081_v53, 0.0  ;;  %v3113_v2 = vmul.f32 0.2, %v3081_v53  ;;  %v2805_v3 = vadd.f32 %v2804_v28, %v2756_v56  ;;  %v2710_v1 = vadd.f32 %v2709_v39, %v5516_v51  ;;  %v2758_v59 = vpop.f32.mrf.mxu1 }
 0x29c   : > { %v3129_v7 = vsel %vm3097_vm13, %v3081_v53, %v3113_v2  ;;  %v2854_v58 = vadd.f32 %v2853_v52, %v2805_v3  ;;  %v2759_v34 = vadd.f32 %v2758_v59, %v2710_v1 }
 0x29d   : > { %v3145_v24 = vpack.c.bf16 %v3129_v7, %v3129_v7 }
 0x29e   : > { %v2970_v6 = vmul.f32 %v5522_v57, %v2854_v58  ;;  %v3062_v57 = vpop.permute.xlu0 %3061 }
 0x29f   : > { %3162 = vst.msk [vmem:[%s5537_s8 + $0x30] sm:$0xf] %vm3149_vm1, %v3145_v24 }
 0x2a0   : > { %v3082_v62 = vadd.f32 %v3057_v10, %v2970_v6 }
 0x2a1   : > { %v2807_v4 = vpop.f32.mrf.mxu2  ;;  %v2711_v11 = vpop.f32.mrf.mxu0 }
 0x2a2   : > { %v2856_v5 = vpop.f32.mrf.mxu3  ;;  %vm3098_vm14 = vcmp.gt.f32.partialorder %v3082_v62, 0.0  ;;  %v3114_v50 = vmul.f32 0.2, %v3082_v62  ;;  %v2808_v9 = vadd.f32 %v2807_v4, %v2759_v34  ;;  %v2712_v51 = vadd.f32 %v2711_v11, %v5524_v63  ;;  %v2760_v25 = vpop.f32.mrf.mxu1 }
 0x2a4   : > { %v3130_v14 = vsel %vm3098_vm14, %v3082_v62, %v3114_v50  ;;  %v2857_v12 = vadd.f32 %v2856_v5, %v2808_v9  ;;  %v2761_v60 = vadd.f32 %v2760_v25, %v2712_v51 }
 0x2a5   : > { %v3146_v13 = vpack.c.bf16 %v3130_v14, %v3130_v14 }
 0x2a6   : > { %v2971_v19 = vmul.f32 %v5529_v0, %v2857_v12 }
 0x2a7   : > { %3163 = vst.msk [vmem:[%s5537_s8 + $0x34] sm:$0xf] %vm3149_vm1, %v3146_v13 }
 0x2a8   : > { %v3083_v27 = vadd.f32 %v3062_v57, %v2971_v19 }
 0x2a9   : > { %v2809_v32 = vpop.f32.mrf.mxu2 }
 0x2aa   : > { %vm3099_vm15 = vcmp.gt.f32.partialorder %v3083_v27, 0.0  ;;  %v3115_v43 = vmul.f32 0.2, %v3083_v27  ;;  %v2810_v18 = vadd.f32 %v2809_v32, %v2761_v60  ;;  %v2858_v22 = vpop.f32.mrf.mxu3 }
 0x2ac   : > { %v3131_v15 = vsel %vm3099_vm15, %v3083_v27, %v3115_v43  ;;  %v2859_v26 = vadd.f32 %v2858_v22, %v2810_v18 }
 0x2ad   : > { %v3147_v16 = vpack.c.bf16 %v3131_v15, %v3131_v15 }
 0x2ae   : > { %v2972_v63 = vmul.f32 %v5540_v31, %v2859_v26 }
 0x2af   : > { %3164 = vst.msk [vmem:[%s5537_s8 + $0x38] sm:$0xf] %vm3149_vm1, %v3147_v16 }
 0x2b0   : > { %v3084_v0 = vadd.f32 %v3067_v21, %v2972_v63 }
 0x2b2   : > { %vm3100_vm0 = vcmp.gt.f32.partialorder %v3084_v0, 0.0  ;;  %v3116_v46 = vmul.f32 0.2, %v3084_v0 }
 0x2b4   : > { %v3132_v49 = vsel %vm3100_vm0, %v3084_v0, %v3116_v46 }
 0x2b5   : > { %v3148_v36 = vpack.c.bf16 %v3132_v49, %v3132_v49 }
 0x2b7   : > { %3165 = vst.msk [vmem:[%s5537_s8 + $0x3c] sm:$0xf] %vm3149_vm1, %v3148_v36 }
 0x2b8 PF: > { %s14_s17 = sadd.s32 1, %s4628_s17   ;;  %s5616_s15 = smov %s4624_s16 }
 0x2b9   : > { %p11_p5 = scmp.ge.s32.totalorder %s14_s17, 4   ;;  %s5617_s16 = smov %s5619_s18 }
 0x2bb   :  { %13 = sbr.rel (!%p11_p5) target bundleno = 2 (0x2), region = 75 }

// kernel: d_net128_forward.12
= control target key start
LH: loop header
LB: loop body
LE: loop exit
PB: predicated region body
PF: predicated region fallthrough
CT: control target
= control target key end

     0   :  { %s3849_s15 = smov 0   ;;  %s3851_s16 = smov 0   ;;  %s4663_s0 = inlined_call_operand.vmem [shape: bf16[128,2304], index: 0, kind: input, shape index: {}]   ;;  %s4664_s1 = inlined_call_operand.vmem [shape: bf16[2304,32], index: 1, kind: input, shape index: {}]   ;;  %s4665_s2 = inlined_call_operand.vmem [shape: f32[128,1], index: 2, kind: input, shape index: {}]   ;;  %s4666_s3 = inlined_call_operand.vmem [shape: f32[128,1], index: 3, kind: input, shape index: {}]   ;;  %s4667_s4 = inlined_call_operand.vmem [shape: bf16[128,32], index: 4, kind: output, shape index: {}]  }
   0x1   :  { %s3853_s17 = smov 0  }
   0x2 LB: > { %s26_s18 = sadd.s32 1, %s3817_s16  ;;  %p2663_p0 = scmp.ge.s32.totalorder %s3821_s17, 1  ;;  %s3821_s17 = sphi %s3853_s17, %s14_s17   ;;  %s3817_s16 = sphi %s3851_s16, %s4669_s16   ;;  %s3813_s15 = sphi %s3849_s15, %s4668_s15  }
   0x3   : > { %p28_p1 = scmp.ge.s32.totalorder %s26_s18, 2  ;;  %p209_p2 = scmp.lt.s32.totalorder %s3821_s17, 3 }
   0x5   : > { %s4671_s18 = smov (%p28_p1, %s26_s18), 0  ;;  %p210_p3 = pnand %p2663_p0, %p209_p2 }
   0x6   : > { %s2664_s5 = sshll.u32 (!%p210_p3), %s3813_s15, 3 }
   0x7   : > { %213 = sbr.rel (%p210_p3) target bundleno = 474 (0x1da), region = 36  ;;  %p254_p4 = scmp.lt.s32.totalorder (!%p210_p3), %s2664_s5, 15 }
   0xc   : > { %v3617_v0 = vld [vmem:[%s4664_s1 + $0x38] sm:$0xff]  ;;  %v3616_v2 = vld [vmem:[%s4664_s1 + $0x30] sm:$0xff]  ;;  %v3615_v4 = vld [vmem:[%s4664_s1 + $0x28] sm:$0xff]  ;;  %s4673_s5 = smov (!%p254_p4, %s2664_s5), 15  ;;  %vm2535_vm1 = vcmask 257024  }
   0xd   : > { %v3625_v1 = vld [vmem:[%s4664_s1 + $0x78] sm:$0xff]  ;;  %3754 = vmatpush.bf16.msra.mxu2 %v3617_v0  ;;  %v3624_v3 = vld [vmem:[%s4664_s1 + $0x70] sm:$0xff]  ;;  %1869 = vmatpush.bf16.msra.mxu0 %v3617_v0  ;;  %v3623_v5 = vld [vmem:[%s4664_s1 + $0x68] sm:$0xff]  ;;  %s3770_s21 = smul.u32 72, %s4673_s5  ;;  %s2667_s8 = sshll.u32 %s4673_s5, 3 }
   0xe   : > { %3762 = vmatpush.bf16.msra.mxu3 %v3625_v1  ;;  %1898 = vmatpush.bf16.msra.mxu1 %v3625_v1  ;;  %v3614_v6 = vld [vmem:[%s4664_s1 + $0x20] sm:$0xff]  ;;  %v3613_v8 = vld [vmem:[%s4664_s1 + $0x18] sm:$0xff]  ;;  %v3612_v10 = vld [vmem:[%s4664_s1 + $0x10] sm:$0xff]  ;;  %s4443_s13 = scalar_lea.vmem %s4665_s2, %s2667_s8 }
   0xf   : > { %v3622_v7 = vld [vmem:[%s4664_s1 + $0x60] sm:$0xff]  ;;  %v3621_v9 = vld [vmem:[%s4664_s1 + $0x58] sm:$0xff]  ;;  %v3620_v11 = vld [vmem:[%s4664_s1 + $0x50] sm:$0xff]  ;;  %s3918_s28 = scalar_lea.vmem %s4663_s0, %s3770_s21  ;;  %s4474_s21 = scalar_lea.vmem %s4666_s3, %s2667_s8 }
  0x10   : > { %v3611_v12 = vld [vmem:[%s4664_s1 + $0x8] sm:$0xff]  ;;  %v3610_v14 = vld [vmem:[%s4664_s1] sm:$0xff]  ;;  %v3633_v24 = vld [vmem:[%s4664_s1 + $0xb8] sm:$0xff] }
  0x11   : > { %3755 = vmatpush.bf16.msra.mxu2 %v3616_v2  ;;  %1870 = vmatpush.bf16.msra.mxu0 %v3616_v2  ;;  %v3619_v13 = vld [vmem:[%s4664_s1 + $0x48] sm:$0xff]  ;;  %v3618_v15 = vld [vmem:[%s4664_s1 + $0x40] sm:$0xff]  ;;  %v3641_v25 = vld [vmem:[%s4664_s1 + $0xf8] sm:$0xff] }
  0x12   : > { %3763 = vmatpush.bf16.msra.mxu3 %v3624_v3  ;;  %1899 = vmatpush.bf16.msra.mxu1 %v3624_v3  ;;  %v2818_v16 = vld [vmem:[%s3918_s28 + $0x120] sm:$0xf]  ;;  %v3583_v17 = vld [vmem:[%s3918_s28 + $0x164] sm:$0xf0]  ;;  %v3574_v18 = vld [vmem:[%s3918_s28 + $0x124] sm:$0xf] }
  0x13   : > { %v2820_v19 = vld [vmem:[%s3918_s28 + $0x168] sm:$0xf0]  ;;  %v2674_v20 = vld [vmem:[%s3918_s28] sm:$0xf]  ;;  %v3547_v21 = vld [vmem:[%s3918_s28 + $0x44] sm:$0xf0]  ;;  %v2819_v26 = vor.u32 %v3583_v17, %v2818_v16 }
  0x14   : > { %v3538_v22 = vld [vmem:[%s3918_s28 + $0x4] sm:$0xf]  ;;  %v2676_v23 = vld [vmem:[%s3918_s28 + $0x48] sm:$0xf0]  ;;  %v2823_v27 = vor.u32 %v3574_v18, %v2820_v19  ;;  %v2675_v28 = vor.u32 %v3547_v21, %v2674_v20  ;;  %v3649_v30 = vld [vmem:[%s4664_s1 + $0x138] sm:$0xff] }
  0x15   : > { %3756 = vmatpush.bf16.msra.mxu2 %v3615_v4  ;;  %1871 = vmatpush.bf16.msra.mxu0 %v3615_v4  ;;  %v2679_v29 = vor.u32 %v3538_v22, %v2676_v23  ;;  %v3657_v31 = vld [vmem:[%s4664_s1 + $0x178] sm:$0xff]  ;;  %v3632_v32 = vld [vmem:[%s4664_s1 + $0xb0] sm:$0xff]  ;;  %v3631_v36 = vld [vmem:[%s4664_s1 + $0xa8] sm:$0xff] }
  0x16   : > { %3764 = vmatpush.bf16.msra.mxu3 %v3623_v5  ;;  %1900 = vmatpush.bf16.msra.mxu1 %v3623_v5  ;;  %v3640_v33 = vld [vmem:[%s4664_s1 + $0xf0] sm:$0xff]  ;;  %v3639_v37 = vld [vmem:[%s4664_s1 + $0xe8] sm:$0xff]  ;;  %v3630_v40 = vld [vmem:[%s4664_s1 + $0xa0] sm:$0xff] }
  0x17   : > { %v3648_v34 = vld [vmem:[%s4664_s1 + $0x130] sm:$0xff]  ;;  %v3647_v38 = vld [vmem:[%s4664_s1 + $0x128] sm:$0xff]  ;;  %v3638_v41 = vld [vmem:[%s4664_s1 + $0xe0] sm:$0xff] }
  0x18   : > { %v3656_v35 = vld [vmem:[%s4664_s1 + $0x170] sm:$0xff]  ;;  %v3655_v39 = vld [vmem:[%s4664_s1 + $0x168] sm:$0xff]  ;;  %v3646_v42 = vld [vmem:[%s4664_s1 + $0x120] sm:$0xff] }
  0x19   : > { %3757 = vmatpush.bf16.msra.mxu2 %v3614_v6  ;;  %1872 = vmatpush.bf16.msra.mxu0 %v3614_v6  ;;  %v2890_v43 = vld [vmem:[%s3918_s28 + $0x1b0] sm:$0xf]  ;;  %v3601_v44 = vld [vmem:[%s3918_s28 + $0x1f4] sm:$0xf0]  ;;  %v3592_v45 = vld [vmem:[%s3918_s28 + $0x1b4] sm:$0xf] }
  0x1a   : > { %3765 = vmatpush.bf16.msra.mxu3 %v3622_v7  ;;  %1901 = vmatpush.bf16.msra.mxu1 %v3622_v7  ;;  %v2892_v46 = vld [vmem:[%s3918_s28 + $0x1f8] sm:$0xf0]  ;;  %v3654_v47 = vld [vmem:[%s4664_s1 + $0x160] sm:$0xff]  ;;  %v2746_v48 = vld [vmem:[%s3918_s28 + $0x90] sm:$0xf]  ;;  %v2891_v54 = vor.u32 %v3601_v44, %v2890_v43 }
  0x1b   : > { %v3565_v49 = vld [vmem:[%s3918_s28 + $0xd4] sm:$0xf0]  ;;  %v3556_v50 = vld [vmem:[%s3918_s28 + $0x94] sm:$0xf]  ;;  %v2748_v51 = vld [vmem:[%s3918_s28 + $0xd8] sm:$0xf0]  ;;  %v2895_v55 = vor.u32 %v3592_v45, %v2892_v46 }
  0x1c   : > { %v3629_v52 = vld [vmem:[%s4664_s1 + $0x98] sm:$0xff]  ;;  %v2747_v56 = vor.u32 %v3565_v49, %v2746_v48  ;;  %v2751_v57 = vor.u32 %v3556_v50, %v2748_v51  ;;  %v3628_v60 = vld [vmem:[%s4664_s1 + $0x90] sm:$0xff]  ;;  %v3627_v0 = vld [vmem:[%s4664_s1 + $0x88] sm:$0xff] }
  0x1d   : > { %3758 = vmatpush.bf16.msra.mxu2 %v3613_v8  ;;  %1873 = vmatpush.bf16.msra.mxu0 %v3613_v8  ;;  %v3637_v53 = vld [vmem:[%s4664_s1 + $0xd8] sm:$0xff]  ;;  %v3636_v61 = vld [vmem:[%s4664_s1 + $0xd0] sm:$0xff]  ;;  %v3635_v1 = vld [vmem:[%s4664_s1 + $0xc8] sm:$0xff] }
  0x1e   : > { %3766 = vmatpush.bf16.msra.mxu3 %v3621_v9  ;;  %1902 = vmatpush.bf16.msra.mxu1 %v3621_v9  ;;  %v3645_v58 = vld [vmem:[%s4664_s1 + $0x118] sm:$0xff]  ;;  %v3644_v62 = vld [vmem:[%s4664_s1 + $0x110] sm:$0xff]  ;;  %v3643_v2 = vld [vmem:[%s4664_s1 + $0x108] sm:$0xff] }
  0x1f   : > { %v3653_v59 = vld [vmem:[%s4664_s1 + $0x158] sm:$0xff]  ;;  %v3652_v63 = vld [vmem:[%s4664_s1 + $0x150] sm:$0xff]  ;;  %v3626_v3 = vld [vmem:[%s4664_s1 + $0x80] sm:$0xff] }
  0x20   : > { %v3651_v4 = vld [vmem:[%s4664_s1 + $0x148] sm:$0xff]  ;;  %v3634_v5 = vld [vmem:[%s4664_s1 + $0xc0] sm:$0xff]  ;;  %v3548_v7 = vld [vmem:[%s3918_s28 + $0x4c] sm:$0xf0] }
  0x21   : > { %3759 = vmatpush.bf16.msra.mxu2 %v3612_v10  ;;  %1874 = vmatpush.bf16.msra.mxu0 %v3612_v10  ;;  %v2682_v6 = vld [vmem:[%s3918_s28 + $0x8] sm:$0xf]  ;;  %v3642_v8 = vld [vmem:[%s4664_s1 + $0x100] sm:$0xff]  ;;  %v3539_v9 = vld [vmem:[%s3918_s28 + $0xc] sm:$0xf] }
  0x22   : > { %3767 = vmatpush.bf16.msra.mxu3 %v3620_v11  ;;  %1903 = vmatpush.bf16.msra.mxu1 %v3620_v11  ;;  %v3665_v10 = vld [vmem:[%s4664_s1 + $0x1b8] sm:$0xff]  ;;  %v3540_v16 = vld [vmem:[%s3918_s28 + $0x14] sm:$0xf]  ;;  %v2683_v20 = vor.u32 %v3548_v7, %v2682_v6  ;;  %v2764_v43 = vld [vmem:[%s3918_s28 + $0xe8] sm:$0xf0] }
  0x23   : > { %v3673_v11 = vld [vmem:[%s4664_s1 + $0x1f8] sm:$0xff] }
  0x24   : > { %v2692_v17 = vld [vmem:[%s3918_s28 + $0x58] sm:$0xf0] }
  0x25   : > { %3760 = vmatpush.bf16.msra.mxu2 %v3611_v12  ;;  %1875 = vmatpush.bf16.msra.mxu0 %v3611_v12  ;;  %v2684_v12 = vld [vmem:[%s3918_s28 + $0x50] sm:$0xf0]  ;;  %v3681_v18 = vld [vmem:[%s4664_s1 + $0x238] sm:$0xff]  ;;  %v2695_v23 = vor.u32 %v3540_v16, %v2692_v17 }
  0x26   : > { %3768 = vmatpush.bf16.msra.mxu3 %v3619_v13  ;;  %1904 = vmatpush.bf16.msra.mxu1 %v3619_v13  ;;  %v3650_v13 = vld [vmem:[%s4664_s1 + $0x140] sm:$0xff]  ;;  %v3689_v19 = vld [vmem:[%s4664_s1 + $0x278] sm:$0xff]  ;;  %v2687_v21 = vor.u32 %v3539_v9, %v2684_v12  ;;  %v3704_v16 = vld [vmem:[%s4664_s1 + $0x2f0] sm:$0xff] }
  0x27   : > { %v3661_v44 = vld [vmem:[%s4664_s1 + $0x198] sm:$0xff] }
  0x28   : > { %v3669_v45 = vld [vmem:[%s4664_s1 + $0x1d8] sm:$0xff] }
  0x29   : > { %3761 = vmatpush.bf16.msra.mxu2 %v3610_v14  ;;  %1876 = vmatpush.bf16.msra.mxu0 %v3610_v14  ;;  %v2690_v14 = vld [vmem:[%s3918_s28 + $0x10] sm:$0xf]  ;;  %v3677_v46 = vld [vmem:[%s4664_s1 + $0x218] sm:$0xff] }
  0x2a   : > { %3769 = vmatpush.bf16.msra.mxu3 %v3618_v15  ;;  %1905 = vmatpush.bf16.msra.mxu1 %v3618_v15  ;;  %v3549_v15 = vld [vmem:[%s3918_s28 + $0x54] sm:$0xf0]  ;;  %v2836_v6 = vld [vmem:[%s3918_s28 + $0x178] sm:$0xf0] }
  0x2b   : > { %v2691_v22 = vor.u32 %v3549_v15, %v2690_v14  ;;  %v3697_v12 = vld [vmem:[%s4664_s1 + $0x2b8] sm:$0xff]  ;;  %v3696_v14 = vld [vmem:[%s4664_s1 + $0x2b0] sm:$0xff] }
  0x2c   : > { %1887 = vmatmul.bf16.vlgmr.msra.gmra.mxu2 %v2819_v26  ;;  %1877 = vmatmul.bf16.vlgmr.msra.gmra.mxu0 %v2675_v28  ;;  %v3680_v26 = vld [vmem:[%s4664_s1 + $0x230] sm:$0xff]  ;;  %v3663_v28 = vld [vmem:[%s4664_s1 + $0x1a8] sm:$0xff]  ;;  %v3713_v15 = vld [vmem:[%s4664_s1 + $0x338] sm:$0xff] }
  0x2d   : > { %1927 = vmatpush.bf16.msrb.mxu2 %v3633_v24  ;;  %1916 = vmatmul.bf16.vlgmr.msra.gmra.mxu3 %v2823_v27  ;;  %v3664_v24 = vld [vmem:[%s4664_s1 + $0x1b0] sm:$0xff]  ;;  %v3721_v17 = vld [vmem:[%s4664_s1 + $0x378] sm:$0xff] }
  0x2e   : > { %1956 = vmatpush.bf16.msrb.mxu3 %v3641_v25  ;;  %1906 = vmatmul.bf16.vlgmr.msra.gmra.mxu1 %v2679_v29  ;;  %v3672_v25 = vld [vmem:[%s4664_s1 + $0x1f0] sm:$0xff]  ;;  %v3671_v29 = vld [vmem:[%s4664_s1 + $0x1e8] sm:$0xff] }
  0x2f   : > { %1985 = vmatpush.bf16.msrb.mxu0 %v3649_v30  ;;  %2014 = vmatpush.bf16.msrb.mxu1 %v3657_v31  ;;  %v3688_v27 = vld [vmem:[%s4664_s1 + $0x270] sm:$0xff]  ;;  %v3679_v30 = vld [vmem:[%s4664_s1 + $0x228] sm:$0xff] }
  0x30   : > { %v3687_v31 = vld [vmem:[%s4664_s1 + $0x268] sm:$0xff] }
  0x31   : > { %1928 = vmatpush.bf16.msrb.mxu2 %v3632_v32  ;;  %v3662_v32 = vld [vmem:[%s4664_s1 + $0x1a0] sm:$0xff] }
  0x32   : > { %1957 = vmatpush.bf16.msrb.mxu3 %v3640_v33  ;;  %v3670_v33 = vld [vmem:[%s4664_s1 + $0x1e0] sm:$0xff] }
  0x33   : > { %1986 = vmatpush.bf16.msrb.mxu0 %v3648_v34  ;;  %2015 = vmatpush.bf16.msrb.mxu1 %v3656_v35  ;;  %v2754_v34 = vld [vmem:[%s3918_s28 + $0x98] sm:$0xf]  ;;  %v3678_v35 = vld [vmem:[%s4664_s1 + $0x220] sm:$0xff] }
  0x35   : > { %1929 = vmatpush.bf16.msrb.mxu2 %v3631_v36  ;;  %v3686_v36 = vld [vmem:[%s4664_s1 + $0x260] sm:$0xff] }
  0x36   : > { %1958 = vmatpush.bf16.msrb.mxu3 %v3639_v37  ;;  %v3566_v37 = vld [vmem:[%s3918_s28 + $0xdc] sm:$0xf0] }
  0x37   : > { %1987 = vmatpush.bf16.msrb.mxu0 %v3647_v38  ;;  %2016 = vmatpush.bf16.msrb.mxu1 %v3655_v39  ;;  %v3557_v38 = vld [vmem:[%s3918_s28 + $0x9c] sm:$0xf]  ;;  %v2756_v39 = vld [vmem:[%s3918_s28 + $0xe0] sm:$0xf0]  ;;  %v2755_v48 = vor.u32 %v3566_v37, %v2754_v34  ;;  %v3719_v37 = vld [vmem:[%s4664_s1 + $0x368] sm:$0xff] }
  0x38   : > { %v2759_v49 = vor.u32 %v3557_v38, %v2756_v39  ;;  %v3694_v34 = vld [vmem:[%s4664_s1 + $0x2a0] sm:$0xff]  ;;  %v2698_v38 = vld [vmem:[%s3918_s28 + $0x18] sm:$0xf] }
  0x39   : > { %1930 = vmatpush.bf16.msrb.mxu2 %v3630_v40  ;;  %v2762_v40 = vld [vmem:[%s3918_s28 + $0xa0] sm:$0xf] }
  0x3a   : > { %1959 = vmatpush.bf16.msrb.mxu3 %v3638_v41  ;;  %v3567_v41 = vld [vmem:[%s3918_s28 + $0xe4] sm:$0xf0]  ;;  %v3550_v39 = vld [vmem:[%s3918_s28 + $0x5c] sm:$0xf0] }
  0x3b   : > { %1988 = vmatpush.bf16.msrb.mxu0 %v3646_v42  ;;  %2017 = vmatpush.bf16.msrb.mxu1 %v3654_v47  ;;  %v3558_v42 = vld [vmem:[%s3918_s28 + $0xa4] sm:$0xf]  ;;  %v3685_v47 = vld [vmem:[%s4664_s1 + $0x258] sm:$0xff]  ;;  %v2763_v50 = vor.u32 %v3567_v41, %v2762_v40 }
  0x3c   : > { %1892 = vmatmul.bf16.gmra.mxu2 %v2891_v54  ;;  %1882 = vmatmul.bf16.gmra.mxu0 %v2747_v56  ;;  %v2767_v51 = vor.u32 %v3558_v42, %v2764_v43  ;;  %v3676_v54 = vld [vmem:[%s4664_s1 + $0x210] sm:$0xff]  ;;  %v3667_v56 = vld [vmem:[%s4664_s1 + $0x1c8] sm:$0xff]  ;;  %v3541_v40 = vld [vmem:[%s3918_s28 + $0x1c] sm:$0xf] }
  0x3d   : > { %1931 = vmatpush.bf16.msrb.mxu2 %v3629_v52  ;;  %1921 = vmatmul.bf16.gmra.mxu3 %v2895_v55  ;;  %v3660_v52 = vld [vmem:[%s4664_s1 + $0x190] sm:$0xff]  ;;  %v3659_v55 = vld [vmem:[%s4664_s1 + $0x188] sm:$0xff]  ;;  %v2700_v41 = vld [vmem:[%s3918_s28 + $0x60] sm:$0xf0] }
  0x3e   : > { %1960 = vmatpush.bf16.msrb.mxu3 %v3637_v53  ;;  %1911 = vmatmul.bf16.gmra.mxu1 %v2751_v57  ;;  %v3668_v53 = vld [vmem:[%s4664_s1 + $0x1d0] sm:$0xff]  ;;  %v2706_v42 = vld [vmem:[%s3918_s28 + $0x20] sm:$0xf]  ;;  %v3551_v43 = vld [vmem:[%s3918_s28 + $0x64] sm:$0xf0] }
  0x3f   : > { %1989 = vmatpush.bf16.msrb.mxu0 %v3645_v58  ;;  %2018 = vmatpush.bf16.msrb.mxu1 %v3653_v59  ;;  %v3684_v57 = vld [vmem:[%s4664_s1 + $0x250] sm:$0xff]  ;;  %v3675_v58 = vld [vmem:[%s4664_s1 + $0x208] sm:$0xff] }
  0x40   : > { %v3683_v59 = vld [vmem:[%s4664_s1 + $0x248] sm:$0xff] }
  0x41   : > { %1932 = vmatpush.bf16.msrb.mxu2 %v3628_v60  ;;  %v3658_v60 = vld [vmem:[%s4664_s1 + $0x180] sm:$0xff] }
  0x42   : > { %1961 = vmatpush.bf16.msrb.mxu3 %v3636_v61  ;;  %v3666_v61 = vld [vmem:[%s4664_s1 + $0x1c0] sm:$0xff] }
  0x43   : > { %1990 = vmatpush.bf16.msrb.mxu0 %v3644_v62  ;;  %2019 = vmatpush.bf16.msrb.mxu1 %v3652_v63  ;;  %v3674_v62 = vld [vmem:[%s4664_s1 + $0x200] sm:$0xff]  ;;  %v2826_v63 = vld [vmem:[%s3918_s28 + $0x128] sm:$0xf] }
  0x45   : > { %1933 = vmatpush.bf16.msrb.mxu2 %v3627_v0  ;;  %v3584_v0 = vld [vmem:[%s3918_s28 + $0x16c] sm:$0xf0] }
  0x46   : > { %1962 = vmatpush.bf16.msrb.mxu3 %v3635_v1  ;;  %v3575_v1 = vld [vmem:[%s3918_s28 + $0x12c] sm:$0xf]  ;;  %v2827_v7 = vor.u32 %v3584_v0, %v2826_v63  ;;  %v3560_v63 = vld [vmem:[%s3918_s28 + $0xb4] sm:$0xf]  ;;  %v2780_v0 = vld [vmem:[%s3918_s28 + $0xf8] sm:$0xf0] }
  0x47   : > { %1991 = vmatpush.bf16.msrb.mxu0 %v3643_v2  ;;  %2020 = vmatpush.bf16.msrb.mxu1 %v3651_v4  ;;  %v2828_v2 = vld [vmem:[%s3918_s28 + $0x170] sm:$0xf0]  ;;  %v3585_v4 = vld [vmem:[%s3918_s28 + $0x174] sm:$0xf0] }
  0x49   : > { %1934 = vmatpush.bf16.msrb.mxu2 %v3626_v3  ;;  %v2834_v3 = vld [vmem:[%s3918_s28 + $0x130] sm:$0xf] }
  0x4a   : > { %1963 = vmatpush.bf16.msrb.mxu3 %v3634_v5  ;;  %v3576_v5 = vld [vmem:[%s3918_s28 + $0x134] sm:$0xf]  ;;  %v2835_v9 = vor.u32 %v3585_v4, %v2834_v3  ;;  %v3717_v3 = vld [vmem:[%s4664_s1 + $0x358] sm:$0xff] }
  0x4b   : > { %1992 = vmatpush.bf16.msrb.mxu0 %v3642_v8  ;;  %2021 = vmatpush.bf16.msrb.mxu1 %v3650_v13  ;;  %v2831_v8 = vor.u32 %v3575_v1, %v2828_v2  ;;  %v3705_v13 = vld [vmem:[%s4664_s1 + $0x2f8] sm:$0xff] }
  0x4c   : > { %1935 = vmatmul.bf16.vlgmr.msrb.gmra.mxu2 %v2683_v20  ;;  %v3593_v20 = vld [vmem:[%s3918_s28 + $0x1bc] sm:$0xf] }
  0x4d   : > { %2043 = vmatpush.bf16.msra.mxu2 %v3665_v10  ;;  %1964 = vmatmul.bf16.vlgmr.msrb.gmra.mxu3 %v2687_v21  ;;  %v2839_v10 = vor.u32 %v3576_v5, %v2836_v6  ;;  %v2900_v21 = vld [vmem:[%s3918_s28 + $0x200] sm:$0xf0]  ;;  %v2783_v5 = vor.u32 %v3560_v63, %v2780_v0  ;;  %v3691_v6 = vld [vmem:[%s4664_s1 + $0x288] sm:$0xff]  ;;  %v3744_v63 = vld [vmem:[%s4664_s1 + $0x430] sm:$0xff] }
  0x4e   : > { %2072 = vmatpush.bf16.msra.mxu3 %v3673_v11  ;;  %1993 = vmatmul.bf16.vlgmr.msrb.gmra.mxu0 %v2691_v22  ;;  %v3682_v11 = vld [vmem:[%s4664_s1 + $0x240] sm:$0xff] }
  0x4f   : > { %2101 = vmatpush.bf16.msra.mxu0 %v3681_v18  ;;  %2130 = vmatpush.bf16.msra.mxu1 %v3689_v19  ;;  %v2898_v18 = vld [vmem:[%s3918_s28 + $0x1b8] sm:$0xf]  ;;  %v3602_v19 = vld [vmem:[%s3918_s28 + $0x1fc] sm:$0xf0] }
  0x50   : > { %2022 = vmatmul.bf16.vlgmr.msrb.gmra.mxu1 %v2695_v23  ;;  %v2906_v22 = vld [vmem:[%s3918_s28 + $0x1c0] sm:$0xf]  ;;  %v3603_v23 = vld [vmem:[%s3918_s28 + $0x204] sm:$0xf0] }
  0x51   : > { %2044 = vmatpush.bf16.msra.mxu2 %v3664_v24  ;;  %v3594_v24 = vld [vmem:[%s3918_s28 + $0x1c4] sm:$0xf] }
  0x52   : > { %2073 = vmatpush.bf16.msra.mxu3 %v3672_v25  ;;  %v2908_v25 = vld [vmem:[%s3918_s28 + $0x208] sm:$0xf0] }
  0x53   : > { %2102 = vmatpush.bf16.msra.mxu0 %v3680_v26  ;;  %2131 = vmatpush.bf16.msra.mxu1 %v3688_v27  ;;  %v2899_v26 = vor.u32 %v3602_v19, %v2898_v18  ;;  %v2903_v27 = vor.u32 %v3593_v20, %v2900_v21  ;;  %v3587_v18 = vld [vmem:[%s3918_s28 + $0x184] sm:$0xf0]  ;;  %v3578_v19 = vld [vmem:[%s3918_s28 + $0x144] sm:$0xf]  ;;  %v2852_v20 = vld [vmem:[%s3918_s28 + $0x188] sm:$0xf0] }
  0x54   : > { %v3715_v21 = vld [vmem:[%s4664_s1 + $0x348] sm:$0xff] }
  0x55   : > { %2045 = vmatpush.bf16.msra.mxu2 %v3663_v28  ;;  %v2907_v28 = vor.u32 %v3603_v23, %v2906_v22 }
  0x56   : > { %2074 = vmatpush.bf16.msra.mxu3 %v3671_v29  ;;  %v2911_v29 = vor.u32 %v3594_v24, %v2908_v25  ;;  %v2855_v25 = vor.u32 %v3578_v19, %v2852_v20 }
  0x57   : > { %2103 = vmatpush.bf16.msra.mxu0 %v3679_v30  ;;  %2132 = vmatpush.bf16.msra.mxu1 %v3687_v31  ;;  %v3695_v30 = vld [vmem:[%s4664_s1 + $0x2a8] sm:$0xff] }
  0x58   : > { %v3703_v31 = vld [vmem:[%s4664_s1 + $0x2e8] sm:$0xff] }
  0x59   : > { %2046 = vmatpush.bf16.msra.mxu2 %v3662_v32  ;;  %v3712_v32 = vld [vmem:[%s4664_s1 + $0x330] sm:$0xff] }
  0x5a   : > { %2075 = vmatpush.bf16.msra.mxu3 %v3670_v33  ;;  %v3720_v33 = vld [vmem:[%s4664_s1 + $0x370] sm:$0xff] }
  0x5b   : > { %2104 = vmatpush.bf16.msra.mxu0 %v3678_v35  ;;  %2133 = vmatpush.bf16.msra.mxu1 %v3686_v36  ;;  %v3702_v35 = vld [vmem:[%s4664_s1 + $0x2e0] sm:$0xff]  ;;  %v3711_v36 = vld [vmem:[%s4664_s1 + $0x328] sm:$0xff] }
  0x5c   : > { %1940 = vmatmul.bf16.gmra.mxu2 %v2755_v48  ;;  %v2707_v48 = vor.u32 %v3551_v43, %v2706_v42  ;;  %v3736_v42 = vld [vmem:[%s4664_s1 + $0x3f0] sm:$0xff]  ;;  %v3745_v43 = vld [vmem:[%s4664_s1 + $0x438] sm:$0xff] }
  0x5d   : > { %2047 = vmatpush.bf16.msra.mxu2 %v3661_v44  ;;  %1969 = vmatmul.bf16.gmra.mxu3 %v2759_v49  ;;  %v3542_v44 = vld [vmem:[%s3918_s28 + $0x24] sm:$0xf] }
  0x5e   : > { %2076 = vmatpush.bf16.msra.mxu3 %v3669_v45  ;;  %1998 = vmatmul.bf16.gmra.mxu0 %v2763_v50  ;;  %v2708_v45 = vld [vmem:[%s3918_s28 + $0x68] sm:$0xf0]  ;;  %v3693_v50 = vld [vmem:[%s4664_s1 + $0x298] sm:$0xff] }
  0x5f   : > { %2105 = vmatpush.bf16.msra.mxu0 %v3677_v46  ;;  %2134 = vmatpush.bf16.msra.mxu1 %v3685_v47  ;;  %v2699_v46 = vor.u32 %v3550_v39, %v2698_v38  ;;  %v2703_v47 = vor.u32 %v3541_v40, %v2700_v41  ;;  %v2711_v49 = vor.u32 %v3542_v44, %v2708_v45  ;;  %v2914_v39 = vld [vmem:[%s3918_s28 + $0x1c8] sm:$0xf]  ;;  %v3604_v40 = vld [vmem:[%s3918_s28 + $0x20c] sm:$0xf0]  ;;  %v3595_v44 = vld [vmem:[%s3918_s28 + $0x1cc] sm:$0xf] }
  0x60   : > { %2027 = vmatmul.bf16.gmra.mxu1 %v2767_v51  ;;  %v3701_v51 = vld [vmem:[%s4664_s1 + $0x2d8] sm:$0xff]  ;;  %v3728_v41 = vld [vmem:[%s4664_s1 + $0x3b0] sm:$0xff] }
  0x61   : > { %2048 = vmatpush.bf16.msra.mxu2 %v3660_v52  ;;  %v3710_v52 = vld [vmem:[%s4664_s1 + $0x320] sm:$0xff]  ;;  %v2916_v45 = vld [vmem:[%s3918_s28 + $0x210] sm:$0xf0] }
  0x62   : > { %2077 = vmatpush.bf16.msra.mxu3 %v3668_v53  ;;  %v3718_v53 = vld [vmem:[%s4664_s1 + $0x360] sm:$0xff] }
  0x63   : > { %2106 = vmatpush.bf16.msra.mxu0 %v3676_v54  ;;  %2135 = vmatpush.bf16.msra.mxu1 %v3684_v57  ;;  %v3692_v54 = vld [vmem:[%s4664_s1 + $0x290] sm:$0xff]  ;;  %v2770_v57 = vld [vmem:[%s3918_s28 + $0xa8] sm:$0xf] }
  0x65   : > { %2049 = vmatpush.bf16.msra.mxu2 %v3659_v55  ;;  %v3700_v55 = vld [vmem:[%s4664_s1 + $0x2d0] sm:$0xff] }
  0x66   : > { %2078 = vmatpush.bf16.msra.mxu3 %v3667_v56  ;;  %v3709_v56 = vld [vmem:[%s4664_s1 + $0x318] sm:$0xff] }
  0x67   : > { %2107 = vmatpush.bf16.msra.mxu0 %v3675_v58  ;;  %2136 = vmatpush.bf16.msra.mxu1 %v3683_v59  ;;  %v3568_v58 = vld [vmem:[%s3918_s28 + $0xec] sm:$0xf0]  ;;  %v3559_v59 = vld [vmem:[%s3918_s28 + $0xac] sm:$0xf] }
  0x68   : > { %v2771_v1 = vor.u32 %v3568_v58, %v2770_v57 }
  0x69   : > { %2050 = vmatpush.bf16.msra.mxu2 %v3658_v60  ;;  %v2772_v60 = vld [vmem:[%s3918_s28 + $0xf0] sm:$0xf0] }
  0x6a   : > { %2079 = vmatpush.bf16.msra.mxu3 %v3666_v61  ;;  %v2778_v61 = vld [vmem:[%s3918_s28 + $0xb0] sm:$0xf]  ;;  %v2775_v2 = vor.u32 %v3559_v59, %v2772_v60  ;;  %v3753_v60 = vld [vmem:[%s4664_s1 + $0x478] sm:$0xff] }
  0x6b   : > { %2108 = vmatpush.bf16.msra.mxu0 %v3674_v62  ;;  %2137 = vmatpush.bf16.msra.mxu1 %v3682_v11  ;;  %v3569_v62 = vld [vmem:[%s3918_s28 + $0xf4] sm:$0xf0]  ;;  %v3698_v11 = vld [vmem:[%s4664_s1 + $0x2c0] sm:$0xff] }
  0x6c   : > { %1945 = vmatmul.bf16.gmra.mxu2 %v2827_v7  ;;  %v2779_v4 = vor.u32 %v3569_v62, %v2778_v61  ;;  %v3699_v7 = vld [vmem:[%s4664_s1 + $0x2c8] sm:$0xff] }
  0x6d   : > { %1974 = vmatmul.bf16.gmra.mxu3 %v2831_v8  ;;  %2159 = vmatpush.bf16.msrb.mxu2 %v3697_v12  ;;  %v3708_v8 = vld [vmem:[%s4664_s1 + $0x310] sm:$0xff]  ;;  %v3707_v12 = vld [vmem:[%s4664_s1 + $0x308] sm:$0xff] }
  0x6e   : > { %2003 = vmatmul.bf16.gmra.mxu0 %v2835_v9  ;;  %2188 = vmatpush.bf16.msrb.mxu3 %v3705_v13  ;;  %v3716_v9 = vld [vmem:[%s4664_s1 + $0x350] sm:$0xff]  ;;  %v2842_v13 = vld [vmem:[%s3918_s28 + $0x138] sm:$0xf]  ;;  %v3727_v61 = vld [vmem:[%s4664_s1 + $0x3a8] sm:$0xff] }
  0x6f   : > { %2217 = vmatpush.bf16.msrb.mxu0 %v3713_v15  ;;  %2246 = vmatpush.bf16.msrb.mxu1 %v3721_v17  ;;  %v3577_v15 = vld [vmem:[%s3918_s28 + $0x13c] sm:$0xf]  ;;  %v2850_v17 = vld [vmem:[%s3918_s28 + $0x140] sm:$0xf]  ;;  %v3735_v62 = vld [vmem:[%s4664_s1 + $0x3e8] sm:$0xff] }
  0x70   : > { %2032 = vmatmul.bf16.gmra.mxu1 %v2839_v10  ;;  %v3690_v10 = vld [vmem:[%s4664_s1 + $0x280] sm:$0xff]  ;;  %v2851_v24 = vor.u32 %v3587_v18, %v2850_v17  ;;  %v2724_v17 = vld [vmem:[%s3918_s28 + $0x78] sm:$0xf0] }
  0x71   : > { %2160 = vmatpush.bf16.msrb.mxu2 %v3696_v14  ;;  %v3586_v14 = vld [vmem:[%s3918_s28 + $0x17c] sm:$0xf0] }
  0x72   : > { %2189 = vmatpush.bf16.msrb.mxu3 %v3704_v16  ;;  %v2844_v16 = vld [vmem:[%s3918_s28 + $0x180] sm:$0xf0]  ;;  %v2843_v22 = vor.u32 %v3586_v14, %v2842_v13  ;;  %v2722_v13 = vld [vmem:[%s3918_s28 + $0x30] sm:$0xf]  ;;  %v3743_v14 = vld [vmem:[%s4664_s1 + $0x428] sm:$0xff] }
  0x73   : > { %2218 = vmatpush.bf16.msrb.mxu0 %v3712_v32  ;;  %2247 = vmatpush.bf16.msrb.mxu1 %v3720_v33  ;;  %v2847_v23 = vor.u32 %v3577_v15, %v2844_v16  ;;  %v3737_v32 = vld [vmem:[%s4664_s1 + $0x3f8] sm:$0xff]  ;;  %v3544_v16 = vld [vmem:[%s3918_s28 + $0x34] sm:$0xf] }
  0x74   : > { %v3553_v15 = vld [vmem:[%s3918_s28 + $0x74] sm:$0xf0] }
  0x75   : > { %2161 = vmatpush.bf16.msrb.mxu2 %v3695_v30  ;;  %v3714_v30 = vld [vmem:[%s4664_s1 + $0x340] sm:$0xff] }
  0x76   : > { %2190 = vmatpush.bf16.msrb.mxu3 %v3703_v31  ;;  %v3729_v31 = vld [vmem:[%s4664_s1 + $0x3b8] sm:$0xff] }
  0x77   : > { %2219 = vmatpush.bf16.msrb.mxu0 %v3711_v36  ;;  %2248 = vmatpush.bf16.msrb.mxu1 %v3719_v37 }
  0x79   : > { %2162 = vmatpush.bf16.msrb.mxu2 %v3694_v34 }
  0x7a   : > { %2191 = vmatpush.bf16.msrb.mxu3 %v3702_v35 }
  0x7b   : > { %2220 = vmatpush.bf16.msrb.mxu0 %v3710_v52  ;;  %2249 = vmatpush.bf16.msrb.mxu1 %v3718_v53  ;;  %v2915_v53 = vor.u32 %v3604_v40, %v2914_v39  ;;  %v2786_v40 = vld [vmem:[%s3918_s28 + $0xb8] sm:$0xf] }
  0x7c   : > { %1950 = vmatmul.bf16.gmra.mxu2 %v2899_v26  ;;  %v3706_v26 = vld [vmem:[%s4664_s1 + $0x300] sm:$0xff] }
  0x7d   : > { %1979 = vmatmul.bf16.gmra.mxu3 %v2903_v27  ;;  %2163 = vmatpush.bf16.msrb.mxu2 %v3693_v50 }
  0x7e   : > { %2008 = vmatmul.bf16.gmra.mxu0 %v2907_v28  ;;  %2192 = vmatpush.bf16.msrb.mxu3 %v3701_v51 }
  0x7f   : > { %2221 = vmatpush.bf16.msrb.mxu0 %v3709_v56  ;;  %2250 = vmatpush.bf16.msrb.mxu1 %v3717_v3 }
  0x80   : > { %2037 = vmatmul.bf16.gmra.mxu1 %v2911_v29 }
  0x81   : > { %2164 = vmatpush.bf16.msrb.mxu2 %v3692_v54  ;;  %v2919_v54 = vor.u32 %v3595_v44, %v2916_v45  ;;  %v3750_v44 = vld [vmem:[%s4664_s1 + $0x460] sm:$0xff]  ;;  %v3724_v45 = vld [vmem:[%s4664_s1 + $0x390] sm:$0xff] }
  0x82   : > { %2193 = vmatpush.bf16.msrb.mxu3 %v3700_v55 }
  0x83   : > { %2222 = vmatpush.bf16.msrb.mxu0 %v3708_v8  ;;  %2251 = vmatpush.bf16.msrb.mxu1 %v3716_v9  ;;  %v3543_v8 = vld [vmem:[%s3918_s28 + $0x2c] sm:$0xf]  ;;  %v3752_v9 = vld [vmem:[%s4664_s1 + $0x470] sm:$0xff] }
  0x85   : > { %2165 = vmatpush.bf16.msrb.mxu2 %v3691_v6  ;;  %v2714_v6 = vld [vmem:[%s3918_s28 + $0x28] sm:$0xf] }
  0x86   : > { %2194 = vmatpush.bf16.msrb.mxu3 %v3699_v7  ;;  %v3552_v7 = vld [vmem:[%s3918_s28 + $0x6c] sm:$0xf0] }
  0x87   : > { %2223 = vmatpush.bf16.msrb.mxu0 %v3707_v12  ;;  %2252 = vmatpush.bf16.msrb.mxu1 %v3715_v21  ;;  %v2716_v12 = vld [vmem:[%s3918_s28 + $0x70] sm:$0xf0]  ;;  %v2715_v21 = vor.u32 %v3552_v7, %v2714_v6 }
  0x88   : > { %v3740_v6 = vld [vmem:[%s4664_s1 + $0x410] sm:$0xff] }
  0x89   : > { %2166 = vmatpush.bf16.msrb.mxu2 %v3690_v10  ;;  %v3726_v10 = vld [vmem:[%s4664_s1 + $0x3a0] sm:$0xff] }
  0x8a   : > { %2195 = vmatpush.bf16.msrb.mxu3 %v3698_v11  ;;  %v3734_v11 = vld [vmem:[%s4664_s1 + $0x3e0] sm:$0xff] }
  0x8b   : > { %2224 = vmatpush.bf16.msrb.mxu0 %v3706_v26  ;;  %2253 = vmatpush.bf16.msrb.mxu1 %v3714_v30  ;;  %v3733_v30 = vld [vmem:[%s4664_s1 + $0x3d8] sm:$0xff] }
  0x8c   : > { %2051 = vmatmul.bf16.vlgmr.msra.gmra.mxu2 %v2699_v46  ;;  %v2922_v46 = vld [vmem:[%s3918_s28 + $0x1d0] sm:$0xf] }
  0x8d   : > { %2080 = vmatmul.bf16.vlgmr.msra.gmra.mxu3 %v2703_v47  ;;  %2275 = vmatpush.bf16.msra.mxu2 %v3729_v31  ;;  %v3605_v47 = vld [vmem:[%s3918_s28 + $0x214] sm:$0xf0]  ;;  %v3742_v31 = vld [vmem:[%s4664_s1 + $0x420] sm:$0xff] }
  0x8e   : > { %2109 = vmatmul.bf16.vlgmr.msra.gmra.mxu0 %v2707_v48  ;;  %2304 = vmatpush.bf16.msra.mxu3 %v3737_v32  ;;  %v3596_v48 = vld [vmem:[%s3918_s28 + $0x1d4] sm:$0xf]  ;;  %v2923_v55 = vor.u32 %v3605_v47, %v2922_v46  ;;  %v2788_v46 = vld [vmem:[%s3918_s28 + $0x100] sm:$0xf0]  ;;  %v2794_v47 = vld [vmem:[%s3918_s28 + $0xc0] sm:$0xf] }
  0x8f   : > { %2333 = vmatpush.bf16.msra.mxu0 %v3745_v43 }
  0x90   : > { %2138 = vmatmul.bf16.vlgmr.msra.gmra.mxu1 %v2711_v49  ;;  %v2924_v49 = vld [vmem:[%s3918_s28 + $0x218] sm:$0xf0] }
  0x91   : > { %2276 = vmatpush.bf16.msra.mxu2 %v3728_v41  ;;  %v2927_v56 = vor.u32 %v3596_v48, %v2924_v49  ;;  %2362 = vmatpush.bf16.msra.mxu1 %v3753_v60  ;;  %v3570_v41 = vld [vmem:[%s3918_s28 + $0xfc] sm:$0xf0]  ;;  %v3741_v48 = vld [vmem:[%s4664_s1 + $0x418] sm:$0xff]  ;;  %v3571_v49 = vld [vmem:[%s3918_s28 + $0x104] sm:$0xf0] }
  0x92   : > { %2305 = vmatpush.bf16.msra.mxu3 %v3736_v42  ;;  %v3561_v42 = vld [vmem:[%s3918_s28 + $0xbc] sm:$0xf]  ;;  %v2795_v60 = vor.u32 %v3571_v49, %v2794_v47 }
  0x93   : > { %2334 = vmatpush.bf16.msra.mxu0 %v3744_v63 }
  0x95   : > { %2277 = vmatpush.bf16.msra.mxu2 %v3727_v61  ;;  %2363 = vmatpush.bf16.msra.mxu1 %v3752_v9 }
  0x96   : > { %2306 = vmatpush.bf16.msra.mxu3 %v3735_v62 }
  0x97   : > { %2335 = vmatpush.bf16.msra.mxu0 %v3743_v14  ;;  %v2858_v14 = vld [vmem:[%s3918_s28 + $0x148] sm:$0xf] }
  0x99   : > { %2278 = vmatpush.bf16.msra.mxu2 %v3726_v10 }
  0x9a   : > { %2307 = vmatpush.bf16.msra.mxu3 %v3734_v11 }
  0x9b   : > { %2336 = vmatpush.bf16.msra.mxu0 %v3742_v31  ;;  %v3747_v31 = vld [vmem:[%s4664_s1 + $0x448] sm:$0xff] }
  0x9c   : > { %2056 = vmatmul.bf16.gmra.mxu2 %v2771_v1 }
  0x9d   : > { %2085 = vmatmul.bf16.gmra.mxu3 %v2775_v2 }
  0x9e   : > { %2114 = vmatmul.bf16.gmra.mxu0 %v2779_v4  ;;  %2308 = vmatpush.bf16.msra.mxu3 %v3733_v30 }
  0x9f   : > { %2337 = vmatpush.bf16.msra.mxu0 %v3741_v48 }
  0xa0   : > { %2143 = vmatmul.bf16.gmra.mxu1 %v2783_v5 }
  0xa3   : > { %2338 = vmatpush.bf16.msra.mxu0 %v3740_v6 }
  0xa9   : > { %v1878_v27 = vpop.f32.mrf.mxu0 }
  0xab   : > { %v1907_v28 = vpop.f32.mrf.mxu1 }
  0xac   : > { %v4283_v29 = vadd.f32 %v1907_v28, %v1878_v27  ;;  %2061 = vmatmul.bf16.gmra.mxu2 %v2843_v22  ;;  %v2719_v22 = vor.u32 %v3543_v8, %v2716_v12  ;;  %v3751_v27 = vld [vmem:[%s4664_s1 + $0x468] sm:$0xff]  ;;  %v3725_v28 = vld [vmem:[%s4664_s1 + $0x398] sm:$0xff] }
  0xad   : > { %2090 = vmatmul.bf16.gmra.mxu3 %v2847_v23  ;;  %v2723_v23 = vor.u32 %v3553_v15, %v2722_v13  ;;  %2364 = vmatpush.bf16.msra.mxu1 %v3751_v27  ;;  %v3588_v15 = vld [vmem:[%s3918_s28 + $0x18c] sm:$0xf0] }
  0xae   : > { %2119 = vmatmul.bf16.gmra.mxu0 %v2851_v24  ;;  %v2727_v24 = vor.u32 %v3544_v16, %v2724_v17  ;;  %2279 = vmatpush.bf16.msra.mxu2 %v3725_v28  ;;  %v3748_v16 = vld [vmem:[%s4664_s1 + $0x450] sm:$0xff] }
  0xaf   : > { %v1888_v33 = vpop.f32.mrf.mxu2 }
  0xb0   : > { %2148 = vmatmul.bf16.gmra.mxu1 %v2855_v25  ;;  %v1917_v34 = vpop.f32.mrf.mxu3 }
  0xb1   : > { %v4294_v35 = vadd.f32 %v1917_v34, %v1888_v33  ;;  %v1880_v36 = vpop.f32.mrf.mxu0  ;;  %2365 = vmatpush.bf16.msra.mxu1 %v3750_v44  ;;  %v2391_v44 = vld [vmem:[%s4443_s13] sm:$0xff] }
  0xb2   : > { %2280 = vmatpush.bf16.msra.mxu2 %v3724_v45  ;;  %v3823_v45 = vmov 0  }
  0xb3   : > { %v1909_v37 = vpop.f32.mrf.mxu1  ;;  %3796 = vset.pattern.permute.xlu0 %v3823_v45  ;;  %3797 = vset.pattern.permute.xlu1 %v3823_v45 }
  0xb4   : > { %v4296_v38 = vadd.f32 %v1909_v37, %v1880_v36  ;;  %2401 = vperm.xlu0 %3796, %v2391_v44   ;;  %3798 = vset.pattern.permute.xlu2 %v3823_v45 }
  0xb7   : > { %v1890_v50 = vpop.f32.mrf.mxu2 }
  0xb8   : > { %v1919_v51 = vpop.f32.mrf.mxu3 }
  0xb9   : > { %v4315_v52 = vadd.f32 %v1919_v51, %v1890_v50  ;;  %v1883_v57 = vpop.f32.mrf.mxu0  ;;  %v3562_v50 = vld [vmem:[%s3918_s28 + $0xc4] sm:$0xf]  ;;  %v2796_v51 = vld [vmem:[%s3918_s28 + $0x108] sm:$0xf0] }
  0xba   : > { %v2799_v61 = vor.u32 %v3562_v50, %v2796_v51 }
  0xbb   : > { %v1912_v58 = vpop.f32.mrf.mxu1 }
  0xbc   : > { %v4317_v59 = vadd.f32 %v1912_v58, %v1883_v57  ;;  %2066 = vmatmul.bf16.gmra.mxu2 %v2915_v53  ;;  %v2787_v57 = vor.u32 %v3570_v41, %v2786_v40  ;;  %v2791_v58 = vor.u32 %v3561_v42, %v2788_v46 }
  0xbd   : > { %2095 = vmatmul.bf16.gmra.mxu3 %v2919_v54 }
  0xbe   : > { %2124 = vmatmul.bf16.gmra.mxu0 %v2923_v55 }
  0xbf   : > { %v1893_v0 = vpop.f32.mrf.mxu2 }
  0xc0   : > { %2153 = vmatmul.bf16.gmra.mxu1 %v2927_v56  ;;  %v1922_v1 = vpop.f32.mrf.mxu3 }
  0xc1   : > { %v4331_v2 = vadd.f32 %v1922_v1, %v1893_v0  ;;  %v1885_v3 = vpop.f32.mrf.mxu0 }
  0xc3   : > { %v1914_v4 = vpop.f32.mrf.mxu1 }
  0xc4   : > { %v4333_v5 = vadd.f32 %v1914_v4, %v1885_v3  ;;  %v3749_v3 = vld [vmem:[%s4664_s1 + $0x458] sm:$0xff]  ;;  %v3723_v4 = vld [vmem:[%s4664_s1 + $0x388] sm:$0xff] }
  0xc5   : > { %2366 = vmatpush.bf16.msra.mxu1 %v3749_v3  ;;  %2281 = vmatpush.bf16.msra.mxu2 %v3723_v4 }
  0xc7   : > { %v1895_v18 = vpop.f32.mrf.mxu2 }
  0xc8   : > { %v1924_v19 = vpop.f32.mrf.mxu3 }
  0xc9   : > { %v4355_v20 = vadd.f32 %v1924_v19, %v1895_v18  ;;  %v3722_v18 = vld [vmem:[%s4664_s1 + $0x380] sm:$0xff]  ;;  %v3739_v19 = vld [vmem:[%s4664_s1 + $0x408] sm:$0xff]  ;;  %2367 = vmatpush.bf16.msra.mxu1 %v3748_v16 }
  0xca   : > { %2282 = vmatpush.bf16.msra.mxu2 %v3722_v18  ;;  %2339 = vmatpush.bf16.msra.mxu0 %v3739_v19 }
  0xcb   : > { %v1994_v25 = vpop.f32.mrf.mxu0 }
  0xcc   : > { %2167 = vmatmul.bf16.vlgmr.msrb.gmra.mxu2 %v2715_v21  ;;  %v3579_v21 = vld [vmem:[%s3918_s28 + $0x14c] sm:$0xf] }
  0xcd   : > { %v2023_v26 = vpop.f32.mrf.mxu1  ;;  %2196 = vmatmul.bf16.vlgmr.msrb.gmra.mxu3 %v2719_v22  ;;  %v2860_v22 = vld [vmem:[%s3918_s28 + $0x190] sm:$0xf0]  ;;  %2368 = vmatpush.bf16.msra.mxu1 %v3747_v31  ;;  %v2738_v31 = vld [vmem:[%s3918_s28 + $0x40] sm:$0xf] }
  0xce   : > { %2225 = vmatmul.bf16.vlgmr.msrb.gmra.mxu0 %v2723_v23  ;;  %v2866_v23 = vld [vmem:[%s3918_s28 + $0x150] sm:$0xf] }
  0xcf   : > { %v1936_v32 = vpop.f32.mrf.mxu2 }
  0xd0   : > { %2254 = vmatmul.bf16.vlgmr.msrb.gmra.mxu1 %v2727_v24  ;;  %v1965_v33 = vpop.f32.mrf.mxu3  ;;  %v1937_v34 = vadd.f32 %v1936_v32, %v4283_v29  ;;  %v3732_v29 = vld [vmem:[%s4664_s1 + $0x3d0] sm:$0xff]  ;;  %v3589_v24 = vld [vmem:[%s3918_s28 + $0x194] sm:$0xf0] }
  0xd1   : > { %2309 = vmatpush.bf16.msra.mxu3 %v3732_v29 }
  0xd2   : > { %v1966_v36 = vadd.f32 %v1965_v33, %v1937_v34  ;;  %v2859_v33 = vor.u32 %v3588_v15, %v2858_v14  ;;  %v2863_v34 = vor.u32 %v3579_v21, %v2860_v22  ;;  %v2393_v14 = vld [vmem:[%s4443_s13 + $0x10] sm:$0xff]  ;;  %v2730_v22 = vld [vmem:[%s3918_s28 + $0x38] sm:$0xf] }
  0xd3   : > { %v1996_v37 = vpop.f32.mrf.mxu0  ;;  %v2397_v15 = vld [vmem:[%s4443_s13 + $0x30] sm:$0xff]  ;;  %2411 = vperm.xlu1 %3797, %v2393_v14  }
  0xd4   : > { %v1995_v43 = vadd.f32 %v1994_v25, %v1966_v36  ;;  %v3580_v25 = vld [vmem:[%s3918_s28 + $0x154] sm:$0xf]  ;;  %v2867_v36 = vor.u32 %v3589_v24, %v2866_v23  ;;  %v3554_v24 = vld [vmem:[%s3918_s28 + $0x7c] sm:$0xf0] }
  0xd5   : > { %v2025_v39 = vpop.f32.mrf.mxu1 }
  0xd6   : > { %v4390_v53 = vadd.f32 %v2023_v26, %v1995_v43  ;;  %v2868_v26 = vld [vmem:[%s3918_s28 + $0x198] sm:$0xf0] }
  0xd7   : > { %v1938_v54 = vpop.f32.mrf.mxu2 }
  0xd8   : > { %v1967_v55 = vpop.f32.mrf.mxu3  ;;  %v1939_v56 = vadd.f32 %v1938_v54, %v4296_v38  ;;  %v3731_v38 = vld [vmem:[%s4664_s1 + $0x3c8] sm:$0xff] }
  0xd9   : > { %2310 = vmatpush.bf16.msra.mxu3 %v3731_v38 }
  0xda   : > { %v1968_v62 = vadd.f32 %v1967_v55, %v1939_v56  ;;  %v2930_v55 = vld [vmem:[%s3918_s28 + $0x1d8] sm:$0xf]  ;;  %v3606_v56 = vld [vmem:[%s3918_s28 + $0x21c] sm:$0xf0] }
  0xdb   : > { %v1999_v63 = vpop.f32.mrf.mxu0  ;;  %v2931_v38 = vor.u32 %v3606_v56, %v2930_v55 }
  0xdc   : > { %v1997_v1 = vadd.f32 %v1996_v37, %v1968_v62  ;;  %2172 = vmatmul.bf16.gmra.mxu2 %v2787_v57  ;;  %v2871_v37 = vor.u32 %v3580_v25, %v2868_v26  ;;  %v2392_v57 = vld [vmem:[%s4443_s13 + $0x8] sm:$0xff]  ;;  %v2394_v25 = vld [vmem:[%s4443_s13 + $0x18] sm:$0xff] }
  0xdd   : > { %v2028_v0 = vpop.f32.mrf.mxu1  ;;  %2201 = vmatmul.bf16.gmra.mxu3 %v2791_v58  ;;  %v3597_v58 = vld [vmem:[%s3918_s28 + $0x1dc] sm:$0xf]  ;;  %v3607_v62 = vld [vmem:[%s3918_s28 + $0x224] sm:$0xf0]  ;;  %2406 = vperm.xlu0 %3796, %v2392_v57  }
  0xde   : > { %2230 = vmatmul.bf16.gmra.mxu0 %v2795_v60  ;;  %v4405_v7 = vadd.f32 %v2025_v39, %v1997_v1  ;;  %v3738_v39 = vld [vmem:[%s4664_s1 + $0x400] sm:$0xff]  ;;  %v2448_v26 = vld [vmem:[%s4474_s21 + $0x8] sm:$0xff]  ;;  %2416 = vperm.xlu1 %3797, %v2394_v25  }
  0xdf   : > { %v1941_v8 = vpop.f32.mrf.mxu2  ;;  %2340 = vmatpush.bf16.msra.mxu0 %v3738_v39  ;;  %v2932_v60 = vld [vmem:[%s3918_s28 + $0x220] sm:$0xf0] }
  0xe0   : > { %2259 = vmatmul.bf16.gmra.mxu1 %v2799_v61  ;;  %v1970_v9 = vpop.f32.mrf.mxu3  ;;  %v1942_v10 = vadd.f32 %v1941_v8, %v4317_v59  ;;  %v3730_v59 = vld [vmem:[%s4664_s1 + $0x3c0] sm:$0xff]  ;;  %v2935_v6 = vor.u32 %v3597_v58, %v2932_v60  ;;  %v2802_v58 = vld [vmem:[%s3918_s28 + $0xc8] sm:$0xf]  ;;  %v3572_v60 = vld [vmem:[%s3918_s28 + $0x10c] sm:$0xf0] }
  0xe1   : > { %2311 = vmatpush.bf16.msra.mxu3 %v3730_v59  ;;  %v2938_v61 = vld [vmem:[%s3918_s28 + $0x1e0] sm:$0xf] }
  0xe2   : > { %v1971_v11 = vadd.f32 %v1970_v9, %v1942_v10  ;;  %v2939_v8 = vor.u32 %v3607_v62, %v2938_v61  ;;  %v2396_v62 = vld [vmem:[%s4443_s13 + $0x28] sm:$0xff] }
  0xe3   : > { %v2001_v12 = vpop.f32.mrf.mxu0 }
  0xe4   : > { %v2000_v17 = vadd.f32 %v1999_v63, %v1971_v11  ;;  %v3598_v63 = vld [vmem:[%s3918_s28 + $0x1e4] sm:$0xf] }
  0xe5   : > { %v2030_v13 = vpop.f32.mrf.mxu1  ;;  %2431 = vperm.xlu0 %3796, %v2397_v15  }
  0xe6   : > { %v4428_v27 = vadd.f32 %v2028_v0, %v2000_v17  ;;  %v2940_v0 = vld [vmem:[%s3918_s28 + $0x228] sm:$0xf0] }
  0xe7   : > { %v1943_v28 = vpop.f32.mrf.mxu2  ;;  %v2943_v9 = vor.u32 %v3598_v63, %v2940_v0  ;;  %v2449_v63 = vld [vmem:[%s4474_s21 + $0x10] sm:$0xff]  ;;  %v2454_v0 = vld [vmem:[%s4474_s21 + $0x38] sm:$0xff] }
  0xe8   : > { %v1972_v30 = vpop.f32.mrf.mxu3  ;;  %v1944_v32 = vadd.f32 %v1943_v28, %v4333_v5  ;;  %v3746_v5 = vld [vmem:[%s4664_s1 + $0x440] sm:$0xff]  ;;  %v3545_v28 = vld [vmem:[%s3918_s28 + $0x3c] sm:$0xf] }
  0xe9   : > { %2369 = vmatpush.bf16.msra.mxu1 %v3746_v5 }
  0xea   : > { %v1973_v40 = vadd.f32 %v1972_v30, %v1944_v32  ;;  %v2732_v30 = vld [vmem:[%s3918_s28 + $0x80] sm:$0xf0]  ;;  %v3555_v32 = vld [vmem:[%s3918_s28 + $0x84] sm:$0xf0] }
  0xeb   : > { %v2004_v41 = vpop.f32.mrf.mxu0 }
  0xec   : > { %v2002_v43 = vadd.f32 %v2001_v12, %v1973_v40  ;;  %2177 = vmatmul.bf16.gmra.mxu2 %v2859_v33  ;;  %v2740_v33 = vld [vmem:[%s3918_s28 + $0x88] sm:$0xf0]  ;;  %v2731_v40 = vor.u32 %v3554_v24, %v2730_v22 }
  0xed   : > { %v2033_v42 = vpop.f32.mrf.mxu1  ;;  %2206 = vmatmul.bf16.gmra.mxu3 %v2863_v34  ;;  %2462 = vperm.xlu0 %3796, %v2448_v26  }
  0xee   : > { %2235 = vmatmul.bf16.gmra.mxu0 %v2867_v36  ;;  %v4449_v29 = vadd.f32 %v2030_v13, %v2002_v43 }
  0xef   : > { %v1946_v46 = vpop.f32.mrf.mxu2 }
  0xf0   : > { %2264 = vmatmul.bf16.gmra.mxu1 %v2871_v37  ;;  %v1975_v47 = vpop.f32.mrf.mxu3  ;;  %v1947_v48 = vadd.f32 %v1946_v46, %v4294_v35 }
  0xf2   : > { %v1976_v49 = vadd.f32 %v1975_v47, %v1947_v48  ;;  %v2395_v47 = vld [vmem:[%s4443_s13 + $0x20] sm:$0xff]  ;;  %v2398_v48 = vld [vmem:[%s4443_s13 + $0x38] sm:$0xff] }
  0xf3   : > { %v2006_v50 = vpop.f32.mrf.mxu0  ;;  %2421 = vperm.xlu2 %3798, %v2395_v47   ;;  %2436 = vperm.xlu1 %3797, %v2398_v48  }
  0xf4   : > { %v2005_v54 = vadd.f32 %v2004_v41, %v1976_v49  ;;  %v2735_v41 = vor.u32 %v3545_v28, %v2732_v30  ;;  %v2451_v49 = vld [vmem:[%s4474_s21 + $0x20] sm:$0xff] }
  0xf5   : > { %v2035_v51 = vpop.f32.mrf.mxu1  ;;  %2477 = vperm.xlu0 %3796, %v2451_v49  }
  0xf6   : > { %v4461_v1 = vadd.f32 %v2033_v42, %v2005_v54  ;;  %v2739_v42 = vor.u32 %v3555_v32, %v2738_v31  ;;  %v2874_v31 = vld [vmem:[%s3918_s28 + $0x158] sm:$0xf]  ;;  %v3590_v32 = vld [vmem:[%s3918_s28 + $0x19c] sm:$0xf0] }
  0xf7   : > { %v1948_v3 = vpop.f32.mrf.mxu2 }
  0xf8   : > { %v1977_v4 = vpop.f32.mrf.mxu3  ;;  %v1949_v35 = vadd.f32 %v1948_v3, %v4315_v52  ;;  %v3563_v3 = vld [vmem:[%s3918_s28 + $0xcc] sm:$0xf] }
  0xfa   : > { %v1978_v10 = vadd.f32 %v1977_v4, %v1949_v35  ;;  %v2804_v4 = vld [vmem:[%s3918_s28 + $0x110] sm:$0xf0]  ;;  %v2810_v35 = vld [vmem:[%s3918_s28 + $0xd0] sm:$0xf] }
  0xfb   : > { %v2009_v11 = vpop.f32.mrf.mxu0  ;;  %2426 = vperm.xlu2 %3798, %v2396_v62   ;;  %2467 = vperm.xlu1 %3797, %v2449_v63   ;;  %v2946_v62 = vld [vmem:[%s3918_s28 + $0x1e8] sm:$0xf]  ;;  %v3608_v63 = vld [vmem:[%s3918_s28 + $0x22c] sm:$0xf0] }
  0xfc   : > { %v2007_v13 = vadd.f32 %v2006_v50, %v1978_v10  ;;  %2182 = vmatmul.bf16.gmra.mxu2 %v2931_v38  ;;  %v3573_v38 = vld [vmem:[%s3918_s28 + $0x114] sm:$0xf0] }
  0xfd   : > { %v2038_v12 = vpop.f32.mrf.mxu1  ;;  %2211 = vmatmul.bf16.gmra.mxu3 %v2935_v6  ;;  %v3564_v6 = vld [vmem:[%s3918_s28 + $0xd4] sm:$0xf]  ;;  %2492 = vperm.xlu0 %3796, %v2454_v0   ;;  %v2811_v14 = vor.u32 %v3573_v38, %v2810_v35  ;;  %v2954_v35 = vld [vmem:[%s3918_s28 + $0x1f0] sm:$0xf]  ;;  %v3609_v38 = vld [vmem:[%s3918_s28 + $0x234] sm:$0xf0] }
  0xfe   : > { %2240 = vmatmul.bf16.gmra.mxu0 %v2939_v8  ;;  %v4466_v52 = vadd.f32 %v2035_v51, %v2007_v13  ;;  %v2812_v8 = vld [vmem:[%s3918_s28 + $0x118] sm:$0xf0]  ;;  %v2807_v13 = vor.u32 %v3563_v3, %v2804_v4  ;;  %v2453_v0 = vld [vmem:[%s4474_s21 + $0x30] sm:$0xff]  ;;  %v3599_v3 = vld [vmem:[%s3918_s28 + $0x1ec] sm:$0xf] }
  0xff   : > { %v1951_v16 = vpop.f32.mrf.mxu2  ;;  %v2815_v15 = vor.u32 %v3564_v6, %v2812_v8  ;;  %v2948_v4 = vld [vmem:[%s3918_s28 + $0x230] sm:$0xf0]  ;;  %v2956_v8 = vld [vmem:[%s3918_s28 + $0x238] sm:$0xf0] }
 0x100   : > { %2269 = vmatmul.bf16.gmra.mxu1 %v2943_v9  ;;  %v1980_v17 = vpop.f32.mrf.mxu3  ;;  %v1952_v18 = vadd.f32 %v1951_v16, %v4331_v2  ;;  %v3546_v2 = vld [vmem:[%s3918_s28 + $0x44] sm:$0xf]  ;;  %v3600_v6 = vld [vmem:[%s3918_s28 + $0x1f4] sm:$0xf] }
 0x101   : > { %v2743_v5 = vor.u32 %v3546_v2, %v2740_v33  ;;  %v3581_v2 = vld [vmem:[%s3918_s28 + $0x15c] sm:$0xf]  ;;  %v2876_v33 = vld [vmem:[%s3918_s28 + $0x1a0] sm:$0xf0] }
 0x102   : > { %v1981_v59 = vadd.f32 %v1980_v17, %v1952_v18 }
 0x103   : > { %v2011_v19 = vpop.f32.mrf.mxu0 }
 0x104   : > { %v2010_v23 = vadd.f32 %v2009_v11, %v1981_v59 }
 0x105   : > { %v2040_v21 = vpop.f32.mrf.mxu1 }
 0x106   : > { %v4486_v34 = vadd.f32 %v2038_v12, %v2010_v23  ;;  %v2803_v12 = vor.u32 %v3572_v60, %v2802_v58 }
 0x107   : > { %v1953_v36 = vpop.f32.mrf.mxu2 }
 0x108   : > { %v1982_v37 = vpop.f32.mrf.mxu3  ;;  %v1954_v39 = vadd.f32 %v1953_v36, %v4355_v20  ;;  %v2882_v36 = vld [vmem:[%s3918_s28 + $0x160] sm:$0xf] }
 0x10a   : > { %v1983_v43 = vadd.f32 %v1982_v37, %v1954_v39  ;;  %v3591_v37 = vld [vmem:[%s3918_s28 + $0x1a4] sm:$0xf0]  ;;  %v3582_v39 = vld [vmem:[%s3918_s28 + $0x164] sm:$0xf] }
 0x10b   : > { %v2110_v44 = vpop.f32.mrf.mxu0 }
 0x10c   : > { %v2012_v46 = vadd.f32 %v2011_v19, %v1983_v43  ;;  %2283 = vmatmul.bf16.vlgmr.msra.gmra.mxu2 %v2731_v40  ;;  %v2447_v19 = vld [vmem:[%s4474_s21] sm:$0xff]  ;;  %v2884_v40 = vld [vmem:[%s3918_s28 + $0x1a8] sm:$0xf0]  ;;  %s2671_s28 = sshll.u32 %s4673_s5, 2 }
 0x10d   : > { %v2139_v45 = vpop.f32.mrf.mxu1  ;;  %2312 = vmatmul.bf16.vlgmr.msra.gmra.mxu3 %v2735_v41  ;;  %2457 = vperm.xlu2 %3798, %v2447_v19   ;;  %s4608_s24 = scalar_lea.vmem %s4667_s4, %s2671_s28 }
 0x10e   : > { %2341 = vmatmul.bf16.vlgmr.msra.gmra.mxu0 %v2739_v42  ;;  %v4492_v20 = vadd.f32 %v2040_v21, %v2012_v46  ;;  %v2452_v21 = vld [vmem:[%s4474_s21 + $0x28] sm:$0xff]  ;;  %v2887_v46 = vor.u32 %v3582_v39, %v2884_v40 }
 0x10f   : > { %v2052_v50 = vpop.f32.mrf.mxu2  ;;  %2482 = vperm.xlu1 %3797, %v2452_v21  }
 0x110   : > { %2370 = vmatmul.bf16.vlgmr.msra.gmra.mxu1 %v2743_v5  ;;  %v2081_v51 = vpop.f32.mrf.mxu3  ;;  %v2053_v54 = vadd.f32 %v2052_v50, %v4390_v53 }
 0x112   : > { %v2082_v55 = vadd.f32 %v2081_v51, %v2053_v54  ;;  %v2450_v51 = vld [vmem:[%s4474_s21 + $0x18] sm:$0xff] }
 0x113   : > { %v2112_v56 = vpop.f32.mrf.mxu0 }
 0x114   : > { %v2111_v61 = vadd.f32 %v2110_v44, %v2082_v55  ;;  %v2879_v44 = vor.u32 %v3581_v2, %v2876_v33 }
 0x115   : > { %v2141_v57 = vpop.f32.mrf.mxu1  ;;  %2472 = vperm.xlu2 %3798, %v2450_v51  }
 0x116   : > { %v4506_v9 = vadd.f32 %v2139_v45, %v2111_v61  ;;  %v2883_v45 = vor.u32 %v3591_v37, %v2882_v36 }
 0x117   : > { %v2054_v53 = vpop.f32.mrf.mxu2 }
 0x118   : > { %v2083_v10 = vpop.f32.mrf.mxu3  ;;  %v2055_v11 = vadd.f32 %v2054_v53, %v4405_v7 }
 0x11a   : > { %v2084_v16 = vadd.f32 %v2083_v10, %v2055_v11 }
 0x11b   : > { %v2115_v17 = vpop.f32.mrf.mxu0 }
 0x11c   : > { %v2113_v59 = vadd.f32 %v2112_v56, %v2084_v16  ;;  %2288 = vmatmul.bf16.gmra.mxu2 %v2803_v12  ;;  %v2947_v12 = vor.u32 %v3608_v63, %v2946_v62 }
 0x11d   : > { %v2144_v18 = vpop.f32.mrf.mxu1  ;;  %2317 = vmatmul.bf16.gmra.mxu3 %v2807_v13  ;;  %2487 = vperm.xlu2 %3798, %v2453_v0   ;;  %v2951_v13 = vor.u32 %v3599_v3, %v2948_v4 }
 0x11e   : > { %2346 = vmatmul.bf16.gmra.mxu0 %v2811_v14  ;;  %v4511_v7 = vadd.f32 %v2141_v57, %v2113_v59  ;;  %v2955_v14 = vor.u32 %v3609_v38, %v2954_v35 }
 0x11f   : > { %v2057_v22 = vpop.f32.mrf.mxu2 }
 0x120   : > { %2375 = vmatmul.bf16.gmra.mxu1 %v2815_v15  ;;  %v2086_v23 = vpop.f32.mrf.mxu3  ;;  %v2058_v24 = vadd.f32 %v2057_v22, %v4428_v27  ;;  %v2875_v27 = vor.u32 %v3590_v32, %v2874_v31  ;;  %v2959_v15 = vor.u32 %v3600_v6, %v2956_v8 }
 0x122   : > { %v2087_v25 = vadd.f32 %v2086_v23, %v2058_v24 }
 0x123   : > { %v2117_v26 = vpop.f32.mrf.mxu0 }
 0x124   : > { %v2116_v30 = vadd.f32 %v2115_v17, %v2087_v25 }
 0x125   : > { %v2146_v28 = vpop.f32.mrf.mxu1 }
 0x126   : > { %v4522_v41 = vadd.f32 %v2144_v18, %v2116_v30  ;;  %v2402_v4 = vpop.permute.xlu0 %2401 }
 0x127   : > { %v2059_v42 = vpop.f32.mrf.mxu2 }
 0x128   : > { %v2088_v5 = vpop.f32.mrf.mxu3  ;;  %v2060_v43 = vadd.f32 %v2059_v42, %v4449_v29 }
 0x12a   : > { %v2089_v47 = vadd.f32 %v2088_v5, %v2060_v43 }
 0x12b   : > { %v2120_v48 = vpop.f32.mrf.mxu0 }
 0x12c   : > { %v2118_v50 = vadd.f32 %v2117_v26, %v2089_v47  ;;  %2293 = vmatmul.bf16.gmra.mxu2 %v2875_v27 }
 0x12d   : > { %v2149_v49 = vpop.f32.mrf.mxu1  ;;  %2322 = vmatmul.bf16.gmra.mxu3 %v2879_v44 }
 0x12e   : > { %2351 = vmatmul.bf16.gmra.mxu0 %v2883_v45  ;;  %v4526_v29 = vadd.f32 %v2146_v28, %v2118_v50 }
 0x12f   : > { %v2062_v54 = vpop.f32.mrf.mxu2 }
 0x130   : > { %2380 = vmatmul.bf16.gmra.mxu1 %v2887_v46  ;;  %v2091_v55 = vpop.f32.mrf.mxu3  ;;  %v2063_v56 = vadd.f32 %v2062_v54, %v4461_v1 }
 0x132   : > { %v2092_v57 = vadd.f32 %v2091_v55, %v2063_v56 }
 0x133   : > { %v2122_v58 = vpop.f32.mrf.mxu0 }
 0x134   : > { %v2121_v61 = vadd.f32 %v2120_v48, %v2092_v57 }
 0x135   : > { %v2151_v60 = vpop.f32.mrf.mxu1 }
 0x136   : > { %v4538_v53 = vadd.f32 %v2149_v49, %v2121_v61 }
 0x137   : > { %v2064_v10 = vpop.f32.mrf.mxu2 }
 0x138   : > { %v2093_v11 = vpop.f32.mrf.mxu3  ;;  %v2065_v1 = vadd.f32 %v2064_v10, %v4466_v52 }
 0x13a   : > { %v2094_v16 = vadd.f32 %v2093_v11, %v2065_v1 }
 0x13b   : > { %v2125_v17 = vpop.f32.mrf.mxu0 }
 0x13c   : > { %v2123_v59 = vadd.f32 %v2122_v58, %v2094_v16  ;;  %2298 = vmatmul.bf16.gmra.mxu2 %v2947_v12 }
 0x13d   : > { %v2154_v18 = vpop.f32.mrf.mxu1  ;;  %2327 = vmatmul.bf16.gmra.mxu3 %v2951_v13 }
 0x13e   : > { %2356 = vmatmul.bf16.gmra.mxu0 %v2955_v14  ;;  %v4541_v19 = vadd.f32 %v2151_v60, %v2123_v59 }
 0x13f   : > { %v2067_v21 = vpop.f32.mrf.mxu2 }
 0x140   : > { %2385 = vmatmul.bf16.gmra.mxu1 %v2959_v15  ;;  %v2096_v22 = vpop.f32.mrf.mxu3  ;;  %v2068_v23 = vadd.f32 %v2067_v21, %v4486_v34 }
 0x142   : > { %v2097_v24 = vadd.f32 %v2096_v22, %v2068_v23 }
 0x143   : > { %v2127_v52 = vpop.f32.mrf.mxu0 }
 0x144   : > { %v2126_v26 = vadd.f32 %v2125_v17, %v2097_v24 }
 0x145   : > { %v2156_v25 = vpop.f32.mrf.mxu1  ;;  %v4586_v11 = vpop.permute.xlu1 %2411 }
 0x146   : > { %v4544_v28 = vadd.f32 %v2154_v18, %v2126_v26 }
 0x147   : > { %v2069_v30 = vpop.f32.mrf.mxu2 }
 0x148   : > { %v2098_v31 = vpop.f32.mrf.mxu3  ;;  %v2070_v32 = vadd.f32 %v2069_v30, %v4492_v20 }
 0x14a   : > { %v2099_v2 = vadd.f32 %v2098_v31, %v2070_v32 }
 0x14b   : > { %v2226_v33 = vpop.f32.mrf.mxu0 }
 0x14c   : > { %v2128_v37 = vadd.f32 %v2127_v52, %v2099_v2 }
 0x14d   : > { %v2255_v36 = vpop.f32.mrf.mxu1  ;;  %v4579_v35 = vpop.permute.xlu2 %2421 }
 0x14e   : > { %v4547_v39 = vadd.f32 %v2156_v25, %v2128_v37 }
 0x14f   : > { %v2168_v40 = vpop.f32.mrf.mxu2  ;;  %v2407_v17 = vpop.permute.xlu0 %2406 }
 0x150   : > { %v2197_v42 = vpop.f32.mrf.mxu3  ;;  %v2169_v38 = vadd.f32 %v2168_v40, %v4506_v9  ;;  %v4596_v52 = vpop.permute.xlu1 %2416 }
 0x152   : > { %v2198_v10 = vadd.f32 %v2197_v42, %v2169_v38 }
 0x153   : > { %v2228_v5 = vpop.f32.mrf.mxu0 }
 0x154   : > { %v2227_v13 = vadd.f32 %v2226_v33, %v2198_v10 }
 0x155   : > { %v2257_v34 = vpop.f32.mrf.mxu1  ;;  %v4593_v18 = vpop.permute.xlu2 %2426 }
 0x156   : > { %v2256_v59 = vadd.f32 %v2255_v36, %v2227_v13 }
 0x157   : > { %v2170_v43 = vpop.f32.mrf.mxu2  ;;  %v4598_v2 = vpop.permute.xlu0 %2431 }
 0x158   : > { %v2199_v27 = vpop.f32.mrf.mxu3  ;;  %v2171_v14 = vadd.f32 %v2170_v43, %v4511_v7 }
 0x15a   : > { %v2200_v9 = vadd.f32 %v2199_v27, %v2171_v14 }
 0x15b   : > { %v2231_v44 = vpop.f32.mrf.mxu0 }
 0x15c   : > { %v2229_v25 = vadd.f32 %v2228_v5, %v2200_v9 }
 0x15d   : > { %v4549_v45 = vpop.f32.mrf.mxu1 }
 0x15e   : > { %v2258_v33 = vadd.f32 %v2257_v34, %v2229_v25 }
 0x15f   : > { %v2173_v46 = vpop.f32.mrf.mxu2 }
 0x160   : > { %v2202_v47 = vpop.f32.mrf.mxu3  ;;  %v2174_v24 = vadd.f32 %v2173_v46, %v4522_v41 }
 0x162   : > { %v2203_v7 = vadd.f32 %v2202_v47, %v2174_v24 }
 0x163   : > { %v4551_v48 = vpop.f32.mrf.mxu0 }
 0x164   : > { %v2232_v38 = vadd.f32 %v2231_v44, %v2203_v7 }
 0x165   : > { %v4553_v20 = vpop.f32.mrf.mxu1 }
 0x166   : > { %v2261_v34 = vadd.f32 %v4549_v45, %v2232_v38 }
 0x167   : > { %v2175_v49 = vpop.f32.mrf.mxu2  ;;  %v2458_v37 = vpop.permute.xlu2 %2457 }
 0x168   : > { %v2204_v50 = vpop.f32.mrf.mxu3  ;;  %v2176_v41 = vadd.f32 %v2175_v49, %v4526_v29 }
 0x16b   : > { %v4555_v51 = vpop.f32.mrf.mxu0 }
 0x16d   : > { %v4557_v54 = vpop.f32.mrf.mxu1 }
 0x16f   : > { %v4559_v55 = vpop.f32.mrf.mxu2 }
 0x170   : > { %v4561_v56 = vpop.f32.mrf.mxu3 }
 0x173   : > { %v4563_v57 = vpop.f32.mrf.mxu0 }
 0x175   : > { %v4565_v58 = vpop.f32.mrf.mxu1 }
 0x177   : > { %v4567_v60 = vpop.f32.mrf.mxu2 }
 0x178   : > { %v4569_v61 = vpop.f32.mrf.mxu3 }
 0x17b   : > { %v4571_v62 = vpop.f32.mrf.mxu0 }
 0x17d   : > { %v4573_v63 = vpop.f32.mrf.mxu1 }
 0x17f   : > { %v4575_v0 = vpop.f32.mrf.mxu2 }
 0x180   : > { %v4577_v3 = vpop.f32.mrf.mxu3 }
 0x183   : > { %v4582_v6 = vpop.f32.mrf.mxu0 }
 0x185   : > { %v4584_v8 = vpop.f32.mrf.mxu1 }
 0x187   : > { %v4588_v1 = vpop.f32.mrf.mxu2 }
 0x188   : > { %v4590_v12 = vpop.f32.mrf.mxu3 }
 0x18b   : > { %v2342_v15 = vpop.f32.mrf.mxu0 }
 0x18d   : > { %v2371_v16 = vpop.f32.mrf.mxu1 }
 0x18f   : > { %v2284_v21 = vpop.f32.mrf.mxu2 }
 0x190   : > { %v2313_v22 = vpop.f32.mrf.mxu3  ;;  %v2285_v23 = vadd.f32 %v2284_v21, %v2256_v59 }
 0x192   : > { %v2314_v26 = vadd.f32 %v2313_v22, %v2285_v23  ;;  %v2463_v22 = vpop.permute.xlu0 %2462 }
 0x193   : > { %v2344_v30 = vpop.f32.mrf.mxu0 }
 0x194   : > { %v2343_v32 = vadd.f32 %v2342_v15, %v2314_v26  ;;  %v4602_v15 = vpop.permute.xlu1 %2436 }
 0x195   : > { %v2373_v31 = vpop.f32.mrf.mxu1 }
 0x196   : > { %v2372_v40 = vadd.f32 %v2371_v16, %v2343_v32  ;;  %v2205_v16 = vadd.f32 %v2204_v50, %v2176_v41  ;;  %v2179_v50 = vadd.f32 %v4559_v55, %v4538_v53 }
 0x197   : > { %v2286_v36 = vpop.f32.mrf.mxu2 }
 0x198   : > { %v2315_v42 = vpop.f32.mrf.mxu3  ;;  %v2287_v43 = vadd.f32 %v2286_v36, %v2258_v33  ;;  %v2439_v27 = vmul.f32 %v2402_v4, %v2372_v40  ;;  %v2234_v45 = vadd.f32 %v4551_v48, %v2205_v16  ;;  %v2208_v32 = vadd.f32 %v4561_v56, %v2179_v50 }
 0x19a   : > { %v2316_v46 = vadd.f32 %v2315_v42, %v2287_v43  ;;  %v2495_v5 = vadd.f32 %v2458_v37, %v2439_v27  ;;  %v2263_v7 = vadd.f32 %v4553_v20, %v2234_v45  ;;  %v2237_v55 = vadd.f32 %v4555_v51, %v2208_v32 }
 0x19b   : > { %v2347_v10 = vpop.f32.mrf.mxu0  ;;  %v2181_v43 = vadd.f32 %v4567_v60, %v4541_v19  ;;  %v2473_v60 = vpop.permute.xlu2 %2472 }
 0x19c   : > { %v2345_v14 = vadd.f32 %v2344_v30, %v2316_v46  ;;  %vm2503_vm0 = vcmp.gt.f32.partialorder %v2495_v5, 0.0  ;;  %v2511_v47 = vmul.f32 0.2, %v2495_v5  ;;  %v2468_v33 = vpop.permute.xlu1 %2467 }
 0x19d   : > { %v2376_v13 = vpop.f32.mrf.mxu1  ;;  %v2210_v46 = vadd.f32 %v4569_v61, %v2181_v43 }
 0x19e   : > { %v2519_v29 = vsel %vm2503_vm0, %v2495_v5, %v2511_v47  ;;  %v2374_v44 = vadd.f32 %v2373_v31, %v2345_v14 }
 0x19f   : > { %v2527_v49 = vpack.c.bf16 %v2519_v29, %v2519_v29  ;;  %v2289_v4 = vpop.f32.mrf.mxu2  ;;  %v2239_v16 = vadd.f32 %v4563_v57, %v2210_v46  ;;  %v2184_v29 = vadd.f32 %v4575_v0, %v4544_v28  ;;  %v2478_v28 = vpop.permute.xlu0 %2477 }
 0x1a0   : > { %v2318_v9 = vpop.f32.mrf.mxu3  ;;  %v2440_v59 = vmul.f32 %v2407_v17, %v2374_v44  ;;  %v2290_v21 = vadd.f32 %v2289_v4, %v2261_v34 }
 0x1a1   : > { %2536 = vst.msk [vmem:[%s4608_s24] sm:$0xf] %vm2535_vm1, %v2527_v49  ;;  %v2213_v4 = vadd.f32 %v4577_v3, %v2184_v29  ;;  %v2186_v3 = vadd.f32 %v4588_v1, %v4547_v39 }
 0x1a2   : > { %v2496_v23 = vadd.f32 %v2463_v22, %v2440_v59  ;;  %v2319_v24 = vadd.f32 %v2318_v9, %v2290_v21  ;;  %v2268_v21 = vadd.f32 %v4565_v58, %v2239_v16 }
 0x1a3   : > { %v2349_v25 = vpop.f32.mrf.mxu0 }
 0x1a4   : > { %vm2504_vm2 = vcmp.gt.f32.partialorder %v2496_v23, 0.0  ;;  %v2512_v26 = vmul.f32 0.2, %v2496_v23  ;;  %v2348_v30 = vadd.f32 %v2347_v10, %v2319_v24  ;;  %v2242_v24 = vadd.f32 %v4571_v62, %v2213_v4  ;;  %v2483_v39 = vpop.permute.xlu1 %2482 }
 0x1a5   : > { %v2378_v31 = vpop.f32.mrf.mxu1 }
 0x1a6   : > { %v2520_v17 = vsel %vm2504_vm2, %v2496_v23, %v2512_v26  ;;  %v2377_v37 = vadd.f32 %v2376_v13, %v2348_v30 }
 0x1a7   : > { %v2528_v40 = vpack.c.bf16 %v2520_v17, %v2520_v17  ;;  %v2291_v48 = vpop.f32.mrf.mxu2  ;;  %v2271_v17 = vadd.f32 %v4573_v63, %v2242_v24 }
 0x1a8   : > { %v2320_v36 = vpop.f32.mrf.mxu3  ;;  %v2292_v42 = vadd.f32 %v2291_v48, %v2263_v7  ;;  %v2441_v53 = vmul.f32 %v4586_v11, %v2377_v37  ;;  %v2266_v11 = vadd.f32 %v4557_v54, %v2237_v55 }
 0x1a9   : > { %2537 = vst.msk [vmem:[%s4608_s24 + $0x4] sm:$0xf] %vm2535_vm1, %v2528_v40 }
 0x1aa   : > { %v2321_v27 = vadd.f32 %v2320_v36, %v2292_v42  ;;  %v2497_v56 = vadd.f32 %v2468_v33, %v2441_v53 }
 0x1ab   : > { %v2352_v41 = vpop.f32.mrf.mxu0 }
 0x1ac   : > { %v2350_v38 = vadd.f32 %v2349_v25, %v2321_v27  ;;  %vm2505_vm3 = vcmp.gt.f32.partialorder %v2497_v56, 0.0  ;;  %v2513_v20 = vmul.f32 0.2, %v2497_v56 }
 0x1ad   : > { %v2381_v13 = vpop.f32.mrf.mxu1 }
 0x1ae   : > { %v2379_v5 = vadd.f32 %v2378_v31, %v2350_v38  ;;  %v2521_v10 = vsel %vm2505_vm3, %v2497_v56, %v2513_v20  ;;  %v2215_v31 = vadd.f32 %v4590_v12, %v2186_v3 }
 0x1af   : > { %v2529_v14 = vpack.c.bf16 %v2521_v10, %v2521_v10  ;;  %v2294_v47 = vpop.f32.mrf.mxu2 }
 0x1b0   : > { %v2323_v51 = vpop.f32.mrf.mxu3  ;;  %v2442_v34 = vmul.f32 %v4596_v52, %v2379_v5  ;;  %v2295_v19 = vadd.f32 %v2294_v47, %v2266_v11  ;;  %v2244_v48 = vadd.f32 %v4582_v6, %v2215_v31 }
 0x1b1   : > { %2538 = vst.msk [vmem:[%s4608_s24 + $0x8] sm:$0xf] %vm2535_vm1, %v2529_v14 }
 0x1b2   : > { %v2498_v61 = vadd.f32 %v2473_v60, %v2442_v34  ;;  %v2324_v44 = vadd.f32 %v2323_v51, %v2295_v19  ;;  %v2273_v27 = vadd.f32 %v4584_v8, %v2244_v48 }
 0x1b3   : > { %v2354_v52 = vpop.f32.mrf.mxu0 }
 0x1b4   : > { %vm2506_vm4 = vcmp.gt.f32.partialorder %v2498_v61, 0.0  ;;  %v2514_v49 = vmul.f32 0.2, %v2498_v61  ;;  %v2353_v54 = vadd.f32 %v2352_v41, %v2324_v44  ;;  %v2488_v41 = vpop.permute.xlu2 %2487 }
 0x1b5   : > { %v2383_v0 = vpop.f32.mrf.mxu1 }
 0x1b6   : > { %v2522_v9 = vsel %vm2506_vm4, %v2498_v61, %v2514_v49  ;;  %v2382_v59 = vadd.f32 %v2381_v13, %v2353_v54 }
 0x1b7   : > { %v2530_v22 = vpack.c.bf16 %v2522_v9, %v2522_v9  ;;  %v2296_v45 = vpop.f32.mrf.mxu2 }
 0x1b8   : > { %v2325_v50 = vpop.f32.mrf.mxu3  ;;  %v2443_v57 = vmul.f32 %v4579_v35, %v2382_v59  ;;  %v2297_v23 = vadd.f32 %v2296_v45, %v2268_v21 }
 0x1b9   : > { %2539 = vst.msk [vmem:[%s4608_s24 + $0xc] sm:$0xf] %vm2535_vm1, %v2530_v22 }
 0x1ba   : > { %v2499_v25 = vadd.f32 %v2478_v28, %v2443_v57  ;;  %v2326_v26 = vadd.f32 %v2325_v50, %v2297_v23 }
 0x1bb   : > { %v2357_v1 = vpop.f32.mrf.mxu0 }
 0x1bc   : > { %vm2507_vm5 = vcmp.gt.f32.partialorder %v2499_v25, 0.0  ;;  %v2515_v58 = vmul.f32 0.2, %v2499_v25  ;;  %v2355_v30 = vadd.f32 %v2354_v52, %v2326_v26 }
 0x1bd   : > { %v2386_v12 = vpop.f32.mrf.mxu1 }
 0x1be   : > { %v2523_v32 = vsel %vm2507_vm5, %v2499_v25, %v2515_v58  ;;  %v2384_v35 = vadd.f32 %v2383_v0, %v2355_v30 }
 0x1bf   : > { %v2531_v7 = vpack.c.bf16 %v2523_v32, %v2523_v32  ;;  %v2299_v33 = vpop.f32.mrf.mxu2 }
 0x1c0   : > { %v2328_v37 = vpop.f32.mrf.mxu3  ;;  %v2444_v62 = vmul.f32 %v4593_v18, %v2384_v35  ;;  %v2300_v40 = vadd.f32 %v2299_v33, %v2271_v17 }
 0x1c1   : > { %2540 = vst.msk [vmem:[%s4608_s24 + $0x10] sm:$0xf] %vm2535_vm1, %v2531_v7 }
 0x1c2   : > { %v2500_v36 = vadd.f32 %v2483_v39, %v2444_v62  ;;  %v2329_v42 = vadd.f32 %v2328_v37, %v2300_v40 }
 0x1c3   : > { %v2359_v10 = vpop.f32.mrf.mxu0 }
 0x1c4   : > { %vm2508_vm6 = vcmp.gt.f32.partialorder %v2500_v36, 0.0  ;;  %v2516_v53 = vmul.f32 0.2, %v2500_v36  ;;  %v2358_v55 = vadd.f32 %v2357_v1, %v2329_v42 }
 0x1c5   : > { %v2388_v14 = vpop.f32.mrf.mxu1 }
 0x1c6   : > { %v2524_v63 = vsel %vm2508_vm6, %v2500_v36, %v2516_v53  ;;  %v2387_v43 = vadd.f32 %v2386_v12, %v2358_v55 }
 0x1c7   : > { %v2532_v56 = vpack.c.bf16 %v2524_v63, %v2524_v63  ;;  %v2301_v18 = vpop.f32.mrf.mxu2 }
 0x1c8   : > { %v2445_v38 = vmul.f32 %v4598_v2, %v2387_v43  ;;  %v2302_v20 = vadd.f32 %v2301_v18, %v2273_v27  ;;  %v2330_v6 = vpop.f32.mrf.mxu3  ;;  %v2493_v2 = vpop.permute.xlu0 %2492 }
 0x1c9   : > { %2541 = vst.msk [vmem:[%s4608_s24 + $0x14] sm:$0xf] %vm2535_vm1, %v2532_v56 }
 0x1ca   : > { %v2501_v46 = vadd.f32 %v2488_v41, %v2445_v38  ;;  %v2331_v5 = vadd.f32 %v2330_v6, %v2302_v20 }
 0x1cc   : > { %vm2509_vm7 = vcmp.gt.f32.partialorder %v2501_v46, 0.0  ;;  %v2517_v13 = vmul.f32 0.2, %v2501_v46  ;;  %v2360_v11 = vadd.f32 %v2359_v10, %v2331_v5 }
 0x1ce   : > { %v2525_v47 = vsel %vm2509_vm7, %v2501_v46, %v2517_v13  ;;  %v2389_v8 = vadd.f32 %v2388_v14, %v2360_v11 }
 0x1cf   : > { %v2533_v51 = vpack.c.bf16 %v2525_v47, %v2525_v47 }
 0x1d0   : > { %v2446_v34 = vmul.f32 %v4602_v15, %v2389_v8 }
 0x1d1   : > { %2542 = vst.msk [vmem:[%s4608_s24 + $0x18] sm:$0xf] %vm2535_vm1, %v2533_v51 }
 0x1d2   : > { %v2502_v19 = vadd.f32 %v2493_v2, %v2446_v34 }
 0x1d4   : > { %vm2510_vm8 = vcmp.gt.f32.partialorder %v2502_v19, 0.0  ;;  %v2518_v60 = vmul.f32 0.2, %v2502_v19 }
 0x1d6   : > { %v2526_v16 = vsel %vm2510_vm8, %v2502_v19, %v2518_v60 }
 0x1d7   : > { %v2534_v29 = vpack.c.bf16 %v2526_v16, %v2526_v16 }
 0x1d9   : > { %2543 = vst.msk [vmem:[%s4608_s24 + $0x1c] sm:$0xf] %vm2535_vm1, %v2534_v29 }
 0x1da PF: > { %s14_s17 = sadd.s32 1, %s3821_s17   ;;  %s4668_s15 = smov %s3817_s16 }
 0x1db   : > { %p11_p5 = scmp.ge.s32.totalorder %s14_s17, 4   ;;  %s4669_s16 = smov %s4671_s18 }
 0x1dd   :  { %13 = sbr.rel (!%p11_p5) target bundleno = 2 (0x2), region = 75 }

// kernel: d_net128_forward.13
= control target key start
LH: loop header
LB: loop body
LE: loop exit
PB: predicated region body
PF: predicated region fallthrough
CT: control target
= control target key end

     0   :  { %s2445_s0 = inlined_call_operand.vmem [shape: bf16[1,2048], index: 0, kind: input, shape index: {}]   ;;  %s2446_s1 = inlined_call_operand.vmem [shape: bf16[2048,2], index: 1, kind: input, shape index: {}]   ;;  %s2447_s2 = inlined_call_operand.<no memory space> [shape: f32[1,1], index: 2, kind: input, shape index: {}]   ;;  %s2448_s4 = inlined_call_operand.hbm [shape: f32[1,2], index: 4, kind: output, shape index: {}]   ;;  %s2449_s3 = inlined_call_operand.<no memory space> [shape: f32[1,1], index: 3, kind: input, shape index: {}]  }
   0x1   :  { %v9_v0 = vstv %s2447_s2  ;;  %v11_v1 = vstv %s2449_s3 }
   0x2   :  { %10 = vst [vmem:[#allocation2] sm:$0x1] %v9_v0 }
   0x3   :  { %12 = vst [vmem:[#allocation3] sm:$0x1] %v11_v1 }
   0x4   :  { %v1865_v2 = vld [vmem:[%s2446_s1 + $0x38] sm:$0xff]  ;;  %v1864_v6 = vld [vmem:[%s2446_s1 + $0x30] sm:$0xff]  ;;  %v1863_v10 = vld [vmem:[%s2446_s1 + $0x28] sm:$0xff] }
   0x5   :  { %v1873_v3 = vld [vmem:[%s2446_s1 + $0x78] sm:$0xff]  ;;  %1084 = vmatpush.bf16.msra.mxu0 %v1865_v2  ;;  %v1872_v7 = vld [vmem:[%s2446_s1 + $0x70] sm:$0xff]  ;;  %v1871_v11 = vld [vmem:[%s2446_s1 + $0x68] sm:$0xff] }
   0x6   :  { %v1881_v4 = vld [vmem:[%s2446_s1 + $0xb8] sm:$0xff]  ;;  %1097 = vmatpush.bf16.msra.mxu1 %v1873_v3  ;;  %v1880_v8 = vld [vmem:[%s2446_s1 + $0xb0] sm:$0xff]  ;;  %v1879_v12 = vld [vmem:[%s2446_s1 + $0xa8] sm:$0xff] }
   0x7   :  { %v1889_v5 = vld [vmem:[%s2446_s1 + $0xf8] sm:$0xff]  ;;  %1110 = vmatpush.bf16.msra.mxu2 %v1881_v4  ;;  %v1888_v9 = vld [vmem:[%s2446_s1 + $0xf0] sm:$0xff]  ;;  %v1887_v13 = vld [vmem:[%s2446_s1 + $0xe8] sm:$0xff] }
   0x8   :  { %1123 = vmatpush.bf16.msra.mxu3 %v1889_v5  ;;  %v1862_v14 = vld [vmem:[%s2446_s1 + $0x20] sm:$0xff]  ;;  %v1861_v18 = vld [vmem:[%s2446_s1 + $0x18] sm:$0xff]  ;;  %v1860_v23 = vld [vmem:[%s2446_s1 + $0x10] sm:$0xff] }
   0x9   :  { %1085 = vmatpush.bf16.msra.mxu0 %v1864_v6  ;;  %v1870_v15 = vld [vmem:[%s2446_s1 + $0x60] sm:$0xff]  ;;  %v1869_v19 = vld [vmem:[%s2446_s1 + $0x58] sm:$0xff]  ;;  %v1868_v24 = vld [vmem:[%s2446_s1 + $0x50] sm:$0xff] }
   0xa   :  { %1098 = vmatpush.bf16.msra.mxu1 %v1872_v7  ;;  %v1878_v16 = vld [vmem:[%s2446_s1 + $0xa0] sm:$0xff]  ;;  %v1877_v20 = vld [vmem:[%s2446_s1 + $0x98] sm:$0xff] }
   0xb   :  { %1111 = vmatpush.bf16.msra.mxu2 %v1880_v8  ;;  %v1886_v17 = vld [vmem:[%s2446_s1 + $0xe0] sm:$0xff]  ;;  %v1885_v21 = vld [vmem:[%s2446_s1 + $0xd8] sm:$0xff] }
   0xc   :  { %1124 = vmatpush.bf16.msra.mxu3 %v1888_v9  ;;  %v22_v22 = vld [vmem:[%s2445_s0] sm:$0xff] }
   0xd   :  { %1086 = vmatpush.bf16.msra.mxu0 %v1863_v10  ;;  %281 = vst [vmem:[#allocation1] ss:$9 sm:$0xff] %v22_v22 }
   0xe   :  { %1099 = vmatpush.bf16.msra.mxu1 %v1871_v11 }
   0xf   :  { %1112 = vmatpush.bf16.msra.mxu2 %v1879_v12 }
  0x10   :  { %1125 = vmatpush.bf16.msra.mxu3 %v1887_v13 }
  0x11   :  { %1087 = vmatpush.bf16.msra.mxu0 %v1862_v14 }
  0x12   :  { %1100 = vmatpush.bf16.msra.mxu1 %v1870_v15 }
  0x13   :  { %1113 = vmatpush.bf16.msra.mxu2 %v1878_v16 }
  0x14   :  { %1126 = vmatpush.bf16.msra.mxu3 %v1886_v17 }
  0x15   :  { %1088 = vmatpush.bf16.msra.mxu0 %v1861_v18 }
  0x16   :  { %1101 = vmatpush.bf16.msra.mxu1 %v1869_v19 }
  0x17   :  { %13 = vsyncpa [#allocation5], 0  ;;  %1114 = vmatpush.bf16.msra.mxu2 %v1877_v20  ;;  %v1876_v25 = vld [vmem:[%s2446_s1 + $0x90] sm:$0xff]  ;;  %v1859_v27 = vld [vmem:[%s2446_s1 + $0x8] sm:$0xff]  ;;  %s1336_s24 = sshll.u32 %s2448_s4, 4  ;;  %vm1327_vm3 = vcmask 8192   ;;  %s1337_s24 = int_to_ptr.hbm [resolvable:$true] %s1336_s24 }
  0x18   :  { %1127 = vmatpush.bf16.msra.mxu3 %v1885_v21  ;;  %v1884_v26 = vld [vmem:[%s2446_s1 + $0xd0] sm:$0xff]  ;;  %v1867_v28 = vld [vmem:[%s2446_s1 + $0x48] sm:$0xff]  ;;  %v1858_v31 = vld [vmem:[%s2446_s1] sm:$0xff] }
  0x19   :  { %1089 = vmatpush.bf16.msra.mxu0 %v1860_v23  ;;  %v1875_v29 = vld [vmem:[%s2446_s1 + $0x88] sm:$0xff]  ;;  %v1866_v32 = vld [vmem:[%s2446_s1 + $0x40] sm:$0xff]  ;;  %v1897_v35 = vld [vmem:[%s2446_s1 + $0x138] sm:$0xff] }
  0x1a   :  { %1102 = vmatpush.bf16.msra.mxu1 %v1868_v24  ;;  %v1883_v30 = vld [vmem:[%s2446_s1 + $0xc8] sm:$0xff]  ;;  %v1874_v33 = vld [vmem:[%s2446_s1 + $0x80] sm:$0xff]  ;;  %v1905_v36 = vld [vmem:[%s2446_s1 + $0x178] sm:$0xff] }
  0x1b   :  { %1115 = vmatpush.bf16.msra.mxu2 %v1876_v25  ;;  %v1882_v34 = vld [vmem:[%s2446_s1 + $0xc0] sm:$0xff]  ;;  %v1913_v37 = vld [vmem:[%s2446_s1 + $0x1b8] sm:$0xff]  ;;  %v1896_v39 = vld [vmem:[%s2446_s1 + $0x130] sm:$0xff] }
  0x1c   :  { %1128 = vmatpush.bf16.msra.mxu3 %v1884_v26  ;;  %v1921_v38 = vld [vmem:[%s2446_s1 + $0x1f8] sm:$0xff]  ;;  %v282_v41 = vld [vmem:[#allocation1] sm:$0xff]  ;;  %v1904_v42 = vld [vmem:[%s2446_s1 + $0x170] sm:$0xff] }
  0x1d   :  { %1090 = vmatpush.bf16.msra.mxu0 %v1859_v27  ;;  %v284_v40 = vld [vmem:[#allocation1 + $0x12] sm:$0xff]  ;;  %v285_v43 = vld [vmem:[#allocation1 + $0x1b] sm:$0xff]  ;;  %v283_v44 = vld [vmem:[#allocation1 + $0x9] sm:$0xff] }
  0x1e   :  { %1103 = vmatpush.bf16.msra.mxu1 %v1867_v28  ;;  %v1912_v45 = vld [vmem:[%s2446_s1 + $0x1b0] sm:$0xff]  ;;  %v1895_v47 = vld [vmem:[%s2446_s1 + $0x128] sm:$0xff]  ;;  %v289_v53 = vld [vmem:[#allocation1 + $0x3f] sm:$0xff] }
  0x1f   :  { %1116 = vmatpush.bf16.msra.mxu2 %v1875_v29  ;;  %v1920_v46 = vld [vmem:[%s2446_s1 + $0x1f0] sm:$0xff]  ;;  %v1903_v48 = vld [vmem:[%s2446_s1 + $0x168] sm:$0xff]  ;;  %v1894_v56 = vld [vmem:[%s2446_s1 + $0x120] sm:$0xff] }
  0x20   :  { %1129 = vmatpush.bf16.msra.mxu3 %v1883_v30  ;;  %v1911_v49 = vld [vmem:[%s2446_s1 + $0x1a8] sm:$0xff]  ;;  %v288_v51 = vld [vmem:[#allocation1 + $0x36] sm:$0xff]  ;;  %v1902_v57 = vld [vmem:[%s2446_s1 + $0x160] sm:$0xff] }
  0x21   :  { %1091 = vmatpush.bf16.msra.mxu0 %v1858_v31  ;;  %v1919_v50 = vld [vmem:[%s2446_s1 + $0x1e8] sm:$0xff]  ;;  %v1910_v58 = vld [vmem:[%s2446_s1 + $0x1a0] sm:$0xff]  ;;  %v1893_v60 = vld [vmem:[%s2446_s1 + $0x118] sm:$0xff] }
  0x22   :  { %1104 = vmatpush.bf16.msra.mxu1 %v1866_v32  ;;  %v286_v52 = vld [vmem:[#allocation1 + $0x24] sm:$0xff]  ;;  %v287_v55 = vld [vmem:[#allocation1 + $0x2d] sm:$0xff]  ;;  %v1901_v61 = vld [vmem:[%s2446_s1 + $0x158] sm:$0xff] }
  0x23   :  { %1117 = vmatpush.bf16.msra.mxu2 %v1874_v33  ;;  %v23_v54 = vld [vmem:[%s2445_s0 + $0x8] sm:$0xff]  ;;  %v1918_v59 = vld [vmem:[%s2446_s1 + $0x1e0] sm:$0xff]  ;;  %v1909_v62 = vld [vmem:[%s2446_s1 + $0x198] sm:$0xff] }
  0x24   :  { %1130 = vmatpush.bf16.msra.mxu3 %v1882_v34  ;;  %1092 = vmatmul.bf16.vlgmr.msra.gmra.mxu0 %v282_v41  ;;  %291 = vst [vmem:[#allocation1] ss:$9 sm:$0xff] %v23_v54  ;;  %v1917_v63 = vld [vmem:[%s2446_s1 + $0x1d8] sm:$0xff]  ;;  %v1892_v0 = vld [vmem:[%s2446_s1 + $0x110] sm:$0xff]  ;;  %v1891_v4 = vld [vmem:[%s2446_s1 + $0x108] sm:$0xff] }
  0x25   :  { %1136 = vmatpush.bf16.msrb.mxu0 %v1897_v35  ;;  %1105 = vmatmul.bf16.vlgmr.msra.gmra.mxu1 %v283_v44  ;;  %v1900_v1 = vld [vmem:[%s2446_s1 + $0x150] sm:$0xff]  ;;  %v1899_v5 = vld [vmem:[%s2446_s1 + $0x148] sm:$0xff]  ;;  %v1890_v8 = vld [vmem:[%s2446_s1 + $0x100] sm:$0xff] }
  0x26   :  { %1149 = vmatpush.bf16.msrb.mxu1 %v1905_v36  ;;  %1118 = vmatmul.bf16.vlgmr.msra.gmra.mxu2 %v284_v40  ;;  %v1908_v2 = vld [vmem:[%s2446_s1 + $0x190] sm:$0xff]  ;;  %v1907_v6 = vld [vmem:[%s2446_s1 + $0x188] sm:$0xff]  ;;  %v1898_v9 = vld [vmem:[%s2446_s1 + $0x140] sm:$0xff] }
  0x27   :  { %1162 = vmatpush.bf16.msrb.mxu2 %v1913_v37  ;;  %1131 = vmatmul.bf16.vlgmr.msra.gmra.mxu3 %v285_v43  ;;  %v1916_v3 = vld [vmem:[%s2446_s1 + $0x1d0] sm:$0xff]  ;;  %v1915_v7 = vld [vmem:[%s2446_s1 + $0x1c8] sm:$0xff]  ;;  %v1906_v10 = vld [vmem:[%s2446_s1 + $0x180] sm:$0xff] }
  0x28   :  { %1175 = vmatpush.bf16.msrb.mxu3 %v1921_v38  ;;  %v1914_v11 = vld [vmem:[%s2446_s1 + $0x1c0] sm:$0xff]  ;;  %v1929_v12 = vld [vmem:[%s2446_s1 + $0x238] sm:$0xff]  ;;  %v1928_v16 = vld [vmem:[%s2446_s1 + $0x230] sm:$0xff] }
  0x29   :  { %1137 = vmatpush.bf16.msrb.mxu0 %v1896_v39  ;;  %v1937_v13 = vld [vmem:[%s2446_s1 + $0x278] sm:$0xff]  ;;  %v1936_v17 = vld [vmem:[%s2446_s1 + $0x270] sm:$0xff]  ;;  %v1927_v20 = vld [vmem:[%s2446_s1 + $0x228] sm:$0xff] }
  0x2a   :  { %1150 = vmatpush.bf16.msrb.mxu1 %v1904_v42  ;;  %v1945_v14 = vld [vmem:[%s2446_s1 + $0x2b8] sm:$0xff]  ;;  %v1944_v18 = vld [vmem:[%s2446_s1 + $0x2b0] sm:$0xff]  ;;  %v1935_v21 = vld [vmem:[%s2446_s1 + $0x268] sm:$0xff] }
  0x2b   :  { %1163 = vmatpush.bf16.msrb.mxu2 %v1912_v45  ;;  %v1953_v15 = vld [vmem:[%s2446_s1 + $0x2f8] sm:$0xff]  ;;  %v1952_v19 = vld [vmem:[%s2446_s1 + $0x2f0] sm:$0xff]  ;;  %v1943_v22 = vld [vmem:[%s2446_s1 + $0x2a8] sm:$0xff] }
  0x2c   :  { %1176 = vmatpush.bf16.msrb.mxu3 %v1920_v46  ;;  %v1951_v23 = vld [vmem:[%s2446_s1 + $0x2e8] sm:$0xff]  ;;  %v1926_v24 = vld [vmem:[%s2446_s1 + $0x220] sm:$0xff]  ;;  %v1925_v28 = vld [vmem:[%s2446_s1 + $0x218] sm:$0xff] }
  0x2d   :  { %1138 = vmatpush.bf16.msrb.mxu0 %v1895_v47  ;;  %v1934_v25 = vld [vmem:[%s2446_s1 + $0x260] sm:$0xff]  ;;  %v1933_v29 = vld [vmem:[%s2446_s1 + $0x258] sm:$0xff]  ;;  %v1924_v32 = vld [vmem:[%s2446_s1 + $0x210] sm:$0xff] }
  0x2e   :  { %1151 = vmatpush.bf16.msrb.mxu1 %v1903_v48  ;;  %v1942_v26 = vld [vmem:[%s2446_s1 + $0x2a0] sm:$0xff]  ;;  %v1941_v30 = vld [vmem:[%s2446_s1 + $0x298] sm:$0xff]  ;;  %v1932_v33 = vld [vmem:[%s2446_s1 + $0x250] sm:$0xff] }
  0x2f   :  { %1164 = vmatpush.bf16.msrb.mxu2 %v1911_v49  ;;  %v1950_v27 = vld [vmem:[%s2446_s1 + $0x2e0] sm:$0xff]  ;;  %v1949_v31 = vld [vmem:[%s2446_s1 + $0x2d8] sm:$0xff]  ;;  %v1940_v34 = vld [vmem:[%s2446_s1 + $0x290] sm:$0xff] }
  0x30   :  { %1177 = vmatpush.bf16.msrb.mxu3 %v1919_v50  ;;  %v1948_v35 = vld [vmem:[%s2446_s1 + $0x2d0] sm:$0xff]  ;;  %v1923_v36 = vld [vmem:[%s2446_s1 + $0x208] sm:$0xff]  ;;  %v1922_v40 = vld [vmem:[%s2446_s1 + $0x200] sm:$0xff] }
  0x31   :  { %1139 = vmatpush.bf16.msrb.mxu0 %v1894_v56  ;;  %v1931_v37 = vld [vmem:[%s2446_s1 + $0x248] sm:$0xff]  ;;  %v1930_v41 = vld [vmem:[%s2446_s1 + $0x240] sm:$0xff]  ;;  %v1961_v44 = vld [vmem:[%s2446_s1 + $0x338] sm:$0xff] }
  0x32   :  { %1152 = vmatpush.bf16.msrb.mxu1 %v1902_v57  ;;  %v1939_v38 = vld [vmem:[%s2446_s1 + $0x288] sm:$0xff]  ;;  %v1938_v42 = vld [vmem:[%s2446_s1 + $0x280] sm:$0xff]  ;;  %v1969_v45 = vld [vmem:[%s2446_s1 + $0x378] sm:$0xff] }
  0x33   :  { %1165 = vmatpush.bf16.msrb.mxu2 %v1910_v58  ;;  %v1947_v39 = vld [vmem:[%s2446_s1 + $0x2c8] sm:$0xff]  ;;  %v1946_v43 = vld [vmem:[%s2446_s1 + $0x2c0] sm:$0xff]  ;;  %v1977_v46 = vld [vmem:[%s2446_s1 + $0x3b8] sm:$0xff] }
  0x34   :  { %1178 = vmatpush.bf16.msrb.mxu3 %v1918_v59  ;;  %v1985_v47 = vld [vmem:[%s2446_s1 + $0x3f8] sm:$0xff]  ;;  %v292_v48 = vld [vmem:[#allocation1] sm:$0xff]  ;;  %v293_v50 = vld [vmem:[#allocation1 + $0x9] sm:$0xff] }
  0x35   :  { %1140 = vmatpush.bf16.msrb.mxu0 %v1893_v60  ;;  %v294_v49 = vld [vmem:[#allocation1 + $0x12] sm:$0xff]  ;;  %v1959_v56 = vld [vmem:[%s2446_s1 + $0x328] sm:$0xff] }
  0x36   :  { %1153 = vmatpush.bf16.msrb.mxu1 %v1901_v61  ;;  %v1976_v54 = vld [vmem:[%s2446_s1 + $0x3b0] sm:$0xff]  ;;  %v1967_v57 = vld [vmem:[%s2446_s1 + $0x368] sm:$0xff]  ;;  %v2019_v61 = vmov 0  }
  0x37   :  { %1166 = vmatpush.bf16.msrb.mxu2 %v1909_v62  ;;  %v1292_v58 = vld [vmem:[#allocation2] sm:$0x1]  ;;  %1988 = vset.pattern.permute.xlu0 %v2019_v61  ;;  %v1958_v62 = vld [vmem:[%s2446_s1 + $0x320] sm:$0xff] }
  0x38   :  { %1179 = vmatpush.bf16.msrb.mxu3 %v1917_v63  ;;  %v1975_v59 = vld [vmem:[%s2446_s1 + $0x3a8] sm:$0xff]  ;;  %1295 = vperm.xlu0 %1988, %v1292_v58   ;;  %v1966_v63 = vld [vmem:[%s2446_s1 + $0x360] sm:$0xff] }
  0x39   :  { %1141 = vmatpush.bf16.msrb.mxu0 %v1892_v0  ;;  %v1983_v60 = vld [vmem:[%s2446_s1 + $0x3e8] sm:$0xff]  ;;  %v1974_v0 = vld [vmem:[%s2446_s1 + $0x3a0] sm:$0xff] }
  0x3a   :  { %1154 = vmatpush.bf16.msrb.mxu1 %v1900_v1  ;;  %v1982_v1 = vld [vmem:[%s2446_s1 + $0x3e0] sm:$0xff] }
  0x3b   :  { %1167 = vmatpush.bf16.msrb.mxu2 %v1908_v2  ;;  %v1957_v2 = vld [vmem:[%s2446_s1 + $0x318] sm:$0xff] }
  0x3c   :  { %1180 = vmatpush.bf16.msrb.mxu3 %v1916_v3  ;;  %v1965_v3 = vld [vmem:[%s2446_s1 + $0x358] sm:$0xff] }
  0x3d   :  { %1142 = vmatpush.bf16.msrb.mxu0 %v1891_v4  ;;  %v1300_v4 = vld [vmem:[#allocation3] sm:$0x1] }
  0x3e   :  { %1155 = vmatpush.bf16.msrb.mxu1 %v1899_v5  ;;  %v1973_v5 = vld [vmem:[%s2446_s1 + $0x398] sm:$0xff] }
  0x3f   :  { %1168 = vmatpush.bf16.msrb.mxu2 %v1907_v6  ;;  %v1981_v6 = vld [vmem:[%s2446_s1 + $0x3d8] sm:$0xff] }
  0x40   :  { %1181 = vmatpush.bf16.msrb.mxu3 %v1915_v7  ;;  %1303 = vperm.xlu0 %1988, %v1300_v4   ;;  %v1956_v7 = vld [vmem:[%s2446_s1 + $0x310] sm:$0xff] }
  0x41   :  { %1143 = vmatpush.bf16.msrb.mxu0 %v1890_v8  ;;  %v1964_v8 = vld [vmem:[%s2446_s1 + $0x350] sm:$0xff] }
  0x42   :  { %1156 = vmatpush.bf16.msrb.mxu1 %v1898_v9  ;;  %v1972_v9 = vld [vmem:[%s2446_s1 + $0x390] sm:$0xff] }
  0x43   :  { %1169 = vmatpush.bf16.msrb.mxu2 %v1906_v10  ;;  %v1980_v10 = vld [vmem:[%s2446_s1 + $0x3d0] sm:$0xff] }
  0x44   :  { %1182 = vmatpush.bf16.msrb.mxu3 %v1914_v11  ;;  %1144 = vmatmul.bf16.vlgmr.msrb.gmra.mxu0 %v286_v52  ;;  %v1960_v52 = vld [vmem:[%s2446_s1 + $0x330] sm:$0xff]  ;;  %v1955_v11 = vld [vmem:[%s2446_s1 + $0x308] sm:$0xff] }
  0x45   :  { %1188 = vmatpush.bf16.msra.mxu0 %v1929_v12  ;;  %1157 = vmatmul.bf16.vlgmr.msrb.gmra.mxu1 %v287_v55  ;;  %v1984_v55 = vld [vmem:[%s2446_s1 + $0x3f0] sm:$0xff]  ;;  %v1963_v12 = vld [vmem:[%s2446_s1 + $0x348] sm:$0xff] }
  0x46   :  { %1201 = vmatpush.bf16.msra.mxu1 %v1937_v13  ;;  %1170 = vmatmul.bf16.vlgmr.msrb.gmra.mxu2 %v288_v51  ;;  %v295_v51 = vld [vmem:[#allocation1 + $0x1b] sm:$0xff]  ;;  %v1971_v13 = vld [vmem:[%s2446_s1 + $0x388] sm:$0xff] }
  0x47   :  { %1214 = vmatpush.bf16.msra.mxu2 %v1945_v14  ;;  %1183 = vmatmul.bf16.vlgmr.msrb.gmra.mxu3 %v289_v53  ;;  %v1968_v53 = vld [vmem:[%s2446_s1 + $0x370] sm:$0xff]  ;;  %v1979_v14 = vld [vmem:[%s2446_s1 + $0x3c8] sm:$0xff] }
  0x48   :  { %1227 = vmatpush.bf16.msra.mxu3 %v1953_v15  ;;  %v1954_v15 = vld [vmem:[%s2446_s1 + $0x300] sm:$0xff] }
  0x49   :  { %1189 = vmatpush.bf16.msra.mxu0 %v1928_v16  ;;  %v1962_v16 = vld [vmem:[%s2446_s1 + $0x340] sm:$0xff] }
  0x4a   :  { %1202 = vmatpush.bf16.msra.mxu1 %v1936_v17  ;;  %v1970_v17 = vld [vmem:[%s2446_s1 + $0x380] sm:$0xff] }
  0x4b   :  { %1215 = vmatpush.bf16.msra.mxu2 %v1944_v18  ;;  %v1978_v18 = vld [vmem:[%s2446_s1 + $0x3c0] sm:$0xff]  ;;  %s2020_s1 = smov [#allocation4]  }
  0x4c   :  { %1228 = vmatpush.bf16.msra.mxu3 %v1952_v19  ;;  %v296_v19 = vld [vmem:[#allocation1 + $0x24] sm:$0xff]  ;;  %s1334_s21 = sshll.u32 %s2020_s1, 4  ;;  %s1335_s21 = int_to_ptr.vmem [resolvable:$true] %s1334_s21 }
  0x4d   :  { %1190 = vmatpush.bf16.msra.mxu0 %v1927_v20  ;;  %v297_v20 = vld [vmem:[#allocation1 + $0x2d] sm:$0xff] }
  0x4e   :  { %1203 = vmatpush.bf16.msra.mxu1 %v1935_v21  ;;  %v298_v21 = vld [vmem:[#allocation1 + $0x36] sm:$0xff] }
  0x4f   :  { %1216 = vmatpush.bf16.msra.mxu2 %v1943_v22  ;;  %v299_v22 = vld [vmem:[#allocation1 + $0x3f] sm:$0xff] }
  0x50   :  { %1229 = vmatpush.bf16.msra.mxu3 %v1951_v23 }
  0x51   :  { %1191 = vmatpush.bf16.msra.mxu0 %v1926_v24 }
  0x52   :  { %1204 = vmatpush.bf16.msra.mxu1 %v1934_v25 }
  0x53   :  { %1217 = vmatpush.bf16.msra.mxu2 %v1942_v26 }
  0x54   :  { %1230 = vmatpush.bf16.msra.mxu3 %v1950_v27 }
  0x55   :  { %1192 = vmatpush.bf16.msra.mxu0 %v1925_v28 }
  0x56   :  { %1205 = vmatpush.bf16.msra.mxu1 %v1933_v29 }
  0x57   :  { %1218 = vmatpush.bf16.msra.mxu2 %v1941_v30 }
  0x58   :  { %1231 = vmatpush.bf16.msra.mxu3 %v1949_v31 }
  0x59   :  { %1193 = vmatpush.bf16.msra.mxu0 %v1924_v32 }
  0x5a   :  { %1206 = vmatpush.bf16.msra.mxu1 %v1932_v33 }
  0x5b   :  { %1219 = vmatpush.bf16.msra.mxu2 %v1940_v34 }
  0x5c   :  { %1232 = vmatpush.bf16.msra.mxu3 %v1948_v35 }
  0x5d   :  { %1194 = vmatpush.bf16.msra.mxu0 %v1923_v36 }
  0x5e   :  { %1207 = vmatpush.bf16.msra.mxu1 %v1931_v37 }
  0x5f   :  { %1220 = vmatpush.bf16.msra.mxu2 %v1939_v38 }
  0x60   :  { %1233 = vmatpush.bf16.msra.mxu3 %v1947_v39 }
  0x61   :  { %1195 = vmatpush.bf16.msra.mxu0 %v1922_v40 }
  0x62   :  { %1208 = vmatpush.bf16.msra.mxu1 %v1930_v41 }
  0x63   :  { %1221 = vmatpush.bf16.msra.mxu2 %v1938_v42 }
  0x64   :  { %1234 = vmatpush.bf16.msra.mxu3 %v1946_v43  ;;  %1196 = vmatmul.bf16.vlgmr.msra.gmra.mxu0 %v292_v48 }
  0x65   :  { %1240 = vmatpush.bf16.msrb.mxu0 %v1961_v44  ;;  %1209 = vmatmul.bf16.vlgmr.msra.gmra.mxu1 %v293_v50 }
  0x66   :  { %1253 = vmatpush.bf16.msrb.mxu1 %v1969_v45  ;;  %1222 = vmatmul.bf16.vlgmr.msra.gmra.mxu2 %v294_v49 }
  0x67   :  { %1266 = vmatpush.bf16.msrb.mxu2 %v1977_v46  ;;  %1235 = vmatmul.bf16.vlgmr.msra.gmra.mxu3 %v295_v51 }
  0x68   :  { %1279 = vmatpush.bf16.msrb.mxu3 %v1985_v47 }
  0x69   :  { %1241 = vmatpush.bf16.msrb.mxu0 %v1960_v52 }
  0x6a   :  { %1254 = vmatpush.bf16.msrb.mxu1 %v1968_v53 }
  0x6b   :  { %1267 = vmatpush.bf16.msrb.mxu2 %v1976_v54 }
  0x6c   :  { %1280 = vmatpush.bf16.msrb.mxu3 %v1984_v55 }
  0x6d   :  { %1242 = vmatpush.bf16.msrb.mxu0 %v1959_v56 }
  0x6e   :  { %1255 = vmatpush.bf16.msrb.mxu1 %v1967_v57 }
  0x6f   :  { %1268 = vmatpush.bf16.msrb.mxu2 %v1975_v59 }
  0x70   :  { %1281 = vmatpush.bf16.msrb.mxu3 %v1983_v60 }
  0x71   :  { %1243 = vmatpush.bf16.msrb.mxu0 %v1958_v62 }
  0x72   :  { %1256 = vmatpush.bf16.msrb.mxu1 %v1966_v63 }
  0x73   :  { %1269 = vmatpush.bf16.msrb.mxu2 %v1974_v0 }
  0x74   :  { %1282 = vmatpush.bf16.msrb.mxu3 %v1982_v1 }
  0x75   :  { %1244 = vmatpush.bf16.msrb.mxu0 %v1957_v2 }
  0x76   :  { %1257 = vmatpush.bf16.msrb.mxu1 %v1965_v3 }
  0x77   :  { %1270 = vmatpush.bf16.msrb.mxu2 %v1973_v5 }
  0x78   :  { %1283 = vmatpush.bf16.msrb.mxu3 %v1981_v6 }
  0x79   :  { %1245 = vmatpush.bf16.msrb.mxu0 %v1956_v7 }
  0x7a   :  { %1258 = vmatpush.bf16.msrb.mxu1 %v1964_v8 }
  0x7b   :  { %1271 = vmatpush.bf16.msrb.mxu2 %v1972_v9 }
  0x7c   :  { %1284 = vmatpush.bf16.msrb.mxu3 %v1980_v10 }
  0x7d   :  { %1246 = vmatpush.bf16.msrb.mxu0 %v1955_v11 }
  0x7e   :  { %1259 = vmatpush.bf16.msrb.mxu1 %v1963_v12 }
  0x7f   :  { %1272 = vmatpush.bf16.msrb.mxu2 %v1971_v13 }
  0x80   :  { %1285 = vmatpush.bf16.msrb.mxu3 %v1979_v14 }
  0x81   :  { %1247 = vmatpush.bf16.msrb.mxu0 %v1954_v15 }
  0x82   :  { %1260 = vmatpush.bf16.msrb.mxu1 %v1962_v16 }
  0x83   :  { %1273 = vmatpush.bf16.msrb.mxu2 %v1970_v17 }
  0x84   :  { %1286 = vmatpush.bf16.msrb.mxu3 %v1978_v18  ;;  %1248 = vmatmul.bf16.vlgmr.msrb.gmra.mxu0 %v296_v19 }
  0x85   :  { %1261 = vmatmul.bf16.vlgmr.msrb.gmra.mxu1 %v297_v20 }
  0x86   :  { %1274 = vmatmul.bf16.vlgmr.msrb.gmra.mxu2 %v298_v21 }
  0x87   :  { %1287 = vmatmul.bf16.vlgmr.msrb.gmra.mxu3 %v299_v22 }
  0xa1   :  { %v1093_v23 = vpop.f32.mrf.mxu0 }
  0xa2   :  { %v1106_v24 = vpop.f32.mrf.mxu1 }
  0xa3   :  { %v1107_v25 = vadd.f32 %v1106_v24, %v1093_v23 }
  0xa9   :  { %v1119_v26 = vpop.f32.mrf.mxu2  ;;  %v1095_v29 = vpop.f32.mrf.mxu0 }
  0xaa   :  { %v1120_v27 = vadd.f32 %v1119_v26, %v1107_v25  ;;  %v1132_v28 = vpop.f32.mrf.mxu3  ;;  %v1108_v31 = vpop.f32.mrf.mxu1 }
  0xab   :  { %v1296_v57 = vpop.permute.xlu0 %1295 }
  0xac   :  { %v1133_v30 = vadd.f32 %v1132_v28, %v1120_v27  ;;  %v1298_v5 = vperm.slane %v1296_v57, 0 }
  0xb1   :  { %v1121_v32 = vpop.f32.mrf.mxu2 }
  0xb2   :  { %v1134_v33 = vpop.f32.mrf.mxu3 }
  0xb3   :  { %v1304_v4 = vpop.permute.xlu0 %1303 }
  0xb4   :  { %v1306_v7 = vperm.slane %v1304_v4, 0 }
  0xc1   :  { %v1145_v34 = vpop.f32.mrf.mxu0 }
  0xc2   :  { %v1158_v35 = vpop.f32.mrf.mxu1  ;;  %v1146_v44 = vadd.f32 %v1145_v34, %v1133_v30 }
  0xc4   :  { %v1159_v48 = vadd.f32 %v1158_v35, %v1146_v44 }
  0xc9   :  { %v1171_v36 = vpop.f32.mrf.mxu2  ;;  %v1147_v38 = vpop.f32.mrf.mxu0 }
  0xca   :  { %v1184_v37 = vpop.f32.mrf.mxu3  ;;  %v1160_v39 = vpop.f32.mrf.mxu1  ;;  %v1172_v50 = vadd.f32 %v1171_v36, %v1159_v48 }
  0xcc   :  { %v1185_v53 = vadd.f32 %v1184_v37, %v1172_v50 }
  0xd1   :  { %v1173_v40 = vpop.f32.mrf.mxu2 }
  0xd2   :  { %v1186_v41 = vpop.f32.mrf.mxu3 }
  0xe1   :  { %v1197_v42 = vpop.f32.mrf.mxu0 }
  0xe2   :  { %v1210_v43 = vpop.f32.mrf.mxu1  ;;  %v1198_v54 = vadd.f32 %v1197_v42, %v1185_v53 }
  0xe4   :  { %v1211_v55 = vadd.f32 %v1210_v43, %v1198_v54 }
  0xe9   :  { %v1223_v45 = vpop.f32.mrf.mxu2  ;;  %v1199_v47 = vpop.f32.mrf.mxu0 }
  0xea   :  { %v1236_v46 = vpop.f32.mrf.mxu3  ;;  %v1212_v49 = vpop.f32.mrf.mxu1  ;;  %v1224_v56 = vadd.f32 %v1223_v45, %v1211_v55 }
  0xec   :  { %v1237_v58 = vadd.f32 %v1236_v46, %v1224_v56 }
  0xf1   :  { %v1225_v51 = vpop.f32.mrf.mxu2 }
  0xf2   :  { %v1238_v52 = vpop.f32.mrf.mxu3 }
 0x101   :  { %v1249_v59 = vpop.f32.mrf.mxu0 }
 0x102   :  { %v1262_v60 = vpop.f32.mrf.mxu1  ;;  %v1250_v61 = vadd.f32 %v1249_v59, %v1237_v58 }
 0x104   :  { %v1263_v62 = vadd.f32 %v1262_v60, %v1250_v61 }
 0x109   :  { %v1275_v63 = vpop.f32.mrf.mxu2  ;;  %v1251_v2 = vpop.f32.mrf.mxu0 }
 0x10a   :  { %v1288_v0 = vpop.f32.mrf.mxu3  ;;  %v1276_v1 = vadd.f32 %v1275_v63, %v1263_v62  ;;  %v1264_v3 = vpop.f32.mrf.mxu1 }
 0x10c   :  { %v1289_v6 = vadd.f32 %v1288_v0, %v1276_v1 }
 0x10e   :  { %v1299_v8 = vmul.f32 %v1298_v5, %v1289_v6 }
 0x110   :  { %v1307_v9 = vadd.f32 %v1306_v7, %v1299_v8 }
 0x111   :  { %v1277_v10 = vpop.f32.mrf.mxu2 }
 0x112   :  { %v1290_v11 = vpop.f32.mrf.mxu3  ;;  %v1857_v12 = vmul.f32 -1.442695, %v1307_v9 }
 0x114   :  { %1989 = vpow2.f32 %v1857_v12 }
 0x11a   :  { %v1990_v13 = vpop.eup %1989 }
 0x11b   :  { %v1311_v14 = vadd.f32 1.0, %v1990_v13 }
 0x11d   :  { %1991 = vrcp.f32 %v1311_v14  ;;  %v1323_v18 = vand.u32 2147483648, %v1311_v14  ;;  %v1321_v20 = vand.u32 2147483647, %v1311_v14  ;;  %vm1317_vm1 = vweird.f32 %v1311_v14 }
 0x11f   :  { %v1324_v22 = vor.u32 1.1754944e-38, %v1323_v18  ;;  %vm1322_vm4 = vcmp.eq.f32.partialorder %v1321_v20, 8.507059e+37 }
 0x123   :  { %v1992_v15 = vpop.eup %1991 }
 0x124   :  { %v1313_v16 = vmul.f32 %v1992_v15, %v1311_v14  ;;  %vm1318_vm0 = vweird.f32 %v1992_v15 }
 0x125   :  { %vm1319_vm2 = vmor %vm1317_vm1, %vm1318_vm0 }
 0x126   :  { %v1314_v17 = vsub.f32 1.0, %v1313_v16 }
 0x128   :  { %v1315_v19 = vmul.f32 %v1992_v15, %v1314_v17 }
 0x12a   :  { %v1316_v21 = vadd.f32 %v1992_v15, %v1315_v19 }
 0x12c   :  { %v1320_v23 = vsel %vm1319_vm2, %v1992_v15, %v1316_v21 }
 0x12d   :  { %v1325_v24 = vsel %vm1322_vm4, %v1324_v22, %v1320_v23 }
 0x12e   :  { %1328 = vst.msk [vmem:[#allocation4] sm:$0x1] %vm1327_vm3, %v1325_v24 }
 0x12f   :  { %1339 = dma.vmem_to_hbm [thread:$0]  %s1335_s21, 16, %s1337_s24, [#allocation5]  }
 0x130   :  { %2017 = dma.done.wait [#allocation5], 16  }
 0x131   :  { %2018 = vsyncadd [#allocation5], 4294967280 }
 0x132   :  { %1344 = vsyncpa [#allocation5], 1 }

</bundles_post_ra>
